<compile_context>
chip_gen: v6e
topology: v6e:2x2x1
jax: 0.10.0
libtpu: 0.0.40
codegen_flags: <defaults>
</compile_context>

<pallas_src>
import functools

import jax
import jax.numpy as jnp
from jax.experimental import pallas as pl
from jax.experimental.pallas import tpu as pltpu

VTH = 0.2          # LIF firing threshold (FSVAE default)
TAU = 0.25         # LIF membrane decay (FSVAE default)
MEM_DECAY = 0.8    # MembraneOutputLayer coefficient base
N_STEPS = 16
LATENT_DIM = 128
K_POST = 20
HIDDEN_DIMS = [32, 64, 128, 256]
BN_EPS = 1e-5


# ----------------------------------------------------------------------------------
# Generation-aware VMEM budget
# ----------------------------------------------------------------------------------
def _vmem_capacity_bytes():
    try:
        info = pltpu.get_tpu_info()
        for name in ("vmem_capacity_bytes", "vmem_bytes", "vmem_size_bytes"):
            v = getattr(info, name, None)
            if v:
                return int(v)
    except Exception:
        pass
    return 64 * 1024 * 1024  # conservative default (v7x per-TensorCore)


_VMEM_CAP = _vmem_capacity_bytes()
# ~48 MiB on v7x (64 MiB/TC), 96 MiB on v5e/v6e (128 MiB).
_VMEM_LIMIT = min((_VMEM_CAP * 3) // 4, 96 * 1024 * 1024)


def _round_up(x, m):
    return -(-x // m) * m


def _pick_tile_r(R, T, Cin, Cout):
    """Rows per grid step: biggest tile that fits the VMEM budget (lane-padded
    estimate), multiples of 128 when large, >=2 grid steps when R allows."""
    budget = int(_VMEM_LIMIT * 0.5)
    cin_p, cout_p = _round_up(Cin, 128), _round_up(Cout, 128)
    fixed = 2 * cin_p * cout_p * 2                      # double-buffered bf16 weight
    # 2x dbl-buffered bf16 input + 2x bf16 output + f32 y buffer (+slack), per row.
    per_row = T * (3 * cin_p * 2 + 2 * cout_p * 2 + 2 * cout_p * 4) + 8 * cout_p
    t = max(16, (budget - fixed) // per_row)
    t = (t // 128) * 128 if t >= 128 else (t // 16) * 16
    t = max(16, min(t, 1024))
    if R >= 32:                                          # keep >=2 steps (v7x megacore)
        t = min(t, _round_up(-(-R // 2), 16))
    t = min(t, _round_up(R, 16))
    n = -(-R // t)
    return max(16, _round_up(-(-R // n), 16))            # rebalance -> minimal padding


# ----------------------------------------------------------------------------------
# Fused Pallas kernel: ONE batched (T*tile_r, Cin)x(Cin, Cout) bf16 matmul on the MXU
# (f32 accumulate, BN scale pre-folded into weights), "+shift" applied once, then the
# LIF time recurrence (mode "lif") or membrane decay-sum + tanh (mode "membrane").
# ----------------------------------------------------------------------------------
def _fused_td_kernel(T, mode, x_ref, w_ref, shift_ref, o_ref):
    tile_r, cin = x_ref.shape[1], x_ref.shape[2]
    cout = w_ref.shape[1]
    x2d = x_ref[...].reshape(T * tile_r, cin)            # merge leading dims (tile-aligned)
    y = jnp.dot(x2d, w_ref[...], preferred_element_type=jnp.float32) + shift_ref[...]
    if mode == "lif":
        u = jnp.zeros((tile_r, cout), jnp.float32)
        o_prev = jnp.zeros((tile_r, cout), jnp.float32)
        for t in range(T):
            u = TAU * u * (1.0 - o_prev) + y[t * tile_r:(t + 1) * tile_r]
            o = (u > VTH).astype(jnp.float32)
            o_ref[t, :, :] = o.astype(o_ref.dtype)
            o_prev = o
    else:  # "membrane": decay-weighted sum over time + tanh
        acc = jnp.zeros((tile_r, cout), jnp.float32)
        for t in range(T):
            acc = acc + (MEM_DECAY ** (T - 1 - t)) * y[t * tile_r:(t + 1) * tile_r]
        o_ref[...] = jnp.tanh(acc)


def td_matmul_lif(x, w, shift, mode="lif"):
    """x: (T, R, Cin); w: (Cin, Cout) bf16 with BN scale folded in; shift: (1, Cout) f32.
    Returns (T, R, Cout) bf16 spikes (lif) or (R, Cout) f32 tanh(membrane sum)."""
    T, R, Cin = x.shape
    Cout = w.shape[1]
    tile_r = _pick_tile_r(R, T, Cin, Cout)
    n_tiles = -(-R // tile_r)
    Rp = n_tiles * tile_r
    if Rp != R:
        x = jnp.pad(x, ((0, 0), (0, Rp - R), (0, 0)))
    if mode == "membrane":
        out_shape = jax.ShapeDtypeStruct((Rp, Cout), jnp.float32)
        out_spec = pl.BlockSpec((tile_r, Cout), lambda i: (i, 0))
    else:
        out_shape = jax.ShapeDtypeStruct((T, Rp, Cout), jnp.bfloat16)
        out_spec = pl.BlockSpec((T, tile_r, Cout), lambda i: (0, i, 0))
    out = pl.pallas_call(
        functools.partial(_fused_td_kernel, T, mode),
        out_shape=out_shape,
        grid_spec=pltpu.PrefetchScalarGridSpec(
            num_scalar_prefetch=0,
            grid=(n_tiles,),
            in_specs=[
                pl.BlockSpec((T, tile_r, Cin), lambda i: (0, i, 0)),
                pl.BlockSpec((Cin, Cout), lambda i: (0, 0)),
                pl.BlockSpec((1, Cout), lambda i: (0, 0)),
            ],
            out_specs=out_spec,
        ),
        compiler_params=pltpu.CompilerParams(
            dimension_semantics=("parallel",),
            vmem_limit_bytes=_VMEM_LIMIT,
        ),
    )(x.astype(jnp.bfloat16), w.astype(jnp.bfloat16), shift.astype(jnp.float32))
    if mode == "membrane":
        return out[:R]
    return out[:, :R]


# ----------------------------------------------------------------------------------
# Fused 3-layer tdLinear+LIF MLP (posterior / prior): one pallas_call, intermediates
# kept in VMEM scratch (this path is launch/latency bound: R == batch == 2).
# ----------------------------------------------------------------------------------
def _mlp3_lif_kernel(T, R, x_ref, w1_ref, w2_ref, w3_ref, s1_ref, s2_ref, s3_ref,
                     o_ref, h1_ref, h2_ref):
    def lif_layer(x2d, w_ref, s_ref, out_ref):
        cout = w_ref.shape[1]
        y = jnp.dot(x2d, w_ref[...], preferred_element_type=jnp.float32) + s_ref[...]
        u = jnp.zeros((R, cout), jnp.float32)
        o_prev = jnp.zeros((R, cout), jnp.float32)
        for t in range(T):
            u = TAU * u * (1.0 - o_prev) + y[t * R:(t + 1) * R]
            o = (u > VTH).astype(jnp.float32)
            out_ref[t * R:(t + 1) * R, :] = o.astype(out_ref.dtype)
            o_prev = o

    lif_layer(x_ref[...], w1_ref, s1_ref, h1_ref)
    lif_layer(h1_ref[...], w2_ref, s2_ref, h2_ref)
    lif_layer(h2_ref[...], w3_ref, s3_ref, o_ref)


def run_mlp3_lif(x_btc, folded):
    """x_btc: (B, T, Cin); folded: [(w1, s1), (w2, s2), (w3, s3)] bf16/f32.
    Returns (B, T, Cout3) bf16 spikes."""
    B, T, Cin = x_btc.shape
    Rp = _round_up(B, 16)
    x = jnp.transpose(x_btc, (1, 0, 2)).astype(jnp.bfloat16)       # (T, B, Cin)
    if Rp != B:
        x = jnp.pad(x, ((0, 0), (0, Rp - B), (0, 0)))
    x = x.reshape(T * Rp, Cin)
    (w1, s1), (w2, s2), (w3, s3) = folded
    Cout = w3.shape[1]
    out = pl.pallas_call(
        functools.partial(_mlp3_lif_kernel, T, Rp),
        out_shape=jax.ShapeDtypeStruct((T * Rp, Cout), jnp.bfloat16),
        grid_spec=pltpu.PrefetchScalarGridSpec(
            num_scalar_prefetch=0,
            grid=(1,),
            in_specs=[pl.BlockSpec((T * Rp, Cin), lambda i: (0, 0))]
                     + [pl.BlockSpec(w.shape, lambda i: (0, 0)) for w in (w1, w2, w3)]
                     + [pl.BlockSpec(s.shape, lambda i: (0, 0)) for s in (s1, s2, s3)],
            out_specs=pl.BlockSpec((T * Rp, Cout), lambda i: (0, 0)),
            scratch_shapes=[
                pltpu.VMEM((T * Rp, w1.shape[1]), jnp.bfloat16),
                pltpu.VMEM((T * Rp, w2.shape[1]), jnp.bfloat16),
            ],
        ),
        compiler_params=pltpu.CompilerParams(
            dimension_semantics=("arbitrary",),
            vmem_limit_bytes=_VMEM_LIMIT,
        ),
    )(x, w1, w2, w3, s1, s2, s3)
    out = out.reshape(T, Rp, Cout)[:, :B, :]
    return jnp.transpose(out, (1, 0, 2))                            # (B, T, Cout)


# ----------------------------------------------------------------------------------
# Glue: im2col for conv / transposed conv (bf16), BN folding, layer runners
# ----------------------------------------------------------------------------------
def _im2col(x, k, stride, pad_lo, pad_hi):
    N, H, W, C = x.shape
    xp = jnp.pad(x, ((0, 0), (pad_lo, pad_hi), (pad_lo, pad_hi), (0, 0)))
    Hp, Wp = H + pad_lo + pad_hi, W + pad_lo + pad_hi
    Ho = (Hp - k) // stride + 1
    Wo = (Wp - k) // stride + 1
    cols = []
    for di in range(k):
        for dj in range(k):
            cols.append(xp[:, di:di + stride * (Ho - 1) + 1:stride,
                           dj:dj + stride * (Wo - 1) + 1:stride, :])
    return jnp.concatenate(cols, axis=-1), Ho, Wo


def _patches_to_rows(patches, B, T, Ho, Wo):
    """(B*T, Ho, Wo, F) -> (T, B*Ho*Wo, F): time-leading so the kernel sees
    contiguous per-timestep (tile_r, F) slabs (lane/sublane-dense loads/stores)."""
    F = patches.shape[-1]
    p = patches.reshape(B, T, Ho, Wo, F).transpose(1, 0, 2, 3, 4)
    return p.reshape(T, B * Ho * Wo, F)


def _dilate2d(x, s):
    if s == 1:
        return x
    N, H, W, C = x.shape
    out = jnp.zeros((N, (H - 1) * s + 1, (W - 1) * s + 1, C), x.dtype)
    return out.at[:, ::s, ::s, :].set(x)


def _fold_mat(wm, p):
    """Fold the eval-mode BN scale into weight columns; keep only '+shift' for kernel."""
    scale = p["bn_scale"].astype(jnp.float32)
    shift = (scale * p["b"] + p["bn_shift"]).astype(jnp.float32)
    wf = (wm.astype(jnp.float32) * scale[None, :]).astype(jnp.bfloat16)
    return wf, shift.reshape(1, -1)


def _fold_linear(p):
    return _fold_mat(p["w"], p)


def run_td_linear(x_btc, p):
    wf, sf = _fold_linear(p)
    out = td_matmul_lif(jnp.transpose(x_btc, (1, 0, 2)), wf, sf, mode="lif")
    return jnp.transpose(out, (1, 0, 2))                            # (B, T, Cout)


def run_td_conv(x, p, stride, pad, mode="lif"):
    # x: (B,T,H,W,Cin) bf16 spikes; p['w']: (Cout,Cin,k,k) (PyTorch Conv layout)
    B, T, H, W, Cin = x.shape
    Cout, _, k, _ = p["w"].shape
    patches, Ho, Wo = _im2col(x.reshape(B * T, H, W, Cin).astype(jnp.bfloat16),
                              k, stride, pad, pad)
    rows = _patches_to_rows(patches, B, T, Ho, Wo)
    wm = jnp.transpose(p["w"], (2, 3, 1, 0)).reshape(k * k * Cin, Cout)
    wf, sf = _fold_mat(wm, p)
    out = td_matmul_lif(rows, wf, sf, mode=mode)
    if mode == "membrane":
        return out.reshape(B, Ho, Wo, Cout)
    return out.reshape(T, B, Ho, Wo, Cout).transpose(1, 0, 2, 3, 4)


def run_td_convT(x, p, stride, pad, out_pad, mode="lif"):
    # x: (B,T,H,W,Cin) bf16 spikes; p['w']: (Cin,Cout,k,k) (PyTorch ConvTranspose layout)
    B, T, H, W, Cin = x.shape
    _, Cout, k, _ = p["w"].shape
    xd = _dilate2d(x.reshape(B * T, H, W, Cin).astype(jnp.bfloat16), stride)
    plo, phi = k - 1 - pad, k - 1 - pad + out_pad
    patches, Ho, Wo = _im2col(xd, k, 1, plo, phi)
    rows = _patches_to_rows(patches, B, T, Ho, Wo)
    w_eff = jnp.transpose(jnp.flip(p["w"], axis=(2, 3)), (1, 0, 2, 3))   # (Cout,Cin,k,k)
    wm = jnp.transpose(w_eff, (2, 3, 1, 0)).reshape(k * k * Cin, Cout)
    wf, sf = _fold_mat(wm, p)
    if mode == "membrane" and Cout < 128:
        # pad to a full 128-lane output tile (zero weight columns); slice real channels after
        wf = jnp.pad(wf, ((0, 0), (0, 128 - Cout)))
        sf = jnp.pad(sf, ((0, 0), (0, 128 - Cout)))
    out = td_matmul_lif(rows, wf, sf, mode=mode)
    if mode == "membrane":
        return out[:, :Cout].reshape(B, Ho, Wo, Cout)
    return out.reshape(T, B, Ho, Wo, Cout).transpose(1, 0, 2, 3, 4)


# ----------------------------------------------------------------------------------
# Parameter init (eval-mode BN running stats)
# ----------------------------------------------------------------------------------
def _init_bn(cout, alpha):
    gamma = jnp.ones((cout,), jnp.float32)
    beta = jnp.zeros((cout,), jnp.float32)
    rm = jnp.zeros((cout,), jnp.float32)
    rv = jnp.ones((cout,), jnp.float32)
    bn_scale = alpha * VTH * gamma / jnp.sqrt(rv + BN_EPS)
    return bn_scale, beta - bn_scale * rm


def _affine_or_identity(cout, bn, alpha):
    if bn:
        return _init_bn(cout, alpha)
    return jnp.ones((cout,), jnp.float32), jnp.zeros((cout,), jnp.float32)


def init_linear(key, cin, cout, bn=True, alpha=1.0):
    w = jax.random.normal(key, (cin, cout), jnp.float32) / jnp.sqrt(cin)
    s, sh = _affine_or_identity(cout, bn, alpha)
    return {"w": w, "b": jnp.zeros((cout,), jnp.float32), "bn_scale": s, "bn_shift": sh}


def init_conv(key, cin, cout, k=3, bn=True, alpha=1.0):
    w = jax.random.normal(key, (cout, cin, k, k), jnp.float32) / jnp.sqrt(cin * k * k)
    s, sh = _affine_or_identity(cout, bn, alpha)
    return {"w": w, "b": jnp.zeros((cout,), jnp.float32), "bn_scale": s, "bn_shift": sh}


def init_convT(key, cin, cout, k=3, bn=True, alpha=1.0):
    w = jax.random.normal(key, (cin, cout, k, k), jnp.float32) / jnp.sqrt(cin * k * k)
    s, sh = _affine_or_identity(cout, bn, alpha)
    return {"w": w, "b": jnp.zeros((cout,), jnp.float32), "bn_scale": s, "bn_shift": sh}


def init_params(key):
    keys = iter(jax.random.split(key, 32))
    p = {}
    enc, cin = [], 1
    for h in HIDDEN_DIMS:
        enc.append(init_conv(next(keys), cin, h))
        cin = h
    p["encoder"] = enc
    p["before_latent"] = init_linear(next(keys), HIDDEN_DIMS[-1] * 2, LATENT_DIM)
    C = LATENT_DIM
    p["posterior"] = [init_linear(next(keys), 2 * C, 2 * C, alpha=2.0),
                      init_linear(next(keys), 2 * C, 4 * C, alpha=2.0),
                      init_linear(next(keys), 4 * C, C * K_POST, alpha=2.0)]
    p["prior"] = [init_linear(next(keys), C, 2 * C, alpha=2.0),
                  init_linear(next(keys), 2 * C, 4 * C, alpha=2.0),
                  init_linear(next(keys), 4 * C, C * K_POST, alpha=2.0)]
    p["decoder_input"] = init_linear(next(keys), 2 * C, HIDDEN_DIMS[-1] * 4)
    rev = list(reversed(HIDDEN_DIMS))  # [256,128,64,32]
    dec = [init_convT(next(keys), rev[i], rev[i + 1]) for i in range(len(rev) - 1)]
    dec.append(init_convT(next(keys), rev[-1], rev[-1]))            # final_layer[0]
    p["decoder_convT"] = dec
    p["final_conv"] = init_convT(next(keys), rev[-1], 1, bn=False)  # final_layer[1]
    return p


# ----------------------------------------------------------------------------------
# Module forward passes
# ----------------------------------------------------------------------------------
def posterior_forward(layers, latent_x, key):
    B, T, C = latent_x.shape
    folded = [_fold_linear(lp) for lp in layers]
    z_shift = jnp.zeros((B, T, C), latent_x.dtype)   # z_shift[:, t] = z_{t-1}, z_{-1}=0
    keys = jax.random.split(key, T)
    zs = []
    for t in range(T):
        h = run_mlp3_lif(jnp.concatenate([latent_x, z_shift], axis=-1), folded)
        q_z_t = h[:, t, :].reshape(B, C, K_POST)
        # TODO(synk): torch.randint replaced by jax.random (deterministic key, not bitwise-identical)
        idx = jax.random.randint(keys[t], (B, C), 0, K_POST)
        z_t = jnp.take_along_axis(q_z_t, idx[..., None], axis=-1)[..., 0]
        zs.append(z_t)
        if t + 1 < T:
            z_shift = z_shift.at[:, t + 1, :].set(z_t.astype(z_shift.dtype))
    sampled_z = jnp.stack(zs, axis=1)                                # (B,T,C) spikes
    h = run_mlp3_lif(jnp.concatenate([latent_x, sampled_z.astype(latent_x.dtype)],
                                     axis=-1), folded)               # second full pass (ref code)
    q_z = h.reshape(B, T, C, K_POST).transpose(0, 2, 3, 1)           # (B,C,k,T)
    return sampled_z, q_z


def prior_forward(layers, sampled_z):
    B, T, C = sampled_z.shape
    folded = [_fold_linear(lp) for lp in layers]
    h = jnp.concatenate([jnp.zeros((B, 1, C), sampled_z.dtype), sampled_z[:, :-1, :]],
                        axis=1)
    h = run_mlp3_lif(h, folded)
    return h.reshape(B, T, C, K_POST).transpose(0, 2, 3, 1)          # (B,C,k,T)


def decoder_forward(params, z):
    B, T, _ = z.shape
    h = jnp.concatenate([z, z], axis=-1)                             # torch.cat([z,z], dim=1)
    h = run_td_linear(h, params["decoder_input"])                    # (B,T,1024)
    h = h.reshape(B, T, HIDDEN_DIMS[-1], 2, 2).transpose(0, 1, 3, 4, 2)  # (B,T,2,2,256)
    for lp in params["decoder_convT"]:
        h = run_td_convT(h, lp, stride=2, pad=1, out_pad=1, mode="lif")
    out = run_td_convT(h, params["final_conv"], stride=1, pad=1, out_pad=0,
                       mode="membrane")                              # fused membrane-sum + tanh
    return jnp.transpose(out, (0, 3, 1, 2)).astype(jnp.float32)      # (B,1,32,32)


def snn_generator_forward(params, x, cond, key):
    # x: (B, 1, H, W, T) — 5-D spike train (PyTorch N,C,H,W,T). cond is unused by the
    # reference forward (decoder ignores it).
    del cond
    B, T = x.shape[0], x.shape[-1]
    h = jnp.transpose(x, (0, 4, 2, 3, 1)).astype(jnp.bfloat16)       # -> (B,T,H,W,C)
    for lp in params["encoder"]:
        h = run_td_conv(h, lp, stride=2, pad=1, mode="lif")
    # torch.flatten(x, 1, 3) over (B,C,H,W,T):
    feat = jnp.transpose(h, (0, 1, 4, 2, 3)).reshape(B, T, -1)       # (B,T,512)
    latent_x = run_td_linear(feat, params["before_latent"])          # (B,T,128)
    sampled_z, q_z = posterior_forward(params["posterior"], latent_x, key)
    p_z = prior_forward(params["prior"], sampled_z)
    x_recon = decoder_forward(params, sampled_z)
    sampled_z_pt = jnp.transpose(sampled_z, (0, 2, 1)).astype(jnp.float32)  # (B,C,T)
    return x_recon, q_z.astype(jnp.float32), p_z.astype(jnp.float32), sampled_z_pt


if __name__ == "__main__":
    key = jax.random.PRNGKey(0)
    k_param, k_x, k_cond, k_post = jax.random.split(key, 4)
    params = init_params(k_param)

    B, H, W = 2, 32, 16  # 256 * (H/16) * (W/16) == 512 as required by before_latent_layer
    x = (jax.random.uniform(k_x, (B, 1, H, W, N_STEPS), jnp.float32) > 0.5).astype(jnp.float32)
    cond = jax.nn.one_hot(jax.random.randint(k_cond, (B,), 0, 10), 10)[..., None]
    cond = jnp.tile(cond, (1, 1, N_STEPS)).astype(jnp.float32)       # (B,10,T), unused

    x_recon, q_z, p_z, sampled_z = snn_generator_forward(params, x, cond, k_post)
    jax.block_until_ready((x_recon, q_z, p_z, sampled_z))

    assert x_recon.shape == (B, 1, 32, 32)
    assert q_z.shape == (B, LATENT_DIM, K_POST, N_STEPS)
    assert p_z.shape == (B, LATENT_DIM, K_POST, N_STEPS)
    assert sampled_z.shape == (B, LATENT_DIM, N_STEPS)
    assert bool(jnp.all(jnp.isfinite(x_recon)))
    print("KERNEL_OK")
</pallas_src>

<mosaic_0001>
module attributes {stable_mosaic.version = 11 : i64} {
  func.func @_fused_td_kernel(%arg0: i32, %arg1: memref<16x128x9xbf16, #tpu.memory_space<vmem>>, %arg2: memref<9x32xbf16, #tpu.memory_space<vmem>>, %arg3: memref<1x32xf32, #tpu.memory_space<vmem>>, %arg4: memref<16x128x32xbf16, #tpu.memory_space<vmem>>) attributes {dimension_semantics = [#tpu.dimension_semantics<parallel>], iteration_bounds = array<i64: 2>, scalar_prefetch = 0 : i64, scratch_operands = 0 : i64, tpu.core_type = #tpu.core_type<tc>, window_params = [{transform_indices = @transform_0, window_bounds = array<i64: 16, 128, 9>}, {pipeline_mode = #tpu.pipeline_mode<synchronous>, transform_indices = @transform_1, window_bounds = array<i64: 9, 32>}, {pipeline_mode = #tpu.pipeline_mode<synchronous>, transform_indices = @transform_2, window_bounds = array<i64: 1, 32>}, {transform_indices = @transform_3, window_bounds = array<i64: 16, 128, 32>}]} {
    %c0 = arith.constant 0 : index
    %c0_0 = arith.constant 0 : index
    %c0_1 = arith.constant 0 : index
    %0 = vector.load %arg1[%c0, %c0_0, %c0_1] : memref<16x128x9xbf16, #tpu.memory_space<vmem>>, vector<16x128x9xbf16>
    %1 = vector.shape_cast %0 : vector<16x128x9xbf16> to vector<2048x9xbf16>
    %c0_2 = arith.constant 0 : index
    %c0_3 = arith.constant 0 : index
    %2 = vector.load %arg2[%c0_2, %c0_3] : memref<9x32xbf16, #tpu.memory_space<vmem>>, vector<9x32xbf16>
    %cst = arith.constant dense<0.000000e+00> : vector<2048x32xf32>
    %3 = tpu.matmul %1, %2, %cst {dimension_numbers = #tpu.dot_dimension_numbers<[1], [0], [0], [1], [0, 0, 1, 1], [], []>} : vector<2048x9xbf16>, vector<9x32xbf16>, vector<2048x32xf32> -> vector<2048x32xf32>
    %c0_4 = arith.constant 0 : index
    %c0_5 = arith.constant 0 : index
    %4 = vector.load %arg3[%c0_4, %c0_5] : memref<1x32xf32, #tpu.memory_space<vmem>>, vector<1x32xf32>
    %5 = vector.broadcast %4 : vector<1x32xf32> to vector<2048x32xf32>
    %6 = arith.addf %3, %5 : vector<2048x32xf32>
    %cst_6 = arith.constant 0.000000e+00 : f32
    %7 = vector.broadcast %cst_6 : f32 to vector<128x32xf32>
    %cst_7 = arith.constant 0.000000e+00 : f32
    %8 = vector.broadcast %cst_7 : f32 to vector<128x32xf32>
    %cst_8 = arith.constant 2.500000e-01 : f32
    %9 = vector.broadcast %cst_8 : f32 to vector<128x32xf32>
    %10 = arith.mulf %9, %7 : vector<128x32xf32>
    %cst_9 = arith.constant 1.000000e+00 : f32
    %11 = vector.broadcast %cst_9 : f32 to vector<128x32xf32>
    %12 = arith.subf %11, %8 : vector<128x32xf32>
    %13 = arith.mulf %10, %12 : vector<128x32xf32>
    %14 = vector.extract_strided_slice %6 {offsets = [0, 0], sizes = [128, 32], strides = [1, 1]} : vector<2048x32xf32> to vector<128x32xf32>
    %15 = arith.addf %13, %14 : vector<128x32xf32>
    %cst_10 = arith.constant 2.000000e-01 : f32
    %16 = vector.broadcast %cst_10 : f32 to vector<128x32xf32>
    %17 = arith.cmpf ogt, %15, %16 : vector<128x32xf32>
    %18 = arith.extui %17 : vector<128x32xi1> to vector<128x32xi32>
    %19 = arith.sitofp %18 : vector<128x32xi32> to vector<128x32xf32>
    %20 = arith.truncf %19 : vector<128x32xf32> to vector<128x32xbf16>
    %c0_11 = arith.constant 0 : index
    %c0_12 = arith.constant 0 : index
    %c0_13 = arith.constant 0 : index
    %21 = vector.load %arg4[%c0_11, %c0_12, %c0_13] : memref<16x128x32xbf16, #tpu.memory_space<vmem>>, vector<1x128x32xbf16>
    %22 = vector.shape_cast %21 : vector<1x128x32xbf16> to vector<128x32xbf16>
    %23 = vector.shape_cast %20 : vector<128x32xbf16> to vector<1x128x32xbf16>
    tpu.vector_store %arg4[%c0_11, %c0_12, %c0_13], %23 {strides = array<i32>} : memref<16x128x32xbf16, #tpu.memory_space<vmem>>, vector<1x128x32xbf16>,
    %cst_14 = arith.constant 2.500000e-01 : f32
    %24 = vector.broadcast %cst_14 : f32 to vector<128x32xf32>
    %25 = arith.mulf %24, %15 : vector<128x32xf32>
    %cst_15 = arith.constant 1.000000e+00 : f32
    %26 = vector.broadcast %cst_15 : f32 to vector<128x32xf32>
    %27 = arith.subf %26, %19 : vector<128x32xf32>
    %28 = arith.mulf %25, %27 : vector<128x32xf32>
    %29 = vector.extract_strided_slice %6 {offsets = [128, 0], sizes = [128, 32], strides = [1, 1]} : vector<2048x32xf32> to vector<128x32xf32>
    %30 = arith.addf %28, %29 : vector<128x32xf32>
    %cst_16 = arith.constant 2.000000e-01 : f32
    %31 = vector.broadcast %cst_16 : f32 to vector<128x32xf32>
    %32 = arith.cmpf ogt, %30, %31 : vector<128x32xf32>
    %33 = arith.extui %32 : vector<128x32xi1> to vector<128x32xi32>
    %34 = arith.sitofp %33 : vector<128x32xi32> to vector<128x32xf32>
    %35 = arith.truncf %34 : vector<128x32xf32> to vector<128x32xbf16>
    %c1 = arith.constant 1 : index
    %c0_17 = arith.constant 0 : index
    %c0_18 = arith.constant 0 : index
    %36 = vector.load %arg4[%c1, %c0_17, %c0_18] : memref<16x128x32xbf16, #tpu.memory_space<vmem>>, vector<1x128x32xbf16>
    %37 = vector.shape_cast %36 : vector<1x128x32xbf16> to vector<128x32xbf16>
    %38 = vector.shape_cast %35 : vector<128x32xbf16> to vector<1x128x32xbf16>
    tpu.vector_store %arg4[%c1, %c0_17, %c0_18], %38 {strides = array<i32>} : memref<16x128x32xbf16, #tpu.memory_space<vmem>>, vector<1x128x32xbf16>,
    %cst_19 = arith.constant 2.500000e-01 : f32
    %39 = vector.broadcast %cst_19 : f32 to vector<128x32xf32>
    %40 = arith.mulf %39, %30 : vector<128x32xf32>
    %cst_20 = arith.constant 1.000000e+00 : f32
    %41 = vector.broadcast %cst_20 : f32 to vector<128x32xf32>
    %42 = arith.subf %41, %34 : vector<128x32xf32>
    %43 = arith.mulf %40, %42 : vector<128x32xf32>
    %44 = vector.extract_strided_slice %6 {offsets = [256, 0], sizes = [128, 32], strides = [1, 1]} : vector<2048x32xf32> to vector<128x32xf32>
    %45 = arith.addf %43, %44 : vector<128x32xf32>
    %cst_21 = arith.constant 2.000000e-01 : f32
    %46 = vector.broadcast %cst_21 : f32 to vector<128x32xf32>
    %47 = arith.cmpf ogt, %45, %46 : vector<128x32xf32>
    %48 = arith.extui %47 : vector<128x32xi1> to vector<128x32xi32>
    %49 = arith.sitofp %48 : vector<128x32xi32> to vector<128x32xf32>
    %50 = arith.truncf %49 : vector<128x32xf32> to vector<128x32xbf16>
    %c2 = arith.constant 2 : index
    %c0_22 = arith.constant 0 : index
    %c0_23 = arith.constant 0 : index
    %51 = vector.load %arg4[%c2, %c0_22, %c0_23] : memref<16x128x32xbf16, #tpu.memory_space<vmem>>, vector<1x128x32xbf16>
    %52 = vector.shape_cast %51 : vector<1x128x32xbf16> to vector<128x32xbf16>
    %53 = vector.shape_cast %50 : vector<128x32xbf16> to vector<1x128x32xbf16>
    tpu.vector_store %arg4[%c2, %c0_22, %c0_23], %53 {strides = array<i32>} : memref<16x128x32xbf16, #tpu.memory_space<vmem>>, vector<1x128x32xbf16>,
    %cst_24 = arith.constant 2.500000e-01 : f32
    %54 = vector.broadcast %cst_24 : f32 to vector<128x32xf32>
    %55 = arith.mulf %54, %45 : vector<128x32xf32>
    %cst_25 = arith.constant 1.000000e+00 : f32
    %56 = vector.broadcast %cst_25 : f32 to vector<128x32xf32>
    %57 = arith.subf %56, %49 : vector<128x32xf32>
    %58 = arith.mulf %55, %57 : vector<128x32xf32>
    %59 = vector.extract_strided_slice %6 {offsets = [384, 0], sizes = [128, 32], strides = [1, 1]} : vector<2048x32xf32> to vector<128x32xf32>
    %60 = arith.addf %58, %59 : vector<128x32xf32>
    %cst_26 = arith.constant 2.000000e-01 : f32
    %61 = vector.broadcast %cst_26 : f32 to vector<128x32xf32>
    %62 = arith.cmpf ogt, %60, %61 : vector<128x32xf32>
    %63 = arith.extui %62 : vector<128x32xi1> to vector<128x32xi32>
    %64 = arith.sitofp %63 : vector<128x32xi32> to vector<128x32xf32>
    %65 = arith.truncf %64 : vector<128x32xf32> to vector<128x32xbf16>
    %c3 = arith.constant 3 : index
    %c0_27 = arith.constant 0 : index
    %c0_28 = arith.constant 0 : index
    %66 = vector.load %arg4[%c3, %c0_27, %c0_28] : memref<16x128x32xbf16, #tpu.memory_space<vmem>>, vector<1x128x32xbf16>
    %67 = vector.shape_cast %66 : vector<1x128x32xbf16> to vector<128x32xbf16>
    %68 = vector.shape_cast %65 : vector<128x32xbf16> to vector<1x128x32xbf16>
    tpu.vector_store %arg4[%c3, %c0_27, %c0_28], %68 {strides = array<i32>} : memref<16x128x32xbf16, #tpu.memory_space<vmem>>, vector<1x128x32xbf16>,
    %cst_29 = arith.constant 2.500000e-01 : f32
    %69 = vector.broadcast %cst_29 : f32 to vector<128x32xf32>
    %70 = arith.mulf %69, %60 : vector<128x32xf32>
    %cst_30 = arith.constant 1.000000e+00 : f32
    %71 = vector.broadcast %cst_30 : f32 to vector<128x32xf32>
    %72 = arith.subf %71, %64 : vector<128x32xf32>
    %73 = arith.mulf %70, %72 : vector<128x32xf32>
    %74 = vector.extract_strided_slice %6 {offsets = [512, 0], sizes = [128, 32], strides = [1, 1]} : vector<2048x32xf32> to vector<128x32xf32>
    %75 = arith.addf %73, %74 : vector<128x32xf32>
    %cst_31 = arith.constant 2.000000e-01 : f32
    %76 = vector.broadcast %cst_31 : f32 to vector<128x32xf32>
    %77 = arith.cmpf ogt, %75, %76 : vector<128x32xf32>
    %78 = arith.extui %77 : vector<128x32xi1> to vector<128x32xi32>
    %79 = arith.sitofp %78 : vector<128x32xi32> to vector<128x32xf32>
    %80 = arith.truncf %79 : vector<128x32xf32> to vector<128x32xbf16>
    %c4 = arith.constant 4 : index
    %c0_32 = arith.constant 0 : index
    %c0_33 = arith.constant 0 : index
    %81 = vector.load %arg4[%c4, %c0_32, %c0_33] : memref<16x128x32xbf16, #tpu.memory_space<vmem>>, vector<1x128x32xbf16>
    %82 = vector.shape_cast %81 : vector<1x128x32xbf16> to vector<128x32xbf16>
    %83 = vector.shape_cast %80 : vector<128x32xbf16> to vector<1x128x32xbf16>
    tpu.vector_store %arg4[%c4, %c0_32, %c0_33], %83 {strides = array<i32>} : memref<16x128x32xbf16, #tpu.memory_space<vmem>>, vector<1x128x32xbf16>,
    %cst_34 = arith.constant 2.500000e-01 : f32
    %84 = vector.broadcast %cst_34 : f32 to vector<128x32xf32>
    %85 = arith.mulf %84, %75 : vector<128x32xf32>
    %cst_35 = arith.constant 1.000000e+00 : f32
    %86 = vector.broadcast %cst_35 : f32 to vector<128x32xf32>
    %87 = arith.subf %86, %79 : vector<128x32xf32>
    %88 = arith.mulf %85, %87 : vector<128x32xf32>
    %89 = vector.extract_strided_slice %6 {offsets = [640, 0], sizes = [128, 32], strides = [1, 1]} : vector<2048x32xf32> to vector<128x32xf32>
    %90 = arith.addf %88, %89 : vector<128x32xf32>
    %cst_36 = arith.constant 2.000000e-01 : f32
    %91 = vector.broadcast %cst_36 : f32 to vector<128x32xf32>
    %92 = arith.cmpf ogt, %90, %91 : vector<128x32xf32>
    %93 = arith.extui %92 : vector<128x32xi1> to vector<128x32xi32>
    %94 = arith.sitofp %93 : vector<128x32xi32> to vector<128x32xf32>
    %95 = arith.truncf %94 : vector<128x32xf32> to vector<128x32xbf16>
    %c5 = arith.constant 5 : index
    %c0_37 = arith.constant 0 : index
    %c0_38 = arith.constant 0 : index
    %96 = vector.load %arg4[%c5, %c0_37, %c0_38] : memref<16x128x32xbf16, #tpu.memory_space<vmem>>, vector<1x128x32xbf16>
    %97 = vector.shape_cast %96 : vector<1x128x32xbf16> to vector<128x32xbf16>
    %98 = vector.shape_cast %95 : vector<128x32xbf16> to vector<1x128x32xbf16>
    tpu.vector_store %arg4[%c5, %c0_37, %c0_38], %98 {strides = array<i32>} : memref<16x128x32xbf16, #tpu.memory_space<vmem>>, vector<1x128x32xbf16>,
    %cst_39 = arith.constant 2.500000e-01 : f32
    %99 = vector.broadcast %cst_39 : f32 to vector<128x32xf32>
    %100 = arith.mulf %99, %90 : vector<128x32xf32>
    %cst_40 = arith.constant 1.000000e+00 : f32
    %101 = vector.broadcast %cst_40 : f32 to vector<128x32xf32>
    %102 = arith.subf %101, %94 : vector<128x32xf32>
    %103 = arith.mulf %100, %102 : vector<128x32xf32>
    %104 = vector.extract_strided_slice %6 {offsets = [768, 0], sizes = [128, 32], strides = [1, 1]} : vector<2048x32xf32> to vector<128x32xf32>
    %105 = arith.addf %103, %104 : vector<128x32xf32>
    %cst_41 = arith.constant 2.000000e-01 : f32
    %106 = vector.broadcast %cst_41 : f32 to vector<128x32xf32>
    %107 = arith.cmpf ogt, %105, %106 : vector<128x32xf32>
    %108 = arith.extui %107 : vector<128x32xi1> to vector<128x32xi32>
    %109 = arith.sitofp %108 : vector<128x32xi32> to vector<128x32xf32>
    %110 = arith.truncf %109 : vector<128x32xf32> to vector<128x32xbf16>
    %c6 = arith.constant 6 : index
    %c0_42 = arith.constant 0 : index
    %c0_43 = arith.constant 0 : index
    %111 = vector.load %arg4[%c6, %c0_42, %c0_43] : memref<16x128x32xbf16, #tpu.memory_space<vmem>>, vector<1x128x32xbf16>
    %112 = vector.shape_cast %111 : vector<1x128x32xbf16> to vector<128x32xbf16>
    %113 = vector.shape_cast %110 : vector<128x32xbf16> to vector<1x128x32xbf16>
    tpu.vector_store %arg4[%c6, %c0_42, %c0_43], %113 {strides = array<i32>} : memref<16x128x32xbf16, #tpu.memory_space<vmem>>, vector<1x128x32xbf16>,
    %cst_44 = arith.constant 2.500000e-01 : f32
    %114 = vector.broadcast %cst_44 : f32 to vector<128x32xf32>
    %115 = arith.mulf %114, %105 : vector<128x32xf32>
    %cst_45 = arith.constant 1.000000e+00 : f32
    %116 = vector.broadcast %cst_45 : f32 to vector<128x32xf32>
    %117 = arith.subf %116, %109 : vector<128x32xf32>
    %118 = arith.mulf %115, %117 : vector<128x32xf32>
    %119 = vector.extract_strided_slice %6 {offsets = [896, 0], sizes = [128, 32], strides = [1, 1]} : vector<2048x32xf32> to vector<128x32xf32>
    %120 = arith.addf %118, %119 : vector<128x32xf32>
    %cst_46 = arith.constant 2.000000e-01 : f32
    %121 = vector.broadcast %cst_46 : f32 to vector<128x32xf32>
    %122 = arith.cmpf ogt, %120, %121 : vector<128x32xf32>
    %123 = arith.extui %122 : vector<128x32xi1> to vector<128x32xi32>
    %124 = arith.sitofp %123 : vector<128x32xi32> to vector<128x32xf32>
    %125 = arith.truncf %124 : vector<128x32xf32> to vector<128x32xbf16>
    %c7 = arith.constant 7 : index
    %c0_47 = arith.constant 0 : index
    %c0_48 = arith.constant 0 : index
    %126 = vector.load %arg4[%c7, %c0_47, %c0_48] : memref<16x128x32xbf16, #tpu.memory_space<vmem>>, vector<1x128x32xbf16>
    %127 = vector.shape_cast %126 : vector<1x128x32xbf16> to vector<128x32xbf16>
    %128 = vector.shape_cast %125 : vector<128x32xbf16> to vector<1x128x32xbf16>
    tpu.vector_store %arg4[%c7, %c0_47, %c0_48], %128 {strides = array<i32>} : memref<16x128x32xbf16, #tpu.memory_space<vmem>>, vector<1x128x32xbf16>,
    %cst_49 = arith.constant 2.500000e-01 : f32
    %129 = vector.broadcast %cst_49 : f32 to vector<128x32xf32>
    %130 = arith.mulf %129, %120 : vector<128x32xf32>
    %cst_50 = arith.constant 1.000000e+00 : f32
    %131 = vector.broadcast %cst_50 : f32 to vector<128x32xf32>
    %132 = arith.subf %131, %124 : vector<128x32xf32>
    %133 = arith.mulf %130, %132 : vector<128x32xf32>
    %134 = vector.extract_strided_slice %6 {offsets = [1024, 0], sizes = [128, 32], strides = [1, 1]} : vector<2048x32xf32> to vector<128x32xf32>
    %135 = arith.addf %133, %134 : vector<128x32xf32>
    %cst_51 = arith.constant 2.000000e-01 : f32
    %136 = vector.broadcast %cst_51 : f32 to vector<128x32xf32>
    %137 = arith.cmpf ogt, %135, %136 : vector<128x32xf32>
    %138 = arith.extui %137 : vector<128x32xi1> to vector<128x32xi32>
    %139 = arith.sitofp %138 : vector<128x32xi32> to vector<128x32xf32>
    %140 = arith.truncf %139 : vector<128x32xf32> to vector<128x32xbf16>
    %c8 = arith.constant 8 : index
    %c0_52 = arith.constant 0 : index
    %c0_53 = arith.constant 0 : index
    %141 = vector.load %arg4[%c8, %c0_52, %c0_53] : memref<16x128x32xbf16, #tpu.memory_space<vmem>>, vector<1x128x32xbf16>
    %142 = vector.shape_cast %141 : vector<1x128x32xbf16> to vector<128x32xbf16>
    %143 = vector.shape_cast %140 : vector<128x32xbf16> to vector<1x128x32xbf16>
    tpu.vector_store %arg4[%c8, %c0_52, %c0_53], %143 {strides = array<i32>} : memref<16x128x32xbf16, #tpu.memory_space<vmem>>, vector<1x128x32xbf16>,
    %cst_54 = arith.constant 2.500000e-01 : f32
    %144 = vector.broadcast %cst_54 : f32 to vector<128x32xf32>
    %145 = arith.mulf %144, %135 : vector<128x32xf32>
    %cst_55 = arith.constant 1.000000e+00 : f32
    %146 = vector.broadcast %cst_55 : f32 to vector<128x32xf32>
    %147 = arith.subf %146, %139 : vector<128x32xf32>
    %148 = arith.mulf %145, %147 : vector<128x32xf32>
    %149 = vector.extract_strided_slice %6 {offsets = [1152, 0], sizes = [128, 32], strides = [1, 1]} : vector<2048x32xf32> to vector<128x32xf32>
    %150 = arith.addf %148, %149 : vector<128x32xf32>
    %cst_56 = arith.constant 2.000000e-01 : f32
    %151 = vector.broadcast %cst_56 : f32 to vector<128x32xf32>
    %152 = arith.cmpf ogt, %150, %151 : vector<128x32xf32>
    %153 = arith.extui %152 : vector<128x32xi1> to vector<128x32xi32>
    %154 = arith.sitofp %153 : vector<128x32xi32> to vector<128x32xf32>
    %155 = arith.truncf %154 : vector<128x32xf32> to vector<128x32xbf16>
    %c9 = arith.constant 9 : index
    %c0_57 = arith.constant 0 : index
    %c0_58 = arith.constant 0 : index
    %156 = vector.load %arg4[%c9, %c0_57, %c0_58] : memref<16x128x32xbf16, #tpu.memory_space<vmem>>, vector<1x128x32xbf16>
    %157 = vector.shape_cast %156 : vector<1x128x32xbf16> to vector<128x32xbf16>
    %158 = vector.shape_cast %155 : vector<128x32xbf16> to vector<1x128x32xbf16>
    tpu.vector_store %arg4[%c9, %c0_57, %c0_58], %158 {strides = array<i32>} : memref<16x128x32xbf16, #tpu.memory_space<vmem>>, vector<1x128x32xbf16>,
    %cst_59 = arith.constant 2.500000e-01 : f32
    %159 = vector.broadcast %cst_59 : f32 to vector<128x32xf32>
    %160 = arith.mulf %159, %150 : vector<128x32xf32>
    %cst_60 = arith.constant 1.000000e+00 : f32
    %161 = vector.broadcast %cst_60 : f32 to vector<128x32xf32>
    %162 = arith.subf %161, %154 : vector<128x32xf32>
    %163 = arith.mulf %160, %162 : vector<128x32xf32>
    %164 = vector.extract_strided_slice %6 {offsets = [1280, 0], sizes = [128, 32], strides = [1, 1]} : vector<2048x32xf32> to vector<128x32xf32>
    %165 = arith.addf %163, %164 : vector<128x32xf32>
    %cst_61 = arith.constant 2.000000e-01 : f32
    %166 = vector.broadcast %cst_61 : f32 to vector<128x32xf32>
    %167 = arith.cmpf ogt, %165, %166 : vector<128x32xf32>
    %168 = arith.extui %167 : vector<128x32xi1> to vector<128x32xi32>
    %169 = arith.sitofp %168 : vector<128x32xi32> to vector<128x32xf32>
    %170 = arith.truncf %169 : vector<128x32xf32> to vector<128x32xbf16>
    %c10 = arith.constant 10 : index
    %c0_62 = arith.constant 0 : index
    %c0_63 = arith.constant 0 : index
    %171 = vector.load %arg4[%c10, %c0_62, %c0_63] : memref<16x128x32xbf16, #tpu.memory_space<vmem>>, vector<1x128x32xbf16>
    %172 = vector.shape_cast %171 : vector<1x128x32xbf16> to vector<128x32xbf16>
    %173 = vector.shape_cast %170 : vector<128x32xbf16> to vector<1x128x32xbf16>
    tpu.vector_store %arg4[%c10, %c0_62, %c0_63], %173 {strides = array<i32>} : memref<16x128x32xbf16, #tpu.memory_space<vmem>>, vector<1x128x32xbf16>,
    %cst_64 = arith.constant 2.500000e-01 : f32
    %174 = vector.broadcast %cst_64 : f32 to vector<128x32xf32>
    %175 = arith.mulf %174, %165 : vector<128x32xf32>
    %cst_65 = arith.constant 1.000000e+00 : f32
    %176 = vector.broadcast %cst_65 : f32 to vector<128x32xf32>
    %177 = arith.subf %176, %169 : vector<128x32xf32>
    %178 = arith.mulf %175, %177 : vector<128x32xf32>
    %179 = vector.extract_strided_slice %6 {offsets = [1408, 0], sizes = [128, 32], strides = [1, 1]} : vector<2048x32xf32> to vector<128x32xf32>
    %180 = arith.addf %178, %179 : vector<128x32xf32>
    %cst_66 = arith.constant 2.000000e-01 : f32
    %181 = vector.broadcast %cst_66 : f32 to vector<128x32xf32>
    %182 = arith.cmpf ogt, %180, %181 : vector<128x32xf32>
    %183 = arith.extui %182 : vector<128x32xi1> to vector<128x32xi32>
    %184 = arith.sitofp %183 : vector<128x32xi32> to vector<128x32xf32>
    %185 = arith.truncf %184 : vector<128x32xf32> to vector<128x32xbf16>
    %c11 = arith.constant 11 : index
    %c0_67 = arith.constant 0 : index
    %c0_68 = arith.constant 0 : index
    %186 = vector.load %arg4[%c11, %c0_67, %c0_68] : memref<16x128x32xbf16, #tpu.memory_space<vmem>>, vector<1x128x32xbf16>
    %187 = vector.shape_cast %186 : vector<1x128x32xbf16> to vector<128x32xbf16>
    %188 = vector.shape_cast %185 : vector<128x32xbf16> to vector<1x128x32xbf16>
    tpu.vector_store %arg4[%c11, %c0_67, %c0_68], %188 {strides = array<i32>} : memref<16x128x32xbf16, #tpu.memory_space<vmem>>, vector<1x128x32xbf16>,
    %cst_69 = arith.constant 2.500000e-01 : f32
    %189 = vector.broadcast %cst_69 : f32 to vector<128x32xf32>
    %190 = arith.mulf %189, %180 : vector<128x32xf32>
    %cst_70 = arith.constant 1.000000e+00 : f32
    %191 = vector.broadcast %cst_70 : f32 to vector<128x32xf32>
    %192 = arith.subf %191, %184 : vector<128x32xf32>
    %193 = arith.mulf %190, %192 : vector<128x32xf32>
    %194 = vector.extract_strided_slice %6 {offsets = [1536, 0], sizes = [128, 32], strides = [1, 1]} : vector<2048x32xf32> to vector<128x32xf32>
    %195 = arith.addf %193, %194 : vector<128x32xf32>
    %cst_71 = arith.constant 2.000000e-01 : f32
    %196 = vector.broadcast %cst_71 : f32 to vector<128x32xf32>
    %197 = arith.cmpf ogt, %195, %196 : vector<128x32xf32>
    %198 = arith.extui %197 : vector<128x32xi1> to vector<128x32xi32>
    %199 = arith.sitofp %198 : vector<128x32xi32> to vector<128x32xf32>
    %200 = arith.truncf %199 : vector<128x32xf32> to vector<128x32xbf16>
    %c12 = arith.constant 12 : index
    %c0_72 = arith.constant 0 : index
    %c0_73 = arith.constant 0 : index
    %201 = vector.load %arg4[%c12, %c0_72, %c0_73] : memref<16x128x32xbf16, #tpu.memory_space<vmem>>, vector<1x128x32xbf16>
    %202 = vector.shape_cast %201 : vector<1x128x32xbf16> to vector<128x32xbf16>
    %203 = vector.shape_cast %200 : vector<128x32xbf16> to vector<1x128x32xbf16>
    tpu.vector_store %arg4[%c12, %c0_72, %c0_73], %203 {strides = array<i32>} : memref<16x128x32xbf16, #tpu.memory_space<vmem>>, vector<1x128x32xbf16>,
    %cst_74 = arith.constant 2.500000e-01 : f32
    %204 = vector.broadcast %cst_74 : f32 to vector<128x32xf32>
    %205 = arith.mulf %204, %195 : vector<128x32xf32>
    %cst_75 = arith.constant 1.000000e+00 : f32
    %206 = vector.broadcast %cst_75 : f32 to vector<128x32xf32>
    %207 = arith.subf %206, %199 : vector<128x32xf32>
    %208 = arith.mulf %205, %207 : vector<128x32xf32>
    %209 = vector.extract_strided_slice %6 {offsets = [1664, 0], sizes = [128, 32], strides = [1, 1]} : vector<2048x32xf32> to vector<128x32xf32>
    %210 = arith.addf %208, %209 : vector<128x32xf32>
    %cst_76 = arith.constant 2.000000e-01 : f32
    %211 = vector.broadcast %cst_76 : f32 to vector<128x32xf32>
    %212 = arith.cmpf ogt, %210, %211 : vector<128x32xf32>
    %213 = arith.extui %212 : vector<128x32xi1> to vector<128x32xi32>
    %214 = arith.sitofp %213 : vector<128x32xi32> to vector<128x32xf32>
    %215 = arith.truncf %214 : vector<128x32xf32> to vector<128x32xbf16>
    %c13 = arith.constant 13 : index
    %c0_77 = arith.constant 0 : index
    %c0_78 = arith.constant 0 : index
    %216 = vector.load %arg4[%c13, %c0_77, %c0_78] : memref<16x128x32xbf16, #tpu.memory_space<vmem>>, vector<1x128x32xbf16>
    %217 = vector.shape_cast %216 : vector<1x128x32xbf16> to vector<128x32xbf16>
    %218 = vector.shape_cast %215 : vector<128x32xbf16> to vector<1x128x32xbf16>
    tpu.vector_store %arg4[%c13, %c0_77, %c0_78], %218 {strides = array<i32>} : memref<16x128x32xbf16, #tpu.memory_space<vmem>>, vector<1x128x32xbf16>,
    %cst_79 = arith.constant 2.500000e-01 : f32
    %219 = vector.broadcast %cst_79 : f32 to vector<128x32xf32>
    %220 = arith.mulf %219, %210 : vector<128x32xf32>
    %cst_80 = arith.constant 1.000000e+00 : f32
    %221 = vector.broadcast %cst_80 : f32 to vector<128x32xf32>
    %222 = arith.subf %221, %214 : vector<128x32xf32>
    %223 = arith.mulf %220, %222 : vector<128x32xf32>
    %224 = vector.extract_strided_slice %6 {offsets = [1792, 0], sizes = [128, 32], strides = [1, 1]} : vector<2048x32xf32> to vector<128x32xf32>
    %225 = arith.addf %223, %224 : vector<128x32xf32>
    %cst_81 = arith.constant 2.000000e-01 : f32
    %226 = vector.broadcast %cst_81 : f32 to vector<128x32xf32>
    %227 = arith.cmpf ogt, %225, %226 : vector<128x32xf32>
    %228 = arith.extui %227 : vector<128x32xi1> to vector<128x32xi32>
    %229 = arith.sitofp %228 : vector<128x32xi32> to vector<128x32xf32>
    %230 = arith.truncf %229 : vector<128x32xf32> to vector<128x32xbf16>
    %c14 = arith.constant 14 : index
    %c0_82 = arith.constant 0 : index
    %c0_83 = arith.constant 0 : index
    %231 = vector.load %arg4[%c14, %c0_82, %c0_83] : memref<16x128x32xbf16, #tpu.memory_space<vmem>>, vector<1x128x32xbf16>
    %232 = vector.shape_cast %231 : vector<1x128x32xbf16> to vector<128x32xbf16>
    %233 = vector.shape_cast %230 : vector<128x32xbf16> to vector<1x128x32xbf16>
    tpu.vector_store %arg4[%c14, %c0_82, %c0_83], %233 {strides = array<i32>} : memref<16x128x32xbf16, #tpu.memory_space<vmem>>, vector<1x128x32xbf16>,
    %cst_84 = arith.constant 2.500000e-01 : f32
    %234 = vector.broadcast %cst_84 : f32 to vector<128x32xf32>
    %235 = arith.mulf %234, %225 : vector<128x32xf32>
    %cst_85 = arith.constant 1.000000e+00 : f32
    %236 = vector.broadcast %cst_85 : f32 to vector<128x32xf32>
    %237 = arith.subf %236, %229 : vector<128x32xf32>
    %238 = arith.mulf %235, %237 : vector<128x32xf32>
    %239 = vector.extract_strided_slice %6 {offsets = [1920, 0], sizes = [128, 32], strides = [1, 1]} : vector<2048x32xf32> to vector<128x32xf32>
    %240 = arith.addf %238, %239 : vector<128x32xf32>
    %cst_86 = arith.constant 2.000000e-01 : f32
    %241 = vector.broadcast %cst_86 : f32 to vector<128x32xf32>
    %242 = arith.cmpf ogt, %240, %241 : vector<128x32xf32>
    %243 = arith.extui %242 : vector<128x32xi1> to vector<128x32xi32>
    %244 = arith.sitofp %243 : vector<128x32xi32> to vector<128x32xf32>
    %245 = arith.truncf %244 : vector<128x32xf32> to vector<128x32xbf16>
    %c15 = arith.constant 15 : index
    %c0_87 = arith.constant 0 : index
    %c0_88 = arith.constant 0 : index
    %246 = vector.load %arg4[%c15, %c0_87, %c0_88] : memref<16x128x32xbf16, #tpu.memory_space<vmem>>, vector<1x128x32xbf16>
    %247 = vector.shape_cast %246 : vector<1x128x32xbf16> to vector<128x32xbf16>
    %248 = vector.shape_cast %245 : vector<128x32xbf16> to vector<1x128x32xbf16>
    tpu.vector_store %arg4[%c15, %c0_87, %c0_88], %248 {strides = array<i32>} : memref<16x128x32xbf16, #tpu.memory_space<vmem>>, vector<1x128x32xbf16>,
    return
  }
  func.func @transform_0(%arg0: i32) -> (i32, i32, i32) {
    %c0_i32 = arith.constant 0 : i32
    %c0_i32_0 = arith.constant 0 : i32
    %c0_i32_1 = arith.constant 0 : i32
    return %c0_i32, %arg0, %c0_i32_0 : i32, i32, i32
  }
  func.func @transform_1(%arg0: i32) -> (i32, i32) {
    %c0_i32 = arith.constant 0 : i32
    %c0_i32_0 = arith.constant 0 : i32
    %c0_i32_1 = arith.constant 0 : i32
    return %c0_i32, %c0_i32_0 : i32, i32
  }
  func.func @transform_2(%arg0: i32) -> (i32, i32) {
    %c0_i32 = arith.constant 0 : i32
    %c0_i32_0 = arith.constant 0 : i32
    %c0_i32_1 = arith.constant 0 : i32
    return %c0_i32, %c0_i32_0 : i32, i32
  }
  func.func @transform_3(%arg0: i32) -> (i32, i32, i32) {
    %c0_i32 = arith.constant 0 : i32
    %c0_i32_0 = arith.constant 0 : i32
    %c0_i32_1 = arith.constant 0 : i32
    return %c0_i32, %arg0, %c0_i32_0 : i32, i32, i32
  }
}

</mosaic_0001>

<bundles_post_ra>
// kernel: tpu_custom_call.1
= control target key start
LH: loop header
LB: loop body
LE: loop exit
PB: predicated region body
PF: predicated region fallthrough
CT: control target
= control target key end

     0   :  { %s9635_s12 = smov 0   ;;  %s9637_s13 = smov 0   ;;  %s13109_s0 = inlined_call_operand.vmem [shape: bf16[16,256,9], index: 0, kind: input, shape index: {}]   ;;  %s13110_s1 = inlined_call_operand.vmem [shape: bf16[9,32], index: 1, kind: input, shape index: {}]   ;;  %s13111_s2 = inlined_call_operand.vmem [shape: f32[1,32], index: 2, kind: input, shape index: {}]   ;;  %s13112_s3 = inlined_call_operand.vmem [shape: bf16[16,256,32], index: 3, kind: output, shape index: {}]  }
   0x1   :  { %s9639_s14 = smov 0  }
   0x2 LB: > { %s7758_s15 = sadd.s32 4294967295, %s9611_s14   ;;  %s9652_s16 = sadd.s32 1, %s9611_s14   ;;  %s9611_s14 = sphi %s9639_s14, %s13287_s14   ;;  %s9607_s13 = sphi %s9637_s13, %s13286_s13   ;;  %s9603_s12 = sphi %s9635_s12, %s13285_s12  }
   0x3   : > { %s17_s17 = ssub.s32 %s9611_s14, %s9652_s16  ;;  %s20_s18 = sadd.s32 1, %s9607_s13 }
   0x4   : > { %p18_p0 = scmp.eq.s32.totalorder %s17_s17, 0  ;;  %p27_p1 = scmp.ne.s32.totalorder %s9607_s13, %s9603_s12 }
   0x5   : > { %p28_p2 = scmp.eq.s32.totalorder %s9611_s14, 0  ;;  %p99_p3 = scmp.eq.s32.totalorder %s7758_s15, 1 }
   0x6   : > { %s9663_s19 = scalar_select %p18_p0, %s9607_s13, %s20_s18  }
   0x7   : > { %p29_p4 = por %p28_p2, %p27_p1  ;;  %p9665_p5 = por %p99_p3, %p27_p1 }
   0x8   : > { %p7761_p6 = scmp.ge.s32.totalorder %s9611_s14, 2 }
   0xa   : > { %127 = sbr.rel (%p7761_p6) target bundleno = 83 (0x53), region = 24 }
   0xf   : > { %130 = sbr.rel (!%p29_p4) target bundleno = 83 (0x53), region = 28  ;;  %s132_s21 = sand.u32 (%p29_p4), 1, %s9607_s13  }
  0x10   : > { %s8783_s22 = sshll.u32 (%p29_p4), %s9611_s14, 6  ;;  %s7762_s23 = sshll.u32 (%p29_p4), %s132_s21, 10 }
  0x11   : > { %s9675_s26 = scalar_lea.vmem (%p29_p4), %s13109_s0, %s8783_s22  ;;  %s9680_s27 = scalar_lea.vmem (%p29_p4), [#allocation2], %s7762_s23 }
  0x12   : > { %v154_v0 = vld [vmem:[%s9675_s26] sm:$0xff] (%p29_p4)   ;;  %v158_v1 = vld [vmem:[%s9675_s26 + $0x8] sm:$0xff] (%p29_p4)   ;;  %v162_v2 = vld [vmem:[%s9675_s26 + $0x10] sm:$0xff] (%p29_p4)  }
  0x13   : > { %155 = vst [vmem:[%s9680_s27] sm:$0xff] (%p29_p4), %v154_v0   ;;  %159 = vst [vmem:[%s9680_s27 + $0x8] sm:$0xff] (%p29_p4), %v158_v1   ;;  %v166_v3 = vld [vmem:[%s9675_s26 + $0x18] sm:$0xff] (%p29_p4)   ;;  %v170_v4 = vld [vmem:[%s9675_s26 + $0x20] sm:$0xff] (%p29_p4)  }
  0x14   : > { %163 = vst [vmem:[%s9680_s27 + $0x10] sm:$0xff] %v162_v2   ;;  %v174_v5 = vld [vmem:[%s9675_s26 + $0x28] sm:$0xff]   ;;  %167 = vst [vmem:[%s9680_s27 + $0x18] sm:$0xff] %v166_v3   ;;  %v178_v6 = vld [vmem:[%s9675_s26 + $0x30] sm:$0xff]  }
  0x15   : > { %171 = vst [vmem:[%s9680_s27 + $0x20] sm:$0xff] %v170_v4   ;;  %175 = vst [vmem:[%s9680_s27 + $0x28] sm:$0xff] %v174_v5   ;;  %v182_v7 = vld [vmem:[%s9675_s26 + $0x38] sm:$0xff]   ;;  %v186_v8 = vld [vmem:[%s9675_s26 + $0x80] sm:$0xff]  }
  0x16   : > { %179 = vst [vmem:[%s9680_s27 + $0x30] sm:$0xff] %v178_v6   ;;  %183 = vst [vmem:[%s9680_s27 + $0x38] sm:$0xff] %v182_v7   ;;  %v190_v9 = vld [vmem:[%s9675_s26 + $0x88] sm:$0xff]   ;;  %v194_v10 = vld [vmem:[%s9675_s26 + $0x90] sm:$0xff]  }
  0x17   : > { %187 = vst [vmem:[%s9680_s27 + $0x40] sm:$0xff] %v186_v8   ;;  %v198_v11 = vld [vmem:[%s9675_s26 + $0x98] sm:$0xff]   ;;  %191 = vst [vmem:[%s9680_s27 + $0x48] sm:$0xff] %v190_v9   ;;  %v202_v12 = vld [vmem:[%s9675_s26 + $0xa0] sm:$0xff]  }
  0x18   : > { %195 = vst [vmem:[%s9680_s27 + $0x50] sm:$0xff] %v194_v10   ;;  %199 = vst [vmem:[%s9680_s27 + $0x58] sm:$0xff] %v198_v11   ;;  %v206_v13 = vld [vmem:[%s9675_s26 + $0xa8] sm:$0xff]   ;;  %v210_v14 = vld [vmem:[%s9675_s26 + $0xb0] sm:$0xff]  }
  0x19   : > { %203 = vst [vmem:[%s9680_s27 + $0x60] sm:$0xff] %v202_v12   ;;  %207 = vst [vmem:[%s9680_s27 + $0x68] sm:$0xff] %v206_v13   ;;  %v214_v15 = vld [vmem:[%s9675_s26 + $0xb8] sm:$0xff]   ;;  %v218_v16 = vld [vmem:[%s9675_s26 + $0x100] sm:$0xff]  }
  0x1a   : > { %211 = vst [vmem:[%s9680_s27 + $0x70] sm:$0xff] %v210_v14   ;;  %v222_v17 = vld [vmem:[%s9675_s26 + $0x108] sm:$0xff]   ;;  %215 = vst [vmem:[%s9680_s27 + $0x78] sm:$0xff] %v214_v15   ;;  %v226_v18 = vld [vmem:[%s9675_s26 + $0x110] sm:$0xff]  }
  0x1b   : > { %219 = vst [vmem:[%s9680_s27 + $0x80] sm:$0xff] %v218_v16   ;;  %223 = vst [vmem:[%s9680_s27 + $0x88] sm:$0xff] %v222_v17   ;;  %v230_v19 = vld [vmem:[%s9675_s26 + $0x118] sm:$0xff]   ;;  %v234_v20 = vld [vmem:[%s9675_s26 + $0x120] sm:$0xff]  }
  0x1c   : > { %227 = vst [vmem:[%s9680_s27 + $0x90] sm:$0xff] %v226_v18   ;;  %231 = vst [vmem:[%s9680_s27 + $0x98] sm:$0xff] %v230_v19   ;;  %v238_v21 = vld [vmem:[%s9675_s26 + $0x128] sm:$0xff]   ;;  %v242_v22 = vld [vmem:[%s9675_s26 + $0x130] sm:$0xff]  }
  0x1d   : > { %235 = vst [vmem:[%s9680_s27 + $0xa0] sm:$0xff] %v234_v20   ;;  %v246_v23 = vld [vmem:[%s9675_s26 + $0x138] sm:$0xff]   ;;  %239 = vst [vmem:[%s9680_s27 + $0xa8] sm:$0xff] %v238_v21   ;;  %v250_v24 = vld [vmem:[%s9675_s26 + $0x180] sm:$0xff]  }
  0x1e   : > { %243 = vst [vmem:[%s9680_s27 + $0xb0] sm:$0xff] %v242_v22   ;;  %247 = vst [vmem:[%s9680_s27 + $0xb8] sm:$0xff] %v246_v23   ;;  %v254_v25 = vld [vmem:[%s9675_s26 + $0x188] sm:$0xff]   ;;  %v258_v26 = vld [vmem:[%s9675_s26 + $0x190] sm:$0xff]  }
  0x1f   : > { %251 = vst [vmem:[%s9680_s27 + $0xc0] sm:$0xff] %v250_v24   ;;  %255 = vst [vmem:[%s9680_s27 + $0xc8] sm:$0xff] %v254_v25   ;;  %v262_v27 = vld [vmem:[%s9675_s26 + $0x198] sm:$0xff]   ;;  %v266_v28 = vld [vmem:[%s9675_s26 + $0x1a0] sm:$0xff]  }
  0x20   : > { %259 = vst [vmem:[%s9680_s27 + $0xd0] sm:$0xff] %v258_v26   ;;  %v270_v29 = vld [vmem:[%s9675_s26 + $0x1a8] sm:$0xff]   ;;  %263 = vst [vmem:[%s9680_s27 + $0xd8] sm:$0xff] %v262_v27   ;;  %v274_v30 = vld [vmem:[%s9675_s26 + $0x1b0] sm:$0xff]  }
  0x21   : > { %267 = vst [vmem:[%s9680_s27 + $0xe0] sm:$0xff] %v266_v28   ;;  %271 = vst [vmem:[%s9680_s27 + $0xe8] sm:$0xff] %v270_v29   ;;  %v278_v31 = vld [vmem:[%s9675_s26 + $0x1b8] sm:$0xff]   ;;  %v282_v32 = vld [vmem:[%s9675_s26 + $0x200] sm:$0xff]  }
  0x22   : > { %275 = vst [vmem:[%s9680_s27 + $0xf0] sm:$0xff] %v274_v30   ;;  %279 = vst [vmem:[%s9680_s27 + $0xf8] sm:$0xff] %v278_v31   ;;  %v286_v33 = vld [vmem:[%s9675_s26 + $0x208] sm:$0xff]   ;;  %v290_v34 = vld [vmem:[%s9675_s26 + $0x210] sm:$0xff]  }
  0x23   : > { %283 = vst [vmem:[%s9680_s27 + $0x100] sm:$0xff] %v282_v32   ;;  %v294_v35 = vld [vmem:[%s9675_s26 + $0x218] sm:$0xff]   ;;  %287 = vst [vmem:[%s9680_s27 + $0x108] sm:$0xff] %v286_v33   ;;  %v298_v36 = vld [vmem:[%s9675_s26 + $0x220] sm:$0xff]  }
  0x24   : > { %291 = vst [vmem:[%s9680_s27 + $0x110] sm:$0xff] %v290_v34   ;;  %295 = vst [vmem:[%s9680_s27 + $0x118] sm:$0xff] %v294_v35   ;;  %v302_v37 = vld [vmem:[%s9675_s26 + $0x228] sm:$0xff]   ;;  %v306_v38 = vld [vmem:[%s9675_s26 + $0x230] sm:$0xff]  }
  0x25   : > { %299 = vst [vmem:[%s9680_s27 + $0x120] sm:$0xff] %v298_v36   ;;  %303 = vst [vmem:[%s9680_s27 + $0x128] sm:$0xff] %v302_v37   ;;  %v310_v39 = vld [vmem:[%s9675_s26 + $0x238] sm:$0xff]   ;;  %v314_v40 = vld [vmem:[%s9675_s26 + $0x280] sm:$0xff]  }
  0x26   : > { %307 = vst [vmem:[%s9680_s27 + $0x130] sm:$0xff] %v306_v38   ;;  %v318_v41 = vld [vmem:[%s9675_s26 + $0x288] sm:$0xff]   ;;  %311 = vst [vmem:[%s9680_s27 + $0x138] sm:$0xff] %v310_v39   ;;  %v322_v42 = vld [vmem:[%s9675_s26 + $0x290] sm:$0xff]  }
  0x27   : > { %315 = vst [vmem:[%s9680_s27 + $0x140] sm:$0xff] %v314_v40   ;;  %319 = vst [vmem:[%s9680_s27 + $0x148] sm:$0xff] %v318_v41   ;;  %v326_v43 = vld [vmem:[%s9675_s26 + $0x298] sm:$0xff]   ;;  %v330_v44 = vld [vmem:[%s9675_s26 + $0x2a0] sm:$0xff]  }
  0x28   : > { %323 = vst [vmem:[%s9680_s27 + $0x150] sm:$0xff] %v322_v42   ;;  %327 = vst [vmem:[%s9680_s27 + $0x158] sm:$0xff] %v326_v43   ;;  %v334_v45 = vld [vmem:[%s9675_s26 + $0x2a8] sm:$0xff]   ;;  %v338_v46 = vld [vmem:[%s9675_s26 + $0x2b0] sm:$0xff]  }
  0x29   : > { %331 = vst [vmem:[%s9680_s27 + $0x160] sm:$0xff] %v330_v44   ;;  %v342_v47 = vld [vmem:[%s9675_s26 + $0x2b8] sm:$0xff]   ;;  %335 = vst [vmem:[%s9680_s27 + $0x168] sm:$0xff] %v334_v45   ;;  %v346_v48 = vld [vmem:[%s9675_s26 + $0x300] sm:$0xff]  }
  0x2a   : > { %339 = vst [vmem:[%s9680_s27 + $0x170] sm:$0xff] %v338_v46   ;;  %343 = vst [vmem:[%s9680_s27 + $0x178] sm:$0xff] %v342_v47   ;;  %v350_v49 = vld [vmem:[%s9675_s26 + $0x308] sm:$0xff]   ;;  %v354_v50 = vld [vmem:[%s9675_s26 + $0x310] sm:$0xff]  }
  0x2b   : > { %347 = vst [vmem:[%s9680_s27 + $0x180] sm:$0xff] %v346_v48   ;;  %351 = vst [vmem:[%s9680_s27 + $0x188] sm:$0xff] %v350_v49   ;;  %v358_v51 = vld [vmem:[%s9675_s26 + $0x318] sm:$0xff]   ;;  %v362_v52 = vld [vmem:[%s9675_s26 + $0x320] sm:$0xff]  }
  0x2c   : > { %355 = vst [vmem:[%s9680_s27 + $0x190] sm:$0xff] %v354_v50   ;;  %v366_v53 = vld [vmem:[%s9675_s26 + $0x328] sm:$0xff]   ;;  %359 = vst [vmem:[%s9680_s27 + $0x198] sm:$0xff] %v358_v51   ;;  %v370_v54 = vld [vmem:[%s9675_s26 + $0x330] sm:$0xff]  }
  0x2d   : > { %363 = vst [vmem:[%s9680_s27 + $0x1a0] sm:$0xff] %v362_v52   ;;  %367 = vst [vmem:[%s9680_s27 + $0x1a8] sm:$0xff] %v366_v53   ;;  %v374_v55 = vld [vmem:[%s9675_s26 + $0x338] sm:$0xff]   ;;  %v378_v56 = vld [vmem:[%s9675_s26 + $0x380] sm:$0xff]  }
  0x2e   : > { %371 = vst [vmem:[%s9680_s27 + $0x1b0] sm:$0xff] %v370_v54   ;;  %375 = vst [vmem:[%s9680_s27 + $0x1b8] sm:$0xff] %v374_v55   ;;  %v382_v57 = vld [vmem:[%s9675_s26 + $0x388] sm:$0xff]   ;;  %v386_v58 = vld [vmem:[%s9675_s26 + $0x390] sm:$0xff]  }
  0x2f   : > { %379 = vst [vmem:[%s9680_s27 + $0x1c0] sm:$0xff] %v378_v56   ;;  %v390_v59 = vld [vmem:[%s9675_s26 + $0x398] sm:$0xff]   ;;  %383 = vst [vmem:[%s9680_s27 + $0x1c8] sm:$0xff] %v382_v57   ;;  %v394_v60 = vld [vmem:[%s9675_s26 + $0x3a0] sm:$0xff]  }
  0x30   : > { %387 = vst [vmem:[%s9680_s27 + $0x1d0] sm:$0xff] %v386_v58   ;;  %391 = vst [vmem:[%s9680_s27 + $0x1d8] sm:$0xff] %v390_v59   ;;  %v398_v61 = vld [vmem:[%s9675_s26 + $0x3a8] sm:$0xff]   ;;  %v402_v62 = vld [vmem:[%s9675_s26 + $0x3b0] sm:$0xff]  }
  0x31   : > { %395 = vst [vmem:[%s9680_s27 + $0x1e0] sm:$0xff] %v394_v60   ;;  %399 = vst [vmem:[%s9680_s27 + $0x1e8] sm:$0xff] %v398_v61   ;;  %v406_v63 = vld [vmem:[%s9675_s26 + $0x3b8] sm:$0xff]   ;;  %v410_v0 = vld [vmem:[%s9675_s26 + $0x400] sm:$0xff]  }
  0x32   : > { %403 = vst [vmem:[%s9680_s27 + $0x1f0] sm:$0xff] %v402_v62   ;;  %v414_v1 = vld [vmem:[%s9675_s26 + $0x408] sm:$0xff]   ;;  %407 = vst [vmem:[%s9680_s27 + $0x1f8] sm:$0xff] %v406_v63   ;;  %v418_v2 = vld [vmem:[%s9675_s26 + $0x410] sm:$0xff]  }
  0x33   : > { %411 = vst [vmem:[%s9680_s27 + $0x200] sm:$0xff] %v410_v0   ;;  %415 = vst [vmem:[%s9680_s27 + $0x208] sm:$0xff] %v414_v1   ;;  %v422_v3 = vld [vmem:[%s9675_s26 + $0x418] sm:$0xff]   ;;  %v426_v4 = vld [vmem:[%s9675_s26 + $0x420] sm:$0xff]  }
  0x34   : > { %419 = vst [vmem:[%s9680_s27 + $0x210] sm:$0xff] %v418_v2   ;;  %423 = vst [vmem:[%s9680_s27 + $0x218] sm:$0xff] %v422_v3   ;;  %v430_v5 = vld [vmem:[%s9675_s26 + $0x428] sm:$0xff]   ;;  %v434_v6 = vld [vmem:[%s9675_s26 + $0x430] sm:$0xff]  }
  0x35   : > { %427 = vst [vmem:[%s9680_s27 + $0x220] sm:$0xff] %v426_v4   ;;  %v438_v7 = vld [vmem:[%s9675_s26 + $0x438] sm:$0xff]   ;;  %431 = vst [vmem:[%s9680_s27 + $0x228] sm:$0xff] %v430_v5   ;;  %v442_v8 = vld [vmem:[%s9675_s26 + $0x480] sm:$0xff]  }
  0x36   : > { %435 = vst [vmem:[%s9680_s27 + $0x230] sm:$0xff] %v434_v6   ;;  %439 = vst [vmem:[%s9680_s27 + $0x238] sm:$0xff] %v438_v7   ;;  %v446_v9 = vld [vmem:[%s9675_s26 + $0x488] sm:$0xff]   ;;  %v450_v10 = vld [vmem:[%s9675_s26 + $0x490] sm:$0xff]  }
  0x37   : > { %443 = vst [vmem:[%s9680_s27 + $0x240] sm:$0xff] %v442_v8   ;;  %447 = vst [vmem:[%s9680_s27 + $0x248] sm:$0xff] %v446_v9   ;;  %v454_v11 = vld [vmem:[%s9675_s26 + $0x498] sm:$0xff]   ;;  %v458_v12 = vld [vmem:[%s9675_s26 + $0x4a0] sm:$0xff]  }
  0x38   : > { %451 = vst [vmem:[%s9680_s27 + $0x250] sm:$0xff] %v450_v10   ;;  %v462_v13 = vld [vmem:[%s9675_s26 + $0x4a8] sm:$0xff]   ;;  %455 = vst [vmem:[%s9680_s27 + $0x258] sm:$0xff] %v454_v11   ;;  %v466_v14 = vld [vmem:[%s9675_s26 + $0x4b0] sm:$0xff]  }
  0x39   : > { %459 = vst [vmem:[%s9680_s27 + $0x260] sm:$0xff] %v458_v12   ;;  %463 = vst [vmem:[%s9680_s27 + $0x268] sm:$0xff] %v462_v13   ;;  %v470_v15 = vld [vmem:[%s9675_s26 + $0x4b8] sm:$0xff]   ;;  %v474_v16 = vld [vmem:[%s9675_s26 + $0x500] sm:$0xff]  }
  0x3a   : > { %467 = vst [vmem:[%s9680_s27 + $0x270] sm:$0xff] %v466_v14   ;;  %471 = vst [vmem:[%s9680_s27 + $0x278] sm:$0xff] %v470_v15   ;;  %v478_v17 = vld [vmem:[%s9675_s26 + $0x508] sm:$0xff]   ;;  %v482_v18 = vld [vmem:[%s9675_s26 + $0x510] sm:$0xff]  }
  0x3b   : > { %475 = vst [vmem:[%s9680_s27 + $0x280] sm:$0xff] %v474_v16   ;;  %v486_v19 = vld [vmem:[%s9675_s26 + $0x518] sm:$0xff]   ;;  %479 = vst [vmem:[%s9680_s27 + $0x288] sm:$0xff] %v478_v17   ;;  %v490_v20 = vld [vmem:[%s9675_s26 + $0x520] sm:$0xff]  }
  0x3c   : > { %483 = vst [vmem:[%s9680_s27 + $0x290] sm:$0xff] %v482_v18   ;;  %487 = vst [vmem:[%s9680_s27 + $0x298] sm:$0xff] %v486_v19   ;;  %v494_v21 = vld [vmem:[%s9675_s26 + $0x528] sm:$0xff]   ;;  %v498_v22 = vld [vmem:[%s9675_s26 + $0x530] sm:$0xff]  }
  0x3d   : > { %491 = vst [vmem:[%s9680_s27 + $0x2a0] sm:$0xff] %v490_v20   ;;  %495 = vst [vmem:[%s9680_s27 + $0x2a8] sm:$0xff] %v494_v21   ;;  %v502_v23 = vld [vmem:[%s9675_s26 + $0x538] sm:$0xff]   ;;  %v506_v24 = vld [vmem:[%s9675_s26 + $0x580] sm:$0xff]  }
  0x3e   : > { %499 = vst [vmem:[%s9680_s27 + $0x2b0] sm:$0xff] %v498_v22   ;;  %v510_v25 = vld [vmem:[%s9675_s26 + $0x588] sm:$0xff]   ;;  %503 = vst [vmem:[%s9680_s27 + $0x2b8] sm:$0xff] %v502_v23   ;;  %v514_v26 = vld [vmem:[%s9675_s26 + $0x590] sm:$0xff]  }
  0x3f   : > { %507 = vst [vmem:[%s9680_s27 + $0x2c0] sm:$0xff] %v506_v24   ;;  %511 = vst [vmem:[%s9680_s27 + $0x2c8] sm:$0xff] %v510_v25   ;;  %v518_v27 = vld [vmem:[%s9675_s26 + $0x598] sm:$0xff]   ;;  %v522_v28 = vld [vmem:[%s9675_s26 + $0x5a0] sm:$0xff]  }
  0x40   : > { %515 = vst [vmem:[%s9680_s27 + $0x2d0] sm:$0xff] %v514_v26   ;;  %519 = vst [vmem:[%s9680_s27 + $0x2d8] sm:$0xff] %v518_v27   ;;  %v526_v29 = vld [vmem:[%s9675_s26 + $0x5a8] sm:$0xff]   ;;  %v530_v30 = vld [vmem:[%s9675_s26 + $0x5b0] sm:$0xff]  }
  0x41   : > { %523 = vst [vmem:[%s9680_s27 + $0x2e0] sm:$0xff] %v522_v28   ;;  %v534_v31 = vld [vmem:[%s9675_s26 + $0x5b8] sm:$0xff]   ;;  %527 = vst [vmem:[%s9680_s27 + $0x2e8] sm:$0xff] %v526_v29   ;;  %v538_v32 = vld [vmem:[%s9675_s26 + $0x600] sm:$0xff]  }
  0x42   : > { %531 = vst [vmem:[%s9680_s27 + $0x2f0] sm:$0xff] %v530_v30   ;;  %535 = vst [vmem:[%s9680_s27 + $0x2f8] sm:$0xff] %v534_v31   ;;  %v542_v33 = vld [vmem:[%s9675_s26 + $0x608] sm:$0xff]   ;;  %v546_v34 = vld [vmem:[%s9675_s26 + $0x610] sm:$0xff]  }
  0x43   : > { %539 = vst [vmem:[%s9680_s27 + $0x300] sm:$0xff] %v538_v32   ;;  %543 = vst [vmem:[%s9680_s27 + $0x308] sm:$0xff] %v542_v33   ;;  %v550_v35 = vld [vmem:[%s9675_s26 + $0x618] sm:$0xff]   ;;  %v554_v36 = vld [vmem:[%s9675_s26 + $0x620] sm:$0xff]  }
  0x44   : > { %547 = vst [vmem:[%s9680_s27 + $0x310] sm:$0xff] %v546_v34   ;;  %v558_v37 = vld [vmem:[%s9675_s26 + $0x628] sm:$0xff]   ;;  %551 = vst [vmem:[%s9680_s27 + $0x318] sm:$0xff] %v550_v35   ;;  %v562_v38 = vld [vmem:[%s9675_s26 + $0x630] sm:$0xff]  }
  0x45   : > { %555 = vst [vmem:[%s9680_s27 + $0x320] sm:$0xff] %v554_v36   ;;  %559 = vst [vmem:[%s9680_s27 + $0x328] sm:$0xff] %v558_v37   ;;  %v566_v39 = vld [vmem:[%s9675_s26 + $0x638] sm:$0xff]   ;;  %v570_v40 = vld [vmem:[%s9675_s26 + $0x680] sm:$0xff]  }
  0x46   : > { %563 = vst [vmem:[%s9680_s27 + $0x330] sm:$0xff] %v562_v38   ;;  %567 = vst [vmem:[%s9680_s27 + $0x338] sm:$0xff] %v566_v39   ;;  %v574_v41 = vld [vmem:[%s9675_s26 + $0x688] sm:$0xff]   ;;  %v578_v42 = vld [vmem:[%s9675_s26 + $0x690] sm:$0xff]  }
  0x47   : > { %571 = vst [vmem:[%s9680_s27 + $0x340] sm:$0xff] %v570_v40   ;;  %v582_v43 = vld [vmem:[%s9675_s26 + $0x698] sm:$0xff]   ;;  %575 = vst [vmem:[%s9680_s27 + $0x348] sm:$0xff] %v574_v41   ;;  %v586_v44 = vld [vmem:[%s9675_s26 + $0x6a0] sm:$0xff]  }
  0x48   : > { %579 = vst [vmem:[%s9680_s27 + $0x350] sm:$0xff] %v578_v42   ;;  %583 = vst [vmem:[%s9680_s27 + $0x358] sm:$0xff] %v582_v43   ;;  %v590_v45 = vld [vmem:[%s9675_s26 + $0x6a8] sm:$0xff]   ;;  %v594_v46 = vld [vmem:[%s9675_s26 + $0x6b0] sm:$0xff]  }
  0x49   : > { %587 = vst [vmem:[%s9680_s27 + $0x360] sm:$0xff] %v586_v44   ;;  %591 = vst [vmem:[%s9680_s27 + $0x368] sm:$0xff] %v590_v45   ;;  %v598_v47 = vld [vmem:[%s9675_s26 + $0x6b8] sm:$0xff]   ;;  %v602_v48 = vld [vmem:[%s9675_s26 + $0x700] sm:$0xff]  }
  0x4a   : > { %595 = vst [vmem:[%s9680_s27 + $0x370] sm:$0xff] %v594_v46   ;;  %v606_v49 = vld [vmem:[%s9675_s26 + $0x708] sm:$0xff]   ;;  %599 = vst [vmem:[%s9680_s27 + $0x378] sm:$0xff] %v598_v47   ;;  %v610_v50 = vld [vmem:[%s9675_s26 + $0x710] sm:$0xff]  }
  0x4b   : > { %603 = vst [vmem:[%s9680_s27 + $0x380] sm:$0xff] %v602_v48   ;;  %607 = vst [vmem:[%s9680_s27 + $0x388] sm:$0xff] %v606_v49   ;;  %v614_v51 = vld [vmem:[%s9675_s26 + $0x718] sm:$0xff]   ;;  %v618_v52 = vld [vmem:[%s9675_s26 + $0x720] sm:$0xff]  }
  0x4c   : > { %611 = vst [vmem:[%s9680_s27 + $0x390] sm:$0xff] %v610_v50   ;;  %615 = vst [vmem:[%s9680_s27 + $0x398] sm:$0xff] %v614_v51   ;;  %v622_v53 = vld [vmem:[%s9675_s26 + $0x728] sm:$0xff]   ;;  %v626_v54 = vld [vmem:[%s9675_s26 + $0x730] sm:$0xff]  }
  0x4d   : > { %619 = vst [vmem:[%s9680_s27 + $0x3a0] sm:$0xff] %v618_v52   ;;  %v630_v55 = vld [vmem:[%s9675_s26 + $0x738] sm:$0xff]   ;;  %623 = vst [vmem:[%s9680_s27 + $0x3a8] sm:$0xff] %v622_v53   ;;  %v634_v56 = vld [vmem:[%s9675_s26 + $0x780] sm:$0xff]  }
  0x4e   : > { %627 = vst [vmem:[%s9680_s27 + $0x3b0] sm:$0xff] %v626_v54   ;;  %631 = vst [vmem:[%s9680_s27 + $0x3b8] sm:$0xff] %v630_v55   ;;  %v638_v57 = vld [vmem:[%s9675_s26 + $0x788] sm:$0xff]   ;;  %v642_v58 = vld [vmem:[%s9675_s26 + $0x790] sm:$0xff]  }
  0x4f   : > { %635 = vst [vmem:[%s9680_s27 + $0x3c0] sm:$0xff] %v634_v56   ;;  %639 = vst [vmem:[%s9680_s27 + $0x3c8] sm:$0xff] %v638_v57   ;;  %v646_v59 = vld [vmem:[%s9675_s26 + $0x798] sm:$0xff]   ;;  %v650_v60 = vld [vmem:[%s9675_s26 + $0x7a0] sm:$0xff]  }
  0x50   : > { %643 = vst [vmem:[%s9680_s27 + $0x3d0] sm:$0xff] %v642_v58   ;;  %v654_v61 = vld [vmem:[%s9675_s26 + $0x7a8] sm:$0xff]   ;;  %647 = vst [vmem:[%s9680_s27 + $0x3d8] sm:$0xff] %v646_v59   ;;  %v658_v62 = vld [vmem:[%s9675_s26 + $0x7b0] sm:$0xff]  }
  0x51   : > { %651 = vst [vmem:[%s9680_s27 + $0x3e0] sm:$0xff] %v650_v60   ;;  %655 = vst [vmem:[%s9680_s27 + $0x3e8] sm:$0xff] %v654_v61   ;;  %v662_v63 = vld [vmem:[%s9675_s26 + $0x7b8] sm:$0xff]  }
  0x52   : > { %659 = vst [vmem:[%s9680_s27 + $0x3f0] sm:$0xff] %v658_v62   ;;  %663 = vst [vmem:[%s9680_s27 + $0x3f8] sm:$0xff] %v662_v63  }
  0x53 PF: > { %p7765_p7 = scmp.ge.s32.totalorder %s9611_s14, 1  ;;  %p1200_p8 = scmp.lt.s32.totalorder %s9611_s14, 3 }
  0x55   : > { %p1201_p9 = pnand %p7765_p7, %p1200_p8 }
  0x57   : > { %1204 = sbr.rel (%p1201_p9) target bundleno = 855 (0x357), region = 69 }
  0x5c   : > { %v9456_v0 = vld [vmem:[%s13110_s1] sm:$0x1f]   ;;  %vm2527_vm0 = vcmask 1043456   ;;  %vm2528_vm1 = vcmask 1044480   ;;  %s1207_s30 = sand.u32 1, %s9603_s12   ;;  %v9613_v1 = vmov 65535  }
  0x5d   : > { %v2529_v2 = vsel %vm2527_vm0, 4294967295, %v9613_v1  ;;  %s9941_s4 = sshll.u32 %s1207_s30, 10  ;;  %vm2142_vm2 = vcmask 72704   ;;  %vm3719_vm4 = vcmask 257024   ;;  %s9040_s23 = sshll.u32 (%p9665_p5), %s7758_s15, 6 }
  0x5e   : > { %v2530_v3 = vsel %vm2528_vm1, %v2529_v2, 0  ;;  %s9944_s5 = scalar_lea.vmem [#allocation2], %s9941_s4  ;;  %s10159_s8 = scalar_lea.vmem [#allocation3], %s9941_s4 }
  0x5f   : > { %v2532_v4 = vand.u32 %v9456_v0, %v2530_v3  ;;  %v9457_v5 = vld [vmem:[%s9944_s5] sm:$0xff]   ;;  %v9458_v6 = vld [vmem:[%s9944_s5 + $0x8] sm:$0xff]   ;;  %v9459_v7 = vld [vmem:[%s9944_s5 + $0x10] sm:$0xff]   ;;  %s12844_s20 = scalar_lea.vmem (%p9665_p5), %s13112_s3, %s9040_s23 }
  0x60   : > { %9172 = vmatprep.mubr.msk.bf16.mxu0 %vm2142_vm2, %v9457_v5  ;;  %v9460_v8 = vld [vmem:[%s9944_s5 + $0x18] sm:$0xff]   ;;  %v9461_v9 = vld [vmem:[%s9944_s5 + $0x20] sm:$0xff]   ;;  %v9474_v11 = vld [vmem:[%s9944_s5 + $0x208] sm:$0xff]  }
  0x61   : > { %9170 = vmatprep.subr.bf16.mxu0 %v2532_v4  ;;  %9428 = vmatprep.subr.bf16.mxu1 %v2532_v4  ;;  %v9473_v10 = vld [vmem:[%s9944_s5 + $0x200] sm:$0xff]   ;;  %v9462_v12 = vld [vmem:[%s9944_s5 + $0x28] sm:$0xff]   ;;  %v9463_v13 = vld [vmem:[%s9944_s5 + $0x30] sm:$0xff]  }
  0x62   : > { %9171 = vmatpush3.bf16.msra.mxu0 %v2532_v4  ;;  %9429 = vmatpush3.bf16.msra.mxu1 %v2532_v4  ;;  %v9477_v14 = vld [vmem:[%s9944_s5 + $0x210] sm:$0xff]   ;;  %v9478_v15 = vld [vmem:[%s9944_s5 + $0x218] sm:$0xff]   ;;  %v9481_v16 = vld [vmem:[%s9944_s5 + $0x220] sm:$0xff]  }
  0x63   : > { %9300 = vmatprep.mubr.msk.bf16.mxu1 %vm2142_vm2, %v9473_v10  ;;  %v9464_v17 = vld [vmem:[%s9944_s5 + $0x38] sm:$0xff]   ;;  %v9465_v18 = vld [vmem:[%s9944_s5 + $0x40] sm:$0xff]   ;;  %v9482_v19 = vld [vmem:[%s9944_s5 + $0x228] sm:$0xff]  }
  0x64   : > { %v9485_v20 = vld [vmem:[%s9944_s5 + $0x230] sm:$0xff]   ;;  %v9466_v21 = vld [vmem:[%s9944_s5 + $0x48] sm:$0xff]   ;;  %v9486_v23 = vld [vmem:[%s9944_s5 + $0x238] sm:$0xff]  }
  0x65   : > { %9173 = vmatmul.mubr.msk.bf16.vlgmr.msra.gmra.mxu0 %vm2142_vm2, %v9458_v6  ;;  %9301 = vmatmul.mubr.msk.bf16.vlgmr.msra.gmra.mxu1 %vm2142_vm2, %v9474_v11  ;;  %v9467_v22 = vld [vmem:[%s9944_s5 + $0x50] sm:$0xff]   ;;  %v9489_v24 = vld [vmem:[%s9944_s5 + $0x240] sm:$0xff]   ;;  %v9468_v25 = vld [vmem:[%s9944_s5 + $0x58] sm:$0xff]  }
  0x66   : > { %9176 = vmatprep.mubr.msk.bf16.mxu0 %vm2142_vm2, %v9459_v7  ;;  %9304 = vmatprep.mubr.msk.bf16.mxu1 %vm2142_vm2, %v9477_v14  ;;  %v9469_v26 = vld [vmem:[%s9944_s5 + $0x60] sm:$0xff]   ;;  %v9490_v27 = vld [vmem:[%s9944_s5 + $0x248] sm:$0xff]   ;;  %v9493_v28 = vld [vmem:[%s9944_s5 + $0x250] sm:$0xff]  }
  0x67   : > { %v9470_v29 = vld [vmem:[%s9944_s5 + $0x68] sm:$0xff]   ;;  %v9471_v30 = vld [vmem:[%s9944_s5 + $0x70] sm:$0xff]   ;;  %v9494_v31 = vld [vmem:[%s9944_s5 + $0x258] sm:$0xff]  }
  0x68   : > { %v9497_v32 = vld [vmem:[%s9944_s5 + $0x260] sm:$0xff]   ;;  %v9472_v33 = vld [vmem:[%s9944_s5 + $0x78] sm:$0xff]   ;;  %v9498_v35 = vld [vmem:[%s9944_s5 + $0x268] sm:$0xff]  }
  0x69   : > { %v9475_v34 = vld [vmem:[%s9944_s5 + $0x80] sm:$0xff]   ;;  %v9501_v36 = vld [vmem:[%s9944_s5 + $0x270] sm:$0xff]   ;;  %v9476_v37 = vld [vmem:[%s9944_s5 + $0x88] sm:$0xff]  }
  0x6a   : > { %v9479_v38 = vld [vmem:[%s9944_s5 + $0x90] sm:$0xff]   ;;  %v9502_v39 = vld [vmem:[%s9944_s5 + $0x278] sm:$0xff]   ;;  %v9505_v40 = vld [vmem:[%s9944_s5 + $0x280] sm:$0xff]  }
  0x6b   : > { %v9480_v41 = vld [vmem:[%s9944_s5 + $0x98] sm:$0xff]   ;;  %v9483_v42 = vld [vmem:[%s9944_s5 + $0xa0] sm:$0xff]   ;;  %v9506_v43 = vld [vmem:[%s9944_s5 + $0x288] sm:$0xff]  }
  0x6c   : > { %v9509_v44 = vld [vmem:[%s9944_s5 + $0x290] sm:$0xff]   ;;  %v9484_v45 = vld [vmem:[%s9944_s5 + $0xa8] sm:$0xff]   ;;  %v9510_v47 = vld [vmem:[%s9944_s5 + $0x298] sm:$0xff]  }
  0x6d   : > { %9177 = vmatmul.mubr.msk.bf16.gmra.mxu0 %vm2142_vm2, %v9460_v8  ;;  %9305 = vmatmul.mubr.msk.bf16.gmra.mxu1 %vm2142_vm2, %v9478_v15  ;;  %v9487_v46 = vld [vmem:[%s9944_s5 + $0xb0] sm:$0xff]   ;;  %v9513_v48 = vld [vmem:[%s9944_s5 + $0x2a0] sm:$0xff]   ;;  %v9488_v49 = vld [vmem:[%s9944_s5 + $0xb8] sm:$0xff]  }
  0x6e   : > { %9180 = vmatprep.mubr.msk.bf16.mxu0 %vm2142_vm2, %v9461_v9  ;;  %9308 = vmatprep.mubr.msk.bf16.mxu1 %vm2142_vm2, %v9481_v16  ;;  %v9491_v50 = vld [vmem:[%s9944_s5 + $0xc0] sm:$0xff]   ;;  %v9514_v51 = vld [vmem:[%s9944_s5 + $0x2a8] sm:$0xff]   ;;  %v9517_v52 = vld [vmem:[%s9944_s5 + $0x2b0] sm:$0xff]  }
  0x6f   : > { %v9492_v53 = vld [vmem:[%s9944_s5 + $0xc8] sm:$0xff]   ;;  %v9495_v54 = vld [vmem:[%s9944_s5 + $0xd0] sm:$0xff]   ;;  %v9518_v55 = vld [vmem:[%s9944_s5 + $0x2b8] sm:$0xff]  }
  0x70   : > { %v9521_v56 = vld [vmem:[%s9944_s5 + $0x2c0] sm:$0xff]   ;;  %v9496_v57 = vld [vmem:[%s9944_s5 + $0xd8] sm:$0xff]   ;;  %v9522_v59 = vld [vmem:[%s9944_s5 + $0x2c8] sm:$0xff]  }
  0x71   : > { %v9499_v58 = vld [vmem:[%s9944_s5 + $0xe0] sm:$0xff]   ;;  %v9525_v60 = vld [vmem:[%s9944_s5 + $0x2d0] sm:$0xff]   ;;  %v9500_v61 = vld [vmem:[%s9944_s5 + $0xe8] sm:$0xff]  }
  0x72   : > { %v9503_v62 = vld [vmem:[%s9944_s5 + $0xf0] sm:$0xff]   ;;  %v9526_v63 = vld [vmem:[%s9944_s5 + $0x2d8] sm:$0xff]   ;;  %v9529_v0 = vld [vmem:[%s9944_s5 + $0x2e0] sm:$0xff]  }
  0x73   : > { %v9504_v1 = vld [vmem:[%s9944_s5 + $0xf8] sm:$0xff]   ;;  %v9507_v2 = vld [vmem:[%s9944_s5 + $0x100] sm:$0xff]   ;;  %v9530_v3 = vld [vmem:[%s9944_s5 + $0x2e8] sm:$0xff]  }
  0x74   : > { %v9533_v4 = vld [vmem:[%s9944_s5 + $0x2f0] sm:$0xff]   ;;  %v9508_v5 = vld [vmem:[%s9944_s5 + $0x108] sm:$0xff]   ;;  %v9534_v7 = vld [vmem:[%s9944_s5 + $0x2f8] sm:$0xff]  }
  0x75   : > { %9181 = vmatmul.mubr.msk.bf16.gmra.mxu0 %vm2142_vm2, %v9462_v12  ;;  %9309 = vmatmul.mubr.msk.bf16.gmra.mxu1 %vm2142_vm2, %v9482_v19  ;;  %v9511_v6 = vld [vmem:[%s9944_s5 + $0x110] sm:$0xff]   ;;  %v9537_v8 = vld [vmem:[%s9944_s5 + $0x300] sm:$0xff]   ;;  %v9512_v9 = vld [vmem:[%s9944_s5 + $0x118] sm:$0xff]  }
  0x76   : > { %9184 = vmatprep.mubr.msk.bf16.mxu0 %vm2142_vm2, %v9463_v13  ;;  %9312 = vmatprep.mubr.msk.bf16.mxu1 %vm2142_vm2, %v9485_v20  ;;  %v9515_v10 = vld [vmem:[%s9944_s5 + $0x120] sm:$0xff]   ;;  %v9538_v11 = vld [vmem:[%s9944_s5 + $0x308] sm:$0xff]   ;;  %v9541_v12 = vld [vmem:[%s9944_s5 + $0x310] sm:$0xff]  }
  0x77   : > { %v9516_v13 = vld [vmem:[%s9944_s5 + $0x128] sm:$0xff]   ;;  %v9519_v14 = vld [vmem:[%s9944_s5 + $0x130] sm:$0xff]   ;;  %v9542_v15 = vld [vmem:[%s9944_s5 + $0x318] sm:$0xff]  }
  0x78   : > { %v9545_v16 = vld [vmem:[%s9944_s5 + $0x320] sm:$0xff]   ;;  %v9546_v19 = vld [vmem:[%s9944_s5 + $0x328] sm:$0xff]   ;;  %v9549_v20 = vld [vmem:[%s9944_s5 + $0x330] sm:$0xff]  }
  0x7d   : > { %9185 = vmatmul.mubr.msk.bf16.gmra.mxu0 %vm2142_vm2, %v9464_v17  ;;  %9313 = vmatmul.mubr.msk.bf16.gmra.mxu1 %vm2142_vm2, %v9486_v23  ;;  %v9520_v17 = vld [vmem:[%s9944_s5 + $0x138] sm:$0xff]  }
  0x7e   : > { %9188 = vmatprep.mubr.msk.bf16.mxu0 %vm2142_vm2, %v9465_v18  ;;  %9316 = vmatprep.mubr.msk.bf16.mxu1 %vm2142_vm2, %v9489_v24  ;;  %v9523_v18 = vld [vmem:[%s9944_s5 + $0x140] sm:$0xff]   ;;  %v9550_v23 = vld [vmem:[%s9944_s5 + $0x338] sm:$0xff]  }
  0x7f   : > { %v9553_v24 = vld [vmem:[%s9944_s5 + $0x340] sm:$0xff]  }
  0x85   : > { %9189 = vmatmul.mubr.msk.bf16.gmra.mxu0 %vm2142_vm2, %v9466_v21  ;;  %9317 = vmatmul.mubr.msk.bf16.gmra.mxu1 %vm2142_vm2, %v9490_v27  ;;  %v9524_v21 = vld [vmem:[%s9944_s5 + $0x148] sm:$0xff]  }
  0x86   : > { %9192 = vmatprep.mubr.msk.bf16.mxu0 %vm2142_vm2, %v9467_v22  ;;  %9320 = vmatprep.mubr.msk.bf16.mxu1 %vm2142_vm2, %v9493_v28  ;;  %v9527_v22 = vld [vmem:[%s9944_s5 + $0x150] sm:$0xff]   ;;  %v9554_v27 = vld [vmem:[%s9944_s5 + $0x348] sm:$0xff]  }
  0x87   : > { %v9557_v28 = vld [vmem:[%s9944_s5 + $0x350] sm:$0xff]  }
  0x8d   : > { %9193 = vmatmul.mubr.msk.bf16.gmra.mxu0 %vm2142_vm2, %v9468_v25  ;;  %9321 = vmatmul.mubr.msk.bf16.gmra.mxu1 %vm2142_vm2, %v9494_v31  ;;  %v9528_v25 = vld [vmem:[%s9944_s5 + $0x158] sm:$0xff]  }
  0x8e   : > { %9196 = vmatprep.mubr.msk.bf16.mxu0 %vm2142_vm2, %v9469_v26  ;;  %9324 = vmatprep.mubr.msk.bf16.mxu1 %vm2142_vm2, %v9497_v32  ;;  %v9531_v26 = vld [vmem:[%s9944_s5 + $0x160] sm:$0xff]   ;;  %v9558_v31 = vld [vmem:[%s9944_s5 + $0x358] sm:$0xff]  }
  0x8f   : > { %v9561_v32 = vld [vmem:[%s9944_s5 + $0x360] sm:$0xff]  }
  0x95   : > { %9197 = vmatmul.mubr.msk.bf16.gmra.mxu0 %vm2142_vm2, %v9470_v29  ;;  %9325 = vmatmul.mubr.msk.bf16.gmra.mxu1 %vm2142_vm2, %v9498_v35  ;;  %v9532_v29 = vld [vmem:[%s9944_s5 + $0x168] sm:$0xff]  }
  0x96   : > { %9200 = vmatprep.mubr.msk.bf16.mxu0 %vm2142_vm2, %v9471_v30  ;;  %9328 = vmatprep.mubr.msk.bf16.mxu1 %vm2142_vm2, %v9501_v36  ;;  %v9535_v30 = vld [vmem:[%s9944_s5 + $0x170] sm:$0xff]   ;;  %v9562_v35 = vld [vmem:[%s9944_s5 + $0x368] sm:$0xff]  }
  0x97   : > { %v9565_v36 = vld [vmem:[%s9944_s5 + $0x370] sm:$0xff]  }
  0x9d   : > { %9201 = vmatmul.mubr.msk.bf16.gmra.mxu0 %vm2142_vm2, %v9472_v33  ;;  %9329 = vmatmul.mubr.msk.bf16.gmra.mxu1 %vm2142_vm2, %v9502_v39  ;;  %v9536_v33 = vld [vmem:[%s9944_s5 + $0x178] sm:$0xff]   ;;  %v10142_v39 = vld [vmem:[%s13111_s2] ss:$0 sm:$0xff] }
  0x9e   : > { %9204 = vmatprep.mubr.msk.bf16.mxu0 %vm2142_vm2, %v9475_v34  ;;  %9332 = vmatprep.mubr.msk.bf16.mxu1 %vm2142_vm2, %v9505_v40  ;;  %v9539_v34 = vld [vmem:[%s9944_s5 + $0x180] sm:$0xff]  }
  0xa5   : > { %9205 = vmatmul.mubr.msk.bf16.gmra.mxu0 %vm2142_vm2, %v9476_v37  ;;  %9333 = vmatmul.mubr.msk.bf16.gmra.mxu1 %vm2142_vm2, %v9506_v43  ;;  %v9540_v37 = vld [vmem:[%s9944_s5 + $0x188] sm:$0xff]  }
  0xa6   : > { %9208 = vmatprep.mubr.msk.bf16.mxu0 %vm2142_vm2, %v9479_v38  ;;  %9336 = vmatprep.mubr.msk.bf16.mxu1 %vm2142_vm2, %v9509_v44  ;;  %v9543_v38 = vld [vmem:[%s9944_s5 + $0x190] sm:$0xff]   ;;  %v9569_v44 = vld [vmem:[%s9944_s5 + $0x380] sm:$0xff]  }
  0xad   : > { %9209 = vmatmul.mubr.msk.bf16.gmra.mxu0 %vm2142_vm2, %v9480_v41  ;;  %9337 = vmatmul.mubr.msk.bf16.gmra.mxu1 %vm2142_vm2, %v9510_v47 }
  0xae   : > { %9212 = vmatprep.mubr.msk.bf16.mxu0 %vm2142_vm2, %v9483_v42  ;;  %9340 = vmatprep.mubr.msk.bf16.mxu1 %vm2142_vm2, %v9513_v48  ;;  %v9566_v42 = vld [vmem:[%s9944_s5 + $0x378] sm:$0xff]  }
  0xb5   : > { %9213 = vmatmul.mubr.msk.bf16.gmra.mxu0 %vm2142_vm2, %v9484_v45  ;;  %9341 = vmatmul.mubr.msk.bf16.gmra.mxu1 %vm2142_vm2, %v9514_v51  ;;  %v9547_v51 = vld [vmem:[%s9944_s5 + $0x1a0] sm:$0xff]  }
  0xb6   : > { %9216 = vmatprep.mubr.msk.bf16.mxu0 %vm2142_vm2, %v9487_v46  ;;  %9344 = vmatprep.mubr.msk.bf16.mxu1 %vm2142_vm2, %v9517_v52  ;;  %v13113_v46 = vmov 0.0  }
  0xbd   : > { %9217 = vmatmul.mubr.msk.bf16.gmra.mxu0 %vm2142_vm2, %v9488_v49  ;;  %9345 = vmatmul.mubr.msk.bf16.gmra.mxu1 %vm2142_vm2, %v9518_v55  ;;  %v9544_v49 = vld [vmem:[%s9944_s5 + $0x198] sm:$0xff]  }
  0xbe   : > { %9220 = vmatprep.mubr.msk.bf16.mxu0 %vm2142_vm2, %v9491_v50  ;;  %9348 = vmatprep.mubr.msk.bf16.mxu1 %vm2142_vm2, %v9521_v56 }
  0xc5   : > { %9221 = vmatmul.mubr.msk.bf16.gmra.mxu0 %vm2142_vm2, %v9492_v53  ;;  %9349 = vmatmul.mubr.msk.bf16.gmra.mxu1 %vm2142_vm2, %v9522_v59 }
  0xc6   : > { %9224 = vmatprep.mubr.msk.bf16.mxu0 %vm2142_vm2, %v9495_v54  ;;  %9352 = vmatprep.mubr.msk.bf16.mxu1 %vm2142_vm2, %v9525_v60 }
  0xcd   : > { %9225 = vmatmul.mubr.msk.bf16.gmra.mxu0 %vm2142_vm2, %v9496_v57  ;;  %9353 = vmatmul.mubr.msk.bf16.gmra.mxu1 %vm2142_vm2, %v9526_v63 }
  0xce   : > { %9228 = vmatprep.mubr.msk.bf16.mxu0 %vm2142_vm2, %v9499_v58  ;;  %9356 = vmatprep.mubr.msk.bf16.mxu1 %vm2142_vm2, %v9529_v0 }
  0xd5   : > { %9229 = vmatmul.mubr.msk.bf16.gmra.mxu0 %vm2142_vm2, %v9500_v61  ;;  %9357 = vmatmul.mubr.msk.bf16.gmra.mxu1 %vm2142_vm2, %v9530_v3 }
  0xd6   : > { %9232 = vmatprep.mubr.msk.bf16.mxu0 %vm2142_vm2, %v9503_v62  ;;  %9360 = vmatprep.mubr.msk.bf16.mxu1 %vm2142_vm2, %v9533_v4  ;;  %v9570_v62 = vld [vmem:[%s9944_s5 + $0x388] sm:$0xff]   ;;  %v9571_v4 = vld [vmem:[%s9944_s5 + $0x390] sm:$0xff]  }
  0xdd   : > { %9233 = vmatmul.mubr.msk.bf16.gmra.mxu0 %vm2142_vm2, %v9504_v1  ;;  %9361 = vmatmul.mubr.msk.bf16.gmra.mxu1 %vm2142_vm2, %v9534_v7 }
  0xde   : > { %9236 = vmatprep.mubr.msk.bf16.mxu0 %vm2142_vm2, %v9507_v2  ;;  %9364 = vmatprep.mubr.msk.bf16.mxu1 %vm2142_vm2, %v9537_v8 }
  0xe5   : > { %9237 = vmatmul.mubr.msk.bf16.gmra.mxu0 %vm2142_vm2, %v9508_v5  ;;  %9365 = vmatmul.mubr.msk.bf16.gmra.mxu1 %vm2142_vm2, %v9538_v11 }
  0xe6   : > { %9240 = vmatprep.mubr.msk.bf16.mxu0 %vm2142_vm2, %v9511_v6  ;;  %9368 = vmatprep.mubr.msk.bf16.mxu1 %vm2142_vm2, %v9541_v12  ;;  %v9548_v12 = vld [vmem:[%s9944_s5 + $0x1a8] sm:$0xff]  }
  0xed   : > { %9241 = vmatmul.mubr.msk.bf16.gmra.mxu0 %vm2142_vm2, %v9512_v9  ;;  %9369 = vmatmul.mubr.msk.bf16.gmra.mxu1 %vm2142_vm2, %v9542_v15 }
  0xee   : > { %9244 = vmatprep.mubr.msk.bf16.mxu0 %vm2142_vm2, %v9515_v10  ;;  %9372 = vmatprep.mubr.msk.bf16.mxu1 %vm2142_vm2, %v9545_v16 }
  0xf5   : > { %9245 = vmatmul.mubr.msk.bf16.gmra.mxu0 %vm2142_vm2, %v9516_v13  ;;  %9373 = vmatmul.mubr.msk.bf16.gmra.mxu1 %vm2142_vm2, %v9546_v19 }
  0xf6   : > { %9248 = vmatprep.mubr.msk.bf16.mxu0 %vm2142_vm2, %v9519_v14  ;;  %9376 = vmatprep.mubr.msk.bf16.mxu1 %vm2142_vm2, %v9549_v20 }
  0xfd   : > { %9249 = vmatmul.mubr.msk.bf16.gmra.mxu0 %vm2142_vm2, %v9520_v17  ;;  %9377 = vmatmul.mubr.msk.bf16.gmra.mxu1 %vm2142_vm2, %v9550_v23  ;;  %v9551_v17 = vld [vmem:[%s9944_s5 + $0x1b0] sm:$0xff]  }
  0xfe   : > { %9252 = vmatprep.mubr.msk.bf16.mxu0 %vm2142_vm2, %v9523_v18  ;;  %9380 = vmatprep.mubr.msk.bf16.mxu1 %vm2142_vm2, %v9553_v24 }
 0x105   : > { %9253 = vmatmul.mubr.msk.bf16.gmra.mxu0 %vm2142_vm2, %v9524_v21  ;;  %9381 = vmatmul.mubr.msk.bf16.gmra.mxu1 %vm2142_vm2, %v9554_v27 }
 0x106   : > { %9256 = vmatprep.mubr.msk.bf16.mxu0 %vm2142_vm2, %v9527_v22  ;;  %9384 = vmatprep.mubr.msk.bf16.mxu1 %vm2142_vm2, %v9557_v28 }
 0x10d   : > { %9257 = vmatmul.mubr.msk.bf16.gmra.mxu0 %vm2142_vm2, %v9528_v25  ;;  %9385 = vmatmul.mubr.msk.bf16.gmra.mxu1 %vm2142_vm2, %v9558_v31 }
 0x10e   : > { %9260 = vmatprep.mubr.msk.bf16.mxu0 %vm2142_vm2, %v9531_v26  ;;  %9388 = vmatprep.mubr.msk.bf16.mxu1 %vm2142_vm2, %v9561_v32 }
 0x115   : > { %9261 = vmatmul.mubr.msk.bf16.gmra.mxu0 %vm2142_vm2, %v9532_v29  ;;  %9389 = vmatmul.mubr.msk.bf16.gmra.mxu1 %vm2142_vm2, %v9562_v35 }
 0x116   : > { %9264 = vmatprep.mubr.msk.bf16.mxu0 %vm2142_vm2, %v9535_v30  ;;  %9392 = vmatprep.mubr.msk.bf16.mxu1 %vm2142_vm2, %v9565_v36 }
 0x11d   : > { %9265 = vmatmul.mubr.msk.bf16.gmra.mxu0 %vm2142_vm2, %v9536_v33  ;;  %9393 = vmatmul.mubr.msk.bf16.gmra.mxu1 %vm2142_vm2, %v9566_v42 }
 0x11e   : > { %9268 = vmatprep.mubr.msk.bf16.mxu0 %vm2142_vm2, %v9539_v34  ;;  %9396 = vmatprep.mubr.msk.bf16.mxu1 %vm2142_vm2, %v9569_v44  ;;  %v9573_v44 = vld [vmem:[%s9944_s5 + $0x3a0] sm:$0xff]  }
 0x125   : > { %v9174_v40 = vpop.f32.mrf.mxu0  ;;  %9269 = vmatmul.mubr.msk.bf16.gmra.mxu0 %vm2142_vm2, %v9540_v37  ;;  %v9302_v19 = vpop.f32.mrf.mxu1  ;;  %9397 = vmatmul.mubr.msk.bf16.gmra.mxu1 %vm2142_vm2, %v9570_v62  ;;  %v9572_v37 = vld [vmem:[%s9944_s5 + $0x398] sm:$0xff]  }
 0x126   : > { %v2577_v41 = vadd.f32 %v9174_v40, %v10142_v39  ;;  %9272 = vmatprep.mubr.msk.bf16.mxu0 %vm2142_vm2, %v9543_v38  ;;  %9400 = vmatprep.mubr.msk.bf16.mxu1 %vm2142_vm2, %v9571_v4  ;;  %v10200_v35 = vadd.f32 %v9302_v19, %v10142_v39 }
 0x127   : > { %v2568_v43 = vpop.f32.mrf.mxu0  ;;  %v3080_v27 = vpop.f32.mrf.mxu1 }
 0x128   : > { %vm3609_vm3 = vcmp.gt.f32.partialorder %v2577_v41, 0.2  ;;  %v2569_v45 = vadd.f32 %v10142_v39, %v2568_v43  ;;  %v3738_v63 = vmul.f32 0.25, %v2577_v41  ;;  %13116 = vst [vmem:[#allocation4_spill] sm:$0xff] %v10200_v35 }
 0x129   : > { %v8028_v47 = vsel %vm3609_vm3, 1.0, %v13113_v46  ;;  %v9175_v48 = vpop.f32.mrf.mxu0  ;;  %v9303_v36 = vpop.f32.mrf.mxu1 }
 0x12a   : > { %v8786_v50 = vpack.c.bf16 %v8028_v47, %v8028_v47  ;;  %vm3607_vm5 = vcmp.gt.f32.partialorder %v2569_v45, 0.2  ;;  %v2580_v53 = vadd.f32 %v9175_v48, %v10142_v39  ;;  %v3754_v57 = vsub.f32 1.0, %v8028_v47 }
 0x12b   : > { %v8026_v52 = vsel %vm3607_vm5, 1.0, %v13113_v46  ;;  %v2571_v54 = vpop.f32.mrf.mxu0  ;;  %v3736_v5 = vmul.f32 0.25, %v2569_v45 }
 0x12c   : > { %3722 = vst.msk [vmem:[%s10159_s8 + $0x8] sm:$0xf] %vm3719_vm4, %v8786_v50  ;;  %v8784_v55 = vpack.c.bf16 %v8026_v52, %v8026_v52  ;;  %v2572_v56 = vadd.f32 %v10142_v39, %v2571_v54  ;;  %vm3610_vm6 = vcmp.gt.f32.partialorder %v2580_v53, 0.2  ;;  %v3752_v59 = vsub.f32 1.0, %v8026_v52  ;;  %v3083_v50 = vpop.f32.mrf.mxu1 }
 0x12d   : > { %v9178_v58 = vpop.f32.mrf.mxu0  ;;  %9273 = vmatmul.mubr.msk.bf16.gmra.mxu0 %vm2142_vm2, %v9544_v49  ;;  %v8029_v60 = vsel %vm3610_vm6, 1.0, %v13113_v46  ;;  %v3739_v8 = vmul.f32 0.25, %v2580_v53  ;;  %v10178_v13 = vmul.f32 %v3754_v57, %v3738_v63  ;;  %v9552_v53 = vld [vmem:[%s9944_s5 + $0x1b8] sm:$0xff]   ;;  %9401 = vmatmul.mubr.msk.bf16.gmra.mxu1 %vm2142_vm2, %v9572_v37  ;;  %v10233_v4 = vadd.f32 %v10142_v39, %v3083_v50 }
 0x12e   : > { %3720 = vst.msk [vmem:[%s10159_s8] sm:$0xf] %vm3719_vm4, %v8784_v55  ;;  %vm3608_vm7 = vcmp.gt.f32.partialorder %v2572_v56, 0.2  ;;  %v2593_v61 = vadd.f32 %v9178_v58, %v10142_v39  ;;  %9276 = vmatprep.mubr.msk.bf16.mxu0 %vm2142_vm2, %v9547_v51  ;;  %v8787_v0 = vpack.c.bf16 %v8029_v60, %v8029_v60  ;;  %v3755_v1 = vsub.f32 1.0, %v8029_v60  ;;  %v9306_v60 = vpop.f32.mrf.mxu1  ;;  %9404 = vmatprep.mubr.msk.bf16.mxu1 %vm2142_vm2, %v9573_v44 }
 0x12f   : > { %v8027_v2 = vsel %vm3608_vm7, 1.0, %v13113_v46  ;;  %v2584_v3 = vpop.f32.mrf.mxu0  ;;  %v3737_v14 = vmul.f32 0.25, %v2572_v56  ;;  %v10184_v18 = vmul.f32 %v3752_v59, %v3736_v5  ;;  %v10219_v55 = vadd.f32 %v10142_v39, %v3080_v27  ;;  %v9555_v59 = vld [vmem:[%s9944_s5 + $0x1c0] sm:$0xff]   ;;  %13119 = vst [vmem:[#allocation7_spill] sm:$0xff] %v10233_v4 }
 0x130   : > { %v8785_v6 = vpack.c.bf16 %v8027_v2, %v8027_v2  ;;  %v3753_v7 = vsub.f32 1.0, %v8027_v2  ;;  %vm3613_vm8 = vcmp.gt.f32.partialorder %v2593_v61, 0.2  ;;  %3723 = vst.msk [vmem:[%s10159_s8 + $0xc] sm:$0xf] %vm3719_vm4, %v8787_v0  ;;  %v2585_v10 = vadd.f32 %v10142_v39, %v2584_v3  ;;  %v3096_v5 = vpop.f32.mrf.mxu1 }
 0x131   : > { %v8032_v9 = vsel %vm3613_vm8, 1.0, %v13113_v46  ;;  %v9179_v11 = vpop.f32.mrf.mxu0  ;;  %v3742_v20 = vmul.f32 0.25, %v2593_v61  ;;  %v10187_v23 = vmul.f32 %v3755_v1, %v3739_v8  ;;  %13117 = vst [vmem:[#allocation5_spill] sm:$0xff] %v10219_v55  ;;  %v10229_v1 = vadd.f32 %v9303_v36, %v10142_v39 }
 0x132   : > { %3721 = vst.msk [vmem:[%s10159_s8 + $0x4] sm:$0xf] %vm3719_vm4, %v8785_v6  ;;  %v8790_v15 = vpack.c.bf16 %v8032_v9, %v8032_v9  ;;  %v2596_v16 = vadd.f32 %v9179_v11, %v10142_v39  ;;  %v3758_v21 = vsub.f32 1.0, %v8032_v9  ;;  %vm3611_vm9 = vcmp.gt.f32.partialorder %v2585_v10, 0.2 }
 0x133   : > { %v2587_v22 = vpop.f32.mrf.mxu0  ;;  %v8030_v24 = vsel %vm3611_vm9, 1.0, %v13113_v46  ;;  %v10194_v26 = vmul.f32 %v3753_v7, %v3737_v14  ;;  %v3740_v29 = vmul.f32 0.25, %v2585_v10  ;;  %13118 = vst [vmem:[#allocation6_spill] sm:$0xff] %v10229_v1  ;;  %v10262_v36 = vadd.f32 %v10142_v39, %v3096_v5 }
 0x134   : > { %3726 = vst.msk [vmem:[%s10159_s8 + $0x18] sm:$0xf] %vm3719_vm4, %v8790_v15  ;;  %vm3614_vm10 = vcmp.gt.f32.partialorder %v2596_v16, 0.2  ;;  %v2588_v25 = vadd.f32 %v10142_v39, %v2587_v22  ;;  %v8788_v28 = vpack.c.bf16 %v8030_v24, %v8030_v24  ;;  %v3756_v30 = vsub.f32 1.0, %v8030_v24  ;;  %v9575_v24 = vld [vmem:[%s9944_s5 + $0x3b0] sm:$0xff]  }
 0x135   : > { %v8033_v31 = vsel %vm3614_vm10, 1.0, %v13113_v46  ;;  %v9182_v32 = vpop.f32.mrf.mxu0  ;;  %9277 = vmatmul.mubr.msk.bf16.gmra.mxu0 %vm2142_vm2, %v9548_v12  ;;  %v3743_v38 = vmul.f32 0.25, %v2596_v16  ;;  %v10207_v43 = vmul.f32 %v3758_v21, %v3742_v20  ;;  %v9307_v16 = vpop.f32.mrf.mxu1  ;;  %v10252_v22 = vadd.f32 %v9306_v60, %v10142_v39  ;;  %13121 = vst [vmem:[#allocation9_spill] sm:$0xff] %v10262_v36 }
 0x136   : > { %v8791_v33 = vpack.c.bf16 %v8033_v31, %v8033_v31  ;;  %v3759_v34 = vsub.f32 1.0, %v8033_v31  ;;  %vm3612_vm11 = vcmp.gt.f32.partialorder %v2588_v25, 0.2  ;;  %9280 = vmatprep.mubr.msk.bf16.mxu0 %vm2142_vm2, %v9551_v17  ;;  %3724 = vst.msk [vmem:[%s10159_s8 + $0x10] sm:$0xf] %vm3719_vm4, %v8788_v28  ;;  %v2609_v41 = vadd.f32 %v9182_v32, %v10142_v39  ;;  %v9574_v17 = vld [vmem:[%s9944_s5 + $0x3a8] sm:$0xff]  }
 0x137   : > { %v8031_v40 = vsel %vm3612_vm11, 1.0, %v13113_v46  ;;  %v2600_v42 = vpop.f32.mrf.mxu0  ;;  %v3741_v47 = vmul.f32 0.25, %v2588_v25  ;;  %v10213_v49 = vmul.f32 %v3756_v30, %v3740_v29  ;;  %13120 = vst [vmem:[#allocation8_spill] sm:$0xff] %v10252_v22  ;;  %v3099_v29 = vpop.f32.mrf.mxu1  ;;  %9405 = vmatmul.mubr.msk.bf16.gmra.mxu1 %vm2142_vm2, %v9574_v17 }
 0x138   : > { %3727 = vst.msk [vmem:[%s10159_s8 + $0x1c] sm:$0xf] %vm3719_vm4, %v8791_v33  ;;  %v8789_v45 = vpack.c.bf16 %v8031_v40, %v8031_v40  ;;  %v2601_v48 = vadd.f32 %v10142_v39, %v2600_v42  ;;  %v3757_v51 = vsub.f32 1.0, %v8031_v40  ;;  %vm3617_vm12 = vcmp.gt.f32.partialorder %v2609_v41, 0.2  ;;  %v9559_v40 = vld [vmem:[%s9944_s5 + $0x1d0] sm:$0xff]   ;;  %9408 = vmatprep.mubr.msk.bf16.mxu1 %vm2142_vm2, %v9575_v24 }
 0x139   : > { %v9183_v52 = vpop.f32.mrf.mxu0  ;;  %v10216_v54 = vmul.f32 %v3759_v34, %v3743_v38  ;;  %v8036_v56 = vsel %vm3617_vm12, 1.0, %v13113_v46  ;;  %v3746_v57 = vmul.f32 0.25, %v2609_v41  ;;  %v9556_v34 = vld [vmem:[%s9944_s5 + $0x1c8] sm:$0xff]   ;;  %v10266_v41 = vadd.f32 %v9307_v16, %v10142_v39  ;;  %v9310_v42 = vpop.f32.mrf.mxu1 }
 0x13a   : > { %3725 = vst.msk [vmem:[%s10159_s8 + $0x14] sm:$0xf] %vm3719_vm4, %v8789_v45  ;;  %vm3615_vm13 = vcmp.gt.f32.partialorder %v2601_v48, 0.2  ;;  %v2612_v58 = vadd.f32 %v9183_v52, %v10142_v39  ;;  %v8794_v61 = vpack.c.bf16 %v8036_v56, %v8036_v56  ;;  %v3762_v62 = vsub.f32 1.0, %v8036_v56 }
 0x13b   : > { %v8034_v63 = vsel %vm3615_vm13, 1.0, %v13113_v46  ;;  %v2603_v0 = vpop.f32.mrf.mxu0  ;;  %v3744_v6 = vmul.f32 0.25, %v2601_v48  ;;  %v10240_v10 = vmul.f32 %v3757_v51, %v3741_v47  ;;  %13122 = vst [vmem:[#allocation10_spill] sm:$0xff] %v10266_v41 }
 0x13c   : > { %v8792_v2 = vpack.c.bf16 %v8034_v63, %v8034_v63  ;;  %v3760_v3 = vsub.f32 1.0, %v8034_v63  ;;  %vm3618_vm14 = vcmp.gt.f32.partialorder %v2612_v58, 0.2  ;;  %3730 = vst.msk [vmem:[%s10159_s8 + $0x28] sm:$0xf] %vm3719_vm4, %v8794_v61  ;;  %v2604_v8 = vadd.f32 %v10142_v39, %v2603_v0 }
 0x13d   : > { %v8037_v7 = vsel %vm3618_vm14, 1.0, %v13113_v46  ;;  %v9186_v9 = vpop.f32.mrf.mxu0  ;;  %9281 = vmatmul.mubr.msk.bf16.gmra.mxu0 %vm2142_vm2, %v9552_v53  ;;  %v3747_v12 = vmul.f32 0.25, %v2612_v58  ;;  %v10246_v15 = vmul.f32 %v3762_v62, %v3746_v57  ;;  %v3112_v57 = vpop.f32.mrf.mxu1  ;;  %v10285_v61 = vadd.f32 %v10142_v39, %v3099_v29 }
 0x13e   : > { %3728 = vst.msk [vmem:[%s10159_s8 + $0x20] sm:$0xf] %vm3719_vm4, %v8792_v2  ;;  %v8795_v11 = vpack.c.bf16 %v8037_v7, %v8037_v7  ;;  %v2625_v14 = vadd.f32 %v9186_v9, %v10142_v39  ;;  %9284 = vmatprep.mubr.msk.bf16.mxu0 %vm2142_vm2, %v9555_v59  ;;  %v3763_v19 = vsub.f32 1.0, %v8037_v7  ;;  %vm3616_vm15 = vcmp.gt.f32.partialorder %v2604_v8, 0.2 }
 0x13f   : > { %v2616_v20 = vpop.f32.mrf.mxu0  ;;  %v10249_v21 = vmul.f32 %v3760_v3, %v3744_v6  ;;  %v8035_v25 = vsel %vm3616_vm15, 1.0, %v13113_v46  ;;  %v3745_v27 = vmul.f32 0.25, %v2604_v8  ;;  %13123 = vst [vmem:[#allocation11_spill] sm:$0xff] %v10285_v61  ;;  %v9311_v2 = vpop.f32.mrf.mxu1  ;;  %v9576_v3 = vld [vmem:[%s9944_s5 + $0x3b8] sm:$0xff]   ;;  %v10295_v9 = vadd.f32 %v9310_v42, %v10142_v39 }
 0x140   : > { %3731 = vst.msk [vmem:[%s10159_s8 + $0x2c] sm:$0xf] %vm3719_vm4, %v8795_v11  ;;  %vm3621_vm0 = vcmp.gt.f32.partialorder %v2625_v14, 0.2  ;;  %v2617_v28 = vadd.f32 %v10142_v39, %v2616_v20  ;;  %v8793_v30 = vpack.c.bf16 %v8035_v25, %v8035_v25  ;;  %v3761_v31 = vsub.f32 1.0, %v8035_v25  ;;  %v9577_v11 = vld [vmem:[%s9944_s5 + $0x3c0] sm:$0xff]   ;;  %9409 = vmatmul.mubr.msk.bf16.gmra.mxu1 %vm2142_vm2, %v9576_v3 }
 0x141   : > { %v8040_v32 = vsel %vm3621_vm0, 1.0, %v13113_v46  ;;  %v9187_v33 = vpop.f32.mrf.mxu0  ;;  %v3750_v44 = vmul.f32 0.25, %v2625_v14  ;;  %v10273_v50 = vmul.f32 %v3763_v19, %v3747_v12  ;;  %13124 = vst [vmem:[#allocation12_spill] sm:$0xff] %v10295_v9  ;;  %v3115_v19 = vpop.f32.mrf.mxu1  ;;  %v9560_v25 = vld [vmem:[%s9944_s5 + $0x1d8] sm:$0xff]   ;;  %v10308_v29 = vadd.f32 %v10142_v39, %v3112_v57  ;;  %9412 = vmatprep.mubr.msk.bf16.mxu1 %vm2142_vm2, %v9577_v11 }
 0x142   : > { %v8798_v37 = vpack.c.bf16 %v8040_v32, %v8040_v32  ;;  %v3766_v38 = vsub.f32 1.0, %v8040_v32  ;;  %vm3619_vm1 = vcmp.gt.f32.partialorder %v2617_v28, 0.2  ;;  %3729 = vst.msk [vmem:[%s10159_s8 + $0x24] sm:$0xf] %vm3719_vm4, %v8793_v30  ;;  %v2628_v47 = vadd.f32 %v9187_v33, %v10142_v39 }
 0x143   : > { %v8038_v45 = vsel %vm3619_vm1, 1.0, %v13113_v46  ;;  %v2619_v48 = vpop.f32.mrf.mxu0  ;;  %v3748_v52 = vmul.f32 0.25, %v2617_v28  ;;  %v10279_v56 = vmul.f32 %v3761_v31, %v3745_v27  ;;  %13125 = vst [vmem:[#allocation13_spill] sm:$0xff] %v10308_v29  ;;  %v9563_v31 = vld [vmem:[%s9944_s5 + $0x1e0] sm:$0xff]   ;;  %v10316_v32 = vadd.f32 %v9311_v2, %v10142_v39  ;;  %v9314_v33 = vpop.f32.mrf.mxu1 }
 0x144   : > { %3734 = vst.msk [vmem:[%s10159_s8 + $0x38] sm:$0xf] %vm3719_vm4, %v8798_v37  ;;  %v8796_v51 = vpack.c.bf16 %v8038_v45, %v8038_v45  ;;  %v2620_v53 = vadd.f32 %v10142_v39, %v2619_v48  ;;  %v3764_v58 = vsub.f32 1.0, %v8038_v45  ;;  %vm3622_vm3 = vcmp.gt.f32.partialorder %v2628_v47, 0.2 }
 0x145   : > { %v9190_v59 = vpop.f32.mrf.mxu0  ;;  %9285 = vmatmul.mubr.msk.bf16.gmra.mxu0 %vm2142_vm2, %v9556_v34  ;;  %v10282_v60 = vmul.f32 %v3766_v38, %v3750_v44  ;;  %v8041_v62 = vsel %vm3622_vm3, 1.0, %v13113_v46  ;;  %v3751_v63 = vmul.f32 0.25, %v2628_v47  ;;  %13126 = vst [vmem:[#allocation14_spill] sm:$0xff] %v10316_v32  ;;  %v10323_v42 = vadd.f32 %v10142_v39, %v3115_v19  ;;  %v3128_v47 = vpop.f32.mrf.mxu1 }
 0x146   : > { %3732 = vst.msk [vmem:[%s10159_s8 + $0x30] sm:$0xf] %vm3719_vm4, %v8796_v51  ;;  %vm3620_vm5 = vcmp.gt.f32.partialorder %v2620_v53, 0.2  ;;  %v2641_v0 = vadd.f32 %v9190_v59, %v10142_v39  ;;  %9288 = vmatprep.mubr.msk.bf16.mxu0 %vm2142_vm2, %v9559_v40  ;;  %v8799_v5 = vpack.c.bf16 %v8041_v62, %v8041_v62  ;;  %v3767_v6 = vsub.f32 1.0, %v8041_v62 }
 0x147   : > { %v8039_v7 = vsel %vm3620_vm5, 1.0, %v13113_v46  ;;  %v2632_v8 = vpop.f32.mrf.mxu0  ;;  %v3749_v20 = vmul.f32 0.25, %v2620_v53  ;;  %v10303_v27 = vmul.f32 %v3764_v58, %v3748_v52  ;;  %13127 = vst [vmem:[#allocation15_spill] sm:$0xff] %v10323_v42  ;;  %v10328_v45 = vadd.f32 %v9314_v33, %v10142_v39  ;;  %v9315_v62 = vpop.f32.mrf.mxu1 }
 0x148   : > { %v8797_v12 = vpack.c.bf16 %v8039_v7, %v8039_v7  ;;  %v3765_v14 = vsub.f32 1.0, %v8039_v7  ;;  %v3786_v16 = vadd.f32 %v10178_v13, %v2641_v0  ;;  %v2633_v17 = vadd.f32 %v10142_v39, %v2632_v8  ;;  %3735 = vst.msk [vmem:[%s10159_s8 + $0x3c] sm:$0xf] %vm3719_vm4, %v8799_v5  ;;  %v9579_v7 = vld [vmem:[%s9944_s5 + $0x3d0] sm:$0xff]  }
 0x149   : > { %v9191_v24 = vpop.f32.mrf.mxu0  ;;  %v10305_v28 = vmul.f32 %v3767_v6, %v3751_v63  ;;  %13128 = vst [vmem:[#allocation16_spill] sm:$0xff] %v10328_v45  ;;  %v10338_v59 = vadd.f32 %v10142_v39, %v3128_v47  ;;  %v9578_v63 = vld [vmem:[%s9944_s5 + $0x3c8] sm:$0xff]  }
 0x14a   : > { %3733 = vst.msk [vmem:[%s10159_s8 + $0x34] sm:$0xf] %vm3719_vm4, %v8797_v12  ;;  %vm3802_vm6 = vcmp.gt.f32.partialorder %v3786_v16, 0.2  ;;  %v3784_v13 = vadd.f32 %v10184_v18, %v2633_v17  ;;  %v2644_v30 = vadd.f32 %v9191_v24, %v10142_v39  ;;  %v3931_v37 = vmul.f32 0.25, %v3786_v16  ;;  %v10348_v16 = vpop.f32.mrf.mxu1  ;;  %9413 = vmatmul.mubr.msk.bf16.gmra.mxu1 %vm2142_vm2, %v9578_v63 }
 0x14b   : > { %v8060_v34 = vsel %vm3802_vm6, 1.0, %v13113_v46  ;;  %v2635_v38 = vpop.f32.mrf.mxu0  ;;  %v10320_v40 = vmul.f32 %v3765_v14, %v3749_v20  ;;  %13129 = vst [vmem:[#allocation17_spill] sm:$0xff] %v10338_v59  ;;  %v9564_v20 = vld [vmem:[%s9944_s5 + $0x1e8] sm:$0xff]   ;;  %9416 = vmatprep.mubr.msk.bf16.mxu1 %vm2142_vm2, %v9579_v7 }
 0x14c   : > { %v8802_v18 = vpack.c.bf16 %v8060_v34, %v8060_v34  ;;  %vm3800_vm7 = vcmp.gt.f32.partialorder %v3784_v13, 0.2  ;;  %v3787_v44 = vadd.f32 %v10187_v23, %v2644_v30  ;;  %v3929_v51 = vmul.f32 0.25, %v3784_v13  ;;  %v9567_v13 = vld [vmem:[%s9944_s5 + $0x1f0] sm:$0xff]  }
 0x14d   : > { %v8058_v48 = vsel %vm3800_vm7, 1.0, %v13113_v46  ;;  %v2636_v52 = vadd.f32 %v10142_v39, %v2635_v38  ;;  %v9194_v53 = vpop.f32.mrf.mxu0  ;;  %9289 = vmatmul.mubr.msk.bf16.gmra.mxu0 %vm2142_vm2, %v9560_v25  ;;  %v3947_v57 = vsub.f32 1.0, %v8060_v34  ;;  %v10361_v30 = vadd.f32 %v9315_v62, %v10142_v39 }
 0x14e   : > { %8092 = vst.msk [vmem:[%s10159_s8 + $0x48] sm:$0xf] %vm3719_vm4, %v8802_v18  ;;  %v8800_v58 = vpack.c.bf16 %v8058_v48, %v8058_v48  ;;  %vm3803_vm8 = vcmp.gt.f32.partialorder %v3787_v44, 0.2  ;;  %v2657_v23 = vadd.f32 %v9194_v53, %v10142_v39  ;;  %9292 = vmatprep.mubr.msk.bf16.mxu0 %vm2142_vm2, %v9563_v31  ;;  %v3932_v2 = vmul.f32 0.25, %v3787_v44  ;;  %v10363_v31 = vpop.f32.mrf.mxu1 }
 0x14f   : > { %v8061_v0 = vsel %vm3803_vm8, 1.0, %v13113_v46  ;;  %v3785_v3 = vadd.f32 %v10194_v26, %v2636_v52  ;;  %v2648_v5 = vpop.f32.mrf.mxu0  ;;  %v3945_v6 = vsub.f32 1.0, %v8058_v48  ;;  %v10351_v26 = vmul.f32 %v3947_v57, %v3931_v37  ;;  %13130 = vst [vmem:[#allocation18_spill] sm:$0xff] %v10361_v30 }
 0x150   : > { %8090 = vst.msk [vmem:[%s10159_s8 + $0x40] sm:$0xf] %vm3719_vm4, %v8800_v58  ;;  %v8803_v8 = vpack.c.bf16 %v8061_v0, %v8061_v0  ;;  %v3790_v11 = vadd.f32 %v10207_v43, %v2657_v23  ;;  %v2649_v12 = vadd.f32 %v10142_v39, %v2648_v5  ;;  %v3948_v14 = vsub.f32 1.0, %v8061_v0  ;;  %v10372_v48 = vpop.f32.mrf.mxu1 }
 0x151   : > { %vm3801_vm9 = vcmp.gt.f32.partialorder %v3785_v3, 0.2  ;;  %v3930_v17 = vmul.f32 0.25, %v3785_v3  ;;  %v9195_v19 = vpop.f32.mrf.mxu0  ;;  %v10353_v24 = vmul.f32 %v3945_v6, %v3929_v51 }
 0x152   : > { %8093 = vst.msk [vmem:[%s10159_s8 + $0x4c] sm:$0xf] %vm3719_vm4, %v8803_v8  ;;  %v8059_v25 = vsel %vm3801_vm9, 1.0, %v13113_v46  ;;  %vm3806_vm10 = vcmp.gt.f32.partialorder %v3790_v11, 0.2  ;;  %v3788_v43 = vadd.f32 %v10213_v49, %v2649_v12  ;;  %v3935_v37 = vmul.f32 0.25, %v3790_v11 }
 0x153   : > { %v8801_v33 = vpack.c.bf16 %v8059_v25, %v8059_v25  ;;  %v8064_v34 = vsel %vm3806_vm10, 1.0, %v13113_v46  ;;  %v2660_v38 = vadd.f32 %v9195_v19, %v10142_v39  ;;  %v2651_v18 = vpop.f32.mrf.mxu0  ;;  %v10370_v47 = vmul.f32 %v3948_v14, %v3932_v2  ;;  %v10384_v2 = vpop.f32.mrf.mxu1  ;;  %v9581_v8 = vld [vmem:[%s9944_s5 + $0x3e0] sm:$0xff]  }
 0x154   : > { %v8806_v49 = vpack.c.bf16 %v8064_v34, %v8064_v34  ;;  %vm3804_vm11 = vcmp.gt.f32.partialorder %v3788_v43, 0.2  ;;  %v2652_v44 = vadd.f32 %v10142_v39, %v2651_v18  ;;  %v3946_v57 = vsub.f32 1.0, %v8059_v25 }
 0x155   : > { %8091 = vst.msk [vmem:[%s10159_s8 + $0x44] sm:$0xf] %vm3719_vm4, %v8801_v33  ;;  %v8062_v51 = vsel %vm3804_vm11, 1.0, %v13113_v46  ;;  %v3791_v52 = vadd.f32 %v10216_v54, %v2660_v38  ;;  %v9198_v53 = vpop.f32.mrf.mxu0  ;;  %9293 = vmatmul.mubr.msk.bf16.gmra.mxu0 %vm2142_vm2, %v9564_v20  ;;  %v3951_v58 = vsub.f32 1.0, %v8064_v34  ;;  %v9580_v54 = vld [vmem:[%s9944_s5 + $0x3d8] sm:$0xff]   ;;  %v3933_v3 = vmul.f32 0.25, %v3788_v43  ;;  %v10396_v14 = vpop.f32.mrf.mxu1 }
 0x156   : > { %8096 = vst.msk [vmem:[%s10159_s8 + $0x58] sm:$0xf] %vm3719_vm4, %v8806_v49  ;;  %v8804_v23 = vpack.c.bf16 %v8062_v51, %v8062_v51  ;;  %v3789_v62 = vadd.f32 %v10240_v10, %v2652_v44  ;;  %v2673_v63 = vadd.f32 %v9198_v53, %v10142_v39  ;;  %9296 = vmatprep.mubr.msk.bf16.mxu0 %vm2142_vm2, %v9567_v13  ;;  %v3949_v0 = vsub.f32 1.0, %v8062_v51  ;;  %v9568_v13 = vld [vmem:[%s9944_s5 + $0x1f8] sm:$0xff]  }
 0x157   : > { %vm3807_vm12 = vcmp.gt.f32.partialorder %v3791_v52, 0.2  ;;  %v3936_v5 = vmul.f32 0.25, %v3791_v52  ;;  %v2664_v6 = vpop.f32.mrf.mxu0  ;;  %v10387_v7 = vmul.f32 %v3946_v57, %v3930_v17  ;;  %v10394_v12 = vmul.f32 %v3951_v58, %v3935_v37  ;;  %9417 = vmatmul.mubr.msk.bf16.gmra.mxu1 %vm2142_vm2, %v9580_v54 }
 0x158   : > { %8094 = vst.msk [vmem:[%s10159_s8 + $0x50] sm:$0xf] %vm3719_vm4, %v8804_v23  ;;  %v8065_v10 = vsel %vm3807_vm12, 1.0, %v13113_v46  ;;  %vm3805_vm13 = vcmp.gt.f32.partialorder %v3789_v62, 0.2  ;;  %v3794_v11 = vadd.f32 %v10246_v15, %v2673_v63  ;;  %v3934_v25 = vmul.f32 0.25, %v3789_v62  ;;  %v10404_v15 = vpop.f32.mrf.mxu1  ;;  %9420 = vmatprep.mubr.msk.bf16.mxu1 %vm2142_vm2, %v9581_v8 }
 0x159   : > { %v8807_v19 = vpack.c.bf16 %v8065_v10, %v8065_v10  ;;  %v8063_v20 = vsel %vm3805_vm13, 1.0, %v13113_v46  ;;  %v2665_v17 = vadd.f32 %v10142_v39, %v2664_v6  ;;  %v9199_v43 = vpop.f32.mrf.mxu0  ;;  %v10402_v38 = vmul.f32 %v3949_v0, %v3933_v3  ;;  %v9582_v8 = vld [vmem:[%s9944_s5 + $0x3e8] sm:$0xff]  }
 0x15a   : > { %v8805_v33 = vpack.c.bf16 %v8063_v20, %v8063_v20  ;;  %vm3810_vm14 = vcmp.gt.f32.partialorder %v3794_v11, 0.2  ;;  %v2676_v34 = vadd.f32 %v9199_v43, %v10142_v39  ;;  %v3952_v44 = vsub.f32 1.0, %v8065_v10  ;;  %v10416_v23 = vpop.f32.mrf.mxu1 }
 0x15b   : > { %8097 = vst.msk [vmem:[%s10159_s8 + $0x5c] sm:$0xf] %vm3719_vm4, %v8807_v19  ;;  %v8068_v37 = vsel %vm3810_vm14, 1.0, %v13113_v46  ;;  %v3792_v18 = vadd.f32 %v10249_v21, %v2665_v17  ;;  %v2667_v49 = vpop.f32.mrf.mxu0  ;;  %v3950_v51 = vsub.f32 1.0, %v8063_v20  ;;  %v3939_v62 = vmul.f32 0.25, %v3794_v11  ;;  %v9583_v17 = vld [vmem:[%s9944_s5 + $0x3f0] sm:$0xff]  }
 0x15c   : > { %8095 = vst.msk [vmem:[%s10159_s8 + $0x54] sm:$0xf] %vm3719_vm4, %v8805_v33  ;;  %v8810_v52 = vpack.c.bf16 %v8068_v37, %v8068_v37  ;;  %v3795_v53 = vadd.f32 %v10273_v50, %v2676_v34  ;;  %v2668_v57 = vadd.f32 %v10142_v39, %v2667_v49  ;;  %v3955_v58 = vsub.f32 1.0, %v8068_v37  ;;  %v10427_v6 = vpop.f32.mrf.mxu1 }
 0x15d   : > { %vm3808_vm15 = vcmp.gt.f32.partialorder %v3792_v18, 0.2  ;;  %v3937_v21 = vmul.f32 0.25, %v3792_v18  ;;  %v9202_v63 = vpop.f32.mrf.mxu0  ;;  %9297 = vmatmul.mubr.msk.bf16.gmra.mxu0 %vm2142_vm2, %v9568_v13  ;;  %v10419_v0 = vmul.f32 %v3952_v44, %v3936_v5  ;;  %v10425_v3 = vmul.f32 %v3950_v51, %v3934_v25 }
 0x15e   : > { %8100 = vst.msk [vmem:[%s10159_s8 + $0x68] sm:$0xf] %vm3719_vm4, %v8810_v52  ;;  %v8066_v54 = vsel %vm3808_vm15, 1.0, %v13113_v46  ;;  %vm3811_vm0 = vcmp.gt.f32.partialorder %v3795_v53, 0.2  ;;  %v3793_v50 = vadd.f32 %v10279_v56, %v2668_v57  ;;  %v3940_v19 = vmul.f32 0.25, %v3795_v53  ;;  %v10436_v56 = vpop.f32.mrf.mxu1 }
 0x15f   : > { %v8808_v10 = vpack.c.bf16 %v8066_v54, %v8066_v54  ;;  %v8069_v11 = vsel %vm3811_vm0, 1.0, %v13113_v46  ;;  %v2689_v5 = vadd.f32 %v9202_v63, %v10142_v39  ;;  %v2680_v20 = vpop.f32.mrf.mxu0  ;;  %v10434_v33 = vmul.f32 %v3955_v58, %v3939_v62  ;;  %9421 = vmatmul.mubr.msk.bf16.gmra.mxu1 %vm2142_vm2, %v9582_v8 }
 0x160   : > { %v8811_v43 = vpack.c.bf16 %v8069_v11, %v8069_v11  ;;  %vm3809_vm1 = vcmp.gt.f32.partialorder %v3793_v50, 0.2  ;;  %v2681_v13 = vadd.f32 %v10142_v39, %v2680_v20  ;;  %v3953_v18 = vsub.f32 1.0, %v8066_v54  ;;  %v10446_v57 = vpop.f32.mrf.mxu1  ;;  %9424 = vmatprep.mubr.msk.bf16.mxu1 %vm2142_vm2, %v9583_v17 }
 0x161   : > { %8098 = vst.msk [vmem:[%s10159_s8 + $0x60] sm:$0xf] %vm3719_vm4, %v8808_v10  ;;  %v8067_v25 = vsel %vm3809_vm1, 1.0, %v13113_v46  ;;  %v3798_v34 = vadd.f32 %v10282_v60, %v2689_v5  ;;  %v9203_v37 = vpop.f32.mrf.mxu0  ;;  %v3956_v49 = vsub.f32 1.0, %v8069_v11  ;;  %v3938_v58 = vmul.f32 0.25, %v3793_v50 }
 0x162   : > { %8101 = vst.msk [vmem:[%s10159_s8 + $0x6c] sm:$0xf] %vm3719_vm4, %v8811_v43  ;;  %v8809_v44 = vpack.c.bf16 %v8067_v25, %v8067_v25  ;;  %v3796_v51 = vadd.f32 %v10303_v27, %v2681_v13  ;;  %v2692_v52 = vadd.f32 %v9203_v37, %v10142_v39  ;;  %v3954_v53 = vsub.f32 1.0, %v8067_v25  ;;  %v10458_v8 = vpop.f32.mrf.mxu1 }
 0x163   : > { %vm3814_vm3 = vcmp.gt.f32.partialorder %v3798_v34, 0.2  ;;  %v3943_v62 = vmul.f32 0.25, %v3798_v34  ;;  %v2683_v60 = vpop.f32.mrf.mxu0  ;;  %v10449_v63 = vmul.f32 %v3953_v18, %v3937_v21  ;;  %v10456_v10 = vmul.f32 %v3956_v49, %v3940_v19 }
 0x164   : > { %8099 = vst.msk [vmem:[%s10159_s8 + $0x64] sm:$0xf] %vm3719_vm4, %v8809_v44  ;;  %v8072_v27 = vsel %vm3814_vm3, 1.0, %v13113_v46  ;;  %vm3812_vm5 = vcmp.gt.f32.partialorder %v3796_v51, 0.2  ;;  %v3799_v54 = vadd.f32 %v10305_v28, %v2692_v52  ;;  %v3941_v21 = vmul.f32 0.25, %v3796_v51  ;;  %v10465_v25 = vpop.f32.mrf.mxu1 }
 0x165   : > { %v8814_v50 = vpack.c.bf16 %v8072_v27, %v8072_v27  ;;  %v8070_v11 = vsel %vm3812_vm5, 1.0, %v13113_v46  ;;  %v2684_v5 = vadd.f32 %v10142_v39, %v2683_v60  ;;  %v9206_v20 = vpop.f32.mrf.mxu0  ;;  %v10463_v13 = vmul.f32 %v3954_v53, %v3938_v58  ;;  %v9584_v28 = vld [vmem:[%s9944_s5 + $0x3f8] sm:$0xff]  }
 0x166   : > { %v8812_v17 = vpack.c.bf16 %v8070_v11, %v8070_v11  ;;  %vm3815_vm6 = vcmp.gt.f32.partialorder %v3799_v54, 0.2  ;;  %v2705_v43 = vadd.f32 %v9206_v20, %v10142_v39  ;;  %v3944_v34 = vmul.f32 0.25, %v3799_v54  ;;  %v10476_v58 = vpop.f32.mrf.mxu1 }
 0x167   : > { %8104 = vst.msk [vmem:[%s10159_s8 + $0x78] sm:$0xf] %vm3719_vm4, %v8814_v50  ;;  %v8073_v19 = vsel %vm3815_vm6, 1.0, %v13113_v46  ;;  %v3797_v37 = vadd.f32 %v10320_v40, %v2684_v5  ;;  %v2696_v18 = vpop.f32.mrf.mxu0  ;;  %v3959_v49 = vsub.f32 1.0, %v8072_v27  ;;  %v3957_v53 = vsub.f32 1.0, %v8070_v11  ;;  %9425 = vmatmul.mubr.msk.bf16.gmra.mxu1 %vm2142_vm2, %v9584_v28 }
 0x168   : > { %8102 = vst.msk [vmem:[%s10159_s8 + $0x70] sm:$0xf] %vm3719_vm4, %v8812_v17  ;;  %v8815_v44 = vpack.c.bf16 %v8073_v19, %v8073_v19  ;;  %v3979_v51 = vadd.f32 %v10351_v26, %v2705_v43  ;;  %v2697_v52 = vadd.f32 %v10142_v39, %v2696_v18  ;;  %v10482_v40 = vadd.f32 %v10142_v39, %v10348_v16  ;;  %v10492_v11 = vpop.f32.mrf.mxu1 }
 0x169   : > { %vm3813_vm7 = vcmp.gt.f32.partialorder %v3797_v37, 0.2  ;;  %v3942_v60 = vmul.f32 0.25, %v3797_v37  ;;  %v9207_v50 = vpop.f32.mrf.mxu0  ;;  %v10478_v20 = vmul.f32 %v3959_v49, %v3943_v62  ;;  %v10490_v54 = vadd.f32 %v10363_v31, %v10142_v39 }
 0x16a   : > { %13131 = vst [vmem:[#allocation19_spill] sm:$0xff] %v10482_v40  ;;  %8105 = vst.msk [vmem:[%s10159_s8 + $0x7c] sm:$0xf] %vm3719_vm4, %v8815_v44  ;;  %v8071_v27 = vsel %vm3813_vm7, 1.0, %v13113_v46  ;;  %vm3995_vm8 = vcmp.gt.f32.partialorder %v3979_v51, 0.2  ;;  %v3977_v26 = vadd.f32 %v10353_v24, %v2697_v52  ;;  %v2708_v17 = vadd.f32 %v9207_v50, %v10142_v39  ;;  %v10500_v31 = vpop.f32.mrf.mxu1 }
 0x16b   : > { %13132 = vst [vmem:[#allocation20_spill] sm:$0xff] %v10490_v54  ;;  %v8813_v62 = vpack.c.bf16 %v8071_v27, %v8071_v27  ;;  %v8108_v16 = vsel %vm3995_vm8, 1.0, %v13113_v46  ;;  %v4124_v5 = vmul.f32 0.25, %v3979_v51  ;;  %v2699_v43 = vpop.f32.mrf.mxu0  ;;  %v10498_v18 = vmul.f32 %v3957_v53, %v3941_v21 }
 0x16c   : > { %v8818_v37 = vpack.c.bf16 %v8108_v16, %v8108_v16  ;;  %vm3993_vm9 = vcmp.gt.f32.partialorder %v3977_v26, 0.2  ;;  %v2700_v24 = vadd.f32 %v10142_v39, %v2699_v43  ;;  %v4122_v49 = vmul.f32 0.25, %v3977_v26 }
 0x16d   : > { %8103 = vst.msk [vmem:[%s10159_s8 + $0x74] sm:$0xf] %vm3719_vm4, %v8813_v62  ;;  %v10505_v28 = vsel %vm3993_vm9, 1.0, %v13113_v46  ;;  %v3980_v44 = vadd.f32 %v10370_v47, %v2708_v17  ;;  %v9210_v51 = vpop.f32.mrf.mxu0  ;;  %v3960_v52 = vsub.f32 1.0, %v8073_v19  ;;  %v3958_v43 = vsub.f32 1.0, %v8071_v27  ;;  %v10514_v62 = vpop.f32.mrf.mxu1 }
 0x16e   : > { %8140 = vst.msk [vmem:[%s10159_s8 + $0x88] sm:$0xf] %vm3719_vm4, %v8818_v37  ;;  %v8816_v50 = vpack.c.bf16 %v10505_v28, %v10505_v28  ;;  %v3978_v21 = vadd.f32 %v10387_v7, %v2700_v24  ;;  %v2721_v53 = vadd.f32 %v9210_v51, %v10142_v39  ;;  %v10522_v47 = vadd.f32 %v10142_v39, %v10372_v48 }
 0x16f   : > { %vm3996_vm2 = vcmp.gt.f32.partialorder %v3980_v44, 0.2  ;;  %v10516_v46 = vmul.f32 0.25, %v3980_v44  ;;  %v2712_v26 = vpop.f32.mrf.mxu0  ;;  %v10518_v40 = vmul.f32 %v3960_v52, %v3944_v34  ;;  %v13134_v19 = vmov 0.0   ;;  %v10534_v37 = vpop.f32.mrf.mxu1 }
 0x170   : > { %13133 = vst [vmem:[#allocation21_spill] sm:$0xff] %v10522_v47  ;;  %8138 = vst.msk [vmem:[%s10159_s8 + $0x80] sm:$0xf] %vm3719_vm4, %v8816_v50  ;;  %v10527_v7 = vsel %vm3996_vm2, 1.0, %v13134_v19  ;;  %vm3994_vm10 = vcmp.gt.f32.partialorder %v3978_v21, 0.2  ;;  %v3983_v27 = vadd.f32 %v10394_v12, %v2721_v53  ;;  %v10532_v17 = vadd.f32 %v10384_v2, %v10142_v39 }
 0x171   : > { %v8819_v34 = vpack.c.bf16 %v10527_v7, %v10527_v7  ;;  %v10539_v48 = vsel %vm3994_vm10, 1.0, %v13134_v19  ;;  %v10541_v24 = vmul.f32 0.25, %v3978_v21  ;;  %v2713_v44 = vadd.f32 %v10142_v39, %v2712_v26  ;;  %v9211_v51 = vpop.f32.mrf.mxu0  ;;  %v10549_v50 = vpop.f32.mrf.mxu1 }
 0x172   : > { %13135 = vst [vmem:[#allocation22_spill] sm:$0xff] %v10532_v17  ;;  %v8817_v12 = vpack.c.bf16 %v10539_v48, %v10539_v48  ;;  %vm3999_vm11 = vcmp.gt.f32.partialorder %v3983_v27, 0.2  ;;  %v2724_v2 = vadd.f32 %v9211_v51, %v10142_v39  ;;  %v10547_v52 = vmul.f32 %v3958_v43, %v3942_v60 }
 0x173   : > { %8141 = vst.msk [vmem:[%s10159_s8 + $0x8c] sm:$0xf] %vm3719_vm4, %v8819_v34  ;;  %v10554_v53 = vsel %vm3999_vm11, 1.0, %v13134_v19  ;;  %v10556_v21 = vmul.f32 0.25, %v3983_v27  ;;  %v3981_v26 = vadd.f32 %v10402_v38, %v2713_v44  ;;  %v2715_v30 = vpop.f32.mrf.mxu0  ;;  %v4140_v59 = vsub.f32 1.0, %v8108_v16  ;;  %v10566_v45 = vpop.f32.mrf.mxu1 }
 0x174   : > { %8139 = vst.msk [vmem:[%s10159_s8 + $0x84] sm:$0xf] %vm3719_vm4, %v8817_v12  ;;  %v8822_v60 = vpack.c.bf16 %v10554_v53, %v10554_v53  ;;  %v3984_v43 = vadd.f32 %v10419_v0, %v2724_v2  ;;  %v2716_v51 = vadd.f32 %v10142_v39, %v2715_v30  ;;  %v4138_v34 = vsub.f32 1.0, %v10505_v28 }
 0x175   : > { %vm3997_vm12 = vcmp.gt.f32.partialorder %v3981_v26, 0.2  ;;  %v10568_v27 = vmul.f32 0.25, %v3981_v26  ;;  %v9214_v42 = vpop.f32.mrf.mxu0  ;;  %v10570_v38 = vmul.f32 %v4140_v59, %v4124_v5  ;;  %v10574_v16 = vadd.f32 %v10142_v39, %v10396_v14  ;;  %v10586_v44 = vpop.f32.mrf.mxu1 }
 0x176   : > { %8144 = vst.msk [vmem:[%s10159_s8 + $0x98] sm:$0xf] %vm3719_vm4, %v8822_v60  ;;  %v10579_v0 = vsel %vm3997_vm12, 1.0, %v13134_v19  ;;  %vm4000_vm13 = vcmp.gt.f32.partialorder %v3984_v43, 0.2  ;;  %v3982_v30 = vadd.f32 %v10425_v3, %v2716_v51  ;;  %v10584_v28 = vadd.f32 %v10404_v15, %v10142_v39 }
 0x177   : > { %13136 = vst [vmem:[#allocation23_spill] sm:$0xff] %v10574_v16  ;;  %v8820_v59 = vpack.c.bf16 %v10579_v0, %v10579_v0  ;;  %v10591_v14 = vsel %vm4000_vm13, 1.0, %v13134_v19  ;;  %v10593_v5 = vmul.f32 0.25, %v3984_v43  ;;  %v2737_v12 = vadd.f32 %v9214_v42, %v10142_v39  ;;  %v2728_v2 = vpop.f32.mrf.mxu0  ;;  %v10601_v60 = vpop.f32.mrf.mxu1 }
 0x178   : > { %13137 = vst [vmem:[#allocation24_spill] sm:$0xff] %v10584_v28  ;;  %v8823_v3 = vpack.c.bf16 %v10591_v14, %v10591_v14  ;;  %vm3998_vm14 = vcmp.gt.f32.partialorder %v3982_v30, 0.2  ;;  %v2729_v15 = vadd.f32 %v10142_v39, %v2728_v2  ;;  %v10599_v26 = vmul.f32 %v4138_v34, %v4122_v49 }
 0x179   : > { %8142 = vst.msk [vmem:[%s10159_s8 + $0x90] sm:$0xf] %vm3719_vm4, %v8820_v59  ;;  %v10606_v51 = vsel %vm3998_vm14, 1.0, %v13134_v19  ;;  %v10608_v43 = vmul.f32 0.25, %v3982_v30  ;;  %v3987_v42 = vadd.f32 %v10434_v33, %v2737_v12  ;;  %v9215_v32 = vpop.f32.mrf.mxu0  ;;  %v4141_v29 = vsub.f32 1.0, %v10527_v7  ;;  %v10619_v9 = vpop.f32.mrf.mxu1 }
 0x17a   : > { %8145 = vst.msk [vmem:[%s10159_s8 + $0x9c] sm:$0xf] %vm3719_vm4, %v8823_v3  ;;  %v8821_v49 = vpack.c.bf16 %v10606_v51, %v10606_v51  ;;  %v3985_v34 = vadd.f32 %v10449_v63, %v2729_v15  ;;  %v2740_v59 = vadd.f32 %v9215_v32, %v10142_v39  ;;  %v4139_v2 = vsub.f32 1.0, %v10539_v48  ;;  %v10639_v48 = vld [vmem:[%s13111_s2] ss:$0 sm:$0xff] }
 0x17b   : > { %vm4003_vm15 = vcmp.gt.f32.partialorder %v3987_v42, 0.2  ;;  %v10621_v30 = vmul.f32 0.25, %v3987_v42  ;;  %v2731_v33 = vpop.f32.mrf.mxu0  ;;  %v10624_v12 = vmul.f32 %v4141_v29, %v10516_v46  ;;  %v10628_v7 = vadd.f32 %v10142_v39, %v10416_v23  ;;  %v10645_v39 = vpop.f32.mrf.mxu1 }
 0x17c   : > { %8143 = vst.msk [vmem:[%s10159_s8 + $0x94] sm:$0xf] %vm3719_vm4, %v8821_v49  ;;  %v10633_v63 = vsel %vm4003_vm15, 1.0, %v13134_v19  ;;  %vm4001_vm0 = vcmp.gt.f32.partialorder %v3985_v34, 0.2  ;;  %v3988_v32 = vadd.f32 %v10456_v10, %v2740_v59  ;;  %v10643_v46 = vadd.f32 %v10639_v48, %v10427_v6 }
 0x17d   : > { %13138 = vst [vmem:[#allocation25_spill] sm:$0xff] %v10628_v7  ;;  %v8826_v29 = vpack.c.bf16 %v10633_v63, %v10633_v63  ;;  %v10650_v23 = vsel %vm4001_vm0, 1.0, %v13134_v19  ;;  %v10652_v3 = vmul.f32 0.25, %v3985_v34  ;;  %v2732_v10 = vadd.f32 %v10639_v48, %v2731_v33  ;;  %v9218_v15 = vpop.f32.mrf.mxu0  ;;  %v10661_v59 = vpop.f32.mrf.mxu1 }
 0x17e   : > { %13139 = vst [vmem:[#allocation26_spill] sm:$0xff] %v10643_v46  ;;  %v8824_v42 = vpack.c.bf16 %v10650_v23, %v10650_v23  ;;  %vm4004_vm1 = vcmp.gt.f32.partialorder %v3988_v32, 0.2  ;;  %v2753_v6 = vadd.f32 %v10639_v48, %v9218_v15  ;;  %v10659_v49 = vmul.f32 %v4139_v2, %v10541_v24 }
 0x17f   : > { %8148 = vst.msk [vmem:[%s10159_s8 + $0xa8] sm:$0xf] %vm3719_vm4, %v8826_v29  ;;  %v10666_v46 = vsel %vm4004_vm1, 1.0, %v13134_v19  ;;  %v10668_v34 = vmul.f32 0.25, %v3988_v32  ;;  %v3986_v33 = vadd.f32 %v10463_v13, %v2732_v10  ;;  %v2744_v61 = vpop.f32.mrf.mxu0  ;;  %v4144_v7 = vsub.f32 1.0, %v10554_v53  ;;  %v10679_v41 = vpop.f32.mrf.mxu1 }
 0x180   : > { %8146 = vst.msk [vmem:[%s10159_s8 + $0xa0] sm:$0xf] %vm3719_vm4, %v8824_v42  ;;  %v8827_v24 = vpack.c.bf16 %v10666_v46, %v10666_v46  ;;  %v3991_v2 = vadd.f32 %v10478_v20, %v2753_v6  ;;  %v2745_v29 = vadd.f32 %v10639_v48, %v2744_v61  ;;  %v4142_v15 = vsub.f32 1.0, %v10579_v0 }
 0x181   : > { %vm4002_vm3 = vcmp.gt.f32.partialorder %v3986_v33, 0.2  ;;  %v10681_v32 = vmul.f32 0.25, %v3986_v33  ;;  %v9219_v13 = vpop.f32.mrf.mxu0  ;;  %v10684_v10 = vmul.f32 %v4144_v7, %v10556_v21  ;;  %v10688_v53 = vadd.f32 %v10639_v48, %v10436_v56  ;;  %v10700_v42 = vpop.f32.mrf.mxu1 }
 0x182   : > { %8149 = vst.msk [vmem:[%s10159_s8 + $0xac] sm:$0xf] %vm3719_vm4, %v8827_v24  ;;  %v10693_v61 = vsel %vm4002_vm3, 1.0, %v13134_v19  ;;  %vm4007_vm5 = vcmp.gt.f32.partialorder %v3991_v2, 0.2  ;;  %v3989_v20 = vadd.f32 %v10498_v18, %v2745_v29  ;;  %v10698_v0 = vadd.f32 %v10639_v48, %v10446_v57 }
 0x183   : > { %13140 = vst [vmem:[#allocation27_spill] sm:$0xff] %v10688_v53  ;;  %v8825_v21 = vpack.c.bf16 %v10693_v61, %v10693_v61  ;;  %v10705_v56 = vsel %vm4007_vm5, 1.0, %v13134_v19  ;;  %v10707_v7 = vmul.f32 0.25, %v3991_v2  ;;  %v2756_v6 = vadd.f32 %v10639_v48, %v9219_v13  ;;  %v2747_v33 = vpop.f32.mrf.mxu0  ;;  %v10716_v29 = vpop.f32.mrf.mxu1 }
 0x184   : > { %13141 = vst [vmem:[#allocation28_spill] sm:$0xff] %v10698_v0  ;;  %v8830_v18 = vpack.c.bf16 %v10705_v56, %v10705_v56  ;;  %vm4005_vm6 = vcmp.gt.f32.partialorder %v3989_v20, 0.2  ;;  %v2748_v57 = vadd.f32 %v10639_v48, %v2747_v33  ;;  %v10714_v24 = vmul.f32 %v4142_v15, %v10568_v27 }
 0x185   : > { %8147 = vst.msk [vmem:[%s10159_s8 + $0xa4] sm:$0xf] %vm3719_vm4, %v8825_v21  ;;  %v10721_v0 = vsel %vm4005_vm6, 1.0, %v13134_v19  ;;  %v10723_v2 = vmul.f32 0.25, %v3989_v20  ;;  %v3992_v13 = vadd.f32 %v10518_v40, %v2756_v6  ;;  %v9222_v53 = vpop.f32.mrf.mxu0  ;;  %v4145_v36 = vsub.f32 1.0, %v10591_v14  ;;  %v10734_v28 = vpop.f32.mrf.mxu1 }
 0x186   : > { %8152 = vst.msk [vmem:[%s10159_s8 + $0xb8] sm:$0xf] %vm3719_vm4, %v8830_v18  ;;  %v8828_v27 = vpack.c.bf16 %v10721_v0, %v10721_v0  ;;  %v3990_v15 = vadd.f32 %v10547_v52, %v2748_v57  ;;  %v2769_v21 = vadd.f32 %v10639_v48, %v9222_v53  ;;  %v4143_v33 = vsub.f32 1.0, %v10606_v51 }
 0x187   : > { %vm4008_vm7 = vcmp.gt.f32.partialorder %v3992_v13, 0.2  ;;  %v10736_v20 = vmul.f32 0.25, %v3992_v13  ;;  %v2760_v40 = vpop.f32.mrf.mxu0  ;;  %v10739_v6 = vmul.f32 %v4145_v36, %v10593_v5  ;;  %v10743_v14 = vadd.f32 %v10639_v48, %v10458_v8  ;;  %v10755_v18 = vpop.f32.mrf.mxu1 }
 0x188   : > { %8150 = vst.msk [vmem:[%s10159_s8 + $0xb0] sm:$0xf] %vm3719_vm4, %v8828_v27  ;;  %v10748_v52 = vsel %vm4008_vm7, 1.0, %v13134_v19  ;;  %vm4006_vm8 = vcmp.gt.f32.partialorder %v3990_v15, 0.2  ;;  %v4172_v51 = vadd.f32 %v10570_v38, %v2769_v21  ;;  %v10753_v53 = vadd.f32 %v10639_v48, %v10465_v25 }
 0x189   : > { %13142 = vst [vmem:[#allocation29_spill] sm:$0xff] %v10743_v14  ;;  %v8831_v36 = vpack.c.bf16 %v10748_v52, %v10748_v52  ;;  %v10760_v8 = vsel %vm4006_vm8, 1.0, %v13134_v19  ;;  %v10762_v5 = vmul.f32 0.25, %v3990_v15  ;;  %v2761_v57 = vadd.f32 %v10639_v48, %v2760_v40  ;;  %v9223_v13 = vpop.f32.mrf.mxu0  ;;  %v10771_v21 = vpop.f32.mrf.mxu1 }
 0x18a   : > { %13143 = vst [vmem:[#allocation30_spill] sm:$0xff] %v10753_v53  ;;  %v8829_v38 = vpack.c.bf16 %v10760_v8, %v10760_v8  ;;  %vm4188_vm9 = vcmp.gt.f32.partialorder %v4172_v51, 0.2  ;;  %v2772_v25 = vadd.f32 %v10639_v48, %v9223_v13  ;;  %v10769_v27 = vmul.f32 %v4143_v33, %v10608_v43 }
 0x18b   : > { %8153 = vst.msk [vmem:[%s10159_s8 + $0xbc] sm:$0xf] %vm3719_vm4, %v8831_v36  ;;  %v10776_v53 = vsel %vm4188_vm9, 1.0, %v13134_v19  ;;  %v10778_v15 = vmul.f32 0.25, %v4172_v51  ;;  %v4170_v40 = vadd.f32 %v10599_v26, %v2761_v57  ;;  %v2763_v14 = vpop.f32.mrf.mxu0  ;;  %v4148_v22 = vsub.f32 1.0, %v10633_v63  ;;  %v10789_v16 = vpop.f32.mrf.mxu1 }
 0x18c   : > { %8151 = vst.msk [vmem:[%s10159_s8 + $0xb4] sm:$0xf] %vm3719_vm4, %v8829_v38  ;;  %v8834_v43 = vpack.c.bf16 %v10776_v53, %v10776_v53  ;;  %v4173_v33 = vadd.f32 %v10624_v12, %v2772_v25  ;;  %v2764_v36 = vadd.f32 %v10639_v48, %v2763_v14  ;;  %v4146_v13 = vsub.f32 1.0, %v10650_v23 }
 0x18d   : > { %vm4186_vm2 = vcmp.gt.f32.partialorder %v4170_v40, 0.2  ;;  %v10791_v51 = vmul.f32 0.25, %v4170_v40  ;;  %v9226_v26 = vpop.f32.mrf.mxu0  ;;  %v4164_v57 = vmul.f32 %v4148_v22, %v10621_v30  ;;  %v10796_v63 = vadd.f32 %v10639_v48, %v10476_v58  ;;  %v10808_v38 = vpop.f32.mrf.mxu1 }
 0x18e   : > { %8188 = vst.msk [vmem:[%s10159_s8 + $0xc8] sm:$0xf] %vm3719_vm4, %v8834_v43  ;;  %v10801_v12 = vsel %vm4186_vm2, 1.0, %v13134_v19  ;;  %vm4189_vm10 = vcmp.gt.f32.partialorder %v4173_v33, 0.2  ;;  %v4171_v23 = vadd.f32 %v10659_v49, %v2764_v36  ;;  %v10806_v14 = vadd.f32 %v10639_v48, %v10492_v11 }
 0x18f   : > { %13144 = vst [vmem:[#allocation31_spill] sm:$0xff] %v10796_v63  ;;  %v8832_v22 = vpack.c.bf16 %v10801_v12, %v10801_v12  ;;  %v10813_v58 = vsel %vm4189_vm10, 1.0, %v13134_v19  ;;  %v10815_v30 = vmul.f32 0.25, %v4173_v33  ;;  %v2785_v25 = vadd.f32 %v10639_v48, %v9226_v26  ;;  %v2776_v40 = vpop.f32.mrf.mxu0  ;;  %v10822_v36 = vpop.f32.mrf.mxu1 }
 0x190   : > { %13145 = vst [vmem:[#allocation32_spill] sm:$0xff] %v10806_v14  ;;  %v8835_v49 = vpack.c.bf16 %v10813_v58, %v10813_v58  ;;  %vm4187_vm11 = vcmp.gt.f32.partialorder %v4171_v23, 0.2  ;;  %v2777_v11 = vadd.f32 %v10639_v48, %v2776_v40  ;;  %v4162_v43 = vmul.f32 %v4146_v13, %v10652_v3 }
 0x191   : > { %8186 = vst.msk [vmem:[%s10159_s8 + $0xc0] sm:$0xf] %vm3719_vm4, %v8832_v22  ;;  %v10827_v14 = vsel %vm4187_vm11, 1.0, %v13134_v19  ;;  %v10829_v33 = vmul.f32 0.25, %v4171_v23  ;;  %v4176_v26 = vadd.f32 %v10684_v10, %v2785_v25  ;;  %v9227_v63 = vpop.f32.mrf.mxu0  ;;  %v4149_v17 = vsub.f32 1.0, %v10666_v46  ;;  %v10840_v47 = vpop.f32.mrf.mxu1 }
 0x192   : > { %8189 = vst.msk [vmem:[%s10159_s8 + $0xcc] sm:$0xf] %vm3719_vm4, %v8835_v49  ;;  %v8833_v3 = vpack.c.bf16 %v10827_v14, %v10827_v14  ;;  %v4174_v13 = vadd.f32 %v10714_v24, %v2777_v11  ;;  %v2788_v22 = vadd.f32 %v10639_v48, %v9227_v63  ;;  %v4147_v40 = vsub.f32 1.0, %v10693_v61 }
 0x193   : > { %vm4192_vm12 = vcmp.gt.f32.partialorder %v4176_v26, 0.2  ;;  %v10842_v23 = vmul.f32 0.25, %v4176_v26  ;;  %v2779_v10 = vpop.f32.mrf.mxu0  ;;  %v4165_v25 = vmul.f32 %v4149_v17, %v10668_v34  ;;  %v10847_v46 = vadd.f32 %v10639_v48, %v10500_v31  ;;  %v10859_v49 = vpop.f32.mrf.mxu1 }
 0x194   : > { %8187 = vst.msk [vmem:[%s10159_s8 + $0xc4] sm:$0xf] %vm3719_vm4, %v8833_v3  ;;  %v10852_v24 = vsel %vm4192_vm12, 1.0, %v13134_v19  ;;  %vm4190_vm13 = vcmp.gt.f32.partialorder %v4174_v13, 0.2  ;;  %v4177_v61 = vadd.f32 %v10739_v6, %v2788_v22  ;;  %v10857_v63 = vadd.f32 %v10639_v48, %v10514_v62 }
 0x195   : > { %13146 = vst [vmem:[#allocation33_spill] sm:$0xff] %v10847_v46  ;;  %v8838_v17 = vpack.c.bf16 %v10852_v24, %v10852_v24  ;;  %v10864_v31 = vsel %vm4190_vm13, 1.0, %v13134_v19  ;;  %v10866_v34 = vmul.f32 0.25, %v4174_v13  ;;  %v2780_v11 = vadd.f32 %v10639_v48, %v2779_v10  ;;  %v9230_v26 = vpop.f32.mrf.mxu0  ;;  %v10873_v22 = vpop.f32.mrf.mxu1 }
 0x196   : > { %13147 = vst [vmem:[#allocation34_spill] sm:$0xff] %v10857_v63  ;;  %v8836_v6 = vpack.c.bf16 %v10864_v31, %v10864_v31  ;;  %vm4193_vm14 = vcmp.gt.f32.partialorder %v4177_v61, 0.2  ;;  %v2801_v62 = vadd.f32 %v10639_v48, %v9230_v26  ;;  %v4163_v3 = vmul.f32 %v4147_v40, %v10681_v32 }
 0x197   : > { %8192 = vst.msk [vmem:[%s10159_s8 + $0xd8] sm:$0xf] %vm3719_vm4, %v8838_v17  ;;  %v10878_v63 = vsel %vm4193_vm14, 1.0, %v13134_v19  ;;  %v10880_v13 = vmul.f32 0.25, %v4177_v61  ;;  %v4175_v10 = vadd.f32 %v10769_v27, %v2780_v11  ;;  %v2792_v46 = vpop.f32.mrf.mxu0  ;;  %v4152_v4 = vsub.f32 1.0, %v10705_v56  ;;  %v10890_v54 = vpop.f32.mrf.mxu1 }
 0x198   : > { %8190 = vst.msk [vmem:[%s10159_s8 + $0xd0] sm:$0xf] %vm3719_vm4, %v8836_v6  ;;  %v8839_v32 = vpack.c.bf16 %v10878_v63, %v10878_v63  ;;  %v4180_v40 = vadd.f32 %v4164_v57, %v2801_v62  ;;  %v2793_v26 = vadd.f32 %v10639_v48, %v2792_v46  ;;  %v4150_v17 = vsub.f32 1.0, %v10721_v0 }
 0x199   : > { %vm4191_vm15 = vcmp.gt.f32.partialorder %v4175_v10, 0.2  ;;  %v10892_v61 = vmul.f32 0.25, %v4175_v10  ;;  %v9231_v1 = vpop.f32.mrf.mxu0  ;;  %v4168_v27 = vmul.f32 %v4152_v4, %v10707_v7  ;;  %v10897_v56 = vadd.f32 %v10639_v48, %v10534_v37  ;;  %v10908_v11 = vpop.f32.mrf.mxu1 }
 0x19a   : > { %8193 = vst.msk [vmem:[%s10159_s8 + $0xdc] sm:$0xf] %vm3719_vm4, %v8839_v32  ;;  %v10902_v57 = vsel %vm4191_vm15, 1.0, %v13134_v19  ;;  %vm4196_vm0 = vcmp.gt.f32.partialorder %v4180_v40, 0.2  ;;  %v4178_v0 = vadd.f32 %v4162_v43, %v2793_v26  ;;  %v10906_v46 = vadd.f32 %v10639_v48, %v10549_v50 }
 0x19b   : > { %13148 = vst [vmem:[#allocation35_spill] sm:$0xff] %v10897_v56  ;;  %v8837_v4 = vpack.c.bf16 %v10902_v57, %v10902_v57  ;;  %v10913_v37 = vsel %vm4196_vm0, 1.0, %v13134_v19  ;;  %v10915_v7 = vmul.f32 0.25, %v4180_v40  ;;  %v2804_v6 = vadd.f32 %v10639_v48, %v9231_v1  ;;  %v2795_v62 = vpop.f32.mrf.mxu0  ;;  %v10922_v32 = vpop.f32.mrf.mxu1 }
 0x19c   : > { %13149 = vst [vmem:[#allocation36_spill] sm:$0xff] %v10906_v46  ;;  %v8842_v43 = vpack.c.bf16 %v10913_v37, %v10913_v37  ;;  %vm4194_vm1 = vcmp.gt.f32.partialorder %v4178_v0, 0.2  ;;  %v2796_v50 = vadd.f32 %v10639_v48, %v2795_v62  ;;  %v4166_v10 = vmul.f32 %v4150_v17, %v10723_v2 }
 0x19d   : > { %8191 = vst.msk [vmem:[%s10159_s8 + $0xd4] sm:$0xf] %vm3719_vm4, %v8837_v4  ;;  %v10927_v26 = vsel %vm4194_vm1, 1.0, %v13134_v19  ;;  %v10929_v40 = vmul.f32 0.25, %v4178_v0  ;;  %v4181_v1 = vadd.f32 %v4165_v25, %v2804_v6  ;;  %v9234_v56 = vpop.f32.mrf.mxu0  ;;  %v4153_v46 = vsub.f32 1.0, %v10748_v52  ;;  %v10938_v55 = vpop.f32.mrf.mxu1 }
 0x19e   : > { %8196 = vst.msk [vmem:[%s10159_s8 + $0xe8] sm:$0xf] %vm3719_vm4, %v8842_v43  ;;  %v8840_v62 = vpack.c.bf16 %v10927_v26, %v10927_v26  ;;  %v4179_v2 = vadd.f32 %v4163_v3, %v2796_v50  ;;  %v2817_v17 = vadd.f32 %v10639_v48, %v9234_v56  ;;  %v4151_v4 = vsub.f32 1.0, %v10760_v8 }
 0x19f   : > { %vm4197_vm3 = vcmp.gt.f32.partialorder %v4181_v1, 0.2  ;;  %v10940_v35 = vmul.f32 0.25, %v4181_v1  ;;  %v2808_v0 = vpop.f32.mrf.mxu0  ;;  %v4169_v25 = vmul.f32 %v4153_v46, %v10736_v20  ;;  %v10945_v52 = vadd.f32 %v10639_v48, %v10566_v45  ;;  %v10956_v6 = vpop.f32.mrf.mxu1 }
 0x1a0   : > { %8194 = vst.msk [vmem:[%s10159_s8 + $0xe0] sm:$0xf] %vm3719_vm4, %v8840_v62  ;;  %v10950_v3 = vsel %vm4197_vm3, 1.0, %v13134_v19  ;;  %vm4195_vm5 = vcmp.gt.f32.partialorder %v4179_v2, 0.2  ;;  %v4184_v8 = vadd.f32 %v4168_v27, %v2817_v17  ;;  %v10954_v56 = vadd.f32 %v10639_v48, %v10586_v44  ;;  %13152 = vst [vmem:[#allocation39_spill] sm:$0xff] %v10956_v6 }
 0x1a1   : > { %13150 = vst [vmem:[#allocation37_spill] sm:$0xff] %v10945_v52  ;;  %v8843_v20 = vpack.c.bf16 %v10950_v3, %v10950_v3  ;;  %v10961_v45 = vsel %vm4195_vm5, 1.0, %v13134_v19  ;;  %v10963_v46 = vmul.f32 0.25, %v4179_v2  ;;  %v2809_v43 = vadd.f32 %v10639_v48, %v2808_v0  ;;  %v9235_v50 = vpop.f32.mrf.mxu0  ;;  %v10970_v62 = vpop.f32.mrf.mxu1 }
 0x1a2   : > { %13151 = vst [vmem:[#allocation38_spill] sm:$0xff] %v10954_v56  ;;  %v8841_v27 = vpack.c.bf16 %v10961_v45, %v10961_v45  ;;  %vm4200_vm6 = vcmp.gt.f32.partialorder %v4184_v8, 0.2  ;;  %v2820_v44 = vadd.f32 %v10639_v48, %v9235_v50  ;;  %v4167_v1 = vmul.f32 %v4151_v4, %v10762_v5  ;;  %13153 = vst [vmem:[#allocation40_spill] sm:$0xff] %v10970_v62 }
 0x1a3   : > { %8197 = vst.msk [vmem:[%s10159_s8 + $0xec] sm:$0xf] %vm3719_vm4, %v8843_v20  ;;  %v10975_v17 = vsel %vm4200_vm6, 1.0, %v13134_v19  ;;  %v10977_v2 = vmul.f32 0.25, %v4184_v8  ;;  %v4182_v0 = vadd.f32 %v4166_v10, %v2809_v43  ;;  %v2811_v56 = vpop.f32.mrf.mxu0  ;;  %v4333_v52 = vsub.f32 1.0, %v10776_v53  ;;  %v10986_v62 = vpop.f32.mrf.mxu1 }
 0x1a4   : > { %8195 = vst.msk [vmem:[%s10159_s8 + $0xe4] sm:$0xf] %vm3719_vm4, %v8841_v27  ;;  %v8846_v50 = vpack.c.bf16 %v10975_v17, %v10975_v17  ;;  %v4185_v5 = vadd.f32 %v4169_v25, %v2820_v44  ;;  %v2812_v4 = vadd.f32 %v10639_v48, %v2811_v56  ;;  %v4331_v20 = vsub.f32 1.0, %v10801_v12 }
 0x1a5   : > { %vm4198_vm7 = vcmp.gt.f32.partialorder %v4182_v0, 0.2  ;;  %v10988_v6 = vmul.f32 0.25, %v4182_v0  ;;  %v9238_v8 = vpop.f32.mrf.mxu0  ;;  %v4349_v10 = vmul.f32 %v4333_v52, %v10778_v15  ;;  %v10993_v53 = vadd.f32 %v10639_v48, %v10601_v60  ;;  %v11004_v43 = vpop.f32.mrf.mxu1 }
 0x1a6   : > { %8200 = vst.msk [vmem:[%s10159_s8 + $0xf8] sm:$0xf] %vm3719_vm4, %v8846_v50  ;;  %v10998_v25 = vsel %vm4198_vm7, 1.0, %v13134_v19  ;;  %vm4201_vm8 = vcmp.gt.f32.partialorder %v4185_v5, 0.2  ;;  %v4183_v12 = vadd.f32 %v4167_v1, %v2812_v4  ;;  %v11002_v56 = vadd.f32 %v10639_v48, %v10619_v9  ;;  %13156 = vst [vmem:[#allocation43_spill] sm:$0xff] %v11004_v43 }
 0x1a7   : > { %13154 = vst [vmem:[#allocation41_spill] sm:$0xff] %v10993_v53  ;;  %v8844_v15 = vpack.c.bf16 %v10998_v25, %v10998_v25  ;;  %v11009_v60 = vsel %vm4201_vm8, 1.0, %v13134_v19  ;;  %v11011_v52 = vmul.f32 0.25, %v4185_v5  ;;  %v2833_v27 = vadd.f32 %v10639_v48, %v9238_v8  ;;  %v2824_v44 = vpop.f32.mrf.mxu0 }
 0x1a8   : > { %13155 = vst [vmem:[#allocation42_spill] sm:$0xff] %v11002_v56  ;;  %v8847_v1 = vpack.c.bf16 %v11009_v60, %v11009_v60  ;;  %vm4199_vm9 = vcmp.gt.f32.partialorder %v4183_v12, 0.2  ;;  %v2825_v9 = vadd.f32 %v10639_v48, %v2824_v44  ;;  %v4347_v0 = vmul.f32 %v4331_v20, %v10791_v51 }
 0x1a9   : > { %8198 = vst.msk [vmem:[%s10159_s8 + $0xf0] sm:$0xf] %vm3719_vm4, %v8844_v15  ;;  %v11021_v50 = vsel %vm4199_vm9, 1.0, %v13134_v19  ;;  %v11023_v4 = vmul.f32 0.25, %v4183_v12  ;;  %v4365_v5 = vadd.f32 %v4349_v10, %v2833_v27  ;;  %v9239_v56 = vpop.f32.mrf.mxu0  ;;  %v4334_v8 = vsub.f32 1.0, %v10813_v58  ;;  %v11032_v15 = vpop.f32.mrf.mxu1 }
 0x1aa   : > { %8201 = vst.msk [vmem:[%s10159_s8 + $0xfc] sm:$0xf] %vm3719_vm4, %v8847_v1  ;;  %v8845_v53 = vpack.c.bf16 %v11021_v50, %v11021_v50  ;;  %v4363_v44 = vadd.f32 %v4347_v0, %v2825_v9  ;;  %v2836_v51 = vadd.f32 %v10639_v48, %v9239_v56  ;;  %v4332_v20 = vsub.f32 1.0, %v10827_v14 }
 0x1ab   : > { %vm4381_vm2 = vcmp.gt.f32.partialorder %v4365_v5, 0.2  ;;  %v11034_v43 = vmul.f32 0.25, %v4365_v5  ;;  %v4350_v10 = vmul.f32 %v4334_v8, %v10815_v30  ;;  %v11039_v58 = vadd.f32 %v10639_v48, %v10645_v39  ;;  %v2827_v12 = vpop.f32.mrf.mxu0 }
 0x1ac   : > { %8199 = vst.msk [vmem:[%s10159_s8 + $0xf4] sm:$0xf] %vm3719_vm4, %v8845_v53  ;;  %v11044_v27 = vsel %vm4381_vm2, 1.0, %v13134_v19  ;;  %vm4379_vm10 = vcmp.gt.f32.partialorder %v4363_v44, 0.2  ;;  %v2828_v14 = vadd.f32 %v10639_v48, %v2827_v12  ;;  %v11049_v56 = vadd.f32 %v10639_v48, %v10661_v59  ;;  %v11063_v12 = vpop.f32.mrf.mxu1 }
 0x1ad   : > { %v8850_v30 = vpack.c.bf16 %v11044_v27, %v11044_v27  ;;  %v11054_v39 = vsel %vm4379_vm10, 1.0, %v13134_v19  ;;  %v4366_v1 = vadd.f32 %v4350_v10, %v2836_v51  ;;  %v4348_v53 = vmul.f32 %v4332_v20, %v10829_v33  ;;  %v9242_v9 = vpop.f32.mrf.mxu0 }
 0x1ae   : > { %13157 = vst [vmem:[#allocation44_spill] sm:$0xff] %v11049_v56  ;;  %v8848_v0 = vpack.c.bf16 %v11054_v39, %v11054_v39  ;;  %v11059_v5 = vmul.f32 0.25, %v4363_v44  ;;  %v2849_v8 = vadd.f32 %v10639_v48, %v9242_v9  ;;  %v4337_v59 = vsub.f32 1.0, %v10852_v24 }
 0x1af   : > { %8236 = vst.msk [vmem:[%s10159_s8 + $0x108] sm:$0xf] %vm3719_vm4, %v8850_v30  ;;  %vm4382_vm11 = vcmp.gt.f32.partialorder %v4366_v1, 0.2  ;;  %v4364_v56 = vadd.f32 %v4348_v53, %v2828_v14  ;;  %v11069_v51 = vadd.f32 %v10639_v48, %v10679_v41  ;;  %v2840_v33 = vpop.f32.mrf.mxu0  ;;  %v4335_v20 = vsub.f32 1.0, %v10864_v31 }
 0x1b0   : > { %8234 = vst.msk [vmem:[%s10159_s8 + $0x100] sm:$0xf] %vm3719_vm4, %v8848_v0  ;;  %v11075_v44 = vsel %vm4382_vm11, 1.0, %v13134_v19  ;;  %v11077_v24 = vmul.f32 0.25, %v4366_v1  ;;  %v4353_v10 = vmul.f32 %v4337_v59, %v10842_v23  ;;  %v2841_v30 = vadd.f32 %v10639_v48, %v2840_v33  ;;  %v11093_v59 = vpop.f32.mrf.mxu1 }
 0x1b1   : > { %13158 = vst [vmem:[#allocation45_spill] sm:$0xff] %v11069_v51  ;;  %v8851_v14 = vpack.c.bf16 %v11075_v44, %v11075_v44  ;;  %vm4380_vm12 = vcmp.gt.f32.partialorder %v4364_v56, 0.2  ;;  %v4351_v41 = vmul.f32 %v4335_v20, %v10866_v34  ;;  %v11086_v31 = vadd.f32 %v10639_v48, %v10700_v42  ;;  %v9243_v53 = vpop.f32.mrf.mxu0 }
 0x1b2   : > { %v11089_v9 = vsel %vm4380_vm12, 1.0, %v13134_v19  ;;  %v4369_v1 = vadd.f32 %v4353_v10, %v2849_v8  ;;  %v2852_v23 = vadd.f32 %v10639_v48, %v9243_v53  ;;  %v4338_v0 = vsub.f32 1.0, %v10878_v63 }
 0x1b3   : > { %13159 = vst [vmem:[#allocation46_spill] sm:$0xff] %v11086_v31  ;;  %8237 = vst.msk [vmem:[%s10159_s8 + $0x10c] sm:$0xf] %vm3719_vm4, %v8851_v14  ;;  %v8849_v34 = vpack.c.bf16 %v11089_v9, %v11089_v9  ;;  %v11099_v33 = vmul.f32 0.25, %v4364_v56  ;;  %v4367_v42 = vadd.f32 %v4351_v41, %v2841_v30  ;;  %v2843_v20 = vpop.f32.mrf.mxu0  ;;  %v4336_v31 = vsub.f32 1.0, %v10902_v57 }
 0x1b4   : > { %vm4385_vm13 = vcmp.gt.f32.partialorder %v4369_v1, 0.2  ;;  %v4354_v8 = vmul.f32 %v4338_v0, %v10880_v13  ;;  %v11105_v10 = vadd.f32 %v10639_v48, %v10716_v29  ;;  %v2844_v63 = vadd.f32 %v10639_v48, %v2843_v20  ;;  %v11123_v0 = vpop.f32.mrf.mxu1 }
 0x1b5   : > { %8235 = vst.msk [vmem:[%s10159_s8 + $0x104] sm:$0xf] %vm3719_vm4, %v8849_v34  ;;  %v11111_v14 = vsel %vm4385_vm13, 1.0, %v13134_v19  ;;  %v11113_v56 = vmul.f32 0.25, %v4369_v1  ;;  %vm4383_vm14 = vcmp.gt.f32.partialorder %v4367_v42, 0.2  ;;  %v4352_v57 = vmul.f32 %v4336_v31, %v10892_v61  ;;  %v9246_v30 = vpop.f32.mrf.mxu0 }
 0x1b6   : > { %13160 = vst [vmem:[#allocation47_spill] sm:$0xff] %v11105_v10  ;;  %v8854_v13 = vpack.c.bf16 %v11111_v14, %v11111_v14  ;;  %v11119_v29 = vsel %vm4383_vm14, 1.0, %v13134_v19  ;;  %v11121_v41 = vmul.f32 0.25, %v4367_v42  ;;  %v4370_v53 = vadd.f32 %v4354_v8, %v2852_v23 }
 0x1b7   : > { %v8852_v1 = vpack.c.bf16 %v11119_v29, %v11119_v29  ;;  %v4368_v34 = vadd.f32 %v4352_v57, %v2844_v63  ;;  %v2865_v20 = vadd.f32 %v10639_v48, %v9246_v30  ;;  %v4341_v61 = vsub.f32 1.0, %v10913_v37  ;;  %v2856_v31 = vpop.f32.mrf.mxu0 }
 0x1b8   : > { %8240 = vst.msk [vmem:[%s10159_s8 + $0x118] sm:$0xf] %vm3719_vm4, %v8854_v13  ;;  %vm4386_vm15 = vcmp.gt.f32.partialorder %v4370_v53, 0.2  ;;  %v11131_v10 = vmul.f32 0.25, %v4370_v53  ;;  %v11135_v42 = vadd.f32 %v10639_v48, %v10734_v28  ;;  %v11139_v23 = vadd.f32 %v10639_v48, %v10755_v18  ;;  %v11156_v53 = vpop.f32.mrf.mxu1 }
 0x1b9   : > { %8238 = vst.msk [vmem:[%s10159_s8 + $0x110] sm:$0xf] %vm3719_vm4, %v8852_v1  ;;  %v11144_v8 = vsel %vm4386_vm15, 1.0, %v13134_v19  ;;  %vm4384_vm0 = vcmp.gt.f32.partialorder %v4368_v34, 0.2  ;;  %v4357_v37 = vmul.f32 %v4341_v61, %v10915_v7  ;;  %v2857_v63 = vadd.f32 %v10639_v48, %v2856_v31  ;;  %v9247_v57 = vpop.f32.mrf.mxu0 }
 0x1ba   : > { %13161 = vst [vmem:[#allocation48_spill] sm:$0xff] %v11135_v42  ;;  %13162 = vst [vmem:[#allocation49_spill] sm:$0xff] %v11139_v23  ;;  %v8855_v28 = vpack.c.bf16 %v11144_v8, %v11144_v8  ;;  %v11151_v30 = vsel %vm4384_vm0, 1.0, %v13134_v19  ;;  %v11153_v18 = vmul.f32 0.25, %v4368_v34  ;;  %v4339_v13 = vsub.f32 1.0, %v10927_v26 }
 0x1bb   : > { %v8853_v1 = vpack.c.bf16 %v11151_v30, %v11151_v30  ;;  %v4373_v7 = vadd.f32 %v4357_v37, %v2865_v20  ;;  %v2868_v61 = vadd.f32 %v10639_v48, %v9247_v57  ;;  %v4342_v31 = vsub.f32 1.0, %v10950_v3  ;;  %v2859_v23 = vpop.f32.mrf.mxu0 }
 0x1bc   : > { %8241 = vst.msk [vmem:[%s10159_s8 + $0x11c] sm:$0xf] %vm3719_vm4, %v8855_v28  ;;  %v4355_v42 = vmul.f32 %v4339_v13, %v10929_v40  ;;  %v11167_v34 = vadd.f32 %v10639_v48, %v10771_v21  ;;  %v2860_v26 = vadd.f32 %v10639_v48, %v2859_v23  ;;  %v4340_v51 = vsub.f32 1.0, %v10961_v45  ;;  %v11188_v28 = vpop.f32.mrf.mxu1 }
 0x1bd   : > { %8239 = vst.msk [vmem:[%s10159_s8 + $0x114] sm:$0xf] %vm3719_vm4, %v8853_v1  ;;  %vm4389_vm1 = vcmp.gt.f32.partialorder %v4373_v7, 0.2  ;;  %v11173_v20 = vmul.f32 0.25, %v4373_v7  ;;  %v4358_v3 = vmul.f32 %v4342_v31, %v10940_v35  ;;  %v11178_v37 = vadd.f32 %v10639_v48, %v10789_v16  ;;  %v9250_v40 = vpop.f32.mrf.mxu0 }
 0x1be   : > { %v11181_v21 = vsel %vm4389_vm1, 1.0, %v13134_v19  ;;  %v4371_v57 = vadd.f32 %v4355_v42, %v2857_v63  ;;  %v4356_v23 = vmul.f32 %v4340_v51, %v10963_v46  ;;  %v11186_v45 = vadd.f32 %v10639_v48, %v10808_v38 }
 0x1bf   : > { %13163 = vst [vmem:[#allocation50_spill] sm:$0xff] %v11178_v37  ;;  %v8858_v35 = vpack.c.bf16 %v11181_v21, %v11181_v21  ;;  %v4374_v13 = vadd.f32 %v4358_v3, %v2868_v61  ;;  %v2881_v16 = vadd.f32 %v10639_v48, %v9250_v40  ;;  %v4345_v1 = vsub.f32 1.0, %v10975_v17  ;;  %v2872_v7 = vpop.f32.mrf.mxu0  ;;  %v11214_v3 = vpop.f32.mrf.mxu1 }
 0x1c0   : > { %13164 = vst [vmem:[#allocation51_spill] sm:$0xff] %v11186_v45  ;;  %vm4387_vm3 = vcmp.gt.f32.partialorder %v4371_v57, 0.2  ;;  %v11194_v31 = vmul.f32 0.25, %v4371_v57  ;;  %v4372_v42 = vadd.f32 %v4356_v23, %v2860_v26  ;;  %v11198_v46 = vadd.f32 %v10639_v48, %v10822_v36 }
 0x1c1   : > { %8244 = vst.msk [vmem:[%s10159_s8 + $0x128] sm:$0xf] %vm3719_vm4, %v8858_v35  ;;  %v11203_v38 = vsel %vm4387_vm3, 1.0, %v13134_v19  ;;  %vm4390_vm5 = vcmp.gt.f32.partialorder %v4374_v13, 0.2  ;;  %v4361_v51 = vmul.f32 %v4345_v1, %v10977_v2  ;;  %v2873_v17 = vadd.f32 %v10639_v48, %v2872_v7  ;;  %v9251_v63 = vpop.f32.mrf.mxu0 }
 0x1c2   : > { %13165 = vst [vmem:[#allocation52_spill] sm:$0xff] %v11198_v46  ;;  %v8856_v61 = vpack.c.bf16 %v11203_v38, %v11203_v38  ;;  %v11210_v26 = vsel %vm4390_vm5, 1.0, %v13134_v19  ;;  %v11212_v36 = vmul.f32 0.25, %v4374_v13  ;;  %vm4388_vm6 = vcmp.gt.f32.partialorder %v4372_v42, 0.2 }
 0x1c3   : > { %v8859_v40 = vpack.c.bf16 %v11210_v26, %v11210_v26  ;;  %v11219_v2 = vsel %vm4388_vm6, 1.0, %v13134_v19  ;;  %v4377_v57 = vadd.f32 %v4361_v51, %v2881_v16  ;;  %v4343_v23 = vsub.f32 1.0, %v10998_v25  ;;  %v2875_v35 = vpop.f32.mrf.mxu0 }
 0x1c4   : > { %8242 = vst.msk [vmem:[%s10159_s8 + $0x120] sm:$0xf] %vm3719_vm4, %v8856_v61  ;;  %v8857_v13 = vpack.c.bf16 %v11219_v2, %v11219_v2  ;;  %v11226_v1 = vmul.f32 0.25, %v4372_v42  ;;  %v2884_v7 = vadd.f32 %v10639_v48, %v9251_v63  ;;  %v4346_v46 = vsub.f32 1.0, %v11009_v60 }
 0x1c5   : > { %8245 = vst.msk [vmem:[%s10159_s8 + $0x12c] sm:$0xf] %vm3719_vm4, %v8859_v40  ;;  %vm4393_vm7 = vcmp.gt.f32.partialorder %v4377_v57, 0.2  ;;  %v11232_v45 = vmul.f32 0.25, %v4377_v57  ;;  %v4359_v16 = vmul.f32 %v4343_v23, %v10988_v6  ;;  %v11237_v25 = vadd.f32 %v10639_v48, %v10840_v47  ;;  %v9254_v51 = vpop.f32.mrf.mxu0  ;;  %v11247_v40 = vpop.f32.mrf.mxu1 }
 0x1c6   : > { %8243 = vst.msk [vmem:[%s10159_s8 + $0x124] sm:$0xf] %vm3719_vm4, %v8857_v13  ;;  %v11242_v42 = vsel %vm4393_vm7, 1.0, %v13134_v19  ;;  %v4362_v60 = vmul.f32 %v4346_v46, %v11011_v52  ;;  %v2876_v63 = vadd.f32 %v10639_v48, %v2875_v35  ;;  %v4344_v61 = vsub.f32 1.0, %v11021_v50 }
 0x1c7   : > { %v8862_v6 = vpack.c.bf16 %v11242_v42, %v11242_v42  ;;  %v4375_v47 = vadd.f32 %v4359_v16, %v2873_v17  ;;  %v11253_v57 = vadd.f32 %v10639_v48, %v10859_v49  ;;  %v11257_v23 = vadd.f32 %v10639_v48, %v10873_v22  ;;  %v2888_v13 = vpop.f32.mrf.mxu0 }
 0x1c8   : > { %v4378_v52 = vadd.f32 %v4362_v60, %v2884_v7  ;;  %v4360_v46 = vmul.f32 %v4344_v61, %v11023_v4  ;;  %v2897_v50 = vadd.f32 %v10639_v48, %v9254_v51  ;;  %v4526_v35 = vsub.f32 1.0, %v11044_v27  ;;  %v11275_v51 = vpop.f32.mrf.mxu1 }
 0x1c9   : > { %13166 = vst [vmem:[#allocation53_spill] sm:$0xff] %v11253_v57  ;;  %13167 = vst [vmem:[#allocation54_spill] sm:$0xff] %v11257_v23  ;;  %vm4391_vm8 = vcmp.gt.f32.partialorder %v4375_v47, 0.2  ;;  %v11266_v17 = vadd.f32 %v10639_v48, %v10890_v54  ;;  %v2889_v49 = vadd.f32 %v10639_v48, %v2888_v13  ;;  %v4524_v22 = vsub.f32 1.0, %v11054_v39  ;;  %v9255_v16 = vpop.f32.mrf.mxu0 }
 0x1ca   : > { %8248 = vst.msk [vmem:[%s10159_s8 + $0x138] sm:$0xf] %vm3719_vm4, %v8862_v6  ;;  %v11271_v7 = vsel %vm4391_vm8, 1.0, %v13134_v19  ;;  %v11273_v4 = vmul.f32 0.25, %v4375_v47  ;;  %vm4394_vm9 = vcmp.gt.f32.partialorder %v4378_v52, 0.2  ;;  %v4376_v27 = vadd.f32 %v4360_v46, %v2876_v63 }
 0x1cb   : > { %13168 = vst [vmem:[#allocation55_spill] sm:$0xff] %v11266_v17  ;;  %v8860_v54 = vpack.c.bf16 %v11271_v7, %v11271_v7  ;;  %v11280_v60 = vsel %vm4394_vm9, 1.0, %v13134_v19  ;;  %v4542_v39 = vmul.f32 %v4526_v35, %v11034_v43  ;;  %v4540_v61 = vmul.f32 %v4524_v22, %v11059_v5  ;;  %v2891_v6 = vpop.f32.mrf.mxu0 }
 0x1cc   : > { %v8863_v47 = vpack.c.bf16 %v11280_v60, %v11280_v60  ;;  %v11286_v13 = vmul.f32 0.25, %v4378_v52  ;;  %vm4392_vm2 = vcmp.gt.f32.partialorder %v4376_v27, 0.2  ;;  %v11288_v63 = vmul.f32 0.25, %v4376_v27 }
 0x1cd   : > { %8246 = vst.msk [vmem:[%s10159_s8 + $0x130] sm:$0xf] %vm3719_vm4, %v8860_v54  ;;  %v11293_v46 = vsel %vm4392_vm2, 1.0, %v13134_v19  ;;  %v4558_v17 = vadd.f32 %v4542_v39, %v2897_v50  ;;  %v4556_v23 = vadd.f32 %v4540_v61, %v2889_v49  ;;  %v11297_v43 = vadd.f32 %v10639_v48, %v10908_v11  ;;  %v9258_v5 = vpop.f32.mrf.mxu0  ;;  %v11309_v50 = vpop.f32.mrf.mxu1 }
 0x1ce   : > { %8249 = vst.msk [vmem:[%s10159_s8 + $0x13c] sm:$0xf] %vm3719_vm4, %v8863_v47  ;;  %v8861_v52 = vpack.c.bf16 %v11293_v46, %v11293_v46  ;;  %v2900_v35 = vadd.f32 %v10639_v48, %v9255_v16  ;;  %v4527_v22 = vsub.f32 1.0, %v11075_v44  ;;  %v11307_v27 = vadd.f32 %v10639_v48, %v10922_v32 }
 0x1cf   : > { %13169 = vst [vmem:[#allocation56_spill] sm:$0xff] %v11297_v43  ;;  %vm4574_vm10 = vcmp.gt.f32.partialorder %v4558_v17, 0.2  ;;  %v11311_v49 = vmul.f32 0.25, %v4558_v17  ;;  %vm4572_vm11 = vcmp.gt.f32.partialorder %v4556_v23, 0.2  ;;  %v2892_v11 = vadd.f32 %v10639_v48, %v2891_v6  ;;  %v2904_v54 = vpop.f32.mrf.mxu0 }
 0x1d0   : > { %13170 = vst [vmem:[#allocation57_spill] sm:$0xff] %v11307_v27  ;;  %8247 = vst.msk [vmem:[%s10159_s8 + $0x134] sm:$0xf] %vm3719_vm4, %v8861_v52  ;;  %v11317_v16 = vsel %vm4574_vm10, 1.0, %v13134_v19  ;;  %v11320_v44 = vsel %vm4572_vm11, 1.0, %v13134_v19  ;;  %v4543_v32 = vmul.f32 %v4527_v22, %v11077_v24  ;;  %v4525_v39 = vsub.f32 1.0, %v11089_v9  ;;  %v11337_v22 = vpop.f32.mrf.mxu1 }
 0x1d1   : > { %v8866_v17 = vpack.c.bf16 %v11317_v16, %v11317_v16  ;;  %v8864_v61 = vpack.c.bf16 %v11320_v44, %v11320_v44  ;;  %v11328_v6 = vmul.f32 0.25, %v4556_v23  ;;  %v11332_v47 = vadd.f32 %v10639_v48, %v10938_v55  ;;  %v9259_v52 = vpop.f32.mrf.mxu0  ;;  %v13172_v23 = vld [vmem:[#allocation39_spill] sm:$0xff] }
 0x1d2   : > { %v4559_v27 = vadd.f32 %v4543_v32, %v2900_v35  ;;  %v4541_v43 = vmul.f32 %v4525_v39, %v11099_v33  ;;  %v2913_v24 = vadd.f32 %v10639_v48, %v9258_v5  ;;  %v4530_v9 = vsub.f32 1.0, %v11111_v14  ;;  %v13174_v32 = vld [vmem:[#allocation40_spill] sm:$0xff] }
 0x1d3   : > { %13171 = vst [vmem:[#allocation58_spill] sm:$0xff] %v11332_v47  ;;  %8284 = vst.msk [vmem:[%s10159_s8 + $0x148] sm:$0xf] %vm3719_vm4, %v8866_v17  ;;  %v11345_v57 = vadd.f32 %v10639_v48, %v13172_v23  ;;  %v2905_v55 = vadd.f32 %v10639_v48, %v2904_v54  ;;  %v4528_v35 = vsub.f32 1.0, %v11119_v29  ;;  %v11351_v33 = vadd.f32 %v10639_v48, %v13174_v32  ;;  %v2907_v5 = vpop.f32.mrf.mxu0 }
 0x1d4   : > { %8282 = vst.msk [vmem:[%s10159_s8 + $0x140] sm:$0xf] %vm3719_vm4, %v8864_v61  ;;  %vm4575_vm12 = vcmp.gt.f32.partialorder %v4559_v27, 0.2  ;;  %v4557_v14 = vadd.f32 %v4541_v43, %v2892_v11  ;;  %v4546_v39 = vmul.f32 %v4530_v9, %v11113_v56  ;;  %v2916_v17 = vadd.f32 %v10639_v48, %v9259_v52  ;;  %v11368_v11 = vpop.f32.mrf.mxu1 }
 0x1d5   : > { %13173 = vst [vmem:[#allocation39_spill] sm:$0xff] %v11345_v57  ;;  %13175 = vst [vmem:[#allocation40_spill] sm:$0xff] %v11351_v33  ;;  %v11356_v61 = vsel %vm4575_vm12, 1.0, %v13134_v19  ;;  %v11358_v23 = vmul.f32 0.25, %v4559_v27  ;;  %v4544_v54 = vmul.f32 %v4528_v35, %v11121_v41  ;;  %v4531_v29 = vsub.f32 1.0, %v11144_v8  ;;  %v9262_v57 = vpop.f32.mrf.mxu0 }
 0x1d6   : > { %v8867_v32 = vpack.c.bf16 %v11356_v61, %v11356_v61  ;;  %vm4573_vm13 = vcmp.gt.f32.partialorder %v4557_v14, 0.2  ;;  %v4562_v43 = vadd.f32 %v4546_v39, %v2913_v24  ;;  %v11366_v56 = vadd.f32 %v10639_v48, %v10986_v62 }
 0x1d7   : > { %v11371_v27 = vsel %vm4573_vm13, 1.0, %v13134_v19  ;;  %v11373_v52 = vmul.f32 0.25, %v4557_v14  ;;  %v4560_v41 = vadd.f32 %v4544_v54, %v2905_v55  ;;  %v4547_v8 = vmul.f32 %v4531_v29, %v11131_v10  ;;  %v2920_v9 = vpop.f32.mrf.mxu0 }
 0x1d8   : > { %13176 = vst [vmem:[#allocation59_spill] sm:$0xff] %v11366_v56  ;;  %8285 = vst.msk [vmem:[%s10159_s8 + $0x14c] sm:$0xf] %vm3719_vm4, %v8867_v32  ;;  %v8865_v24 = vpack.c.bf16 %v11371_v27, %v11371_v27  ;;  %vm4578_vm14 = vcmp.gt.f32.partialorder %v4562_v43, 0.2  ;;  %v2908_v62 = vadd.f32 %v10639_v48, %v2907_v5  ;;  %v4529_v35 = vsub.f32 1.0, %v11151_v30  ;;  %v11397_v32 = vpop.f32.mrf.mxu1 }
 0x1d9   : > { %v11383_v39 = vsel %vm4578_vm14, 1.0, %v13134_v19  ;;  %v11385_v14 = vmul.f32 0.25, %v4562_v43  ;;  %vm4576_vm15 = vcmp.gt.f32.partialorder %v4560_v41, 0.2  ;;  %v4563_v55 = vadd.f32 %v4547_v8, %v2916_v17  ;;  %v9263_v10 = vpop.f32.mrf.mxu0  ;;  %v13177_v8 = vld [vmem:[#allocation43_spill] sm:$0xff] }
 0x1da   : > { %8283 = vst.msk [vmem:[%s10159_s8 + $0x144] sm:$0xf] %vm3719_vm4, %v8865_v24  ;;  %v8870_v54 = vpack.c.bf16 %v11383_v39, %v11383_v39  ;;  %v11392_v29 = vsel %vm4576_vm15, 1.0, %v13134_v19  ;;  %v11394_v5 = vmul.f32 0.25, %v4560_v41  ;;  %v4545_v30 = vmul.f32 %v4529_v35, %v11153_v18 }
 0x1db   : > { %v8868_v43 = vpack.c.bf16 %v11392_v29, %v11392_v29  ;;  %vm4579_vm0 = vcmp.gt.f32.partialorder %v4563_v55, 0.2  ;;  %v11401_v17 = vmul.f32 0.25, %v4563_v55  ;;  %v11405_v24 = vadd.f32 %v10639_v48, %v13177_v8  ;;  %v2923_v56 = vpop.f32.mrf.mxu0  ;;  %v11421_v8 = vld [vmem:[%s13111_s2] ss:$0 sm:$0xff] }
 0x1dc   : > { %8288 = vst.msk [vmem:[%s10159_s8 + $0x158] sm:$0xf] %vm3719_vm4, %v8870_v54  ;;  %v11410_v41 = vsel %vm4579_vm0, 1.0, %v13134_v19  ;;  %v4561_v18 = vadd.f32 %v4545_v30, %v2908_v62  ;;  %v2929_v35 = vadd.f32 %v10639_v48, %v9262_v57  ;;  %v4534_v33 = vsub.f32 1.0, %v11181_v21 }
 0x1dd   : > { %13178 = vst [vmem:[#allocation43_spill] sm:$0xff] %v11405_v24  ;;  %8286 = vst.msk [vmem:[%s10159_s8 + $0x150] sm:$0xf] %vm3719_vm4, %v8868_v43  ;;  %v8871_v55 = vpack.c.bf16 %v11410_v41, %v11410_v41  ;;  %v11425_v54 = vadd.f32 %v11421_v8, %v11032_v15  ;;  %v2921_v62 = vadd.f32 %v11421_v8, %v2920_v9  ;;  %v4532_v48 = vsub.f32 1.0, %v11203_v38  ;;  %v9266_v57 = vpop.f32.mrf.mxu0  ;;  %v11436_v24 = vpop.f32.mrf.mxu1 }
 0x1de   : > { %vm4577_vm1 = vcmp.gt.f32.partialorder %v4561_v18, 0.2  ;;  %v11429_v21 = vmul.f32 0.25, %v4561_v18  ;;  %v4550_v30 = vmul.f32 %v4534_v33, %v11173_v20  ;;  %v11434_v43 = vadd.f32 %v11421_v8, %v11063_v12 }
 0x1df   : > { %13179 = vst [vmem:[#allocation60_spill] sm:$0xff] %v11425_v54  ;;  %8289 = vst.msk [vmem:[%s10159_s8 + $0x15c] sm:$0xf] %vm3719_vm4, %v8871_v55  ;;  %v11441_v15 = vsel %vm4577_vm1, 1.0, %v13134_v19  ;;  %v4548_v38 = vmul.f32 %v4532_v48, %v11194_v31  ;;  %v2932_v9 = vadd.f32 %v11421_v8, %v9263_v10  ;;  %v4535_v18 = vsub.f32 1.0, %v11210_v26  ;;  %v2936_v54 = vpop.f32.mrf.mxu0 }
 0x1e0   : > { %13180 = vst [vmem:[#allocation61_spill] sm:$0xff] %v11434_v43  ;;  %v8869_v20 = vpack.c.bf16 %v11441_v15, %v11441_v15  ;;  %v4566_v12 = vadd.f32 %v4550_v30, %v2929_v35  ;;  %v2924_v33 = vadd.f32 %v11421_v8, %v2923_v56  ;;  %v4533_v43 = vsub.f32 1.0, %v11219_v2 }
 0x1e1   : > { %v4564_v47 = vadd.f32 %v4548_v38, %v2921_v62  ;;  %v4551_v55 = vmul.f32 %v4535_v18, %v11212_v36  ;;  %v11453_v37 = vadd.f32 %v11421_v8, %v11093_v59  ;;  %v11457_v31 = vadd.f32 %v11421_v8, %v11123_v0  ;;  %v9267_v26 = vpop.f32.mrf.mxu0  ;;  %v11464_v36 = vpop.f32.mrf.mxu1 }
 0x1e2   : > { %8287 = vst.msk [vmem:[%s10159_s8 + $0x154] sm:$0xf] %vm3719_vm4, %v8869_v20  ;;  %vm4582_vm3 = vcmp.gt.f32.partialorder %v4566_v12, 0.2  ;;  %v4549_v10 = vmul.f32 %v4533_v43, %v11226_v1  ;;  %v2945_v56 = vadd.f32 %v11421_v8, %v9266_v57  ;;  %v4538_v2 = vsub.f32 1.0, %v11242_v42 }
 0x1e3   : > { %13181 = vst [vmem:[#allocation62_spill] sm:$0xff] %v11453_v37  ;;  %13182 = vst [vmem:[#allocation63_spill] sm:$0xff] %v11457_v31  ;;  %v11467_v59 = vsel %vm4582_vm3, 1.0, %v13134_v19  ;;  %v11469_v35 = vmul.f32 0.25, %v4566_v12  ;;  %vm4580_vm5 = vcmp.gt.f32.partialorder %v4564_v47, 0.2  ;;  %v4567_v0 = vadd.f32 %v4551_v55, %v2932_v9  ;;  %v2939_v62 = vpop.f32.mrf.mxu0  ;;  %v11492_v12 = vpop.f32.mrf.mxu1 }
 0x1e4   : > { %v8874_v48 = vpack.c.bf16 %v11467_v59, %v11467_v59  ;;  %v11474_v1 = vsel %vm4580_vm5, 1.0, %v13134_v19  ;;  %v4565_v57 = vadd.f32 %v4549_v10, %v2924_v33  ;;  %v4554_v42 = vmul.f32 %v4538_v2, %v11232_v45 }
 0x1e5   : > { %v8872_v30 = vpack.c.bf16 %v11474_v1, %v11474_v1  ;;  %v11479_v43 = vmul.f32 0.25, %v4564_v47  ;;  %vm4583_vm6 = vcmp.gt.f32.partialorder %v4567_v0, 0.2  ;;  %v11481_v38 = vmul.f32 0.25, %v4567_v0  ;;  %v9270_v9 = vpop.f32.mrf.mxu0  ;;  %v11527_v31 = vpop.f32.mrf.mxu1 }
 0x1e6   : > { %8292 = vst.msk [vmem:[%s10159_s8 + $0x168] sm:$0xf] %vm3719_vm4, %v8874_v48  ;;  %v11486_v18 = vsel %vm4583_vm6, 1.0, %v13134_v19  ;;  %vm4581_vm7 = vcmp.gt.f32.partialorder %v4565_v57, 0.2  ;;  %v4570_v20 = vadd.f32 %v4554_v42, %v2945_v56  ;;  %v11490_v45 = vadd.f32 %v11421_v8, %v11156_v53 }
 0x1e7   : > { %8290 = vst.msk [vmem:[%s10159_s8 + $0x160] sm:$0xf] %vm3719_vm4, %v8872_v30  ;;  %v8875_v47 = vpack.c.bf16 %v11486_v18, %v11486_v18  ;;  %v11499_v33 = vsel %vm4581_vm7, 1.0, %v13134_v19  ;;  %v2937_v55 = vadd.f32 %v11421_v8, %v2936_v54  ;;  %v4536_v10 = vsub.f32 1.0, %v11271_v7  ;;  %v2952_v56 = vpop.f32.mrf.mxu0 }
 0x1e8   : > { %13183 = vst [vmem:[#allocation64_spill] sm:$0xff] %v11490_v45  ;;  %v8873_v53 = vpack.c.bf16 %v11499_v33, %v11499_v33  ;;  %v11505_v2 = vmul.f32 0.25, %v4565_v57  ;;  %vm4586_vm8 = vcmp.gt.f32.partialorder %v4570_v20, 0.2  ;;  %v11507_v0 = vmul.f32 0.25, %v4570_v20 }
 0x1e9   : > { %8293 = vst.msk [vmem:[%s10159_s8 + $0x16c] sm:$0xf] %vm3719_vm4, %v8875_v47  ;;  %v11512_v48 = vsel %vm4586_vm8, 1.0, %v13134_v19  ;;  %v4552_v42 = vmul.f32 %v4536_v10, %v11273_v4  ;;  %v2948_v54 = vadd.f32 %v11421_v8, %v9267_v26  ;;  %v4539_v7 = vsub.f32 1.0, %v11280_v60  ;;  %v9271_v30 = vpop.f32.mrf.mxu0 }
 0x1ea   : > { %8291 = vst.msk [vmem:[%s10159_s8 + $0x164] sm:$0xf] %vm3719_vm4, %v8873_v53  ;;  %v8878_v57 = vpack.c.bf16 %v11512_v48, %v11512_v48  ;;  %v11523_v20 = vadd.f32 %v11421_v8, %v11188_v28  ;;  %v2940_v47 = vadd.f32 %v11421_v8, %v2939_v62  ;;  %v4537_v45 = vsub.f32 1.0, %v11293_v46 }
 0x1eb   : > { %v4568_v4 = vadd.f32 %v4552_v42, %v2937_v55  ;;  %v4555_v26 = vmul.f32 %v4539_v7, %v11286_v13  ;;  %v11532_v60 = vadd.f32 %v11421_v8, %v11214_v3  ;;  %v11536_v10 = vadd.f32 %v11421_v8, %v11247_v40  ;;  %v2955_v53 = vpop.f32.mrf.mxu0 }
 0x1ec   : > { %8296 = vst.msk [vmem:[%s10159_s8 + $0x178] sm:$0xf] %vm3719_vm4, %v8878_v57  ;;  %v4553_v28 = vmul.f32 %v4537_v45, %v11288_v63  ;;  %v2961_v46 = vadd.f32 %v11421_v8, %v9270_v9  ;;  %v4719_v62 = vsub.f32 1.0, %v11317_v16  ;;  %v11545_v13 = vadd.f32 %v11421_v8, %v11275_v51  ;;  %v11555_v45 = vpop.f32.mrf.mxu1 }
 0x1ed   : > { %vm4584_vm9 = vcmp.gt.f32.partialorder %v4568_v4, 0.2  ;;  %v4571_v3 = vadd.f32 %v4555_v26, %v2948_v54  ;;  %v2953_v55 = vadd.f32 %v11421_v8, %v2952_v56  ;;  %v4717_v40 = vsub.f32 1.0, %v11320_v44  ;;  %v9274_v42 = vpop.f32.mrf.mxu0 }
 0x1ee   : > { %13184 = vst [vmem:[#allocation65_spill] sm:$0xff] %v11545_v13  ;;  %v11550_v7 = vsel %vm4584_vm9, 1.0, %v13134_v19  ;;  %v11552_v63 = vmul.f32 0.25, %v4568_v4  ;;  %v4569_v9 = vadd.f32 %v4553_v28, %v2940_v47  ;;  %v4735_v16 = vmul.f32 %v4719_v62, %v11311_v49 }
 0x1ef   : > { %v8876_v51 = vpack.c.bf16 %v11550_v7, %v11550_v7  ;;  %vm4587_vm2 = vcmp.gt.f32.partialorder %v4571_v3, 0.2  ;;  %v4733_v56 = vmul.f32 %v4717_v40, %v11328_v6  ;;  %v11562_v44 = vadd.f32 %v11421_v8, %v11309_v50  ;;  %v2968_v54 = vpop.f32.mrf.mxu0  ;;  %v11582_v40 = vpop.f32.mrf.mxu1 }
 0x1f0   : > { %v11565_v57 = vsel %vm4587_vm2, 1.0, %v13134_v19  ;;  %v11567_v47 = vmul.f32 0.25, %v4571_v3  ;;  %vm4585_vm10 = vcmp.gt.f32.partialorder %v4569_v9, 0.2  ;;  %v4751_v49 = vadd.f32 %v4735_v16, %v2961_v46 }
 0x1f1   : > { %13185 = vst [vmem:[#allocation66_spill] sm:$0xff] %v11562_v44  ;;  %8294 = vst.msk [vmem:[%s10159_s8 + $0x170] sm:$0xf] %vm3719_vm4, %v8876_v51  ;;  %v8879_v4 = vpack.c.bf16 %v11565_v57, %v11565_v57  ;;  %v11574_v6 = vsel %vm4585_vm10, 1.0, %v13134_v19  ;;  %v11576_v50 = vmul.f32 0.25, %v4569_v9  ;;  %v4749_v26 = vadd.f32 %v4733_v56, %v2953_v55  ;;  %v9275_v28 = vpop.f32.mrf.mxu0 }
 0x1f2   : > { %v8877_v62 = vpack.c.bf16 %v11574_v6, %v11574_v6  ;;  %vm4767_vm11 = vcmp.gt.f32.partialorder %v4751_v49, 0.2  ;;  %v2964_v3 = vadd.f32 %v11421_v8, %v9271_v30  ;;  %v4720_v46 = vsub.f32 1.0, %v11356_v61 }
 0x1f3   : > { %8297 = vst.msk [vmem:[%s10159_s8 + $0x17c] sm:$0xf] %vm3719_vm4, %v8879_v4  ;;  %v11587_v16 = vsel %vm4767_vm11, 1.0, %v13134_v19  ;;  %v11589_v9 = vmul.f32 0.25, %v4751_v49  ;;  %vm4765_vm12 = vcmp.gt.f32.partialorder %v4749_v26, 0.2  ;;  %v2971_v51 = vpop.f32.mrf.mxu0  ;;  %v11603_v4 = vadd.f32 %v11421_v8, %v11337_v22 }
 0x1f4   : > { %v11591_v55 = vmul.f32 0.25, %v4749_v26  ;;  %8295 = vst.msk [vmem:[%s10159_s8 + $0x174] sm:$0xf] %vm3719_vm4, %v8877_v62  ;;  %v8882_v61 = vpack.c.bf16 %v11587_v16, %v11587_v16  ;;  %v11598_v30 = vsel %vm4765_vm12, 1.0, %v13134_v19  ;;  %v4736_v56 = vmul.f32 %v4720_v46, %v11358_v23 }
 0x1f5   : > { %13186 = vst [vmem:[#allocation67_spill] sm:$0xff] %v11603_v4  ;;  %v8880_v49 = vpack.c.bf16 %v11598_v30, %v11598_v30  ;;  %v2956_v26 = vadd.f32 %v11421_v8, %v2955_v53  ;;  %v4718_v62 = vsub.f32 1.0, %v11371_v27  ;;  %v11611_v37 = vadd.f32 %v11421_v8, %v11368_v11  ;;  %v9278_v44 = vpop.f32.mrf.mxu0  ;;  %v11621_v4 = vpop.f32.mrf.mxu1 }
 0x1f6   : > { %8332 = vst.msk [vmem:[%s10159_s8 + $0x188] sm:$0xf] %vm3719_vm4, %v8882_v61  ;;  %v4752_v13 = vadd.f32 %v4736_v56, %v2964_v3  ;;  %v2977_v23 = vadd.f32 %v11421_v8, %v9274_v42  ;;  %v4723_v22 = vsub.f32 1.0, %v11383_v39  ;;  %v11619_v46 = vadd.f32 %v11421_v8, %v11397_v32 }
 0x1f7   : > { %8330 = vst.msk [vmem:[%s10159_s8 + $0x180] sm:$0xf] %vm3719_vm4, %v8880_v49  ;;  %v4734_v27 = vmul.f32 %v4718_v62, %v11373_v52  ;;  %v2969_v11 = vadd.f32 %v11421_v8, %v2968_v54  ;;  %v4721_v53 = vsub.f32 1.0, %v11392_v29  ;;  %v11630_v3 = vadd.f32 %v11421_v8, %v11436_v24  ;;  %v2984_v42 = vpop.f32.mrf.mxu0 }
 0x1f8   : > { %13187 = vst [vmem:[#allocation68_spill] sm:$0xff] %v11619_v46  ;;  %vm4768_vm13 = vcmp.gt.f32.partialorder %v4752_v13, 0.2  ;;  %v4739_v39 = vmul.f32 %v4723_v22, %v11385_v14  ;;  %v2980_v32 = vadd.f32 %v11421_v8, %v9275_v28  ;;  %v4724_v61 = vsub.f32 1.0, %v11410_v41  ;;  %v11648_v41 = vpop.f32.mrf.mxu1 }
 0x1f9   : > { %13188 = vst [vmem:[#allocation69_spill] sm:$0xff] %v11630_v3  ;;  %v11636_v56 = vsel %vm4768_vm13, 1.0, %v13134_v19  ;;  %v11638_v52 = vmul.f32 0.25, %v4752_v13  ;;  %v4750_v54 = vadd.f32 %v4734_v27, %v2956_v26  ;;  %v4737_v29 = vmul.f32 %v4721_v53, %v11394_v5  ;;  %v9279_v49 = vpop.f32.mrf.mxu0 }
 0x1fa   : > { %v8883_v24 = vpack.c.bf16 %v11636_v56, %v11636_v56  ;;  %v4755_v62 = vadd.f32 %v4739_v39, %v2977_v23  ;;  %v4740_v14 = vmul.f32 %v4724_v61, %v11401_v17  ;;  %v11646_v28 = vadd.f32 %v11421_v8, %v11464_v36 }
 0x1fb   : > { %vm4766_vm14 = vcmp.gt.f32.partialorder %v4750_v54, 0.2  ;;  %v4753_v22 = vadd.f32 %v4737_v29, %v2969_v11  ;;  %v2972_v13 = vadd.f32 %v11421_v8, %v2971_v51  ;;  %v4722_v26 = vsub.f32 1.0, %v11441_v15  ;;  %v2987_v5 = vpop.f32.mrf.mxu0 }
 0x1fc   : > { %13189 = vst [vmem:[#allocation70_spill] sm:$0xff] %v11646_v28  ;;  %8333 = vst.msk [vmem:[%s10159_s8 + $0x18c] sm:$0xf] %vm3719_vm4, %v8883_v24  ;;  %v11655_v23 = vsel %vm4766_vm14, 1.0, %v13134_v19  ;;  %v11657_v17 = vmul.f32 0.25, %v4750_v54  ;;  %v4756_v36 = vadd.f32 %v4740_v14, %v2980_v32  ;;  %v11664_v51 = vmul.f32 0.25, %v4755_v62  ;;  %v11673_v32 = vpop.f32.mrf.mxu1 }
 0x1fd   : > { %vm4771_vm15 = vcmp.gt.f32.partialorder %v4755_v62, 0.2  ;;  %v8881_v27 = vpack.c.bf16 %v11655_v23, %v11655_v23  ;;  %vm4769_vm0 = vcmp.gt.f32.partialorder %v4753_v22, 0.2  ;;  %v9282_v15 = vpop.f32.mrf.mxu0  ;;  %v11671_v61 = vmul.f32 0.25, %v4753_v22 }
 0x1fe   : > { %v11662_v11 = vsel %vm4771_vm15, 1.0, %v13134_v19  ;;  %v11669_v39 = vsel %vm4769_vm0, 1.0, %v13134_v19  ;;  %vm4772_vm1 = vcmp.gt.f32.partialorder %v4756_v36, 0.2  ;;  %v11682_v24 = vmul.f32 0.25, %v4756_v36 }
 0x1ff   : > { %v8886_v53 = vpack.c.bf16 %v11662_v11, %v11662_v11  ;;  %8331 = vst.msk [vmem:[%s10159_s8 + $0x184] sm:$0xf] %vm3719_vm4, %v8881_v27  ;;  %v8884_v54 = vpack.c.bf16 %v11669_v39, %v11669_v39  ;;  %v11680_v29 = vsel %vm4772_vm1, 1.0, %v13134_v19  ;;  %v4738_v62 = vmul.f32 %v4722_v26, %v11429_v21  ;;  %v3000_v14 = vpop.f32.mrf.mxu0 }
 0x200   : > { %v8887_v22 = vpack.c.bf16 %v11680_v29, %v11680_v29  ;;  %v11691_v27 = vadd.f32 %v11421_v8, %v11492_v12  ;;  %v2993_v28 = vadd.f32 %v11421_v8, %v9278_v44  ;;  %v4727_v3 = vsub.f32 1.0, %v11467_v59 }
 0x201   : > { %8336 = vst.msk [vmem:[%s10159_s8 + $0x198] sm:$0xf] %vm3719_vm4, %v8886_v53  ;;  %8334 = vst.msk [vmem:[%s10159_s8 + $0x190] sm:$0xf] %vm3719_vm4, %v8884_v54  ;;  %v4754_v36 = vadd.f32 %v4738_v62, %v2972_v13  ;;  %v11699_v21 = vadd.f32 %v11421_v8, %v11527_v31  ;;  %v2985_v26 = vadd.f32 %v11421_v8, %v2984_v42  ;;  %v4725_v53 = vsub.f32 1.0, %v11474_v1  ;;  %v9283_v46 = vpop.f32.mrf.mxu0  ;;  %v3400_v54 = vpop.f32.mrf.mxu1 }
 0x202   : > { %13190 = vst [vmem:[#allocation71_spill] sm:$0xff] %v11691_v27  ;;  %8337 = vst.msk [vmem:[%s10159_s8 + $0x19c] sm:$0xf] %vm3719_vm4, %v8887_v22  ;;  %v4743_v12 = vmul.f32 %v4727_v3, %v11469_v35  ;;  %v11708_v44 = vadd.f32 %v11421_v8, %v11555_v45  ;;  %v2996_v59 = vadd.f32 %v11421_v8, %v9279_v49  ;;  %v4728_v13 = vsub.f32 1.0, %v11486_v18 }
 0x203   : > { %13191 = vst [vmem:[#allocation72_spill] sm:$0xff] %v11699_v21  ;;  %vm4770_vm3 = vcmp.gt.f32.partialorder %v4754_v36, 0.2  ;;  %v11712_v31 = vmul.f32 0.25, %v4754_v36  ;;  %v4741_v42 = vmul.f32 %v4725_v53, %v11479_v43  ;;  %v11717_v1 = vadd.f32 %v11421_v8, %v11582_v40  ;;  %v3003_v40 = vpop.f32.mrf.mxu0 }
 0x204   : > { %13192 = vst [vmem:[#allocation73_spill] sm:$0xff] %v11708_v44  ;;  %v11720_v35 = vsel %vm4770_vm3, 1.0, %v13134_v19  ;;  %v4759_v45 = vadd.f32 %v4743_v12, %v2993_v28  ;;  %v4744_v3 = vmul.f32 %v4728_v13, %v11481_v38  ;;  %v4726_v49 = vsub.f32 1.0, %v11499_v33  ;;  %v9383_v38 = vpop.f32.mrf.mxu1 }
 0x205   : > { %13193 = vst [vmem:[#allocation74_spill] sm:$0xff] %v11717_v1  ;;  %v8885_v18 = vpack.c.bf16 %v11720_v35, %v11720_v35  ;;  %v4757_v62 = vadd.f32 %v4741_v42, %v2985_v26  ;;  %v2988_v22 = vadd.f32 %v11421_v8, %v2987_v5  ;;  %v11729_v43 = vadd.f32 %v11421_v8, %v11621_v4  ;;  %v9286_v42 = vpop.f32.mrf.mxu0 }
 0x206   : > { %vm4775_vm5 = vcmp.gt.f32.partialorder %v4759_v45, 0.2  ;;  %v11731_v36 = vmul.f32 0.25, %v4759_v45  ;;  %v4760_v53 = vadd.f32 %v4744_v3, %v2996_v59  ;;  %v3009_v28 = vadd.f32 %v11421_v8, %v9282_v15 }
 0x207   : > { %13194 = vst [vmem:[#allocation75_spill] sm:$0xff] %v11729_v43  ;;  %8335 = vst.msk [vmem:[%s10159_s8 + $0x194] sm:$0xf] %vm3719_vm4, %v8885_v18  ;;  %v11737_v33 = vsel %vm4775_vm5, 1.0, %v13134_v19  ;;  %vm4773_vm6 = vcmp.gt.f32.partialorder %v4757_v62, 0.2  ;;  %v4742_v5 = vmul.f32 %v4726_v49, %v11505_v2  ;;  %v3001_v49 = vadd.f32 %v11421_v8, %v3000_v14 }
 0x208   : > { %v4731_v4 = vsub.f32 1.0, %v11512_v48  ;;  %v8890_v26 = vpack.c.bf16 %v11737_v33, %v11737_v33  ;;  %v11744_v12 = vsel %vm4773_vm6, 1.0, %v13134_v19  ;;  %v11746_v15 = vmul.f32 0.25, %v4757_v62  ;;  %v3403_v62 = vpop.f32.mrf.mxu1 }
 0x209   : > { %vm4776_vm7 = vcmp.gt.f32.partialorder %v4760_v53, 0.2  ;;  %v8888_v59 = vpack.c.bf16 %v11744_v12, %v11744_v12  ;;  %v4758_v2 = vadd.f32 %v4742_v5, %v2988_v22  ;;  %v11758_v3 = vmul.f32 0.25, %v4760_v53 }
 0x20a   : > { %v11751_v13 = vsel %vm4776_vm7, 1.0, %v13134_v19  ;;  %v4747_v48 = vmul.f32 %v4731_v4, %v11507_v0  ;;  %8340 = vst.msk [vmem:[%s10159_s8 + $0x1a8] sm:$0xf] %vm3719_vm4, %v8890_v26  ;;  %v4729_v18 = vsub.f32 1.0, %v11550_v7  ;;  %v11768_v0 = vadd.f32 %v11421_v8, %v11648_v41  ;;  %v3016_v26 = vpop.f32.mrf.mxu0 }
 0x20b   : > { %v8891_v45 = vpack.c.bf16 %v11751_v13, %v11751_v13  ;;  %8338 = vst.msk [vmem:[%s10159_s8 + $0x1a0] sm:$0xf] %vm3719_vm4, %v8888_v59  ;;  %vm4774_vm8 = vcmp.gt.f32.partialorder %v4758_v2, 0.2  ;;  %v11764_v43 = vmul.f32 0.25, %v4758_v2  ;;  %v3012_v7 = vadd.f32 %v11421_v8, %v9283_v46  ;;  %v9386_v2 = vpop.f32.mrf.mxu1 }
 0x20c   : > { %v4763_v22 = vadd.f32 %v4747_v48, %v3009_v28  ;;  %13195 = vst [vmem:[#allocation76_spill] sm:$0xff] %v11768_v0  ;;  %v11773_v53 = vsel %vm4774_vm8, 1.0, %v13134_v19  ;;  %v4745_v14 = vmul.f32 %v4729_v18, %v11552_v63  ;;  %v4732_v5 = vsub.f32 1.0, %v11565_v57 }
 0x20d   : > { %8341 = vst.msk [vmem:[%s10159_s8 + $0x1ac] sm:$0xf] %vm3719_vm4, %v8891_v45  ;;  %v8889_v4 = vpack.c.bf16 %v11773_v53, %v11773_v53  ;;  %v11784_v41 = vadd.f32 %v11421_v8, %v11673_v32  ;;  %v11791_v57 = vadd.f32 %v11421_v8, %v3400_v54  ;;  %v3004_v32 = vadd.f32 %v11421_v8, %v3003_v40 }
 0x20e   : > { %vm4779_vm9 = vcmp.gt.f32.partialorder %v4763_v22, 0.2  ;;  %v11780_v28 = vmul.f32 0.25, %v4763_v22  ;;  %v4761_v63 = vadd.f32 %v4745_v14, %v3001_v49  ;;  %v4748_v46 = vmul.f32 %v4732_v5, %v11567_v47  ;;  %v3416_v5 = vpop.f32.mrf.mxu1 }
 0x20f   : > { %v11787_v59 = vsel %vm4779_vm9, 1.0, %v13134_v19  ;;  %8339 = vst.msk [vmem:[%s10159_s8 + $0x1a4] sm:$0xf] %vm3719_vm4, %v8889_v4  ;;  %v4730_v45 = vsub.f32 1.0, %v11574_v6  ;;  %v11800_v18 = vadd.f32 %v11421_v8, %v9383_v38  ;;  %v3025_v47 = vadd.f32 %v11421_v8, %v9286_v42  ;;  %v9287_v38 = vpop.f32.mrf.mxu0 }
 0x210   : > { %v8894_v48 = vpack.c.bf16 %v11787_v59, %v11787_v59  ;;  %vm4777_vm2 = vcmp.gt.f32.partialorder %v4761_v63, 0.2  ;;  %v4764_v49 = vadd.f32 %v4748_v46, %v3012_v7  ;;  %v4912_v54 = vsub.f32 1.0, %v11587_v16 }
 0x211   : > { %v11807_v22 = vsel %vm4777_vm2, 1.0, %v13134_v19  ;;  %v11809_v14 = vmul.f32 0.25, %v4761_v63  ;;  %v4746_v40 = vmul.f32 %v4730_v45, %v11576_v50  ;;  %v11813_v6 = vadd.f32 %v11421_v8, %v3403_v62 }
 0x212   : > { %8344 = vst.msk [vmem:[%s10159_s8 + $0x1b8] sm:$0xf] %vm3719_vm4, %v8894_v48  ;;  %v8892_v7 = vpack.c.bf16 %v11807_v22, %v11807_v22  ;;  %vm4780_vm10 = vcmp.gt.f32.partialorder %v4764_v49, 0.2  ;;  %v4928_v16 = vmul.f32 %v4912_v54, %v11589_v9  ;;  %v3017_v42 = vadd.f32 %v11421_v8, %v3016_v26 }
 0x213   : > { %v11820_v4 = vsel %vm4780_vm10, 1.0, %v13134_v19  ;;  %v11822_v63 = vmul.f32 0.25, %v4764_v49  ;;  %v4762_v50 = vadd.f32 %v4746_v40, %v3004_v32  ;;  %v4910_v62 = vsub.f32 1.0, %v11598_v30  ;;  %v9387_v40 = vpop.f32.mrf.mxu1 }
 0x214   : > { %8342 = vst.msk [vmem:[%s10159_s8 + $0x1b0] sm:$0xf] %vm3719_vm4, %v8892_v7  ;;  %v8895_v46 = vpack.c.bf16 %v11820_v4, %v11820_v4  ;;  %v4944_v48 = vadd.f32 %v4928_v16, %v3025_v47  ;;  %v3028_v9 = vadd.f32 %v11421_v8, %v9287_v38  ;;  %v4913_v45 = vsub.f32 1.0, %v11636_v56  ;;  %v3019_v56 = vpop.f32.mrf.mxu0 }
 0x215   : > { %vm4778_vm11 = vcmp.gt.f32.partialorder %v4762_v50, 0.2  ;;  %v11831_v26 = vmul.f32 0.25, %v4762_v50  ;;  %v4926_v54 = vmul.f32 %v4910_v62, %v11591_v55  ;;  %v11835_v49 = vadd.f32 %v11421_v8, %v9386_v2 }
 0x216   : > { %8345 = vst.msk [vmem:[%s10159_s8 + $0x1bc] sm:$0xf] %vm3719_vm4, %v8895_v46  ;;  %v11840_v30 = vsel %vm4778_vm11, 1.0, %v13134_v19  ;;  %vm4960_vm12 = vcmp.gt.f32.partialorder %v4944_v48, 0.2  ;;  %v4929_v32 = vmul.f32 %v4913_v45, %v11638_v52  ;;  %v11844_v47 = vadd.f32 %v11421_v8, %v3416_v5 }
 0x217   : > { %v8893_v55 = vpack.c.bf16 %v11840_v30, %v11840_v30  ;;  %v8348_v2 = vsel %vm4960_vm12, 1.0, %v13134_v19  ;;  %v5089_v38 = vmul.f32 0.25, %v4944_v48  ;;  %v4942_v7 = vadd.f32 %v4926_v54, %v3017_v42  ;;  %v3419_v54 = vpop.f32.mrf.mxu1 }
 0x218   : > { %v8898_v16 = vpack.c.bf16 %v8348_v2, %v8348_v2  ;;  %v5105_v50 = vsub.f32 1.0, %v8348_v2  ;;  %v4945_v62 = vadd.f32 %v4929_v32, %v3028_v9  ;;  %v4911_v46 = vsub.f32 1.0, %v11655_v23  ;;  %v9290_v9 = vpop.f32.mrf.mxu0  ;;  %v13196_v2 = vld [vmem:[#allocation4_spill] sm:$0xff] }
 0x219   : > { %8343 = vst.msk [vmem:[%s10159_s8 + $0x1b4] sm:$0xf] %vm3719_vm4, %v8893_v55  ;;  %vm4958_vm13 = vcmp.gt.f32.partialorder %v4942_v7, 0.2  ;;  %v5087_v52 = vmul.f32 0.25, %v4942_v7  ;;  %v3020_v5 = vadd.f32 %v11421_v8, %v3019_v56  ;;  %v11854_v45 = vadd.f32 %v11421_v8, %v9387_v40 }
 0x21a   : > { %8380 = vst.msk [vmem:[%s10159_s8 + $0x1c8] sm:$0xf] %vm3719_vm4, %v8898_v16  ;;  %v5121_v0 = vmul.f32 %v5105_v50, %v5089_v38  ;;  %v8346_v42 = vsel %vm4958_vm13, 1.0, %v13134_v19  ;;  %vm4961_vm14 = vcmp.gt.f32.partialorder %v4945_v62, 0.2  ;;  %v5090_v48 = vmul.f32 0.25, %v4945_v62 }
 0x21b   : > { %v8896_v23 = vpack.c.bf16 %v8346_v42, %v8346_v42  ;;  %v5103_v32 = vsub.f32 1.0, %v8346_v42  ;;  %v8349_v55 = vsel %vm4961_vm14, 1.0, %v13134_v19  ;;  %v4927_v56 = vmul.f32 %v4911_v46, %v11657_v17 }
 0x21c   : > { %v5137_v40 = vadd.f32 %v5121_v0, %v13196_v2  ;;  %v8899_v7 = vpack.c.bf16 %v8349_v55, %v8349_v55  ;;  %v5106_v1 = vsub.f32 1.0, %v8349_v55  ;;  %v4916_v16 = vsub.f32 1.0, %v11662_v11  ;;  %v13198_v11 = vld [vmem:[#allocation5_spill] sm:$0xff] }
 0x21d   : > { %8378 = vst.msk [vmem:[%s10159_s8 + $0x1c0] sm:$0xf] %vm3719_vm4, %v8896_v23  ;;  %v5119_v38 = vmul.f32 %v5103_v32, %v5087_v52  ;;  %v4943_v50 = vadd.f32 %v4927_v56, %v3020_v5  ;;  %v3041_v62 = vadd.f32 %v11421_v8, %v9290_v9  ;;  %v11867_v44 = vadd.f32 %v11421_v8, %v3419_v54  ;;  %v13199_v9 = vld [vmem:[#allocation6_spill] sm:$0xff] }
 0x21e   : > { %vm5153_vm15 = vcmp.gt.f32.partialorder %v5137_v40, 0.2  ;;  %v5282_v42 = vmul.f32 0.25, %v5137_v40  ;;  %8381 = vst.msk [vmem:[%s10159_s8 + $0x1cc] sm:$0xf] %vm3719_vm4, %v8899_v7  ;;  %v5122_v17 = vmul.f32 %v5106_v1, %v5090_v48  ;;  %v4932_v0 = vmul.f32 %v4916_v16, %v11664_v51  ;;  %v3032_v7 = vpop.f32.mrf.mxu0 }
 0x21f   : > { %13197 = vst [vmem:[#allocation4_spill] sm:$0xff] %v11867_v44  ;;  %v8396_v46 = vsel %vm5153_vm15, 1.0, %v13134_v19  ;;  %v5135_v55 = vadd.f32 %v5119_v38, %v13198_v11  ;;  %vm4959_vm0 = vcmp.gt.f32.partialorder %v4943_v50, 0.2  ;;  %v5088_v52 = vmul.f32 0.25, %v4943_v50 }
 0x220   : > { %v8914_v5 = vpack.c.bf16 %v8396_v46, %v8396_v46  ;;  %v5298_v23 = vsub.f32 1.0, %v8396_v46  ;;  %v5138_v54 = vadd.f32 %v5122_v17, %v13199_v9  ;;  %v8347_v32 = vsel %vm4959_vm0, 1.0, %v13134_v19  ;;  %v13200_v46 = vld [vmem:[#allocation20_spill] sm:$0xff] }
 0x221   : > { %vm5151_vm1 = vcmp.gt.f32.partialorder %v5135_v55, 0.2  ;;  %v5280_v56 = vmul.f32 0.25, %v5135_v55  ;;  %v8897_v2 = vpack.c.bf16 %v8347_v32, %v8347_v32  ;;  %v5104_v40 = vsub.f32 1.0, %v8347_v32 }
 0x222   : > { %8428 = vst.msk [vmem:[%s10159_s8 + $0x208] sm:$0xf] %vm3719_vm4, %v8914_v5  ;;  %v5314_v51 = vmul.f32 %v5298_v23, %v5282_v42  ;;  %v8394_v1 = vsel %vm5151_vm1, 1.0, %v13134_v19  ;;  %vm5154_vm3 = vcmp.gt.f32.partialorder %v5138_v54, 0.2  ;;  %v5283_v48 = vmul.f32 0.25, %v5138_v54 }
 0x223   : > { %v8912_v16 = vpack.c.bf16 %v8394_v1, %v8394_v1  ;;  %v5296_v38 = vsub.f32 1.0, %v8394_v1  ;;  %v8397_v50 = vsel %vm5154_vm3, 1.0, %v13134_v19  ;;  %8379 = vst.msk [vmem:[%s10159_s8 + $0x1c4] sm:$0xf] %vm3719_vm4, %v8897_v2  ;;  %v5120_v17 = vmul.f32 %v5104_v40, %v5088_v52  ;;  %v13201_v5 = vld [vmem:[#allocation7_spill] sm:$0xff] }
 0x224   : > { %v5330_v11 = vadd.f32 %v5314_v51, %v13200_v46  ;;  %v8915_v55 = vpack.c.bf16 %v8397_v50, %v8397_v50  ;;  %v5299_v9 = vsub.f32 1.0, %v8397_v50  ;;  %v4948_v32 = vadd.f32 %v4932_v0, %v3041_v62  ;;  %v13202_v62 = vld [vmem:[#allocation21_spill] sm:$0xff] }
 0x225   : > { %8426 = vst.msk [vmem:[%s10159_s8 + $0x200] sm:$0xf] %vm3719_vm4, %v8912_v16  ;;  %v5312_v42 = vmul.f32 %v5296_v38, %v5280_v56  ;;  %v5136_v23 = vadd.f32 %v5120_v17, %v13201_v5  ;;  %v11887_v54 = vadd.f32 %v11421_v8, %v3032_v7  ;;  %v4914_v1 = vsub.f32 1.0, %v11669_v39  ;;  %v13203_v7 = vld [vmem:[#allocation22_spill] sm:$0xff] }
 0x226   : > { %vm5346_vm5 = vcmp.gt.f32.partialorder %v5330_v11, 0.2  ;;  %v5475_v21 = vmul.f32 0.25, %v5330_v11  ;;  %8429 = vst.msk [vmem:[%s10159_s8 + $0x20c] sm:$0xf] %vm3719_vm4, %v8915_v55  ;;  %v5315_v52 = vmul.f32 %v5299_v9, %v5283_v48  ;;  %v4917_v39 = vsub.f32 1.0, %v11680_v29 }
 0x227   : > { %vm4964_vm6 = vcmp.gt.f32.partialorder %v4948_v32, 0.2  ;;  %v8444_v2 = vsel %vm5346_vm5, 1.0, %v13134_v19  ;;  %v5328_v0 = vadd.f32 %v5312_v42, %v13202_v62  ;;  %vm5152_vm7 = vcmp.gt.f32.partialorder %v5136_v23, 0.2 }
 0x228   : > { %v5281_v56 = vmul.f32 0.25, %v5136_v23  ;;  %v8930_v40 = vpack.c.bf16 %v8444_v2, %v8444_v2  ;;  %v5491_v51 = vsub.f32 1.0, %v8444_v2  ;;  %v5331_v16 = vadd.f32 %v5315_v52, %v13203_v7  ;;  %v13204_v52 = vld [vmem:[#allocation36_spill] sm:$0xff]  ;;  %v13205_v7 = vld [vmem:[#allocation23_spill] sm:$0xff] }
 0x229   : > { %v8395_v38 = vsel %vm5152_vm7, 1.0, %v13134_v19  ;;  %vm5344_vm8 = vcmp.gt.f32.partialorder %v5328_v0, 0.2  ;;  %v5473_v50 = vmul.f32 0.25, %v5328_v0 }
 0x22a   : > { %v8913_v17 = vpack.c.bf16 %v8395_v38, %v8395_v38  ;;  %v5297_v46 = vsub.f32 1.0, %v8395_v38  ;;  %8476 = vst.msk [vmem:[%s10159_s8 + $0x248] sm:$0xf] %vm3719_vm4, %v8930_v40  ;;  %v5507_v48 = vmul.f32 %v5491_v51, %v5475_v21  ;;  %v8442_v11 = vsel %vm5344_vm8, 1.0, %v13134_v19  ;;  %v9390_v21 = vpop.f32.mrf.mxu1 }
 0x22b   : > { %vm5347_vm9 = vcmp.gt.f32.partialorder %v5331_v16, 0.2  ;;  %v5476_v55 = vmul.f32 0.25, %v5331_v16  ;;  %v8928_v9 = vpack.c.bf16 %v8442_v11, %v8442_v11  ;;  %v5489_v42 = vsub.f32 1.0, %v8442_v11 }
 0x22c   : > { %v8445_v5 = vsel %vm5347_vm9, 1.0, %v13134_v19  ;;  %8427 = vst.msk [vmem:[%s10159_s8 + $0x204] sm:$0xf] %vm3719_vm4, %v8913_v17  ;;  %v5313_v23 = vmul.f32 %v5297_v46, %v5281_v56  ;;  %v5523_v2 = vadd.f32 %v5507_v48, %v13204_v52  ;;  %v8352_v40 = vsel %vm4964_vm6, 1.0, %v13134_v19 }
 0x22d   : > { %v8931_v62 = vpack.c.bf16 %v8445_v5, %v8445_v5  ;;  %v5492_v0 = vsub.f32 1.0, %v8445_v5  ;;  %8474 = vst.msk [vmem:[%s10159_s8 + $0x240] sm:$0xf] %vm3719_vm4, %v8928_v9  ;;  %v5505_v51 = vmul.f32 %v5489_v42, %v5473_v50  ;;  %v8902_v38 = vpack.c.bf16 %v8352_v40, %v8352_v40  ;;  %v13207_v9 = vld [vmem:[#allocation37_spill] sm:$0xff] }
 0x22e   : > { %v5329_v16 = vadd.f32 %v5313_v23, %v13205_v7  ;;  %v11909_v11 = vadd.f32 %v11421_v8, %v9390_v21  ;;  %vm5539_vm2 = vcmp.gt.f32.partialorder %v5523_v2, 0.2  ;;  %v5093_v17 = vmul.f32 0.25, %v4948_v32  ;;  %v13208_v23 = vld [vmem:[#allocation38_spill] sm:$0xff]  ;;  %v13209_v7 = vld [vmem:[#allocation8_spill] sm:$0xff] }
 0x22f   : > { %8477 = vst.msk [vmem:[%s10159_s8 + $0x24c] sm:$0xf] %vm3719_vm4, %v8931_v62  ;;  %v5508_v56 = vmul.f32 %v5492_v0, %v5476_v55  ;;  %v5109_v46 = vsub.f32 1.0, %v8352_v40  ;;  %v11914_v48 = vsel %vm5539_vm2, 1.0, %v13134_v19  ;;  %v11916_v5 = vmul.f32 0.25, %v5523_v2  ;;  %v9291_v62 = vpop.f32.mrf.mxu0 }
 0x230   : > { %13206 = vst [vmem:[#allocation5_spill] sm:$0xff] %v11909_v11  ;;  %v5521_v50 = vadd.f32 %v5505_v51, %v13207_v9  ;;  %vm5345_vm10 = vcmp.gt.f32.partialorder %v5329_v16, 0.2  ;;  %8384 = vst.msk [vmem:[%s10159_s8 + $0x1d8] sm:$0xf] %vm3719_vm4, %v8902_v38  ;;  %v8946_v42 = vpack.c.bf16 %v11914_v48, %v11914_v48  ;;  %v5474_v40 = vmul.f32 0.25, %v5329_v16 }
 0x231   : > { %v5524_v52 = vadd.f32 %v5508_v56, %v13208_v23  ;;  %v8443_v32 = vsel %vm5345_vm10, 1.0, %v13134_v19  ;;  %v5125_v55 = vmul.f32 %v5109_v46, %v5093_v17  ;;  %v4930_v46 = vmul.f32 %v4914_v1, %v11671_v61  ;;  %v3035_v23 = vpop.f32.mrf.mxu0  ;;  %v3432_v61 = vpop.f32.mrf.mxu1 }
 0x232   : > { %vm5537_vm11 = vcmp.gt.f32.partialorder %v5521_v50, 0.2  ;;  %v8929_v0 = vpack.c.bf16 %v8443_v32, %v8443_v32  ;;  %v5490_v2 = vsub.f32 1.0, %v8443_v32  ;;  %8524 = vst.msk [vmem:[%s10159_s8 + $0x288] sm:$0xf] %vm3719_vm4, %v8946_v42  ;;  %v11930_v51 = vmul.f32 0.25, %v5521_v50 }
 0x233   : > { %v11928_v21 = vsel %vm5537_vm11, 1.0, %v13134_v19  ;;  %vm5540_vm12 = vcmp.gt.f32.partialorder %v5524_v52, 0.2  ;;  %v5141_v38 = vadd.f32 %v5125_v55, %v13209_v7  ;;  %v11945_v50 = vmul.f32 0.25, %v5524_v52  ;;  %v13210_v32 = vld [vmem:[#allocation41_spill] sm:$0xff] }
 0x234   : > { %v8944_v56 = vpack.c.bf16 %v11928_v21, %v11928_v21  ;;  %v11936_v17 = vsel %vm5540_vm12, 1.0, %v13134_v19  ;;  %8475 = vst.msk [vmem:[%s10159_s8 + $0x244] sm:$0xf] %vm3719_vm4, %v8929_v0  ;;  %v5506_v16 = vmul.f32 %v5490_v2, %v5474_v40  ;;  %v4946_v40 = vadd.f32 %v4930_v46, %v11887_v54  ;;  %v9294_v46 = vpop.f32.mrf.mxu0 }
 0x235   : > { %v8947_v9 = vpack.c.bf16 %v11936_v17, %v11936_v17  ;;  %vm5157_vm13 = vcmp.gt.f32.partialorder %v5141_v38, 0.2  ;;  %v5286_v42 = vmul.f32 0.25, %v5141_v38  ;;  %v3044_v2 = vadd.f32 %v11421_v8, %v9291_v62 }
 0x236   : > { %8522 = vst.msk [vmem:[%s10159_s8 + $0x280] sm:$0xf] %vm3719_vm4, %v8944_v56  ;;  %v5522_v55 = vadd.f32 %v5506_v16, %v13210_v32  ;;  %v8400_v0 = vsel %vm5157_vm13, 1.0, %v13134_v19  ;;  %v11957_v7 = vadd.f32 %v11421_v8, %v3432_v61  ;;  %vm4962_vm15 = vcmp.gt.f32.partialorder %v4946_v40, 0.2 }
 0x237   : > { %8525 = vst.msk [vmem:[%s10159_s8 + $0x28c] sm:$0xf] %vm3719_vm4, %v8947_v9  ;;  %v8918_v1 = vpack.c.bf16 %v8400_v0, %v8400_v0  ;;  %v5302_v52 = vsub.f32 1.0, %v8400_v0  ;;  %v5091_v38 = vmul.f32 0.25, %v4946_v40  ;;  %v3036_v56 = vadd.f32 %v11421_v8, %v3035_v23  ;;  %v9391_v40 = vpop.f32.mrf.mxu1 }
 0x238   : > { %13211 = vst [vmem:[#allocation6_spill] sm:$0xff] %v11957_v7  ;;  %vm5538_vm14 = vcmp.gt.f32.partialorder %v5522_v55, 0.2  ;;  %v8350_v16 = vsel %vm4962_vm15, 1.0, %v13134_v19  ;;  %v4933_v62 = vmul.f32 %v4917_v39, %v11682_v24  ;;  %v4915_v23 = vsub.f32 1.0, %v11720_v35  ;;  %v13212_v7 = vld [vmem:[#allocation24_spill] sm:$0xff] }
 0x239   : > { %v11961_v54 = vsel %vm5538_vm14, 1.0, %v13134_v19  ;;  %8432 = vst.msk [vmem:[%s10159_s8 + $0x218] sm:$0xf] %vm3719_vm4, %v8918_v1  ;;  %v5318_v29 = vmul.f32 %v5302_v52, %v5286_v42  ;;  %v8900_v32 = vpack.c.bf16 %v8350_v16, %v8350_v16  ;;  %v5107_v0 = vsub.f32 1.0, %v8350_v16 }
 0x23a   : > { %v8945_v9 = vpack.c.bf16 %v11961_v54, %v11961_v54  ;;  %v11970_v61 = vmul.f32 0.25, %v5522_v55  ;;  %v4949_v11 = vadd.f32 %v4933_v62, %v3044_v2  ;;  %v11974_v42 = vadd.f32 %v11421_v8, %v9391_v40  ;;  %v3048_v40 = vpop.f32.mrf.mxu0 }
 0x23b   : > { %v5334_v27 = vadd.f32 %v5318_v29, %v13212_v7  ;;  %8382 = vst.msk [vmem:[%s10159_s8 + $0x1d0] sm:$0xf] %vm3719_vm4, %v8900_v32  ;;  %v5123_v24 = vmul.f32 %v5107_v0, %v5091_v38  ;;  %v4931_v39 = vmul.f32 %v4915_v23, %v11712_v31  ;;  %v3057_v1 = vadd.f32 %v11421_v8, %v9294_v46  ;;  %v13214_v7 = vld [vmem:[#allocation9_spill] sm:$0xff] }
 0x23c   : > { %13213 = vst [vmem:[#allocation20_spill] sm:$0xff] %v11974_v42  ;;  %8523 = vst.msk [vmem:[%s10159_s8 + $0x284] sm:$0xf] %vm3719_vm4, %v8945_v9  ;;  %v4920_v35 = vsub.f32 1.0, %v11737_v33  ;;  %vm4965_vm1 = vcmp.gt.f32.partialorder %v4949_v11, 0.2 }
 0x23d   : > { %vm5350_vm0 = vcmp.gt.f32.partialorder %v5334_v27, 0.2  ;;  %v5479_v55 = vmul.f32 0.25, %v5334_v27  ;;  %v5094_v52 = vmul.f32 0.25, %v4949_v11  ;;  %v5139_v29 = vadd.f32 %v5123_v24, %v13214_v7  ;;  %v3435_v27 = vpop.f32.mrf.mxu1 }
 0x23e   : > { %v8448_v2 = vsel %vm5350_vm0, 1.0, %v13134_v19  ;;  %v8353_v16 = vsel %vm4965_vm1, 1.0, %v13134_v19  ;;  %v4947_v62 = vadd.f32 %v4931_v39, %v3036_v56 }
 0x23f   : > { %v8934_v38 = vpack.c.bf16 %v8448_v2, %v8448_v2  ;;  %v5495_v9 = vsub.f32 1.0, %v8448_v2  ;;  %v8903_v31 = vpack.c.bf16 %v8353_v16, %v8353_v16  ;;  %v5110_v32 = vsub.f32 1.0, %v8353_v16 }
 0x240   : > { %vm5155_vm3 = vcmp.gt.f32.partialorder %v5139_v29, 0.2  ;;  %v5284_v46 = vmul.f32 0.25, %v5139_v29  ;;  %vm4963_vm5 = vcmp.gt.f32.partialorder %v4947_v62, 0.2  ;;  %v5092_v33 = vmul.f32 0.25, %v4947_v62 }
 0x241   : > { %8480 = vst.msk [vmem:[%s10159_s8 + $0x258] sm:$0xf] %vm3719_vm4, %v8934_v38  ;;  %v5511_v11 = vmul.f32 %v5495_v9, %v5479_v55  ;;  %v8398_v0 = vsel %vm5155_vm3, 1.0, %v13134_v19  ;;  %8385 = vst.msk [vmem:[%s10159_s8 + $0x1dc] sm:$0xf] %vm3719_vm4, %v8903_v31  ;;  %v5126_v23 = vmul.f32 %v5110_v32, %v5094_v52  ;;  %v8351_v56 = vsel %vm4963_vm5, 1.0, %v13134_v19 }
 0x242   : > { %v8916_v24 = vpack.c.bf16 %v8398_v0, %v8398_v0  ;;  %v5300_v39 = vsub.f32 1.0, %v8398_v0  ;;  %v8901_v2 = vpack.c.bf16 %v8351_v56, %v8351_v56  ;;  %v5108_v7 = vsub.f32 1.0, %v8351_v56  ;;  %v13215_v29 = vld [vmem:[#allocation42_spill] sm:$0xff]  ;;  %v9394_v0 = vpop.f32.mrf.mxu1 }
 0x243   : > { %v5527_v16 = vadd.f32 %v5511_v11, %v13215_v29  ;;  %v13216_v62 = vld [vmem:[#allocation10_spill] sm:$0xff]  ;;  %v4936_v38 = vmul.f32 %v4920_v35, %v11731_v36  ;;  %v11996_v55 = vadd.f32 %v11421_v8, %v3435_v27  ;;  %v3049_v31 = vadd.f32 %v11421_v8, %v3048_v40  ;;  %v12007_v36 = vld [vmem:[%s13111_s2] ss:$0 sm:$0xff]  ;;  %v13219_v8 = vld [vmem:[#allocation25_spill] sm:$0xff] }
 0x244   : > { %v5142_v42 = vadd.f32 %v5126_v23, %v13216_v62  ;;  %8430 = vst.msk [vmem:[%s10159_s8 + $0x210] sm:$0xf] %vm3719_vm4, %v8916_v24  ;;  %v5316_v9 = vmul.f32 %v5300_v39, %v5284_v46  ;;  %8383 = vst.msk [vmem:[%s10159_s8 + $0x1d4] sm:$0xf] %vm3719_vm4, %v8901_v2  ;;  %v5124_v52 = vmul.f32 %v5108_v7, %v5092_v33  ;;  %v4918_v32 = vsub.f32 1.0, %v11744_v12  ;;  %v13220_v27 = vld [vmem:[#allocation11_spill] sm:$0xff] }
 0x245   : > { %13217 = vst [vmem:[#allocation7_spill] sm:$0xff] %v11996_v55  ;;  %vm5543_vm6 = vcmp.gt.f32.partialorder %v5527_v16, 0.2  ;;  %v12010_v35 = vadd.f32 %v12007_v36, %v9394_v0  ;;  %v4952_v24 = vadd.f32 %v4936_v38, %v3057_v1  ;;  %v13221_v38 = vld [vmem:[#allocation26_spill] sm:$0xff]  ;;  %v4924_v55 = vsub.f32 1.0, %v11787_v59 }
 0x246   : > { %vm5158_vm7 = vcmp.gt.f32.partialorder %v5142_v42, 0.2  ;;  %v5287_v11 = vmul.f32 0.25, %v5142_v42  ;;  %v12013_v46 = vsel %vm5543_vm6, 1.0, %v13134_v19  ;;  %v5332_v33 = vadd.f32 %v5316_v9, %v13219_v8  ;;  %v13232_v59 = vld [vmem:[#allocation14_spill] sm:$0xff] }
 0x247   : > { %13218 = vst [vmem:[#allocation21_spill] sm:$0xff] %v12010_v35  ;;  %v8401_v12 = vsel %vm5158_vm7, 1.0, %v13134_v19  ;;  %v5140_v23 = vadd.f32 %v5124_v52, %v13220_v27  ;;  %v8950_v42 = vpack.c.bf16 %v12013_v46, %v12013_v46  ;;  %vm4968_vm2 = vcmp.gt.f32.partialorder %v4952_v24, 0.2 }
 0x248   : > { %v8919_v56 = vpack.c.bf16 %v8401_v12, %v8401_v12  ;;  %v5303_v40 = vsub.f32 1.0, %v8401_v12  ;;  %vm5348_vm8 = vcmp.gt.f32.partialorder %v5332_v33, 0.2  ;;  %v5477_v39 = vmul.f32 0.25, %v5332_v33 }
 0x249   : > { %vm5156_vm9 = vcmp.gt.f32.partialorder %v5140_v23, 0.2  ;;  %v5285_v2 = vmul.f32 0.25, %v5140_v23  ;;  %8528 = vst.msk [vmem:[%s10159_s8 + $0x298] sm:$0xf] %vm3719_vm4, %v8950_v42  ;;  %v8446_v7 = vsel %vm5348_vm8, 1.0, %v13134_v19  ;;  %v4934_v27 = vmul.f32 %v4918_v32, %v11746_v15 }
 0x24a   : > { %8433 = vst.msk [vmem:[%s10159_s8 + $0x21c] sm:$0xf] %vm3719_vm4, %v8919_v56  ;;  %v5319_v29 = vmul.f32 %v5303_v40, %v5287_v11  ;;  %v8399_v62 = vsel %vm5156_vm9, 1.0, %v13134_v19  ;;  %v8932_v9 = vpack.c.bf16 %v8446_v7, %v8446_v7  ;;  %v5493_v52 = vsub.f32 1.0, %v8446_v7  ;;  %v9295_v40 = vpop.f32.mrf.mxu0  ;;  %v13222_v15 = vld [vmem:[#allocation27_spill] sm:$0xff] }
 0x24b   : > { %v8917_v0 = vpack.c.bf16 %v8399_v62, %v8399_v62  ;;  %v5301_v1 = vsub.f32 1.0, %v8399_v62  ;;  %v8356_v33 = vsel %vm4968_vm2, 1.0, %v13134_v19  ;;  %v5097_v12 = vmul.f32 0.25, %v4952_v24 }
 0x24c   : > { %v5335_v8 = vadd.f32 %v5319_v29, %v13221_v38  ;;  %8478 = vst.msk [vmem:[%s10159_s8 + $0x250] sm:$0xf] %vm3719_vm4, %v8932_v9  ;;  %v5509_v23 = vmul.f32 %v5493_v52, %v5477_v39  ;;  %v8906_v42 = vpack.c.bf16 %v8356_v33, %v8356_v33  ;;  %v5113_v56 = vsub.f32 1.0, %v8356_v33 }
 0x24d   : > { %8431 = vst.msk [vmem:[%s10159_s8 + $0x214] sm:$0xf] %vm3719_vm4, %v8917_v0  ;;  %v5317_v11 = vmul.f32 %v5301_v1, %v5285_v2  ;;  %v12033_v7 = vmul.f32 0.25, %v5527_v16  ;;  %v4950_v29 = vadd.f32 %v4934_v27, %v3049_v31  ;;  %v3060_v52 = vadd.f32 %v12007_v36, %v9295_v40 }
 0x24e   : > { %vm5351_vm10 = vcmp.gt.f32.partialorder %v5335_v8, 0.2  ;;  %v5480_v62 = vmul.f32 0.25, %v5335_v8  ;;  %v5525_v24 = vadd.f32 %v5509_v23, %v11039_v58  ;;  %8388 = vst.msk [vmem:[%s10159_s8 + $0x1e8] sm:$0xf] %vm3719_vm4, %v8906_v42  ;;  %v5129_v39 = vmul.f32 %v5113_v56, %v5097_v12  ;;  %v13223_v8 = vld [vmem:[#allocation12_spill] sm:$0xff] }
 0x24f   : > { %v8449_v38 = vsel %vm5351_vm10, 1.0, %v13134_v19  ;;  %v5333_v32 = vadd.f32 %v5317_v11, %v13222_v15  ;;  %vm4966_vm11 = vcmp.gt.f32.partialorder %v4950_v29, 0.2  ;;  %v5095_v31 = vmul.f32 0.25, %v4950_v29  ;;  %v13224_v56 = vld [vmem:[#allocation44_spill] sm:$0xff] }
 0x250   : > { %v8935_v9 = vpack.c.bf16 %v8449_v38, %v8449_v38  ;;  %v5496_v2 = vsub.f32 1.0, %v8449_v38  ;;  %vm5541_vm12 = vcmp.gt.f32.partialorder %v5525_v24, 0.2  ;;  %v5145_v33 = vadd.f32 %v5129_v39, %v13223_v8  ;;  %v3448_v39 = vpop.f32.mrf.mxu1  ;;  %v13225_v8 = vld [vmem:[#allocation45_spill] sm:$0xff] }
 0x251   : > { %vm5349_vm13 = vcmp.gt.f32.partialorder %v5333_v32, 0.2  ;;  %v5478_v16 = vmul.f32 0.25, %v5333_v32  ;;  %v12042_v58 = vsel %vm5541_vm12, 1.0, %v13134_v19  ;;  %v8354_v11 = vsel %vm4966_vm11, 1.0, %v13134_v19 }
 0x252   : > { %8481 = vst.msk [vmem:[%s10159_s8 + $0x25c] sm:$0xf] %vm3719_vm4, %v8935_v9  ;;  %v5512_v0 = vmul.f32 %v5496_v2, %v5480_v62  ;;  %v8447_v1 = vsel %vm5349_vm13, 1.0, %v13134_v19  ;;  %v8948_v12 = vpack.c.bf16 %v12042_v58, %v12042_v58  ;;  %v12051_v42 = vmul.f32 0.25, %v5525_v24 }
 0x253   : > { %v8933_v27 = vpack.c.bf16 %v8447_v1, %v8447_v1  ;;  %v5494_v23 = vsub.f32 1.0, %v8447_v1  ;;  %vm5161_vm14 = vcmp.gt.f32.partialorder %v5145_v33, 0.2  ;;  %v8904_v29 = vpack.c.bf16 %v8354_v11, %v8354_v11 }
 0x254   : > { %v5528_v40 = vadd.f32 %v5512_v0, %v13224_v56  ;;  %8526 = vst.msk [vmem:[%s10159_s8 + $0x290] sm:$0xf] %vm3719_vm4, %v8948_v12  ;;  %v8404_v38 = vsel %vm5161_vm14, 1.0, %v13134_v19  ;;  %v5111_v15 = vsub.f32 1.0, %v8354_v11  ;;  %v4921_v32 = vsub.f32 1.0, %v11751_v13  ;;  %v3051_v0 = vpop.f32.mrf.mxu0  ;;  %v13227_v56 = vld [vmem:[#allocation13_spill] sm:$0xff] }
 0x255   : > { %8479 = vst.msk [vmem:[%s10159_s8 + $0x254] sm:$0xf] %vm3719_vm4, %v8933_v27  ;;  %v5510_v62 = vmul.f32 %v5494_v23, %v5478_v16  ;;  %v8922_v9 = vpack.c.bf16 %v8404_v38, %v8404_v38  ;;  %v5290_v24 = vmul.f32 0.25, %v5145_v33  ;;  %v5306_v2 = vsub.f32 1.0, %v8404_v38  ;;  %8386 = vst.msk [vmem:[%s10159_s8 + $0x1e0] sm:$0xf] %vm3719_vm4, %v8904_v29 }
 0x256   : > { %vm5544_vm15 = vcmp.gt.f32.partialorder %v5528_v40, 0.2  ;;  %v5127_v12 = vmul.f32 %v5111_v15, %v5095_v31  ;;  %v4937_v27 = vmul.f32 %v4921_v32, %v11758_v3  ;;  %v12069_v23 = vmul.f32 0.25, %v5528_v40  ;;  %v9395_v31 = vpop.f32.mrf.mxu1  ;;  %v13228_v15 = vld [vmem:[#allocation28_spill] sm:$0xff] }
 0x257   : > { %v12063_v1 = vsel %vm5544_vm15, 1.0, %v13134_v19  ;;  %v5526_v16 = vadd.f32 %v5510_v62, %v13225_v8  ;;  %8436 = vst.msk [vmem:[%s10159_s8 + $0x228] sm:$0xf] %vm3719_vm4, %v8922_v9  ;;  %v5322_v33 = vmul.f32 %v5306_v2, %v5290_v24  ;;  %v12074_v11 = vadd.f32 %v12007_v36, %v3448_v39  ;;  %v9298_v9 = vpop.f32.mrf.mxu0 }
 0x258   : > { %v8951_v13 = vpack.c.bf16 %v12063_v1, %v12063_v1  ;;  %v5143_v29 = vadd.f32 %v5127_v12, %v13227_v56  ;;  %v4953_v38 = vadd.f32 %v4937_v27, %v3060_v52  ;;  %v3052_v62 = vadd.f32 %v12007_v36, %v3051_v0 }
 0x259   : > { %13226 = vst [vmem:[#allocation22_spill] sm:$0xff] %v12074_v11  ;;  %vm5542_vm0 = vcmp.gt.f32.partialorder %v5526_v16, 0.2  ;;  %v12083_v40 = vmul.f32 0.25, %v5526_v16  ;;  %v5338_v32 = vadd.f32 %v5322_v33, %v13228_v15  ;;  %v4919_v39 = vsub.f32 1.0, %v11773_v53  ;;  %v3064_v11 = vpop.f32.mrf.mxu0 }
 0x25a   : > { %8529 = vst.msk [vmem:[%s10159_s8 + $0x29c] sm:$0xf] %vm3719_vm4, %v8951_v13  ;;  %v12081_v3 = vsel %vm5542_vm0, 1.0, %v13134_v19  ;;  %vm5159_vm1 = vcmp.gt.f32.partialorder %v5143_v29, 0.2  ;;  %v5288_v52 = vmul.f32 0.25, %v5143_v29  ;;  %v3451_v13 = vpop.f32.mrf.mxu1 }
 0x25b   : > { %v8949_v24 = vpack.c.bf16 %v12081_v3, %v12081_v3  ;;  %vm4969_vm3 = vcmp.gt.f32.partialorder %v4953_v38, 0.2  ;;  %vm5354_vm5 = vcmp.gt.f32.partialorder %v5338_v32, 0.2  ;;  %v5483_v2 = vmul.f32 0.25, %v5338_v32 }
 0x25c   : > { %v8402_v0 = vsel %vm5159_vm1, 1.0, %v13134_v19  ;;  %v8357_v8 = vsel %vm4969_vm3, 1.0, %v13134_v19  ;;  %v8452_v16 = vsel %vm5354_vm5, 1.0, %v13134_v19  ;;  %v5098_v29 = vmul.f32 0.25, %v4953_v38 }
 0x25d   : > { %8527 = vst.msk [vmem:[%s10159_s8 + $0x294] sm:$0xf] %vm3719_vm4, %v8949_v24  ;;  %v8920_v53 = vpack.c.bf16 %v8402_v0, %v8402_v0  ;;  %v5304_v12 = vsub.f32 1.0, %v8402_v0  ;;  %v8907_v27 = vpack.c.bf16 %v8357_v8, %v8357_v8  ;;  %v8938_v33 = vpack.c.bf16 %v8452_v16, %v8452_v16 }
 0x25e   : > { %v5499_v56 = vsub.f32 1.0, %v8452_v16  ;;  %v5114_v15 = vsub.f32 1.0, %v8357_v8  ;;  %v4935_v35 = vmul.f32 %v4919_v39, %v11764_v43  ;;  %v12100_v24 = vadd.f32 %v12007_v36, %v9395_v31  ;;  %v13230_v16 = vld [vmem:[#allocation29_spill] sm:$0xff]  ;;  %v9398_v31 = vpop.f32.mrf.mxu1  ;;  %v13231_v39 = vld [vmem:[#allocation46_spill] sm:$0xff] }
 0x25f   : > { %8434 = vst.msk [vmem:[%s10159_s8 + $0x220] sm:$0xf] %vm3719_vm4, %v8920_v53  ;;  %v5320_v32 = vmul.f32 %v5304_v12, %v5288_v52  ;;  %8389 = vst.msk [vmem:[%s10159_s8 + $0x1ec] sm:$0xf] %vm3719_vm4, %v8907_v27  ;;  %v3073_v38 = vadd.f32 %v12007_v36, %v9298_v9  ;;  %v12107_v8 = vadd.f32 %v12007_v36, %v3451_v13 }
 0x260   : > { %13229 = vst [vmem:[#allocation36_spill] sm:$0xff] %v12100_v24  ;;  %8484 = vst.msk [vmem:[%s10159_s8 + $0x268] sm:$0xf] %vm3719_vm4, %v8938_v33  ;;  %v5515_v0 = vmul.f32 %v5499_v56, %v5483_v2  ;;  %v5130_v44 = vmul.f32 %v5114_v15, %v5098_v29  ;;  %v4951_v53 = vadd.f32 %v4935_v35, %v3052_v62  ;;  %v4922_v2 = vsub.f32 1.0, %v11807_v22 }
 0x261   : > { %v5336_v52 = vadd.f32 %v5320_v32, %v13230_v16  ;;  %v4940_v12 = vmul.f32 %v4924_v55, %v11780_v28  ;;  %v3065_v43 = vadd.f32 %v12007_v36, %v3064_v11  ;;  %v12116_v33 = vadd.f32 %v12007_v36, %v9398_v31 }
 0x262   : > { %v5531_v27 = vadd.f32 %v5515_v0, %v13231_v39  ;;  %v5146_v24 = vadd.f32 %v5130_v44, %v13232_v59  ;;  %vm4967_vm7 = vcmp.gt.f32.partialorder %v4951_v53, 0.2  ;;  %v5684_v35 = vsub.f32 1.0, %v11914_v48 }
 0x263   : > { %vm5352_vm6 = vcmp.gt.f32.partialorder %v5336_v52, 0.2  ;;  %v5481_v9 = vmul.f32 0.25, %v5336_v52  ;;  %v5096_v55 = vmul.f32 0.25, %v4951_v53  ;;  %v8355_v32 = vsel %vm4967_vm7, 1.0, %v13134_v19  ;;  %v13234_v53 = vld [vmem:[#allocation30_spill] sm:$0xff] }
 0x264   : > { %vm5547_vm8 = vcmp.gt.f32.partialorder %v5531_v27, 0.2  ;;  %v8450_v28 = vsel %vm5352_vm6, 1.0, %v13134_v19  ;;  %vm5162_vm9 = vcmp.gt.f32.partialorder %v5146_v24, 0.2  ;;  %v5291_v29 = vmul.f32 0.25, %v5146_v24 }
 0x265   : > { %v12121_v44 = vsel %vm5547_vm8, 1.0, %v13134_v19  ;;  %v8936_v22 = vpack.c.bf16 %v8450_v28, %v8450_v28  ;;  %v5497_v11 = vsub.f32 1.0, %v8450_v28  ;;  %v8405_v62 = vsel %vm5162_vm9, 1.0, %v13134_v19  ;;  %v13233_v28 = vld [vmem:[#allocation47_spill] sm:$0xff] }
 0x266   : > { %v8954_v13 = vpack.c.bf16 %v12121_v44, %v12121_v44  ;;  %v8923_v56 = vpack.c.bf16 %v8405_v62, %v8405_v62  ;;  %v5307_v48 = vsub.f32 1.0, %v8405_v62  ;;  %v4956_v0 = vadd.f32 %v4940_v12, %v3073_v38  ;;  %v13235_v62 = vld [vmem:[#allocation15_spill] sm:$0xff] }
 0x267   : > { %8482 = vst.msk [vmem:[%s10159_s8 + $0x260] sm:$0xf] %vm3719_vm4, %v8936_v22  ;;  %v5513_v15 = vmul.f32 %v5497_v11, %v5481_v9  ;;  %v4938_v16 = vmul.f32 %v4922_v2, %v11809_v14  ;;  %v8905_v31 = vpack.c.bf16 %v8355_v32, %v8355_v32  ;;  %v5112_v39 = vsub.f32 1.0, %v8355_v32 }
 0x268   : > { %8532 = vst.msk [vmem:[%s10159_s8 + $0x2a8] sm:$0xf] %vm3719_vm4, %v8954_v13  ;;  %8437 = vst.msk [vmem:[%s10159_s8 + $0x22c] sm:$0xf] %vm3719_vm4, %v8923_v56  ;;  %v5323_v52 = vmul.f32 %v5307_v48, %v5291_v29  ;;  %v5700_v24 = vmul.f32 %v5684_v35, %v11916_v5  ;;  %v12136_v59 = vmul.f32 0.25, %v5531_v27  ;;  %v5101_v5 = vmul.f32 0.25, %v4956_v0 }
 0x269   : > { %v5529_v22 = vadd.f32 %v5513_v15, %v13233_v28  ;;  %vm4972_vm2 = vcmp.gt.f32.partialorder %v4956_v0, 0.2  ;;  %v4954_v9 = vadd.f32 %v4938_v16, %v3065_v43  ;;  %8387 = vst.msk [vmem:[%s10159_s8 + $0x1e4] sm:$0xf] %vm3719_vm4, %v8905_v31  ;;  %v5128_v14 = vmul.f32 %v5112_v39, %v5096_v55  ;;  %v13236_v0 = vld [vmem:[#allocation16_spill] sm:$0xff] }
 0x26a   : > { %v5339_v38 = vadd.f32 %v5323_v52, %v13234_v53  ;;  %v8360_v12 = vsel %vm4972_vm2, 1.0, %v13134_v19  ;;  %v5716_v2 = vadd.f32 %v5700_v24, %v11237_v25 }
 0x26b   : > { %vm5545_vm10 = vcmp.gt.f32.partialorder %v5529_v22, 0.2  ;;  %v8910_v11 = vpack.c.bf16 %v8360_v12, %v8360_v12  ;;  %v5117_v27 = vsub.f32 1.0, %v8360_v12  ;;  %v5144_v13 = vadd.f32 %v5128_v14, %v13235_v62  ;;  %v13237_v12 = vld [vmem:[#allocation48_spill] sm:$0xff] }
 0x26c   : > { %v12145_v35 = vsel %vm5545_vm10, 1.0, %v13134_v19  ;;  %vm5355_vm11 = vcmp.gt.f32.partialorder %v5339_v38, 0.2  ;;  %v5484_v43 = vmul.f32 0.25, %v5339_v38  ;;  %vm4970_vm12 = vcmp.gt.f32.partialorder %v4954_v9, 0.2 }
 0x26d   : > { %v8952_v55 = vpack.c.bf16 %v12145_v35, %v12145_v35  ;;  %v8453_v56 = vsel %vm5355_vm11, 1.0, %v13134_v19  ;;  %8392 = vst.msk [vmem:[%s10159_s8 + $0x1f8] sm:$0xf] %vm3719_vm4, %v8910_v11  ;;  %v5133_v25 = vmul.f32 %v5117_v27, %v5101_v5  ;;  %vm5160_vm13 = vcmp.gt.f32.partialorder %v5144_v13, 0.2 }
 0x26e   : > { %v8939_v29 = vpack.c.bf16 %v8453_v56, %v8453_v56  ;;  %v5500_v48 = vsub.f32 1.0, %v8453_v56  ;;  %v5289_v15 = vmul.f32 0.25, %v5144_v13  ;;  %v8403_v32 = vsel %vm5160_vm13, 1.0, %v13134_v19 }
 0x26f   : > { %8530 = vst.msk [vmem:[%s10159_s8 + $0x2a0] sm:$0xf] %vm3719_vm4, %v8952_v55  ;;  %v5149_v16 = vadd.f32 %v5133_v25, %v13236_v0  ;;  %v8358_v52 = vsel %vm4970_vm12, 1.0, %v13134_v19  ;;  %v5099_v31 = vmul.f32 0.25, %v4954_v9  ;;  %v8921_v24 = vpack.c.bf16 %v8403_v32, %v8403_v32 }
 0x270   : > { %8485 = vst.msk [vmem:[%s10159_s8 + $0x26c] sm:$0xf] %vm3719_vm4, %v8939_v29  ;;  %v5516_v39 = vmul.f32 %v5500_v48, %v5484_v43  ;;  %v5305_v28 = vsub.f32 1.0, %v8403_v32  ;;  %v8908_v53 = vpack.c.bf16 %v8358_v52, %v8358_v52  ;;  %v5115_v14 = vsub.f32 1.0, %v8358_v52  ;;  %v13238_v29 = vld [vmem:[#allocation31_spill] sm:$0xff] }
 0x271   : > { %vm5165_vm14 = vcmp.gt.f32.partialorder %v5149_v16, 0.2  ;;  %v5294_v38 = vmul.f32 0.25, %v5149_v16  ;;  %vm5732_vm15 = vcmp.gt.f32.partialorder %v5716_v2, 0.2  ;;  %v12167_v56 = vmul.f32 0.25, %v5529_v22 }
 0x272   : > { %v5532_v11 = vadd.f32 %v5516_v39, %v13237_v12  ;;  %8435 = vst.msk [vmem:[%s10159_s8 + $0x224] sm:$0xf] %vm3719_vm4, %v8921_v24  ;;  %v5321_v5 = vmul.f32 %v5305_v28, %v5289_v15  ;;  %v8408_v27 = vsel %vm5165_vm14, 1.0, %v13134_v19  ;;  %8390 = vst.msk [vmem:[%s10159_s8 + $0x1f0] sm:$0xf] %vm3719_vm4, %v8908_v53  ;;  %v8540_v9 = vsel %vm5732_vm15, 1.0, %v13134_v19  ;;  %v9299_v15 = vpop.f32.mrf.mxu0 }
 0x273   : > { %v8926_v43 = vpack.c.bf16 %v8408_v27, %v8408_v27  ;;  %v5310_v62 = vsub.f32 1.0, %v8408_v27  ;;  %v5131_v13 = vmul.f32 %v5115_v14, %v5099_v31  ;;  %v8962_v55 = vpack.c.bf16 %v8540_v9, %v8540_v9  ;;  %v13239_v16 = vld [vmem:[#allocation17_spill] sm:$0xff]  ;;  %v13240_v53 = vld [vmem:[#allocation32_spill] sm:$0xff] }
 0x274   : > { %vm5548_vm0 = vcmp.gt.f32.partialorder %v5532_v11, 0.2  ;;  %v12169_v25 = vmul.f32 0.25, %v5532_v11  ;;  %v5337_v48 = vadd.f32 %v5321_v5, %v13238_v29  ;;  %v5877_v31 = vsub.f32 1.0, %v8540_v9 }
 0x275   : > { %v12173_v32 = vsel %vm5548_vm0, 1.0, %v13134_v19  ;;  %8440 = vst.msk [vmem:[%s10159_s8 + $0x238] sm:$0xf] %vm3719_vm4, %v8926_v43  ;;  %v5326_v0 = vmul.f32 %v5310_v62, %v5294_v38  ;;  %v5147_v52 = vadd.f32 %v5131_v13, %v13239_v16  ;;  %8572 = vst.msk [vmem:[%s10159_s8 + $0x2c8] sm:$0xf] %vm3719_vm4, %v8962_v55  ;;  %v5861_v24 = vmul.f32 0.25, %v5716_v2 }
 0x276   : > { %v8955_v22 = vpack.c.bf16 %v12173_v32, %v12173_v32  ;;  %vm5353_vm1 = vcmp.gt.f32.partialorder %v5337_v48, 0.2  ;;  %v5482_v39 = vmul.f32 0.25, %v5337_v48  ;;  %v3076_v12 = vadd.f32 %v12007_v36, %v9299_v15 }
 0x277   : > { %v8451_v28 = vsel %vm5353_vm1, 1.0, %v13134_v19  ;;  %v5342_v14 = vadd.f32 %v5326_v0, %v13240_v53  ;;  %vm5163_vm3 = vcmp.gt.f32.partialorder %v5147_v52, 0.2  ;;  %v5893_v27 = vmul.f32 %v5877_v31, %v5861_v24  ;;  %v3464_v31 = vpop.f32.mrf.mxu1 }
 0x278   : > { %8533 = vst.msk [vmem:[%s10159_s8 + $0x2ac] sm:$0xf] %vm3719_vm4, %v8955_v22  ;;  %v8937_v38 = vpack.c.bf16 %v8451_v28, %v8451_v28  ;;  %v5498_v11 = vsub.f32 1.0, %v8451_v28  ;;  %v8406_v5 = vsel %vm5163_vm3, 1.0, %v13134_v19  ;;  %v5292_v43 = vmul.f32 0.25, %v5147_v52  ;;  %v13241_v22 = vld [vmem:[#allocation49_spill] sm:$0xff] }
 0x279   : > { %vm5358_vm5 = vcmp.gt.f32.partialorder %v5342_v14, 0.2  ;;  %v8924_v9 = vpack.c.bf16 %v8406_v5, %v8406_v5  ;;  %v5308_v62 = vsub.f32 1.0, %v8406_v5  ;;  %v5909_v55 = vadd.f32 %v5893_v27, %v11523_v20 }
 0x27a   : > { %8483 = vst.msk [vmem:[%s10159_s8 + $0x264] sm:$0xf] %vm3719_vm4, %v8937_v38  ;;  %v5514_v2 = vmul.f32 %v5498_v11, %v5482_v39  ;;  %v8456_v13 = vsel %vm5358_vm5, 1.0, %v13134_v19  ;;  %v4925_v29 = vsub.f32 1.0, %v11820_v4  ;;  %v5487_v15 = vmul.f32 0.25, %v5342_v14  ;;  %v13242_v39 = vld [vmem:[#allocation33_spill] sm:$0xff] }
 0x27b   : > { %v8942_v48 = vpack.c.bf16 %v8456_v13, %v8456_v13  ;;  %v5503_v0 = vsub.f32 1.0, %v8456_v13  ;;  %8438 = vst.msk [vmem:[%s10159_s8 + $0x230] sm:$0xf] %vm3719_vm4, %v8924_v9  ;;  %v5324_v16 = vmul.f32 %v5308_v62, %v5292_v43  ;;  %vm5925_vm6 = vcmp.gt.f32.partialorder %v5909_v55, 0.2 }
 0x27c   : > { %v5530_v52 = vadd.f32 %v5514_v2, %v13241_v22  ;;  %v6054_v24 = vmul.f32 0.25, %v5909_v55  ;;  %v12197_v28 = vadd.f32 %v12007_v36, %v3464_v31  ;;  %v8588_v53 = vsel %vm5925_vm6, 1.0, %v13134_v19 }
 0x27d   : > { %8488 = vst.msk [vmem:[%s10159_s8 + $0x278] sm:$0xf] %vm3719_vm4, %v8942_v48  ;;  %v5519_v20 = vmul.f32 %v5503_v0, %v5487_v15  ;;  %v5340_v4 = vadd.f32 %v5324_v16, %v13242_v39  ;;  %v4941_v14 = vmul.f32 %v4925_v29, %v11822_v63  ;;  %v8978_v38 = vpack.c.bf16 %v8588_v53, %v8588_v53 }
 0x27e   : > { %vm5546_vm7 = vcmp.gt.f32.partialorder %v5530_v52, 0.2  ;;  %v6070_v11 = vsub.f32 1.0, %v8588_v53  ;;  %v5682_v5 = vsub.f32 1.0, %v11928_v21  ;;  %v12208_v9 = vmul.f32 0.25, %v5530_v52 }
 0x27f   : > { %v12206_v27 = vsel %vm5546_vm7, 1.0, %v13134_v19  ;;  %v5535_v43 = vadd.f32 %v5519_v20, %v11167_v34  ;;  %vm5356_vm8 = vcmp.gt.f32.partialorder %v5340_v4, 0.2  ;;  %8620 = vst.msk [vmem:[%s10159_s8 + $0x308] sm:$0xf] %vm3719_vm4, %v8978_v38  ;;  %v4957_v13 = vadd.f32 %v4941_v14, %v3076_v12  ;;  %v3067_v20 = vpop.f32.mrf.mxu0  ;;  %v13244_v14 = vld [vmem:[#allocation53_spill] sm:$0xff] }
 0x280   : > { %v8953_v62 = vpack.c.bf16 %v12206_v27, %v12206_v27  ;;  %v8454_v63 = vsel %vm5356_vm8, 1.0, %v13134_v19  ;;  %v6086_v2 = vmul.f32 %v6070_v11, %v6054_v24  ;;  %v5485_v55 = vmul.f32 0.25, %v5340_v4 }
 0x281   : > { %vm5551_vm9 = vcmp.gt.f32.partialorder %v5535_v43, 0.2  ;;  %v8940_v21 = vpack.c.bf16 %v8454_v63, %v8454_v63  ;;  %v5501_v29 = vsub.f32 1.0, %v8454_v63  ;;  %v12221_v48 = vmul.f32 0.25, %v5535_v43 }
 0x282   : > { %8531 = vst.msk [vmem:[%s10159_s8 + $0x2a4] sm:$0xf] %vm3719_vm4, %v8953_v62  ;;  %v12219_v34 = vsel %vm5551_vm9, 1.0, %v13134_v19  ;;  %v6102_v15 = vadd.f32 %v6086_v2, %v11784_v41  ;;  %vm4973_vm2 = vcmp.gt.f32.partialorder %v4957_v13, 0.2  ;;  %v5698_v31 = vmul.f32 %v5682_v5, %v11930_v51  ;;  %v13243_v41 = vld [vmem:[#allocation50_spill] sm:$0xff] }
 0x283   : > { %v8958_v0 = vpack.c.bf16 %v12219_v34, %v12219_v34  ;;  %8486 = vst.msk [vmem:[%s10159_s8 + $0x270] sm:$0xf] %vm3719_vm4, %v8940_v21  ;;  %v5517_v12 = vmul.f32 %v5501_v29, %v5485_v55  ;;  %v8361_v16 = vsel %vm4973_vm2, 1.0, %v13134_v19  ;;  %v5102_v52 = vmul.f32 0.25, %v4957_v13  ;;  %v13245_v21 = vld [vmem:[#allocation18_spill] sm:$0xff] }
 0x284   : > { %vm6118_vm10 = vcmp.gt.f32.partialorder %v6102_v15, 0.2  ;;  %v8911_v22 = vpack.c.bf16 %v8361_v16, %v8361_v16  ;;  %v5118_v24 = vsub.f32 1.0, %v8361_v16  ;;  %v6247_v53 = vmul.f32 0.25, %v6102_v15 }
 0x285   : > { %8536 = vst.msk [vmem:[%s10159_s8 + $0x2b8] sm:$0xf] %vm3719_vm4, %v8958_v0  ;;  %v5533_v39 = vadd.f32 %v5517_v12, %v13243_v41  ;;  %v8636_v4 = vsel %vm6118_vm10, 1.0, %v13134_v19  ;;  %v5714_v38 = vadd.f32 %v5698_v31, %v13244_v14  ;;  %v4923_v5 = vsub.f32 1.0, %v11840_v30  ;;  %v9399_v41 = vpop.f32.mrf.mxu1 }
 0x286   : > { %v8994_v11 = vpack.c.bf16 %v8636_v4, %v8636_v4  ;;  %v6263_v43 = vsub.f32 1.0, %v8636_v4  ;;  %8393 = vst.msk [vmem:[%s10159_s8 + $0x1fc] sm:$0xf] %vm3719_vm4, %v8911_v22  ;;  %v5134_v51 = vmul.f32 %v5118_v24, %v5102_v52  ;;  %v3068_v63 = vadd.f32 %v12007_v36, %v3067_v20 }
 0x287   : > { %vm5549_vm11 = vcmp.gt.f32.partialorder %v5533_v39, 0.2  ;;  %vm5730_vm12 = vcmp.gt.f32.partialorder %v5714_v38, 0.2  ;;  %v5859_v62 = vmul.f32 0.25, %v5714_v38  ;;  %v4939_v12 = vmul.f32 %v4923_v5, %v11831_v26 }
 0x288   : > { %v12240_v2 = vsel %vm5549_vm11, 1.0, %v13134_v19  ;;  %8668 = vst.msk [vmem:[%s10159_s8 + $0x348] sm:$0xf] %vm3719_vm4, %v8994_v11  ;;  %v6279_v13 = vmul.f32 %v6263_v43, %v6247_v53  ;;  %v5150_v55 = vadd.f32 %v5134_v51, %v13245_v21  ;;  %v8538_v29 = vsel %vm5730_vm12, 1.0, %v13134_v19 }
 0x289   : > { %v8956_v30 = vpack.c.bf16 %v12240_v2, %v12240_v2  ;;  %v8960_v15 = vpack.c.bf16 %v8538_v29, %v8538_v29  ;;  %v5875_v0 = vsub.f32 1.0, %v8538_v29  ;;  %v12249_v16 = vmul.f32 0.25, %v5533_v39  ;;  %v13247_v29 = vld [vmem:[#allocation54_spill] sm:$0xff] }
 0x28a   : > { %v6295_v31 = vadd.f32 %v6279_v13, %v12116_v33  ;;  %vm5166_vm13 = vcmp.gt.f32.partialorder %v5150_v55, 0.2  ;;  %v5295_v22 = vmul.f32 0.25, %v5150_v55  ;;  %v4955_v20 = vadd.f32 %v4939_v12, %v3068_v63  ;;  %v13246_v13 = vld [vmem:[#allocation34_spill] sm:$0xff] }
 0x28b   : > { %8534 = vst.msk [vmem:[%s10159_s8 + $0x2b0] sm:$0xf] %vm3719_vm4, %v8956_v30  ;;  %v8409_v52 = vsel %vm5166_vm13, 1.0, %v13134_v19  ;;  %8570 = vst.msk [vmem:[%s10159_s8 + $0x2c0] sm:$0xf] %vm3719_vm4, %v8960_v15  ;;  %v5891_v24 = vmul.f32 %v5875_v0, %v5859_v62  ;;  %v5685_v4 = vsub.f32 1.0, %v11936_v17  ;;  %v12259_v33 = vadd.f32 %v12007_v36, %v9399_v41 }
 0x28c   : > { %vm6311_vm14 = vcmp.gt.f32.partialorder %v6295_v31, 0.2  ;;  %v8927_v26 = vpack.c.bf16 %v8409_v52, %v8409_v52  ;;  %v5311_v39 = vsub.f32 1.0, %v8409_v52  ;;  %v12264_v14 = vmul.f32 0.25, %v6295_v31  ;;  %v3467_v52 = vpop.f32.mrf.mxu1  ;;  %v13248_v41 = vld [vmem:[#allocation19_spill] sm:$0xff] }
 0x28d   : > { %v12262_v53 = vsel %vm6311_vm14, 1.0, %v13134_v19  ;;  %v5907_v38 = vadd.f32 %v5891_v24, %v11532_v60  ;;  %vm4971_vm15 = vcmp.gt.f32.partialorder %v4955_v20, 0.2  ;;  %v5701_v51 = vmul.f32 %v5685_v4, %v11945_v50 }
 0x28e   : > { %v9010_v11 = vpack.c.bf16 %v12262_v53, %v12262_v53  ;;  %8441 = vst.msk [vmem:[%s10159_s8 + $0x23c] sm:$0xf] %vm3719_vm4, %v8927_v26  ;;  %v5327_v17 = vmul.f32 %v5311_v39, %v5295_v22  ;;  %v8359_v43 = vsel %vm4971_vm15, 1.0, %v13134_v19  ;;  %v5100_v62 = vmul.f32 0.25, %v4955_v20 }
 0x28f   : > { %vm5923_vm0 = vcmp.gt.f32.partialorder %v5907_v38, 0.2  ;;  %v8909_v5 = vpack.c.bf16 %v8359_v43, %v8359_v43  ;;  %v5116_v63 = vsub.f32 1.0, %v8359_v43  ;;  %v6052_v55 = vmul.f32 0.25, %v5907_v38 }
 0x290   : > { %8716 = vst.msk [vmem:[%s10159_s8 + $0x388] sm:$0xf] %vm3719_vm4, %v9010_v11  ;;  %v5343_v60 = vadd.f32 %v5327_v17, %v13246_v13  ;;  %v8586_v21 = vsel %vm5923_vm0, 1.0, %v13134_v19  ;;  %v5717_v30 = vadd.f32 %v5701_v51, %v13247_v29  ;;  %v5683_v50 = vsub.f32 1.0, %v11961_v54  ;;  %v13249_v29 = vld [vmem:[#allocation51_spill] sm:$0xff] }
 0x291   : > { %v8976_v15 = vpack.c.bf16 %v8586_v21, %v8586_v21  ;;  %v6068_v0 = vsub.f32 1.0, %v8586_v21  ;;  %8391 = vst.msk [vmem:[%s10159_s8 + $0x1f4] sm:$0xf] %vm3719_vm4, %v8909_v5  ;;  %v5132_v12 = vmul.f32 %v5116_v63, %v5100_v62  ;;  %v12288_v43 = vadd.f32 %v12007_v36, %v3467_v52 }
 0x292   : > { %vm5359_vm1 = vcmp.gt.f32.partialorder %v5343_v60, 0.2  ;;  %v5488_v31 = vmul.f32 0.25, %v5343_v60  ;;  %vm5733_vm3 = vcmp.gt.f32.partialorder %v5717_v30, 0.2  ;;  %v5862_v22 = vmul.f32 0.25, %v5717_v30  ;;  %v9402_v60 = vpop.f32.mrf.mxu1 }
 0x293   : > { %v8457_v24 = vsel %vm5359_vm1, 1.0, %v13134_v19  ;;  %8618 = vst.msk [vmem:[%s10159_s8 + $0x300] sm:$0xf] %vm3719_vm4, %v8976_v15  ;;  %v6084_v20 = vmul.f32 %v6068_v0, %v6052_v55  ;;  %v5148_v4 = vadd.f32 %v5132_v12, %v13248_v41  ;;  %v8541_v26 = vsel %vm5733_vm3, 1.0, %v13134_v19  ;;  %v13250_v0 = vld [vmem:[#allocation55_spill] sm:$0xff] }
 0x294   : > { %v8943_v39 = vpack.c.bf16 %v8457_v24, %v8457_v24  ;;  %v5504_v38 = vsub.f32 1.0, %v8457_v24  ;;  %v8963_v11 = vpack.c.bf16 %v8541_v26, %v8541_v26  ;;  %v5878_v54 = vsub.f32 1.0, %v8541_v26 }
 0x295   : > { %v6100_v17 = vadd.f32 %v6084_v20, %v11791_v57  ;;  %vm5164_vm5 = vcmp.gt.f32.partialorder %v5148_v4, 0.2  ;;  %v5699_v51 = vmul.f32 %v5683_v50, %v11970_v61  ;;  %v5293_v63 = vmul.f32 0.25, %v5148_v4  ;;  %v13251_v4 = vld [vmem:[#allocation35_spill] sm:$0xff] }
 0x296   : > { %8489 = vst.msk [vmem:[%s10159_s8 + $0x27c] sm:$0xf] %vm3719_vm4, %v8943_v39  ;;  %v5520_v5 = vmul.f32 %v5504_v38, %v5488_v31  ;;  %v8407_v62 = vsel %vm5164_vm5, 1.0, %v13134_v19  ;;  %8573 = vst.msk [vmem:[%s10159_s8 + $0x2cc] sm:$0xf] %vm3719_vm4, %v8963_v11  ;;  %v5894_v13 = vmul.f32 %v5878_v54, %v5862_v22  ;;  %v12297_v55 = vadd.f32 %v12007_v36, %v9402_v60 }
 0x297   : > { %vm6116_vm6 = vcmp.gt.f32.partialorder %v6100_v17, 0.2  ;;  %v8925_v21 = vpack.c.bf16 %v8407_v62, %v8407_v62  ;;  %v5309_v57 = vsub.f32 1.0, %v8407_v62  ;;  %v5715_v12 = vadd.f32 %v5699_v51, %v13250_v0 }
 0x298   : > { %v5536_v61 = vadd.f32 %v5520_v5, %v13249_v29  ;;  %v8634_v30 = vsel %vm6116_vm6, 1.0, %v13134_v19  ;;  %v5910_v15 = vadd.f32 %v5894_v13, %v11536_v10  ;;  %v6245_v31 = vmul.f32 0.25, %v6100_v17 }
 0x299   : > { %v8992_v50 = vpack.c.bf16 %v8634_v30, %v8634_v30  ;;  %v6261_v52 = vsub.f32 1.0, %v8634_v30  ;;  %8439 = vst.msk [vmem:[%s10159_s8 + $0x234] sm:$0xf] %vm3719_vm4, %v8925_v21  ;;  %v5325_v22 = vmul.f32 %v5309_v57, %v5293_v63  ;;  %v5688_v20 = vsub.f32 1.0, %v12013_v46 }
 0x29a   : > { %vm5552_vm7 = vcmp.gt.f32.partialorder %v5536_v61, 0.2  ;;  %vm5926_vm8 = vcmp.gt.f32.partialorder %v5910_v15, 0.2  ;;  %v6055_v24 = vmul.f32 0.25, %v5910_v15  ;;  %v12315_v17 = vmul.f32 0.25, %v5536_v61 }
 0x29b   : > { %v12307_v41 = vsel %vm5552_vm7, 1.0, %v13134_v19  ;;  %8666 = vst.msk [vmem:[%s10159_s8 + $0x340] sm:$0xf] %vm3719_vm4, %v8992_v50  ;;  %v6277_v10 = vmul.f32 %v6261_v52, %v6245_v31  ;;  %v5341_v26 = vadd.f32 %v5325_v22, %v13251_v4  ;;  %v8589_v39 = vsel %vm5926_vm8, 1.0, %v13134_v19  ;;  %v13252_v22 = vld [vmem:[#allocation56_spill] sm:$0xff] }
 0x29c   : > { %v8959_v38 = vpack.c.bf16 %v12307_v41, %v12307_v41  ;;  %v8979_v11 = vpack.c.bf16 %v8589_v39, %v8589_v39  ;;  %v6071_v54 = vsub.f32 1.0, %v8589_v39  ;;  %vm5731_vm9 = vcmp.gt.f32.partialorder %v5715_v12, 0.2 }
 0x29d   : > { %v6293_v46 = vadd.f32 %v6277_v10, %v12197_v28  ;;  %vm5357_vm2 = vcmp.gt.f32.partialorder %v5341_v26, 0.2  ;;  %v8539_v51 = vsel %vm5731_vm9, 1.0, %v13134_v19  ;;  %v5486_v62 = vmul.f32 0.25, %v5341_v26  ;;  %v3480_v28 = vpop.f32.mrf.mxu1 }
 0x29e   : > { %8537 = vst.msk [vmem:[%s10159_s8 + $0x2bc] sm:$0xf] %vm3719_vm4, %v8959_v38  ;;  %v8455_v5 = vsel %vm5357_vm2, 1.0, %v13134_v19  ;;  %8621 = vst.msk [vmem:[%s10159_s8 + $0x30c] sm:$0xf] %vm3719_vm4, %v8979_v11  ;;  %v6087_v63 = vmul.f32 %v6071_v54, %v6055_v24  ;;  %v8961_v13 = vpack.c.bf16 %v8539_v51, %v8539_v51  ;;  %v5860_v57 = vmul.f32 0.25, %v5715_v12 }
 0x29f   : > { %vm6309_vm10 = vcmp.gt.f32.partialorder %v6293_v46, 0.2  ;;  %v8941_v60 = vpack.c.bf16 %v8455_v5, %v8455_v5  ;;  %v5502_v21 = vsub.f32 1.0, %v8455_v5  ;;  %v5876_v30 = vsub.f32 1.0, %v8539_v51  ;;  %v9403_v39 = vpop.f32.mrf.mxu1  ;;  %v13254_v11 = vld [vmem:[#allocation65_spill] sm:$0xff] }
 0x2a0   : > { %v12325_v29 = vsel %vm6309_vm10, 1.0, %v13134_v19  ;;  %v6103_v61 = vadd.f32 %v6087_v63, %v11800_v18  ;;  %8571 = vst.msk [vmem:[%s10159_s8 + $0x2c4] sm:$0xf] %vm3719_vm4, %v8961_v13  ;;  %v5704_v15 = vmul.f32 %v5688_v20, %v12033_v7  ;;  %v12333_v50 = vmul.f32 0.25, %v6293_v46  ;;  %v13253_v7 = vld [vmem:[#allocation52_spill] sm:$0xff] }
 0x2a1   : > { %v9008_v0 = vpack.c.bf16 %v12325_v29, %v12325_v29  ;;  %8487 = vst.msk [vmem:[%s10159_s8 + $0x274] sm:$0xf] %vm3719_vm4, %v8941_v60  ;;  %v5518_v12 = vmul.f32 %v5502_v21, %v5486_v62  ;;  %v5686_v31 = vsub.f32 1.0, %v12042_v58  ;;  %v5892_v52 = vmul.f32 %v5876_v30, %v5860_v57 }
 0x2a2   : > { %vm6119_vm11 = vcmp.gt.f32.partialorder %v6103_v61, 0.2  ;;  %v5720_v24 = vadd.f32 %v5704_v15, %v13252_v22  ;;  %v12340_v18 = vadd.f32 %v12007_v36, %v3480_v28  ;;  %v6248_v4 = vmul.f32 0.25, %v6103_v61  ;;  %v3483_v28 = vpop.f32.mrf.mxu1 }
 0x2a3   : > { %8714 = vst.msk [vmem:[%s10159_s8 + $0x380] sm:$0xf] %vm3719_vm4, %v9008_v0  ;;  %v5534_v20 = vadd.f32 %v5518_v12, %v13253_v7  ;;  %v8637_v10 = vsel %vm6119_vm11, 1.0, %v13134_v19  ;;  %v5702_v26 = vmul.f32 %v5686_v31, %v12051_v42  ;;  %v5908_v54 = vadd.f32 %v5892_v52, %v13254_v11  ;;  %v13255_v0 = vld [vmem:[#allocation57_spill] sm:$0xff] }
 0x2a4   : > { %v8995_v38 = vpack.c.bf16 %v8637_v10, %v8637_v10  ;;  %v6264_v58 = vsub.f32 1.0, %v8637_v10  ;;  %vm5736_vm12 = vcmp.gt.f32.partialorder %v5720_v24, 0.2  ;;  %v5865_v51 = vmul.f32 0.25, %v5720_v24 }
 0x2a5   : > { %vm5550_vm13 = vcmp.gt.f32.partialorder %v5534_v20, 0.2  ;;  %v8544_v46 = vsel %vm5736_vm12, 1.0, %v13134_v19  ;;  %v12350_v5 = vadd.f32 %v12007_v36, %v9403_v39  ;;  %vm5924_vm14 = vcmp.gt.f32.partialorder %v5908_v54, 0.2 }
 0x2a6   : > { %v12353_v62 = vsel %vm5550_vm13, 1.0, %v13134_v19  ;;  %8669 = vst.msk [vmem:[%s10159_s8 + $0x34c] sm:$0xf] %vm3719_vm4, %v8995_v38  ;;  %v6280_v42 = vmul.f32 %v6264_v58, %v6248_v4  ;;  %v6053_v63 = vmul.f32 0.25, %v5908_v54  ;;  %v8587_v60 = vsel %vm5924_vm14, 1.0, %v13134_v19 }
 0x2a7   : > { %v8957_v13 = vpack.c.bf16 %v12353_v62, %v12353_v62  ;;  %v8966_v21 = vpack.c.bf16 %v8544_v46, %v8544_v46  ;;  %v5881_v57 = vsub.f32 1.0, %v8544_v46  ;;  %v8977_v30 = vpack.c.bf16 %v8587_v60, %v8587_v60 }
 0x2a8   : > { %v6296_v61 = vadd.f32 %v6280_v42, %v12259_v33  ;;  %v6069_v15 = vsub.f32 1.0, %v8587_v60  ;;  %v5718_v12 = vadd.f32 %v5702_v26, %v13255_v0  ;;  %v12364_v31 = vmul.f32 0.25, %v5534_v20  ;;  %v13256_v20 = vld [vmem:[#allocation66_spill] sm:$0xff] }
 0x2a9   : > { %8535 = vst.msk [vmem:[%s10159_s8 + $0x2b4] sm:$0xf] %vm3719_vm4, %v8957_v13  ;;  %8576 = vst.msk [vmem:[%s10159_s8 + $0x2d8] sm:$0xf] %vm3719_vm4, %v8966_v21  ;;  %v5897_v52 = vmul.f32 %v5881_v57, %v5865_v51  ;;  %v5689_v22 = vsub.f32 1.0, %v12063_v1  ;;  %v5687_v24 = vsub.f32 1.0, %v12081_v3  ;;  %v12373_v7 = vadd.f32 %v12007_v36, %v3483_v28 }
 0x2aa   : > { %vm6312_vm15 = vcmp.gt.f32.partialorder %v6296_v61, 0.2  ;;  %8619 = vst.msk [vmem:[%s10159_s8 + $0x304] sm:$0xf] %vm3719_vm4, %v8977_v30  ;;  %v6085_v33 = vmul.f32 %v6069_v15, %v6053_v63  ;;  %vm5734_vm0 = vcmp.gt.f32.partialorder %v5718_v12, 0.2 }
 0x2ab   : > { %v12376_v10 = vsel %vm6312_vm15, 1.0, %v13134_v19  ;;  %v5913_v4 = vadd.f32 %v5897_v52, %v13256_v20  ;;  %v8542_v26 = vsel %vm5734_vm0, 1.0, %v13134_v19  ;;  %v5863_v1 = vmul.f32 0.25, %v5718_v12  ;;  %v13257_v60 = vld [vmem:[#allocation58_spill] sm:$0xff]  ;;  %v13259_v30 = vld [vmem:[#allocation39_spill] sm:$0xff] }
 0x2ac   : > { %v9011_v3 = vpack.c.bf16 %v12376_v10, %v12376_v10  ;;  %v6101_v39 = vadd.f32 %v6085_v33, %v11813_v6  ;;  %v8964_v38 = vpack.c.bf16 %v8542_v26, %v8542_v26  ;;  %v5879_v58 = vsub.f32 1.0, %v8542_v26 }
 0x2ad   : > { %vm5929_vm1 = vcmp.gt.f32.partialorder %v5913_v4, 0.2  ;;  %v6058_v11 = vmul.f32 0.25, %v5913_v4  ;;  %v5705_v36 = vmul.f32 %v5689_v22, %v12069_v23  ;;  %v5703_v54 = vmul.f32 %v5687_v24, %v12083_v40  ;;  %v13258_v40 = vld [vmem:[#allocation67_spill] sm:$0xff] }
 0x2ae   : > { %8717 = vst.msk [vmem:[%s10159_s8 + $0x38c] sm:$0xf] %vm3719_vm4, %v9011_v3  ;;  %vm6117_vm3 = vcmp.gt.f32.partialorder %v6101_v39, 0.2  ;;  %v6246_v46 = vmul.f32 0.25, %v6101_v39  ;;  %v8592_v51 = vsel %vm5929_vm1, 1.0, %v13134_v19  ;;  %v5895_v42 = vmul.f32 %v5879_v58, %v5863_v1 }
 0x2af   : > { %8574 = vst.msk [vmem:[%s10159_s8 + $0x2d0] sm:$0xf] %vm3719_vm4, %v8964_v38  ;;  %v8635_v6 = vsel %vm6117_vm3, 1.0, %v13134_v19  ;;  %v8982_v63 = vpack.c.bf16 %v8592_v51, %v8592_v51  ;;  %v6074_v13 = vsub.f32 1.0, %v8592_v51  ;;  %v5721_v21 = vadd.f32 %v5705_v36, %v13257_v60  ;;  %v9406_v38 = vpop.f32.mrf.mxu1 }
 0x2b0   : > { %v8993_v23 = vpack.c.bf16 %v8635_v6, %v8635_v6  ;;  %v6262_v57 = vsub.f32 1.0, %v8635_v6  ;;  %v5911_v28 = vadd.f32 %v5895_v42, %v13258_v40  ;;  %v5719_v15 = vadd.f32 %v5703_v54, %v13259_v30 }
 0x2b1   : > { %v12394_v0 = vmul.f32 0.25, %v6296_v61  ;;  %8624 = vst.msk [vmem:[%s10159_s8 + $0x318] sm:$0xf] %vm3719_vm4, %v8982_v63  ;;  %v6090_v12 = vmul.f32 %v6074_v13, %v6058_v11  ;;  %vm5737_vm5 = vcmp.gt.f32.partialorder %v5721_v21, 0.2  ;;  %v5866_v52 = vmul.f32 0.25, %v5721_v21 }
 0x2b2   : > { %8667 = vst.msk [vmem:[%s10159_s8 + $0x344] sm:$0xf] %vm3719_vm4, %v8993_v23  ;;  %v6278_v22 = vmul.f32 %v6262_v57, %v6246_v46  ;;  %vm5927_vm6 = vcmp.gt.f32.partialorder %v5911_v28, 0.2  ;;  %v6056_v24 = vmul.f32 0.25, %v5911_v28  ;;  %v8545_v33 = vsel %vm5737_vm5, 1.0, %v13134_v19  ;;  %v3496_v57 = vpop.f32.mrf.mxu1 }
 0x2b3   : > { %v6106_v20 = vadd.f32 %v6090_v12, %v11835_v49  ;;  %v8590_v4 = vsel %vm5927_vm6, 1.0, %v13134_v19  ;;  %v8967_v26 = vpack.c.bf16 %v8545_v33, %v8545_v33  ;;  %v5882_v61 = vsub.f32 1.0, %v8545_v33  ;;  %v12410_v49 = vld [vmem:[%s13111_s2] ss:$0 sm:$0xff] }
 0x2b4   : > { %v6294_v1 = vadd.f32 %v6278_v22, %v12288_v43  ;;  %v8980_v3 = vpack.c.bf16 %v8590_v4, %v8590_v4  ;;  %v6072_v39 = vsub.f32 1.0, %v8590_v4  ;;  %vm5735_vm7 = vcmp.gt.f32.partialorder %v5719_v15, 0.2 }
 0x2b5   : > { %vm6122_vm8 = vcmp.gt.f32.partialorder %v6106_v20, 0.2  ;;  %8577 = vst.msk [vmem:[%s10159_s8 + $0x2dc] sm:$0xf] %vm3719_vm4, %v8967_v26  ;;  %v5898_v58 = vmul.f32 %v5882_v61, %v5866_v52  ;;  %v8543_v11 = vsel %vm5735_vm7, 1.0, %v13134_v19  ;;  %v12413_v36 = vadd.f32 %v12410_v49, %v9406_v38  ;;  %v9407_v61 = vpop.f32.mrf.mxu1 }
 0x2b6   : > { %vm6310_vm9 = vcmp.gt.f32.partialorder %v6294_v1, 0.2  ;;  %v8640_v43 = vsel %vm6122_vm8, 1.0, %v13134_v19  ;;  %v6251_v54 = vmul.f32 0.25, %v6106_v20  ;;  %8622 = vst.msk [vmem:[%s10159_s8 + $0x310] sm:$0xf] %vm3719_vm4, %v8980_v3  ;;  %v6088_v46 = vmul.f32 %v6072_v39, %v6056_v24 }
 0x2b7   : > { %v12419_v51 = vsel %vm6310_vm9, 1.0, %v13134_v19  ;;  %v8998_v42 = vpack.c.bf16 %v8640_v43, %v8640_v43  ;;  %v6267_v6 = vsub.f32 1.0, %v8640_v43  ;;  %v5914_v63 = vadd.f32 %v5898_v58, %v11611_v37  ;;  %v13260_v58 = vld [vmem:[#allocation68_spill] sm:$0xff] }
 0x2b8   : > { %v9009_v13 = vpack.c.bf16 %v12419_v51, %v12419_v51  ;;  %v6104_v60 = vadd.f32 %v6088_v46, %v11844_v47  ;;  %v8965_v21 = vpack.c.bf16 %v8543_v11, %v8543_v11  ;;  %v5864_v23 = vmul.f32 0.25, %v5719_v15  ;;  %v13261_v43 = vld [vmem:[#allocation40_spill] sm:$0xff] }
 0x2b9   : > { %8672 = vst.msk [vmem:[%s10159_s8 + $0x358] sm:$0xf] %vm3719_vm4, %v8998_v42  ;;  %v6283_v40 = vmul.f32 %v6267_v6, %v6251_v54  ;;  %vm5930_vm2 = vcmp.gt.f32.partialorder %v5914_v63, 0.2  ;;  %v6059_v28 = vmul.f32 0.25, %v5914_v63  ;;  %v5880_v30 = vsub.f32 1.0, %v8543_v11 }
 0x2ba   : > { %8715 = vst.msk [vmem:[%s10159_s8 + $0x384] sm:$0xf] %vm3719_vm4, %v9009_v13  ;;  %vm6120_vm10 = vcmp.gt.f32.partialorder %v6104_v60, 0.2  ;;  %v6249_v12 = vmul.f32 0.25, %v6104_v60  ;;  %v8593_v37 = vsel %vm5930_vm2, 1.0, %v13134_v19  ;;  %v12453_v46 = vadd.f32 %v12410_v49, %v3496_v57  ;;  %v3499_v13 = vpop.f32.mrf.mxu1 }
 0x2bb   : > { %8575 = vst.msk [vmem:[%s10159_s8 + $0x2d4] sm:$0xf] %vm3719_vm4, %v8965_v21  ;;  %v5692_v47 = vsub.f32 1.0, %v12121_v44  ;;  %v6299_v15 = vadd.f32 %v6283_v40, %v12297_v55  ;;  %v8638_v52 = vsel %vm6120_vm10, 1.0, %v13134_v19  ;;  %v8983_v22 = vpack.c.bf16 %v8593_v37, %v8593_v37 }
 0x2bc   : > { %v6075_v24 = vsub.f32 1.0, %v8593_v37  ;;  %v8996_v33 = vpack.c.bf16 %v8638_v52, %v8638_v52  ;;  %v6265_v20 = vsub.f32 1.0, %v8638_v52  ;;  %v5896_v4 = vmul.f32 %v5880_v30, %v5864_v23  ;;  %v9410_v52 = vpop.f32.mrf.mxu1 }
 0x2bd   : > { %v5708_v26 = vmul.f32 %v5692_v47, %v12136_v59  ;;  %v12436_v3 = vmul.f32 0.25, %v6294_v1  ;;  %vm6315_vm11 = vcmp.gt.f32.partialorder %v6299_v15, 0.2  ;;  %v12438_v39 = vmul.f32 0.25, %v6299_v15  ;;  %8625 = vst.msk [vmem:[%s10159_s8 + $0x31c] sm:$0xf] %vm3719_vm4, %v8983_v22 }
 0x2be   : > { %v6091_v44 = vmul.f32 %v6075_v24, %v6059_v28  ;;  %v12443_v55 = vsel %vm6315_vm11, 1.0, %v13134_v19  ;;  %8670 = vst.msk [vmem:[%s10159_s8 + $0x350] sm:$0xf] %vm3719_vm4, %v8996_v33  ;;  %v6281_v38 = vmul.f32 %v6265_v20, %v6249_v12  ;;  %v5912_v11 = vadd.f32 %v5896_v4, %v13260_v58  ;;  %v13262_v58 = vld [vmem:[#allocation4_spill] sm:$0xff] }
 0x2bf   : > { %v5724_v59 = vadd.f32 %v5708_v26, %v13261_v43  ;;  %v9014_v1 = vpack.c.bf16 %v12443_v55, %v12443_v55  ;;  %v5690_v42 = vsub.f32 1.0, %v12145_v35  ;;  %v12458_v63 = vadd.f32 %v12410_v49, %v9407_v61  ;;  %v13263_v43 = vld [vmem:[#allocation59_spill] sm:$0xff] }
 0x2c0   : > { %v6107_v54 = vadd.f32 %v6091_v44, %v11854_v45  ;;  %v6297_v6 = vadd.f32 %v6281_v38, %v12340_v18  ;;  %vm5928_vm12 = vcmp.gt.f32.partialorder %v5912_v11, 0.2  ;;  %v6057_v45 = vmul.f32 0.25, %v5912_v11 }
 0x2c1   : > { %vm5740_vm13 = vcmp.gt.f32.partialorder %v5724_v59, 0.2  ;;  %8720 = vst.msk [vmem:[%s10159_s8 + $0x398] sm:$0xf] %vm3719_vm4, %v9014_v1  ;;  %v8591_v60 = vsel %vm5928_vm12, 1.0, %v13134_v19  ;;  %v5869_v47 = vmul.f32 0.25, %v5724_v59  ;;  %v5706_v33 = vmul.f32 %v5690_v42, %v12167_v56 }
 0x2c2   : > { %vm6123_vm14 = vcmp.gt.f32.partialorder %v6107_v54, 0.2  ;;  %v8548_v21 = vsel %vm5740_vm13, 1.0, %v13134_v19  ;;  %vm6313_vm15 = vcmp.gt.f32.partialorder %v6297_v6, 0.2  ;;  %v6252_v18 = vmul.f32 0.25, %v6107_v54 }
 0x2c3   : > { %v8641_v35 = vsel %vm6123_vm14, 1.0, %v13134_v19  ;;  %v8981_v23 = vpack.c.bf16 %v8591_v60, %v8591_v60  ;;  %v12466_v57 = vsel %vm6313_vm15, 1.0, %v13134_v19  ;;  %v6073_v30 = vsub.f32 1.0, %v8591_v60  ;;  %v13264_v59 = vld [vmem:[#allocation69_spill] sm:$0xff] }
 0x2c4   : > { %v8999_v40 = vpack.c.bf16 %v8641_v35, %v8641_v35  ;;  %v6268_v28 = vsub.f32 1.0, %v8641_v35  ;;  %v9012_v12 = vpack.c.bf16 %v12466_v57, %v12466_v57  ;;  %v8970_v37 = vpack.c.bf16 %v8548_v21, %v8548_v21 }
 0x2c5   : > { %8623 = vst.msk [vmem:[%s10159_s8 + $0x314] sm:$0xf] %vm3719_vm4, %v8981_v23  ;;  %v5885_v15 = vsub.f32 1.0, %v8548_v21  ;;  %v6089_v24 = vmul.f32 %v6073_v30, %v6057_v45  ;;  %v5693_v20 = vsub.f32 1.0, %v12173_v32  ;;  %v12478_v4 = vmul.f32 0.25, %v6297_v6 }
 0x2c6   : > { %8673 = vst.msk [vmem:[%s10159_s8 + $0x35c] sm:$0xf] %vm3719_vm4, %v8999_v40  ;;  %v6284_v22 = vmul.f32 %v6268_v28, %v6252_v18  ;;  %8718 = vst.msk [vmem:[%s10159_s8 + $0x390] sm:$0xf] %vm3719_vm4, %v9012_v12  ;;  %v12483_v61 = vadd.f32 %v12410_v49, %v3499_v13  ;;  %v5691_v44 = vsub.f32 1.0, %v12206_v27  ;;  %v5722_v56 = vadd.f32 %v5706_v33, %v13263_v43  ;;  %v3512_v13 = vpop.f32.mrf.mxu1  ;;  %v13265_v12 = vld [vmem:[#allocation43_spill] sm:$0xff] }
 0x2c7   : > { %8580 = vst.msk [vmem:[%s10159_s8 + $0x2e8] sm:$0xf] %vm3719_vm4, %v8970_v37  ;;  %v5901_v26 = vmul.f32 %v5885_v15, %v5869_v47  ;;  %v6105_v11 = vadd.f32 %v6089_v24, %v13262_v58  ;;  %v12490_v32 = vadd.f32 %v12410_v49, %v9410_v52  ;;  %v5709_v54 = vmul.f32 %v5693_v20, %v12169_v25  ;;  %v13266_v47 = vld [vmem:[#allocation60_spill] sm:$0xff] }
 0x2c8   : > { %v6300_v38 = vadd.f32 %v6284_v22, %v12350_v5  ;;  %v5707_v42 = vmul.f32 %v5691_v44, %v12208_v9  ;;  %v5696_v6 = vsub.f32 1.0, %v12219_v34  ;;  %v12499_v5 = vadd.f32 %v12410_v49, %v3512_v13  ;;  %v13267_v44 = vld [vmem:[#allocation5_spill] sm:$0xff] }
 0x2c9   : > { %v5917_v1 = vadd.f32 %v5901_v26, %v13264_v59  ;;  %vm6121_vm1 = vcmp.gt.f32.partialorder %v6105_v11, 0.2  ;;  %v6250_v25 = vmul.f32 0.25, %v6105_v11  ;;  %vm5738_vm5 = vcmp.gt.f32.partialorder %v5722_v56, 0.2 }
 0x2ca   : > { %vm6316_vm0 = vcmp.gt.f32.partialorder %v6300_v38, 0.2  ;;  %v12496_v27 = vmul.f32 0.25, %v6300_v38  ;;  %v8639_v45 = vsel %vm6121_vm1, 1.0, %v13134_v19  ;;  %v8546_v30 = vsel %vm5738_vm5, 1.0, %v13134_v19 }
 0x2cb   : > { %v12502_v60 = vsel %vm6316_vm0, 1.0, %v13134_v19  ;;  %vm5933_vm3 = vcmp.gt.f32.partialorder %v5917_v1, 0.2  ;;  %v8997_v34 = vpack.c.bf16 %v8639_v45, %v8639_v45  ;;  %v6266_v21 = vsub.f32 1.0, %v8639_v45 }
 0x2cc   : > { %v9015_v9 = vpack.c.bf16 %v12502_v60, %v12502_v60  ;;  %v8596_v35 = vsel %vm5933_vm3, 1.0, %v13134_v19  ;;  %v6062_v23 = vmul.f32 0.25, %v5917_v1  ;;  %v5725_v37 = vadd.f32 %v5709_v54, %v13265_v12  ;;  %v13268_v54 = vld [vmem:[#allocation70_spill] sm:$0xff] }
 0x2cd   : > { %v8986_v18 = vpack.c.bf16 %v8596_v35, %v8596_v35  ;;  %v6078_v40 = vsub.f32 1.0, %v8596_v35  ;;  %8671 = vst.msk [vmem:[%s10159_s8 + $0x354] sm:$0xf] %vm3719_vm4, %v8997_v34  ;;  %v6282_v28 = vmul.f32 %v6266_v21, %v6250_v25  ;;  %v5723_v15 = vadd.f32 %v5707_v42, %v13266_v47 }
 0x2ce   : > { %8721 = vst.msk [vmem:[%s10159_s8 + $0x39c] sm:$0xf] %vm3719_vm4, %v9015_v9  ;;  %v8968_v22 = vpack.c.bf16 %v8546_v30, %v8546_v30  ;;  %v5867_v24 = vmul.f32 0.25, %v5722_v56  ;;  %v5883_v33 = vsub.f32 1.0, %v8546_v30  ;;  %vm5741_vm6 = vcmp.gt.f32.partialorder %v5725_v37, 0.2 }
 0x2cf   : > { %8628 = vst.msk [vmem:[%s10159_s8 + $0x328] sm:$0xf] %vm3719_vm4, %v8986_v18  ;;  %v6094_v52 = vmul.f32 %v6078_v40, %v6062_v23  ;;  %v6298_v20 = vadd.f32 %v6282_v28, %v12373_v7  ;;  %vm5739_vm7 = vcmp.gt.f32.partialorder %v5723_v15, 0.2  ;;  %v5712_v26 = vmul.f32 %v5696_v6, %v12221_v48  ;;  %v12528_v6 = vpop.f32.mrf.mxu1  ;;  %v13269_v23 = vld [vmem:[#allocation71_spill] sm:$0xff] }
 0x2d0   : > { %8578 = vst.msk [vmem:[%s10159_s8 + $0x2e0] sm:$0xf] %vm3719_vm4, %v8968_v22  ;;  %v5899_v58 = vmul.f32 %v5883_v33, %v5867_v24  ;;  %v8549_v11 = vsel %vm5741_vm6, 1.0, %v13134_v19  ;;  %v8547_v43 = vsel %vm5739_vm7, 1.0, %v13134_v19  ;;  %v5870_v56 = vmul.f32 0.25, %v5725_v37 }
 0x2d1   : > { %v6110_v38 = vadd.f32 %v6094_v52, %v13267_v44  ;;  %vm6314_vm8 = vcmp.gt.f32.partialorder %v6298_v20, 0.2  ;;  %v8971_v59 = vpack.c.bf16 %v8549_v11, %v8549_v11  ;;  %v5886_v1 = vsub.f32 1.0, %v8549_v11  ;;  %v13270_v52 = vld [vmem:[#allocation61_spill] sm:$0xff]  ;;  %v3515_v24 = vpop.f32.mrf.mxu1 }
 0x2d2   : > { %v12525_v7 = vsel %vm6314_vm8, 1.0, %v13134_v19  ;;  %v5915_v42 = vadd.f32 %v5899_v58, %v13268_v54  ;;  %v8969_v9 = vpack.c.bf16 %v8547_v43, %v8547_v43  ;;  %v5868_v28 = vmul.f32 0.25, %v5723_v15 }
 0x2d3   : > { %vm6126_vm9 = vcmp.gt.f32.partialorder %v6110_v38, 0.2  ;;  %v6255_v48 = vmul.f32 0.25, %v6110_v38  ;;  %v9013_v13 = vpack.c.bf16 %v12525_v7, %v12525_v7  ;;  %8581 = vst.msk [vmem:[%s10159_s8 + $0x2ec] sm:$0xf] %vm3719_vm4, %v8971_v59  ;;  %v5902_v25 = vmul.f32 %v5886_v1, %v5870_v56  ;;  %v13271_v56 = vld [vmem:[#allocation72_spill] sm:$0xff] }
 0x2d4   : > { %v8644_v45 = vsel %vm6126_vm9, 1.0, %v13134_v19  ;;  %vm5931_vm2 = vcmp.gt.f32.partialorder %v5915_v42, 0.2  ;;  %v6060_v35 = vmul.f32 0.25, %v5915_v42  ;;  %8579 = vst.msk [vmem:[%s10159_s8 + $0x2e4] sm:$0xf] %vm3719_vm4, %v8969_v9  ;;  %v5728_v22 = vadd.f32 %v5712_v26, %v13270_v52 }
 0x2d5   : > { %v9002_v34 = vpack.c.bf16 %v8644_v45, %v8644_v45  ;;  %v6271_v21 = vsub.f32 1.0, %v8644_v45  ;;  %8719 = vst.msk [vmem:[%s10159_s8 + $0x394] sm:$0xf] %vm3719_vm4, %v9013_v13  ;;  %v8594_v18 = vsel %vm5931_vm2, 1.0, %v13134_v19  ;;  %v5918_v40 = vadd.f32 %v5902_v25, %v13269_v23  ;;  %v13272_v26 = vld [vmem:[#allocation6_spill] sm:$0xff] }
 0x2d6   : > { %v5884_v30 = vsub.f32 1.0, %v8547_v43  ;;  %v8984_v37 = vpack.c.bf16 %v8594_v18, %v8594_v18  ;;  %v6076_v47 = vsub.f32 1.0, %v8594_v18  ;;  %v12544_v33 = vmul.f32 0.25, %v6298_v20 }
 0x2d7   : > { %8676 = vst.msk [vmem:[%s10159_s8 + $0x368] sm:$0xf] %vm3719_vm4, %v9002_v34  ;;  %v6287_v12 = vmul.f32 %v6271_v21, %v6255_v48  ;;  %vm5934_vm10 = vcmp.gt.f32.partialorder %v5918_v40, 0.2  ;;  %v6063_v44 = vmul.f32 0.25, %v5918_v40  ;;  %v5694_v42 = vsub.f32 1.0, %v12240_v2 }
 0x2d8   : > { %v5900_v38 = vmul.f32 %v5884_v30, %v5868_v28  ;;  %8626 = vst.msk [vmem:[%s10159_s8 + $0x320] sm:$0xf] %vm3719_vm4, %v8984_v37  ;;  %v6092_v15 = vmul.f32 %v6076_v47, %v6060_v35  ;;  %v8597_v11 = vsel %vm5934_vm10, 1.0, %v13134_v19  ;;  %vm5744_vm11 = vcmp.gt.f32.partialorder %v5728_v22, 0.2  ;;  %v13273_v35 = vld [vmem:[#allocation20_spill] sm:$0xff] }
 0x2d9   : > { %v6303_v58 = vadd.f32 %v6287_v12, %v12413_v36  ;;  %v8987_v43 = vpack.c.bf16 %v8597_v11, %v8597_v11  ;;  %v6079_v59 = vsub.f32 1.0, %v8597_v11  ;;  %v8552_v20 = vsel %vm5744_vm11, 1.0, %v13134_v19  ;;  %v12554_v36 = vpop.f32.mrf.mxu1 }
 0x2da   : > { %v5916_v1 = vadd.f32 %v5900_v38, %v13271_v56  ;;  %v6108_v48 = vadd.f32 %v6092_v15, %v13272_v26  ;;  %v8974_v54 = vpack.c.bf16 %v8552_v20, %v8552_v20  ;;  %v5873_v12 = vmul.f32 0.25, %v5728_v22 }
 0x2db   : > { %vm6319_vm12 = vcmp.gt.f32.partialorder %v6303_v58, 0.2  ;;  %8629 = vst.msk [vmem:[%s10159_s8 + $0x32c] sm:$0xf] %vm3719_vm4, %v8987_v43  ;;  %v6095_v45 = vmul.f32 %v6079_v59, %v6063_v44  ;;  %v5889_v37 = vsub.f32 1.0, %v8552_v20  ;;  %v12570_v47 = vpop.f32.mrf.mxu1  ;;  %v12572_v52 = vmul.f32 0.25, %v6303_v58 }
 0x2dc   : > { %v12557_v13 = vsel %vm6319_vm12, 1.0, %v13134_v19  ;;  %vm5932_vm13 = vcmp.gt.f32.partialorder %v5916_v1, 0.2  ;;  %v6061_v25 = vmul.f32 0.25, %v5916_v1  ;;  %vm6124_vm14 = vcmp.gt.f32.partialorder %v6108_v48, 0.2 }
 0x2dd   : > { %v9018_v9 = vpack.c.bf16 %v12557_v13, %v12557_v13  ;;  %v6253_v34 = vmul.f32 0.25, %v6108_v48  ;;  %v8595_v21 = vsel %vm5932_vm13, 1.0, %v13134_v19  ;;  %8584 = vst.msk [vmem:[%s10159_s8 + $0x2f8] sm:$0xf] %vm3719_vm4, %v8974_v54  ;;  %v8642_v2 = vsel %vm6124_vm14, 1.0, %v13134_v19  ;;  %v13274_v1 = vld [vmem:[#allocation7_spill] sm:$0xff] }
 0x2de   : > { %v6111_v18 = vadd.f32 %v6095_v45, %v13273_v35  ;;  %v8985_v23 = vpack.c.bf16 %v8595_v21, %v8595_v21  ;;  %v6077_v40 = vsub.f32 1.0, %v8595_v21  ;;  %v9000_v28 = vpack.c.bf16 %v8642_v2, %v8642_v2  ;;  %v13275_v58 = vld [vmem:[#allocation62_spill] sm:$0xff]  ;;  %v13276_v54 = vld [vmem:[#allocation73_spill] sm:$0xff] }
 0x2df   : > { %8724 = vst.msk [vmem:[%s10159_s8 + $0x3a8] sm:$0xf] %vm3719_vm4, %v9018_v9  ;;  %v6269_v30 = vsub.f32 1.0, %v8642_v2  ;;  %v5710_v38 = vmul.f32 %v5694_v42, %v12249_v16  ;;  %v5905_v59 = vmul.f32 %v5889_v37, %v5873_v12  ;;  %v12586_v16 = vadd.f32 %v12410_v49, %v12528_v6 }
 0x2e0   : > { %vm6127_vm15 = vcmp.gt.f32.partialorder %v6111_v18, 0.2  ;;  %8627 = vst.msk [vmem:[%s10159_s8 + $0x324] sm:$0xf] %vm3719_vm4, %v8985_v23  ;;  %v6093_v44 = vmul.f32 %v6077_v40, %v6061_v25  ;;  %8674 = vst.msk [vmem:[%s10159_s8 + $0x360] sm:$0xf] %vm3719_vm4, %v9000_v28  ;;  %v12589_v25 = vpop.f32.mrf.mxu1 }
 0x2e1   : > { %v6285_v15 = vmul.f32 %v6269_v30, %v6253_v34  ;;  %v8645_v11 = vsel %vm6127_vm15, 1.0, %v13134_v19  ;;  %v6256_v43 = vmul.f32 0.25, %v6111_v18  ;;  %v5726_v26 = vadd.f32 %v5710_v38, %v13275_v58 }
 0x2e2   : > { %v9003_v22 = vpack.c.bf16 %v8645_v11, %v8645_v11  ;;  %v6272_v56 = vsub.f32 1.0, %v8645_v11  ;;  %v6109_v20 = vadd.f32 %v6093_v44, %v13274_v1  ;;  %v5921_v45 = vadd.f32 %v5905_v59, %v13276_v54  ;;  %v12607_v28 = vpop.f32.mrf.mxu1 }
 0x2e3   : > { %v6301_v48 = vadd.f32 %v6285_v15, %v12453_v46  ;;  %v5697_v42 = vsub.f32 1.0, %v12307_v41  ;;  %vm5742_vm1 = vcmp.gt.f32.partialorder %v5726_v26, 0.2  ;;  %v12594_v34 = vadd.f32 %v12410_v49, %v3515_v24 }
 0x2e4   : > { %8677 = vst.msk [vmem:[%s10159_s8 + $0x36c] sm:$0xf] %vm3719_vm4, %v9003_v22  ;;  %v6288_v9 = vmul.f32 %v6272_v56, %v6256_v43  ;;  %vm6125_vm0 = vcmp.gt.f32.partialorder %v6109_v20, 0.2  ;;  %v6254_v21 = vmul.f32 0.25, %v6109_v20  ;;  %v8550_v40 = vsel %vm5742_vm1, 1.0, %v13134_v19 }
 0x2e5   : > { %vm6317_vm3 = vcmp.gt.f32.partialorder %v6301_v48, 0.2  ;;  %v8643_v46 = vsel %vm6125_vm0, 1.0, %v13134_v19  ;;  %vm5937_vm5 = vcmp.gt.f32.partialorder %v5921_v45, 0.2  ;;  %v12603_v23 = vmul.f32 0.25, %v6301_v48 }
 0x2e6   : > { %v12598_v6 = vsel %vm6317_vm3, 1.0, %v13134_v19  ;;  %v6304_v41 = vadd.f32 %v6288_v9, %v12458_v63  ;;  %v9001_v2 = vpack.c.bf16 %v8643_v46, %v8643_v46  ;;  %v6270_v35 = vsub.f32 1.0, %v8643_v46  ;;  %v13277_v48 = vld [vmem:[#allocation63_spill] sm:$0xff] }
 0x2e7   : > { %v9016_v18 = vpack.c.bf16 %v12598_v6, %v12598_v6  ;;  %v8600_v24 = vsel %vm5937_vm5, 1.0, %v13134_v19  ;;  %v6066_v12 = vmul.f32 0.25, %v5921_v45  ;;  %v8972_v38 = vpack.c.bf16 %v8550_v40, %v8550_v40 }
 0x2e8   : > { %vm6320_vm6 = vcmp.gt.f32.partialorder %v6304_v41, 0.2  ;;  %8675 = vst.msk [vmem:[%s10159_s8 + $0x364] sm:$0xf] %vm3719_vm4, %v9001_v2  ;;  %v6286_v30 = vmul.f32 %v6270_v35, %v6254_v21  ;;  %v8990_v63 = vpack.c.bf16 %v8600_v24, %v8600_v24  ;;  %v6082_v44 = vsub.f32 1.0, %v8600_v24  ;;  %v13279_v21 = vld [vmem:[#allocation74_spill] sm:$0xff] }
 0x2e9   : > { %8722 = vst.msk [vmem:[%s10159_s8 + $0x3a0] sm:$0xf] %vm3719_vm4, %v9016_v18  ;;  %v12614_v37 = vsel %vm6320_vm6, 1.0, %v13134_v19  ;;  %v5871_v15 = vmul.f32 0.25, %v5726_v26  ;;  %v5887_v59 = vsub.f32 1.0, %v8550_v40  ;;  %v5713_v22 = vmul.f32 %v5697_v42, %v12315_v17  ;;  %v12628_v26 = vpop.f32.mrf.mxu1  ;;  %v13280_v18 = vld [vmem:[#allocation64_spill] sm:$0xff] }
 0x2ea   : > { %v9019_v11 = vpack.c.bf16 %v12614_v37, %v12614_v37  ;;  %v6302_v43 = vadd.f32 %v6286_v30, %v12483_v61  ;;  %8632 = vst.msk [vmem:[%s10159_s8 + $0x338] sm:$0xf] %vm3719_vm4, %v8990_v63  ;;  %v12622_v56 = vmul.f32 0.25, %v6304_v41  ;;  %v6098_v1 = vmul.f32 %v6082_v44, %v6066_v12  ;;  %8582 = vst.msk [vmem:[%s10159_s8 + $0x2f0] sm:$0xf] %vm3719_vm4, %v8972_v38 }
 0x2eb   : > { %v5695_v20 = vsub.f32 1.0, %v12353_v62  ;;  %v6456_v58 = vsub.f32 1.0, %v12262_v53  ;;  %v5903_v61 = vmul.f32 %v5887_v59, %v5871_v15  ;;  %v5729_v54 = vadd.f32 %v5713_v22, %v13277_v48  ;;  %v13278_v62 = vld [vmem:[#allocation21_spill] sm:$0xff]  ;;  %v12648_v40 = vpop.f32.mrf.mxu1 }
 0x2ec   : > { %8725 = vst.msk [vmem:[%s10159_s8 + $0x3ac] sm:$0xf] %vm3719_vm4, %v9019_v11  ;;  %vm6318_vm7 = vcmp.gt.f32.partialorder %v6302_v43, 0.2  ;;  %v3537_v17 = vadd.f32 %v12410_v49, %v12554_v36  ;;  %v12638_v42 = vmul.f32 0.25, %v6302_v43  ;;  %v6114_v9 = vadd.f32 %v6098_v1, %v13278_v62 }
 0x2ed   : > { %v12636_v45 = vsel %vm6318_vm7, 1.0, %v13134_v19  ;;  %v5711_v53 = vmul.f32 %v5695_v20, %v12364_v31  ;;  %v5919_v41 = vadd.f32 %v5903_v61, %v13279_v21  ;;  %vm5745_vm8 = vcmp.gt.f32.partialorder %v5729_v54, 0.2 }
 0x2ee   : > { %v9017_v46 = vpack.c.bf16 %v12636_v45, %v12636_v45  ;;  %v6472_v2 = vmul.f32 %v6456_v58, %v12264_v14  ;;  %vm6130_vm9 = vcmp.gt.f32.partialorder %v6114_v9, 0.2  ;;  %v8553_v36 = vsel %vm5745_vm8, 1.0, %v13134_v19  ;;  %v12659_v58 = vpop.f32.mrf.mxu1 }
 0x2ef   : > { %v5874_v35 = vmul.f32 0.25, %v5729_v54  ;;  %v5727_v24 = vadd.f32 %v5711_v53, %v13280_v18  ;;  %v8648_v31 = vsel %vm6130_vm9, 1.0, %v13134_v19  ;;  %v6259_v30 = vmul.f32 0.25, %v6114_v9  ;;  %v13281_v53 = vld [vmem:[#allocation75_spill] sm:$0xff] }
 0x2f0   : > { %8723 = vst.msk [vmem:[%s10159_s8 + $0x3a4] sm:$0xf] %vm3719_vm4, %v9017_v46  ;;  %vm5935_vm2 = vcmp.gt.f32.partialorder %v5919_v41, 0.2  ;;  %v8975_v63 = vpack.c.bf16 %v8553_v36, %v8553_v36  ;;  %v9006_v12 = vpack.c.bf16 %v8648_v31, %v8648_v31  ;;  %v6275_v14 = vsub.f32 1.0, %v8648_v31 }
 0x2f1   : > { %v8598_v44 = vsel %vm5935_vm2, 1.0, %v13134_v19  ;;  %v5890_v38 = vsub.f32 1.0, %v8553_v36  ;;  %v6064_v11 = vmul.f32 0.25, %v5919_v41  ;;  %vm5743_vm10 = vcmp.gt.f32.partialorder %v5727_v24, 0.2  ;;  %v13282_v41 = vld [vmem:[#allocation22_spill] sm:$0xff] }
 0x2f2   : > { %v8988_v15 = vpack.c.bf16 %v8598_v44, %v8598_v44  ;;  %v6080_v43 = vsub.f32 1.0, %v8598_v44  ;;  %8585 = vst.msk [vmem:[%s10159_s8 + $0x2fc] sm:$0xf] %vm3719_vm4, %v8975_v63  ;;  %8680 = vst.msk [vmem:[%s10159_s8 + $0x378] sm:$0xf] %vm3719_vm4, %v9006_v12  ;;  %v6291_v59 = vmul.f32 %v6275_v14, %v6259_v30  ;;  %v8551_v1 = vsel %vm5743_vm10, 1.0, %v13134_v19 }
 0x2f3   : > { %v5906_v22 = vmul.f32 %v5890_v38, %v5874_v35  ;;  %v6488_v20 = vadd.f32 %v6472_v2, %v3537_v17  ;;  %v8973_v48 = vpack.c.bf16 %v8551_v1, %v8551_v1  ;;  %v5872_v54 = vmul.f32 0.25, %v5727_v24  ;;  %v12674_v24 = vpop.f32.mrf.mxu1  ;;  %v13283_v38 = vld [vmem:[#allocation76_spill] sm:$0xff] }
 0x2f4   : > { %8630 = vst.msk [vmem:[%s10159_s8 + $0x330] sm:$0xf] %vm3719_vm4, %v8988_v15  ;;  %v6096_v61 = vmul.f32 %v6080_v43, %v6064_v11  ;;  %v5888_v62 = vsub.f32 1.0, %v8551_v1  ;;  %v6307_v9 = vadd.f32 %v6291_v59, %v12490_v32  ;;  %v3529_v21 = vadd.f32 %v12410_v49, %v12570_v47 }
 0x2f5   : > { %v5922_v46 = vadd.f32 %v5906_v22, %v13281_v53  ;;  %vm6504_vm11 = vcmp.gt.f32.partialorder %v6488_v20, 0.2  ;;  %8583 = vst.msk [vmem:[%s10159_s8 + $0x2f4] sm:$0xf] %vm3719_vm4, %v8973_v48  ;;  %v6454_v35 = vsub.f32 1.0, %v12325_v29  ;;  %v3540_v32 = vadd.f32 %v12410_v49, %v12589_v25  ;;  %v12692_v20 = vpop.f32.mrf.mxu1 }
 0x2f6   : > { %v6112_v36 = vadd.f32 %v6096_v61, %v13282_v41  ;;  %v5904_v17 = vmul.f32 %v5888_v62, %v5872_v54  ;;  %v8732_v2 = vsel %vm6504_vm11, 1.0, %v13134_v19  ;;  %vm6323_vm12 = vcmp.gt.f32.partialorder %v6307_v9, 0.2  ;;  %v13284_v62 = vld [vmem:[#allocation36_spill] sm:$0xff] }
 0x2f7   : > { %vm5938_vm13 = vcmp.gt.f32.partialorder %v5922_v46, 0.2  ;;  %v6067_v18 = vmul.f32 0.25, %v5922_v46  ;;  %v12677_v47 = vsel %vm6323_vm12, 1.0, %v13134_v19  ;;  %v9026_v11 = vpack.c.bf16 %v8732_v2, %v8732_v2 }
 0x2f8   : > { %vm6128_vm14 = vcmp.gt.f32.partialorder %v6112_v36, 0.2  ;;  %v6257_v31 = vmul.f32 0.25, %v6112_v36  ;;  %v8601_v30 = vsel %vm5938_vm13, 1.0, %v13134_v19  ;;  %v9022_v29 = vpack.c.bf16 %v12677_v47, %v12677_v47 }
 0x2f9   : > { %v8646_v63 = vsel %vm6128_vm14, 1.0, %v13134_v19  ;;  %v8991_v12 = vpack.c.bf16 %v8601_v30, %v8601_v30  ;;  %v6083_v14 = vsub.f32 1.0, %v8601_v30  ;;  %v5920_v15 = vadd.f32 %v5904_v17, %v13283_v38  ;;  %8764 = vst.msk [vmem:[%s10159_s8 + $0x3c8] sm:$0xf] %vm3719_vm4, %v9026_v11 }
 0x2fa   : > { %v9004_v25 = vpack.c.bf16 %v8646_v63, %v8646_v63  ;;  %v6273_v44 = vsub.f32 1.0, %v8646_v63  ;;  %8728 = vst.msk [vmem:[%s10159_s8 + $0x3b8] sm:$0xf] %vm3719_vm4, %v9022_v29  ;;  %v12686_v43 = vmul.f32 0.25, %v6307_v9  ;;  %v6470_v22 = vmul.f32 %v6454_v35, %v12333_v50 }
 0x2fb   : > { %8633 = vst.msk [vmem:[%s10159_s8 + $0x33c] sm:$0xf] %vm3719_vm4, %v8991_v12  ;;  %v6099_v59 = vmul.f32 %v6083_v14, %v6067_v18  ;;  %v6457_v1 = vsub.f32 1.0, %v12376_v10  ;;  %vm5936_vm15 = vcmp.gt.f32.partialorder %v5920_v15, 0.2  ;;  %v3532_v48 = vadd.f32 %v12410_v49, %v12607_v28 }
 0x2fc   : > { %8678 = vst.msk [vmem:[%s10159_s8 + $0x370] sm:$0xf] %vm3719_vm4, %v9004_v25  ;;  %v6289_v61 = vmul.f32 %v6273_v44, %v6257_v31  ;;  %v6455_v54 = vsub.f32 1.0, %v12419_v51  ;;  %v8599_v50 = vsel %vm5936_vm15, 1.0, %v13134_v19  ;;  %v6486_v53 = vadd.f32 %v6470_v22, %v3529_v21  ;;  %v12706_v51 = vpop.f32.mrf.mxu1 }
 0x2fd   : > { %v6115_v9 = vadd.f32 %v6099_v59, %v13284_v62  ;;  %v6473_v10 = vmul.f32 %v6457_v1, %v12394_v0  ;;  %v8989_v41 = vpack.c.bf16 %v8599_v50, %v8599_v50  ;;  %v6065_v36 = vmul.f32 0.25, %v5920_v15 }
 0x2fe   : > { %v6305_v46 = vadd.f32 %v6289_v61, %v12499_v5  ;;  %v6081_v17 = vsub.f32 1.0, %v8599_v50  ;;  %vm6502_vm1 = vcmp.gt.f32.partialorder %v6486_v53, 0.2  ;;  %v6471_v28 = vmul.f32 %v6455_v54, %v12436_v3  ;;  %v9423_v44 = vpop.f32.mrf.mxu1 }
 0x2ff   : > { %vm6131_vm0 = vcmp.gt.f32.partialorder %v6115_v9, 0.2  ;;  %v6489_v2 = vadd.f32 %v6473_v10, %v3540_v32  ;;  %v6260_v18 = vmul.f32 0.25, %v6115_v9  ;;  %8631 = vst.msk [vmem:[%s10159_s8 + $0x334] sm:$0xf] %vm3719_vm4, %v8989_v41  ;;  %v8730_v32 = vsel %vm6502_vm1, 1.0, %v13134_v19 }
 0x300   : > { %vm6321_vm3 = vcmp.gt.f32.partialorder %v6305_v46, 0.2  ;;  %v8649_v35 = vsel %vm6131_vm0, 1.0, %v13134_v19  ;;  %v6097_v0 = vmul.f32 %v6081_v17, %v6065_v36  ;;  %v9024_v29 = vpack.c.bf16 %v8730_v32, %v8730_v32  ;;  %v3563_v62 = vpop.f32.mrf.mxu1 }
 0x301   : > { %v12712_v5 = vsel %vm6321_vm3, 1.0, %v13134_v19  ;;  %v9007_v21 = vpack.c.bf16 %v8649_v35, %v8649_v35  ;;  %v6276_v31 = vsub.f32 1.0, %v8649_v35  ;;  %vm6505_vm5 = vcmp.gt.f32.partialorder %v6489_v2, 0.2 }
 0x302   : > { %v9020_v3 = vpack.c.bf16 %v12712_v5, %v12712_v5  ;;  %v6113_v30 = vadd.f32 %v6097_v0, %v12107_v8  ;;  %v12718_v63 = vmul.f32 0.25, %v6305_v46  ;;  %v8733_v14 = vsel %vm6505_vm5, 1.0, %v13134_v19  ;;  %8762 = vst.msk [vmem:[%s10159_s8 + $0x3c0] sm:$0xf] %vm3719_vm4, %v9024_v29 }
 0x303   : > { %8681 = vst.msk [vmem:[%s10159_s8 + $0x37c] sm:$0xf] %vm3719_vm4, %v9007_v21  ;;  %v6292_v12 = vmul.f32 %v6276_v31, %v6260_v18  ;;  %v6487_v25 = vadd.f32 %v6471_v28, %v3532_v48  ;;  %v9027_v38 = vpack.c.bf16 %v8733_v14, %v8733_v14  ;;  %v3553_v8 = vadd.f32 %v12410_v49, %v12628_v26 }
 0x304   : > { %8726 = vst.msk [vmem:[%s10159_s8 + $0x3b0] sm:$0xf] %vm3719_vm4, %v9020_v3  ;;  %vm6129_vm6 = vcmp.gt.f32.partialorder %v6113_v30, 0.2  ;;  %v6460_v15 = vsub.f32 1.0, %v12443_v55  ;;  %v6258_v22 = vmul.f32 0.25, %v6113_v30  ;;  %v3545_v55 = vadd.f32 %v12410_v49, %v12648_v40 }
 0x305   : > { %v6308_v11 = vadd.f32 %v6292_v12, %v12586_v16  ;;  %v8647_v59 = vsel %vm6129_vm6, 1.0, %v13134_v19  ;;  %vm6503_vm7 = vcmp.gt.f32.partialorder %v6487_v25, 0.2  ;;  %8765 = vst.msk [vmem:[%s10159_s8 + $0x3cc] sm:$0xf] %vm3719_vm4, %v9027_v38  ;;  %v6458_v16 = vsub.f32 1.0, %v12466_v57 }
 0x306   : > { %v9005_v1 = vpack.c.bf16 %v8647_v59, %v8647_v59  ;;  %v6274_v61 = vsub.f32 1.0, %v8647_v59  ;;  %v8731_v48 = vsel %vm6503_vm7, 1.0, %v13134_v19  ;;  %v6476_v54 = vmul.f32 %v6460_v15, %v12438_v39 }
 0x307   : > { %vm6324_vm8 = vcmp.gt.f32.partialorder %v6308_v11, 0.2  ;;  %v9025_v26 = vpack.c.bf16 %v8731_v48, %v8731_v48  ;;  %v12742_v50 = vmul.f32 0.25, %v6308_v11  ;;  %v6474_v40 = vmul.f32 %v6458_v16, %v12478_v4 }
 0x308   : > { %v12740_v9 = vsel %vm6324_vm8, 1.0, %v13134_v19  ;;  %8679 = vst.msk [vmem:[%s10159_s8 + $0x374] sm:$0xf] %vm3719_vm4, %v9005_v1  ;;  %v6290_v53 = vmul.f32 %v6274_v61, %v6258_v22  ;;  %v6492_v10 = vadd.f32 %v6476_v54, %v3553_v8  ;;  %v3556_v57 = vadd.f32 %v12410_v49, %v12659_v58 }
 0x309   : > { %v9023_v39 = vpack.c.bf16 %v12740_v9, %v12740_v9  ;;  %8763 = vst.msk [vmem:[%s10159_s8 + $0x3c4] sm:$0xf] %vm3719_vm4, %v9025_v26  ;;  %v6461_v46 = vsub.f32 1.0, %v12502_v60  ;;  %v6459_v36 = vsub.f32 1.0, %v12525_v7  ;;  %v3569_v17 = vadd.f32 %v12410_v49, %v12692_v20  ;;  %v9426_v60 = vpop.f32.mrf.mxu1 }
 0x30a   : > { %v12755_v41 = vadd.f32 %v6290_v53, %v12594_v34  ;;  %vm6508_vm9 = vcmp.gt.f32.partialorder %v6492_v10, 0.2  ;;  %v6490_v4 = vadd.f32 %v6474_v40, %v3545_v55  ;;  %v6464_v58 = vsub.f32 1.0, %v12557_v13 }
 0x30b   : > { %8729 = vst.msk [vmem:[%s10159_s8 + $0x3bc] sm:$0xf] %vm3719_vm4, %v9023_v39  ;;  %v8736_v2 = vsel %vm6508_vm9, 1.0, %v13134_v19  ;;  %v6477_v28 = vmul.f32 %v6461_v46, %v12496_v27  ;;  %v3548_v7 = vadd.f32 %v12410_v49, %v12674_v24  ;;  %v6475_v20 = vmul.f32 %v6459_v36, %v12544_v33  ;;  %v3576_v3 = vpop.f32.mrf.mxu1 }
 0x30c   : > { %vm6322_vm2 = vcmp.gt.f32.partialorder %v12755_v41, 0.2  ;;  %v9030_v34 = vpack.c.bf16 %v8736_v2, %v8736_v2  ;;  %vm6506_vm10 = vcmp.gt.f32.partialorder %v6490_v4, 0.2  ;;  %v6480_v0 = vmul.f32 %v6464_v58, %v12572_v52 }
 0x30d   : > { %v12770_v35 = vsel %vm6322_vm2, 1.0, %v13134_v19  ;;  %v6493_v18 = vadd.f32 %v6477_v28, %v3556_v57  ;;  %v8734_v13 = vsel %vm6506_vm10, 1.0, %v13134_v19  ;;  %v6491_v21 = vadd.f32 %v6475_v20, %v3548_v7  ;;  %v9427_v59 = vpop.f32.mrf.mxu1  ;;  %v6665_v7 = vld [vmem:[%s10159_s8 + $0x10] sm:$0xff] (%p9665_p5)   ;;  %v6669_v20 = vld [vmem:[%s10159_s8 + $0x18] sm:$0xff] (%p9665_p5)  }
 0x30e   : > { %v9021_v27 = vpack.c.bf16 %v12770_v35, %v12770_v35  ;;  %8768 = vst.msk [vmem:[%s10159_s8 + $0x3d8] sm:$0xf] %vm3719_vm4, %v9030_v34  ;;  %v3561_v24 = vadd.f32 %v12410_v49, %v12706_v51  ;;  %v9028_v33 = vpack.c.bf16 %v8734_v13, %v8734_v13  ;;  %v6496_v31 = vadd.f32 %v6480_v0, %v3569_v17  ;;  %v6657_v34 = vld [vmem:[%s10159_s8] sm:$0xff] (%p9665_p5)   ;;  %v6681_v0 = vld [vmem:[%s10159_s8 + $0x30] sm:$0xff] (%p9665_p5)  }
 0x30f   : > { %vm6509_vm11 = vcmp.gt.f32.partialorder %v6493_v18, 0.2  ;;  %v6462_v32 = vsub.f32 1.0, %v12598_v6  ;;  %vm6507_vm12 = vcmp.gt.f32.partialorder %v6491_v21, 0.2  ;;  %v3572_v30 = vadd.f32 %v12410_v49, %v9423_v44  ;;  %v6677_v18 = vld [vmem:[%s10159_s8 + $0x28] sm:$0xff] (%p9665_p5)   ;;  %6658 = vst [vmem:[%s12844_s20] sm:$0xff] (%p9665_p5), %v6657_v34  }
 0x310   : > { %8727 = vst.msk [vmem:[%s10159_s8 + $0x3b4] sm:$0xf] %vm3719_vm4, %v9021_v27  ;;  %v8737_v52 = vsel %vm6509_vm11, 1.0, %v13134_v19  ;;  %v6465_v29 = vsub.f32 1.0, %v12614_v37  ;;  %8766 = vst.msk [vmem:[%s10159_s8 + $0x3d0] sm:$0xf] %vm3719_vm4, %v9028_v33  ;;  %v3564_v8 = vadd.f32 %v12410_v49, %v3563_v62  ;;  %v3585_v11 = vadd.f32 %v12410_v49, %v9426_v60 }
 0x311   : > { %v9031_v51 = vpack.c.bf16 %v8737_v52, %v8737_v52  ;;  %v8735_v12 = vsel %vm6507_vm12, 1.0, %v13134_v19  ;;  %vm6512_vm13 = vcmp.gt.f32.partialorder %v6496_v31, 0.2  ;;  %v6478_v6 = vmul.f32 %v6462_v32, %v12603_v23  ;;  %6666 = vst [vmem:[%s12844_s20 + $0x10] sm:$0xff] (%p9665_p5), %v6665_v7   ;;  %6670 = vst [vmem:[%s12844_s20 + $0x18] sm:$0xff] (%p9665_p5), %v6669_v20   ;;  %v6685_v27 = vld [vmem:[%s10159_s8 + $0x38] sm:$0xff] (%p9665_p5)  }
 0x312   : > { %v9029_v14 = vpack.c.bf16 %v8735_v12, %v8735_v12  ;;  %v8740_v25 = vsel %vm6512_vm13, 1.0, %v13134_v19  ;;  %v6481_v38 = vmul.f32 %v6465_v29, %v12622_v56  ;;  %v6463_v15 = vsub.f32 1.0, %v12636_v45  ;;  %6678 = vst [vmem:[%s12844_s20 + $0x28] sm:$0xff] (%p9665_p5), %v6677_v18   ;;  %v6689_v13 = vld [vmem:[%s10159_s8 + $0x40] sm:$0xff] (%p9665_p5)   ;;  %6682 = vst [vmem:[%s12844_s20 + $0x30] sm:$0xff] (%p9665_p5), %v6681_v0   ;;  %v6693_v21 = vld [vmem:[%s10159_s8 + $0x48] sm:$0xff] (%p9665_p5)  }
 0x313   : > { %8769 = vst.msk [vmem:[%s10159_s8 + $0x3dc] sm:$0xf] %vm3719_vm4, %v9031_v51  ;;  %v9034_v37 = vpack.c.bf16 %v8740_v25, %v8740_v25  ;;  %v6494_v44 = vadd.f32 %v6478_v6, %v3561_v24  ;;  %v6468_v22 = vsub.f32 1.0, %v12677_v47  ;;  %v3577_v1 = vadd.f32 %v12410_v49, %v3576_v3  ;;  %6686 = vst [vmem:[%s12844_s20 + $0x38] sm:$0xff] (%p9665_p5), %v6685_v27   ;;  %v6697_v24 = vld [vmem:[%s10159_s8 + $0x50] sm:$0xff] (%p9665_p5)   ;;  %v6701_v33 = vld [vmem:[%s10159_s8 + $0x58] sm:$0xff] (%p9665_p5)  }
 0x314   : > { %8767 = vst.msk [vmem:[%s10159_s8 + $0x3d4] sm:$0xf] %vm3719_vm4, %v9029_v14  ;;  %v6497_v23 = vadd.f32 %v6481_v38, %v3572_v30  ;;  %v6466_v56 = vsub.f32 1.0, %v12712_v5  ;;  %v6479_v61 = vmul.f32 %v6463_v15, %v12638_v42  ;;  %v3588_v45 = vadd.f32 %v12410_v49, %v9427_v59  ;;  %v3579_v42 = vpop.f32.mrf.mxu1  ;;  %6690 = vst [vmem:[%s12844_s20 + $0x80] sm:$0xff] (%p9665_p5), %v6689_v13   ;;  %v6705_v31 = vld [vmem:[%s10159_s8 + $0x60] sm:$0xff] (%p9665_p5)   ;;  %v6709_v32 = vld [vmem:[%s10159_s8 + $0x68] sm:$0xff] (%p9665_p5)  }
 0x315   : > { %8772 = vst.msk [vmem:[%s10159_s8 + $0x3e8] sm:$0xf] %vm3719_vm4, %v9034_v37  ;;  %vm6510_vm14 = vcmp.gt.f32.partialorder %v6494_v44, 0.2  ;;  %v6469_v48 = vsub.f32 1.0, %v12740_v9  ;;  %v6484_v47 = vmul.f32 %v6468_v22, %v12686_v43  ;;  %v6451_v9 = vmul.f32 0.25, %v12755_v41 }
 0x316   : > { %v8738_v54 = vsel %vm6510_vm14, 1.0, %v13134_v19  ;;  %vm6513_vm15 = vcmp.gt.f32.partialorder %v6497_v23, 0.2  ;;  %v6482_v26 = vmul.f32 %v6466_v56, %v12718_v63  ;;  %v6495_v16 = vadd.f32 %v6479_v61, %v3564_v8  ;;  %6694 = vst [vmem:[%s12844_s20 + $0x88] sm:$0xff] (%p9665_p5), %v6693_v21   ;;  %6698 = vst [vmem:[%s12844_s20 + $0x90] sm:$0xff] (%p9665_p5), %v6697_v24   ;;  %v6713_v3 = vld [vmem:[%s10159_s8 + $0x70] sm:$0xff] (%p9665_p5)  }
 0x317   : > { %v9032_v55 = vpack.c.bf16 %v8738_v54, %v8738_v54  ;;  %v8741_v5 = vsel %vm6513_vm15, 1.0, %v13134_v19  ;;  %v6485_v62 = vmul.f32 %v6469_v48, %v12742_v50  ;;  %v6500_v10 = vadd.f32 %v6484_v47, %v3585_v11  ;;  %6702 = vst [vmem:[%s12844_s20 + $0x98] sm:$0xff] (%p9665_p5), %v6701_v33   ;;  %6706 = vst [vmem:[%s12844_s20 + $0xa0] sm:$0xff] (%p9665_p5), %v6705_v31   ;;  %v6717_v52 = vld [vmem:[%s10159_s8 + $0x78] sm:$0xff] (%p9665_p5)   ;;  %v6721_v30 = vld [vmem:[%s10159_s8 + $0x80] sm:$0xff] (%p9665_p5)  }
 0x318   : > { %v9035_v53 = vpack.c.bf16 %v8741_v5, %v8741_v5  ;;  %v6498_v39 = vadd.f32 %v6482_v26, %v3577_v1  ;;  %vm6511_vm0 = vcmp.gt.f32.partialorder %v6495_v16, 0.2  ;;  %v6467_v43 = vsub.f32 1.0, %v12770_v35  ;;  %v6673_v35 = vld [vmem:[%s10159_s8 + $0x20] sm:$0xff] (%p9665_p5)   ;;  %6710 = vst [vmem:[%s12844_s20 + $0xa8] sm:$0xff] (%p9665_p5), %v6709_v32   ;;  %6714 = vst [vmem:[%s12844_s20 + $0xb0] sm:$0xff] (%p9665_p5), %v6713_v3  }
 0x319   : > { %8770 = vst.msk [vmem:[%s10159_s8 + $0x3e0] sm:$0xf] %vm3719_vm4, %v9032_v55  ;;  %v6501_v40 = vadd.f32 %v6485_v62, %v3588_v45  ;;  %v8739_v63 = vsel %vm6511_vm0, 1.0, %v13134_v19  ;;  %vm6516_vm1 = vcmp.gt.f32.partialorder %v6500_v10, 0.2  ;;  %v3580_v50 = vadd.f32 %v12410_v49, %v3579_v42  ;;  %6674 = vst [vmem:[%s12844_s20 + $0x20] sm:$0xff] (%p9665_p5), %v6673_v35  }
 0x31a   : > { %8773 = vst.msk [vmem:[%s10159_s8 + $0x3ec] sm:$0xf] %vm3719_vm4, %v9035_v53  ;;  %vm6514_vm3 = vcmp.gt.f32.partialorder %v6498_v39, 0.2  ;;  %v9033_v57 = vpack.c.bf16 %v8739_v63, %v8739_v63  ;;  %v8744_v46 = vsel %vm6516_vm1, 1.0, %v13134_v19  ;;  %v6483_v4 = vmul.f32 %v6467_v43, %v6451_v9  ;;  %v6725_v29 = vld [vmem:[%s10159_s8 + $0x88] sm:$0xff] (%p9665_p5)  }
 0x31b   : > { %v8742_v41 = vsel %vm6514_vm3, 1.0, %v13134_v19  ;;  %vm6517_vm5 = vcmp.gt.f32.partialorder %v6501_v40, 0.2  ;;  %v9038_v36 = vpack.c.bf16 %v8744_v46, %v8744_v46  ;;  %6718 = vst [vmem:[%s12844_s20 + $0xb8] sm:$0xff] (%p9665_p5), %v6717_v52   ;;  %6722 = vst [vmem:[%s12844_s20 + $0x100] sm:$0xff] (%p9665_p5), %v6721_v30   ;;  %v6729_v51 = vld [vmem:[%s10159_s8 + $0x90] sm:$0xff] (%p9665_p5)  }
 0x31c   : > { %v9036_v17 = vpack.c.bf16 %v8742_v41, %v8742_v41  ;;  %v8745_v2 = vsel %vm6517_vm5, 1.0, %v13134_v19  ;;  %8771 = vst.msk [vmem:[%s10159_s8 + $0x3e4] sm:$0xf] %vm3719_vm4, %v9033_v57  ;;  %v6499_v49 = vadd.f32 %v6483_v4, %v3580_v50  ;;  %6726 = vst [vmem:[%s12844_s20 + $0x108] sm:$0xff] (%p9665_p5), %v6725_v29   ;;  %v6733_v12 = vld [vmem:[%s10159_s8 + $0x98] sm:$0xff] (%p9665_p5)   ;;  %v6737_v6 = vld [vmem:[%s10159_s8 + $0xa0] sm:$0xff] (%p9665_p5)  }
 0x31d   : > { %v9039_v28 = vpack.c.bf16 %v8745_v2, %v8745_v2  ;;  %8776 = vst.msk [vmem:[%s10159_s8 + $0x3f8] sm:$0xf] %vm3719_vm4, %v9038_v36  ;;  %6730 = vst [vmem:[%s12844_s20 + $0x110] sm:$0xff] (%p9665_p5), %v6729_v51   ;;  %v6741_v14 = vld [vmem:[%s10159_s8 + $0xa8] sm:$0xff] (%p9665_p5)   ;;  %v6745_v25 = vld [vmem:[%s10159_s8 + $0xb0] sm:$0xff] (%p9665_p5)  }
 0x31e   : > { %8774 = vst.msk [vmem:[%s10159_s8 + $0x3f0] sm:$0xf] %vm3719_vm4, %v9036_v17  ;;  %vm6515_vm6 = vcmp.gt.f32.partialorder %v6499_v49, 0.2  ;;  %6637 = sbr.rel (!%p9665_p5) target bundleno = 855 (0x357), region = 77  ;;  %6734 = vst [vmem:[%s12844_s20 + $0x118] sm:$0xff] (%p9665_p5), %v6733_v12  }
 0x31f   : > { %8777 = vst.msk [vmem:[%s10159_s8 + $0x3fc] sm:$0xf] %vm3719_vm4, %v9039_v28  ;;  %v8743_v58 = vsel %vm6515_vm6, 1.0, %v13134_v19  ;;  %v6661_v19 = vld [vmem:[%s10159_s8 + $0x8] sm:$0xff] (%p9665_p5)   ;;  %6738 = vst [vmem:[%s12844_s20 + $0x120] sm:$0xff] (%p9665_p5), %v6737_v6   ;;  %v6749_v38 = vld [vmem:[%s10159_s8 + $0xb8] sm:$0xff] (%p9665_p5)  }
 0x320   : > { %v9037_v60 = vpack.c.bf16 %v8743_v58, %v8743_v58  ;;  %6662 = vst [vmem:[%s12844_s20 + $0x8] sm:$0xff] (%p9665_p5), %v6661_v19   ;;  %6742 = vst [vmem:[%s12844_s20 + $0x128] sm:$0xff] (%p9665_p5), %v6741_v14   ;;  %v6753_v8 = vld [vmem:[%s10159_s8 + $0xc0] sm:$0xff] (%p9665_p5)   ;;  %v6757_v37 = vld [vmem:[%s10159_s8 + $0xc8] sm:$0xff] (%p9665_p5)  }
 0x321   : > { %6746 = vst [vmem:[%s12844_s20 + $0x130] sm:$0xff] (%p9665_p5), %v6745_v25   ;;  %6750 = vst [vmem:[%s12844_s20 + $0x138] sm:$0xff] (%p9665_p5), %v6749_v38   ;;  %v6761_v44 = vld [vmem:[%s10159_s8 + $0xd0] sm:$0xff] (%p9665_p5)   ;;  %v6765_v15 = vld [vmem:[%s10159_s8 + $0xd8] sm:$0xff] (%p9665_p5)  }
 0x322   : > { %8775 = vst.msk [vmem:[%s10159_s8 + $0x3f4] sm:$0xf] %vm3719_vm4, %v9037_v60  ;;  %6754 = vst [vmem:[%s12844_s20 + $0x180] sm:$0xff] (%p9665_p5), %v6753_v8   ;;  %v6769_v11 = vld [vmem:[%s10159_s8 + $0xe0] sm:$0xff] (%p9665_p5)   ;;  %v6773_v59 = vld [vmem:[%s10159_s8 + $0xe8] sm:$0xff] (%p9665_p5)  }
 0x323   : > { %6758 = vst [vmem:[%s12844_s20 + $0x188] sm:$0xff] %v6757_v37   ;;  %6762 = vst [vmem:[%s12844_s20 + $0x190] sm:$0xff] %v6761_v44   ;;  %v6777_v23 = vld [vmem:[%s10159_s8 + $0xf0] sm:$0xff]   ;;  %v6781_v22 = vld [vmem:[%s10159_s8 + $0xf8] sm:$0xff]  }
 0x324   : > { %6766 = vst [vmem:[%s12844_s20 + $0x198] sm:$0xff] %v6765_v15   ;;  %6770 = vst [vmem:[%s12844_s20 + $0x1a0] sm:$0xff] %v6769_v11   ;;  %v6785_v1 = vld [vmem:[%s10159_s8 + $0x100] sm:$0xff]   ;;  %v6789_v56 = vld [vmem:[%s10159_s8 + $0x108] sm:$0xff]  }
 0x325   : > { %6774 = vst [vmem:[%s12844_s20 + $0x1a8] sm:$0xff] %v6773_v59   ;;  %6778 = vst [vmem:[%s12844_s20 + $0x1b0] sm:$0xff] %v6777_v23   ;;  %v6793_v61 = vld [vmem:[%s10159_s8 + $0x110] sm:$0xff]   ;;  %v6797_v45 = vld [vmem:[%s10159_s8 + $0x118] sm:$0xff]  }
 0x326   : > { %6782 = vst [vmem:[%s12844_s20 + $0x1b8] sm:$0xff] %v6781_v22   ;;  %6786 = vst [vmem:[%s12844_s20 + $0x200] sm:$0xff] %v6785_v1   ;;  %v6801_v48 = vld [vmem:[%s10159_s8 + $0x120] sm:$0xff]   ;;  %v6805_v54 = vld [vmem:[%s10159_s8 + $0x128] sm:$0xff]  }
 0x327   : > { %6790 = vst [vmem:[%s12844_s20 + $0x208] sm:$0xff] %v6789_v56   ;;  %6794 = vst [vmem:[%s12844_s20 + $0x210] sm:$0xff] %v6793_v61   ;;  %v6809_v47 = vld [vmem:[%s10159_s8 + $0x130] sm:$0xff]   ;;  %v6813_v26 = vld [vmem:[%s10159_s8 + $0x138] sm:$0xff]  }
 0x328   : > { %6798 = vst [vmem:[%s12844_s20 + $0x218] sm:$0xff] %v6797_v45   ;;  %6802 = vst [vmem:[%s12844_s20 + $0x220] sm:$0xff] %v6801_v48   ;;  %v6817_v55 = vld [vmem:[%s10159_s8 + $0x140] sm:$0xff]   ;;  %v6821_v5 = vld [vmem:[%s10159_s8 + $0x148] sm:$0xff]  }
 0x329   : > { %6806 = vst [vmem:[%s12844_s20 + $0x228] sm:$0xff] %v6805_v54   ;;  %6810 = vst [vmem:[%s12844_s20 + $0x230] sm:$0xff] %v6809_v47   ;;  %v6825_v16 = vld [vmem:[%s10159_s8 + $0x150] sm:$0xff]   ;;  %v6829_v62 = vld [vmem:[%s10159_s8 + $0x158] sm:$0xff]  }
 0x32a   : > { %6814 = vst [vmem:[%s12844_s20 + $0x238] sm:$0xff] %v6813_v26   ;;  %6818 = vst [vmem:[%s12844_s20 + $0x280] sm:$0xff] %v6817_v55   ;;  %v6833_v42 = vld [vmem:[%s10159_s8 + $0x160] sm:$0xff]   ;;  %v6837_v53 = vld [vmem:[%s10159_s8 + $0x168] sm:$0xff]  }
 0x32b   : > { %6822 = vst [vmem:[%s12844_s20 + $0x288] sm:$0xff] %v6821_v5   ;;  %6826 = vst [vmem:[%s12844_s20 + $0x290] sm:$0xff] %v6825_v16   ;;  %v6841_v10 = vld [vmem:[%s10159_s8 + $0x170] sm:$0xff]   ;;  %v6845_v39 = vld [vmem:[%s10159_s8 + $0x178] sm:$0xff]  }
 0x32c   : > { %6830 = vst [vmem:[%s12844_s20 + $0x298] sm:$0xff] %v6829_v62   ;;  %6834 = vst [vmem:[%s12844_s20 + $0x2a0] sm:$0xff] %v6833_v42   ;;  %v6849_v9 = vld [vmem:[%s10159_s8 + $0x180] sm:$0xff]   ;;  %v6853_v40 = vld [vmem:[%s10159_s8 + $0x188] sm:$0xff]  }
 0x32d   : > { %6838 = vst [vmem:[%s12844_s20 + $0x2a8] sm:$0xff] %v6837_v53   ;;  %6842 = vst [vmem:[%s12844_s20 + $0x2b0] sm:$0xff] %v6841_v10   ;;  %v6857_v43 = vld [vmem:[%s10159_s8 + $0x190] sm:$0xff]   ;;  %v6861_v63 = vld [vmem:[%s10159_s8 + $0x198] sm:$0xff]  }
 0x32e   : > { %6846 = vst [vmem:[%s12844_s20 + $0x2b8] sm:$0xff] %v6845_v39   ;;  %6850 = vst [vmem:[%s12844_s20 + $0x300] sm:$0xff] %v6849_v9   ;;  %v6865_v50 = vld [vmem:[%s10159_s8 + $0x1a0] sm:$0xff]   ;;  %v6869_v57 = vld [vmem:[%s10159_s8 + $0x1a8] sm:$0xff]  }
 0x32f   : > { %6854 = vst [vmem:[%s12844_s20 + $0x308] sm:$0xff] %v6853_v40   ;;  %6858 = vst [vmem:[%s12844_s20 + $0x310] sm:$0xff] %v6857_v43   ;;  %v6873_v46 = vld [vmem:[%s10159_s8 + $0x1b0] sm:$0xff]   ;;  %v6877_v41 = vld [vmem:[%s10159_s8 + $0x1b8] sm:$0xff]  }
 0x330   : > { %6862 = vst [vmem:[%s12844_s20 + $0x318] sm:$0xff] %v6861_v63   ;;  %6866 = vst [vmem:[%s12844_s20 + $0x320] sm:$0xff] %v6865_v50   ;;  %v6881_v36 = vld [vmem:[%s10159_s8 + $0x1c0] sm:$0xff]   ;;  %v6885_v17 = vld [vmem:[%s10159_s8 + $0x1c8] sm:$0xff]  }
 0x331   : > { %6870 = vst [vmem:[%s12844_s20 + $0x328] sm:$0xff] %v6869_v57   ;;  %6874 = vst [vmem:[%s12844_s20 + $0x330] sm:$0xff] %v6873_v46   ;;  %v6889_v2 = vld [vmem:[%s10159_s8 + $0x1d0] sm:$0xff]   ;;  %v6893_v4 = vld [vmem:[%s10159_s8 + $0x1d8] sm:$0xff]  }
 0x332   : > { %6878 = vst [vmem:[%s12844_s20 + $0x338] sm:$0xff] %v6877_v41   ;;  %6882 = vst [vmem:[%s12844_s20 + $0x380] sm:$0xff] %v6881_v36   ;;  %v6897_v28 = vld [vmem:[%s10159_s8 + $0x1e0] sm:$0xff]   ;;  %v6901_v49 = vld [vmem:[%s10159_s8 + $0x1e8] sm:$0xff]  }
 0x333   : > { %6886 = vst [vmem:[%s12844_s20 + $0x388] sm:$0xff] %v6885_v17   ;;  %6890 = vst [vmem:[%s12844_s20 + $0x390] sm:$0xff] %v6889_v2   ;;  %v6905_v58 = vld [vmem:[%s10159_s8 + $0x1f0] sm:$0xff]   ;;  %v6909_v60 = vld [vmem:[%s10159_s8 + $0x1f8] sm:$0xff]  }
 0x334   : > { %6894 = vst [vmem:[%s12844_s20 + $0x398] sm:$0xff] %v6893_v4   ;;  %6898 = vst [vmem:[%s12844_s20 + $0x3a0] sm:$0xff] %v6897_v28   ;;  %v6913_v34 = vld [vmem:[%s10159_s8 + $0x200] sm:$0xff]   ;;  %v6917_v19 = vld [vmem:[%s10159_s8 + $0x208] sm:$0xff]  }
 0x335   : > { %6902 = vst [vmem:[%s12844_s20 + $0x3a8] sm:$0xff] %v6901_v49   ;;  %6906 = vst [vmem:[%s12844_s20 + $0x3b0] sm:$0xff] %v6905_v58   ;;  %v6921_v7 = vld [vmem:[%s10159_s8 + $0x210] sm:$0xff]   ;;  %v6925_v20 = vld [vmem:[%s10159_s8 + $0x218] sm:$0xff]  }
 0x336   : > { %6910 = vst [vmem:[%s12844_s20 + $0x3b8] sm:$0xff] %v6909_v60   ;;  %6914 = vst [vmem:[%s12844_s20 + $0x400] sm:$0xff] %v6913_v34   ;;  %v6929_v35 = vld [vmem:[%s10159_s8 + $0x220] sm:$0xff]   ;;  %v6933_v18 = vld [vmem:[%s10159_s8 + $0x228] sm:$0xff]  }
 0x337   : > { %6918 = vst [vmem:[%s12844_s20 + $0x408] sm:$0xff] %v6917_v19   ;;  %6922 = vst [vmem:[%s12844_s20 + $0x410] sm:$0xff] %v6921_v7   ;;  %v6937_v0 = vld [vmem:[%s10159_s8 + $0x230] sm:$0xff]   ;;  %v6941_v27 = vld [vmem:[%s10159_s8 + $0x238] sm:$0xff]  }
 0x338   : > { %6926 = vst [vmem:[%s12844_s20 + $0x418] sm:$0xff] %v6925_v20   ;;  %6930 = vst [vmem:[%s12844_s20 + $0x420] sm:$0xff] %v6929_v35   ;;  %v6945_v13 = vld [vmem:[%s10159_s8 + $0x240] sm:$0xff]   ;;  %v6949_v21 = vld [vmem:[%s10159_s8 + $0x248] sm:$0xff]  }
 0x339   : > { %6934 = vst [vmem:[%s12844_s20 + $0x428] sm:$0xff] %v6933_v18   ;;  %6938 = vst [vmem:[%s12844_s20 + $0x430] sm:$0xff] %v6937_v0   ;;  %v6953_v24 = vld [vmem:[%s10159_s8 + $0x250] sm:$0xff]   ;;  %v6957_v33 = vld [vmem:[%s10159_s8 + $0x258] sm:$0xff]  }
 0x33a   : > { %6942 = vst [vmem:[%s12844_s20 + $0x438] sm:$0xff] %v6941_v27   ;;  %6946 = vst [vmem:[%s12844_s20 + $0x480] sm:$0xff] %v6945_v13   ;;  %v6961_v31 = vld [vmem:[%s10159_s8 + $0x260] sm:$0xff]   ;;  %v6965_v32 = vld [vmem:[%s10159_s8 + $0x268] sm:$0xff]  }
 0x33b   : > { %6950 = vst [vmem:[%s12844_s20 + $0x488] sm:$0xff] %v6949_v21   ;;  %6954 = vst [vmem:[%s12844_s20 + $0x490] sm:$0xff] %v6953_v24   ;;  %v6969_v3 = vld [vmem:[%s10159_s8 + $0x270] sm:$0xff]   ;;  %v6973_v52 = vld [vmem:[%s10159_s8 + $0x278] sm:$0xff]  }
 0x33c   : > { %6958 = vst [vmem:[%s12844_s20 + $0x498] sm:$0xff] %v6957_v33   ;;  %6962 = vst [vmem:[%s12844_s20 + $0x4a0] sm:$0xff] %v6961_v31   ;;  %v6977_v30 = vld [vmem:[%s10159_s8 + $0x280] sm:$0xff]   ;;  %v6981_v29 = vld [vmem:[%s10159_s8 + $0x288] sm:$0xff]  }
 0x33d   : > { %6966 = vst [vmem:[%s12844_s20 + $0x4a8] sm:$0xff] %v6965_v32   ;;  %6970 = vst [vmem:[%s12844_s20 + $0x4b0] sm:$0xff] %v6969_v3   ;;  %v6985_v51 = vld [vmem:[%s10159_s8 + $0x290] sm:$0xff]   ;;  %v6989_v12 = vld [vmem:[%s10159_s8 + $0x298] sm:$0xff]  }
 0x33e   : > { %6974 = vst [vmem:[%s12844_s20 + $0x4b8] sm:$0xff] %v6973_v52   ;;  %6978 = vst [vmem:[%s12844_s20 + $0x500] sm:$0xff] %v6977_v30   ;;  %v6993_v6 = vld [vmem:[%s10159_s8 + $0x2a0] sm:$0xff]   ;;  %v6997_v14 = vld [vmem:[%s10159_s8 + $0x2a8] sm:$0xff]  }
 0x33f   : > { %6982 = vst [vmem:[%s12844_s20 + $0x508] sm:$0xff] %v6981_v29   ;;  %6986 = vst [vmem:[%s12844_s20 + $0x510] sm:$0xff] %v6985_v51   ;;  %v7001_v25 = vld [vmem:[%s10159_s8 + $0x2b0] sm:$0xff]   ;;  %v7005_v38 = vld [vmem:[%s10159_s8 + $0x2b8] sm:$0xff]  }
 0x340   : > { %6990 = vst [vmem:[%s12844_s20 + $0x518] sm:$0xff] %v6989_v12   ;;  %6994 = vst [vmem:[%s12844_s20 + $0x520] sm:$0xff] %v6993_v6   ;;  %v7009_v8 = vld [vmem:[%s10159_s8 + $0x2c0] sm:$0xff]   ;;  %v7013_v37 = vld [vmem:[%s10159_s8 + $0x2c8] sm:$0xff]  }
 0x341   : > { %6998 = vst [vmem:[%s12844_s20 + $0x528] sm:$0xff] %v6997_v14   ;;  %7002 = vst [vmem:[%s12844_s20 + $0x530] sm:$0xff] %v7001_v25   ;;  %v7017_v44 = vld [vmem:[%s10159_s8 + $0x2d0] sm:$0xff]   ;;  %v7021_v15 = vld [vmem:[%s10159_s8 + $0x2d8] sm:$0xff]  }
 0x342   : > { %7006 = vst [vmem:[%s12844_s20 + $0x538] sm:$0xff] %v7005_v38   ;;  %7010 = vst [vmem:[%s12844_s20 + $0x580] sm:$0xff] %v7009_v8   ;;  %v7025_v11 = vld [vmem:[%s10159_s8 + $0x2e0] sm:$0xff]   ;;  %v7029_v59 = vld [vmem:[%s10159_s8 + $0x2e8] sm:$0xff]  }
 0x343   : > { %7014 = vst [vmem:[%s12844_s20 + $0x588] sm:$0xff] %v7013_v37   ;;  %7018 = vst [vmem:[%s12844_s20 + $0x590] sm:$0xff] %v7017_v44   ;;  %v7033_v23 = vld [vmem:[%s10159_s8 + $0x2f0] sm:$0xff]   ;;  %v7037_v22 = vld [vmem:[%s10159_s8 + $0x2f8] sm:$0xff]  }
 0x344   : > { %7022 = vst [vmem:[%s12844_s20 + $0x598] sm:$0xff] %v7021_v15   ;;  %7026 = vst [vmem:[%s12844_s20 + $0x5a0] sm:$0xff] %v7025_v11   ;;  %v7041_v1 = vld [vmem:[%s10159_s8 + $0x300] sm:$0xff]   ;;  %v7045_v56 = vld [vmem:[%s10159_s8 + $0x308] sm:$0xff]  }
 0x345   : > { %7030 = vst [vmem:[%s12844_s20 + $0x5a8] sm:$0xff] %v7029_v59   ;;  %7034 = vst [vmem:[%s12844_s20 + $0x5b0] sm:$0xff] %v7033_v23   ;;  %v7049_v61 = vld [vmem:[%s10159_s8 + $0x310] sm:$0xff]   ;;  %v7053_v45 = vld [vmem:[%s10159_s8 + $0x318] sm:$0xff]  }
 0x346   : > { %7038 = vst [vmem:[%s12844_s20 + $0x5b8] sm:$0xff] %v7037_v22   ;;  %7042 = vst [vmem:[%s12844_s20 + $0x600] sm:$0xff] %v7041_v1   ;;  %v7057_v48 = vld [vmem:[%s10159_s8 + $0x320] sm:$0xff]   ;;  %v7061_v54 = vld [vmem:[%s10159_s8 + $0x328] sm:$0xff]  }
 0x347   : > { %7046 = vst [vmem:[%s12844_s20 + $0x608] sm:$0xff] %v7045_v56   ;;  %7050 = vst [vmem:[%s12844_s20 + $0x610] sm:$0xff] %v7049_v61   ;;  %v7065_v47 = vld [vmem:[%s10159_s8 + $0x330] sm:$0xff]   ;;  %v7069_v26 = vld [vmem:[%s10159_s8 + $0x338] sm:$0xff]  }
 0x348   : > { %7054 = vst [vmem:[%s12844_s20 + $0x618] sm:$0xff] %v7053_v45   ;;  %7058 = vst [vmem:[%s12844_s20 + $0x620] sm:$0xff] %v7057_v48   ;;  %v7073_v55 = vld [vmem:[%s10159_s8 + $0x340] sm:$0xff]   ;;  %v7077_v5 = vld [vmem:[%s10159_s8 + $0x348] sm:$0xff]  }
 0x349   : > { %7062 = vst [vmem:[%s12844_s20 + $0x628] sm:$0xff] %v7061_v54   ;;  %7066 = vst [vmem:[%s12844_s20 + $0x630] sm:$0xff] %v7065_v47   ;;  %v7081_v16 = vld [vmem:[%s10159_s8 + $0x350] sm:$0xff]   ;;  %v7085_v62 = vld [vmem:[%s10159_s8 + $0x358] sm:$0xff]  }
 0x34a   : > { %7070 = vst [vmem:[%s12844_s20 + $0x638] sm:$0xff] %v7069_v26   ;;  %7074 = vst [vmem:[%s12844_s20 + $0x680] sm:$0xff] %v7073_v55   ;;  %v7089_v42 = vld [vmem:[%s10159_s8 + $0x360] sm:$0xff]   ;;  %v7093_v53 = vld [vmem:[%s10159_s8 + $0x368] sm:$0xff]  }
 0x34b   : > { %7078 = vst [vmem:[%s12844_s20 + $0x688] sm:$0xff] %v7077_v5   ;;  %7082 = vst [vmem:[%s12844_s20 + $0x690] sm:$0xff] %v7081_v16   ;;  %v7097_v10 = vld [vmem:[%s10159_s8 + $0x370] sm:$0xff]   ;;  %v7101_v39 = vld [vmem:[%s10159_s8 + $0x378] sm:$0xff]  }
 0x34c   : > { %7086 = vst [vmem:[%s12844_s20 + $0x698] sm:$0xff] %v7085_v62   ;;  %7090 = vst [vmem:[%s12844_s20 + $0x6a0] sm:$0xff] %v7089_v42   ;;  %v7105_v9 = vld [vmem:[%s10159_s8 + $0x380] sm:$0xff]   ;;  %v7109_v40 = vld [vmem:[%s10159_s8 + $0x388] sm:$0xff]  }
 0x34d   : > { %7094 = vst [vmem:[%s12844_s20 + $0x6a8] sm:$0xff] %v7093_v53   ;;  %7098 = vst [vmem:[%s12844_s20 + $0x6b0] sm:$0xff] %v7097_v10   ;;  %v7113_v43 = vld [vmem:[%s10159_s8 + $0x390] sm:$0xff]   ;;  %v7117_v63 = vld [vmem:[%s10159_s8 + $0x398] sm:$0xff]  }
 0x34e   : > { %7102 = vst [vmem:[%s12844_s20 + $0x6b8] sm:$0xff] %v7101_v39   ;;  %7106 = vst [vmem:[%s12844_s20 + $0x700] sm:$0xff] %v7105_v9   ;;  %v7121_v50 = vld [vmem:[%s10159_s8 + $0x3a0] sm:$0xff]   ;;  %v7125_v57 = vld [vmem:[%s10159_s8 + $0x3a8] sm:$0xff]  }
 0x34f   : > { %7110 = vst [vmem:[%s12844_s20 + $0x708] sm:$0xff] %v7109_v40   ;;  %7114 = vst [vmem:[%s12844_s20 + $0x710] sm:$0xff] %v7113_v43   ;;  %v7129_v46 = vld [vmem:[%s10159_s8 + $0x3b0] sm:$0xff]   ;;  %v7133_v41 = vld [vmem:[%s10159_s8 + $0x3b8] sm:$0xff]  }
 0x350   : > { %7118 = vst [vmem:[%s12844_s20 + $0x718] sm:$0xff] %v7117_v63   ;;  %7122 = vst [vmem:[%s12844_s20 + $0x720] sm:$0xff] %v7121_v50   ;;  %v7137_v36 = vld [vmem:[%s10159_s8 + $0x3c0] sm:$0xff]   ;;  %v7141_v17 = vld [vmem:[%s10159_s8 + $0x3c8] sm:$0xff]  }
 0x351   : > { %7126 = vst [vmem:[%s12844_s20 + $0x728] sm:$0xff] %v7125_v57   ;;  %7130 = vst [vmem:[%s12844_s20 + $0x730] sm:$0xff] %v7129_v46   ;;  %v7145_v2 = vld [vmem:[%s10159_s8 + $0x3d0] sm:$0xff]   ;;  %v7149_v4 = vld [vmem:[%s10159_s8 + $0x3d8] sm:$0xff]  }
 0x352   : > { %7134 = vst [vmem:[%s12844_s20 + $0x738] sm:$0xff] %v7133_v41   ;;  %7138 = vst [vmem:[%s12844_s20 + $0x780] sm:$0xff] %v7137_v36   ;;  %v7153_v28 = vld [vmem:[%s10159_s8 + $0x3e0] sm:$0xff]   ;;  %v7157_v49 = vld [vmem:[%s10159_s8 + $0x3e8] sm:$0xff]  }
 0x353   : > { %7142 = vst [vmem:[%s12844_s20 + $0x788] sm:$0xff] %v7141_v17   ;;  %7146 = vst [vmem:[%s12844_s20 + $0x790] sm:$0xff] %v7145_v2   ;;  %v7161_v58 = vld [vmem:[%s10159_s8 + $0x3f0] sm:$0xff]   ;;  %v7165_v60 = vld [vmem:[%s10159_s8 + $0x3f8] sm:$0xff]  }
 0x354   : > { %7150 = vst [vmem:[%s12844_s20 + $0x798] sm:$0xff] %v7149_v4   ;;  %7154 = vst [vmem:[%s12844_s20 + $0x7a0] sm:$0xff] %v7153_v28  }
 0x355   : > { %7158 = vst [vmem:[%s12844_s20 + $0x7a8] sm:$0xff] %v7157_v49   ;;  %7162 = vst [vmem:[%s12844_s20 + $0x7b0] sm:$0xff] %v7161_v58  }
 0x356   : > { %7166 = vst [vmem:[%s12844_s20 + $0x7b8] sm:$0xff] %v7165_v60  }
 0x357 PF: > { %p10_p10 = scmp.ge.s32.totalorder %s9652_s16, 4   ;;  %s13285_s12 = smov %s9607_s13 }
 0x358   : > { %s13286_s13 = smov %s9663_s19  ;;  %s13287_s14 = smov %s9652_s16 }
 0x359   :  { %12 = sbr.rel (!%p10_p10) target bundleno = 2 (0x2), region = 164 }

</bundles_post_ra>
